<compile_context>
chip_gen: v7x
topology: tpu7x:2x2x1
jax: 0.10.0
libtpu: 0.0.40
codegen_flags: <defaults>
</compile_context>

<pallas_src>
import jax
import jax.numpy as jnp
import numpy as np
from jax import lax
from jax.experimental import pallas as pl
from jax.experimental.pallas import tpu as pltpu

# Set to jnp.bfloat16 on v6e/v7x if the accuracy budget allows: weights are
# cast in the wrapper, patches are cast right before the MXU dot;
# bias / PReLU / residual math stays f32 (v5e has no bf16 VPU).
_DOT_DTYPE = jnp.float32


# ----------------------------------------------------------------------------
# Phase-space weight packing (runs in XLA outside the kernel; tiny).
# ----------------------------------------------------------------------------
def _build_up_phase_weight(up_w):
    """ConvTranspose3d(k=3, s=2, p=1, op=1) weight (Cin, Cu, 3,3,3) -> combined
    phase-space matrix (8*Cin, 8*Cu).
    Rows = (off_d, off_h, off_w, cin) with offsets in {0,1} (far-end zero pad);
    cols = (phase_d, phase_h, phase_w, cu).
    Per-dim taps: even phase -> x[d+0]*W[k=1];  odd -> x[d+0]*W[k=2] + x[d+1]*W[k=0]."""
    Cin, Cu = up_w.shape[0], up_w.shape[1]
    s = np.zeros((2, 2, 3), np.float32)          # [phase, offset, k]
    s[0, 0, 1] = 1.0
    s[1, 0, 2] = 1.0
    s[1, 1, 0] = 1.0
    w = jnp.einsum('pai,qbj,rck,nmijk->abcnpqrm', s, s, s, up_w,
                   precision=lax.Precision.HIGHEST)
    return w.reshape(8 * Cin, 8 * Cu)


def _build_conv_phase_weight(w):
    """Conv3d("same", k=3, p=1) weight (Cout, Cin, 3,3,3) -> phase-space im2col
    matrix (27*8*Cin, 8*Cout).
    Output phase q at coarse d reads input phase r at coarse d + a - 1 through
    fine tap k = 2*a + r - q - 1 (a in {0,1,2} is the coarse tap index).
    Rows = (tap_d, tap_h, tap_w, rph_d, rph_h, rph_w, cin); cols = (qph, cout)."""
    s = np.zeros((2, 3, 2, 3), np.float32)       # [q, a, r, k]
    for q in range(2):
        for a in range(3):
            for r in range(2):
                k = 2 * a + r - q - 1
                if 0 <= k <= 2:
                    s[q, a, r, k] = 1.0
    Cout, Cin = w.shape[0], w.shape[1]
    wc = jnp.einsum('paui,qbvj,rcwk,onijk->abcuvwnpqro', s, s, s, w,
                    precision=lax.Precision.HIGHEST)
    return wc.reshape(27 * 8 * Cin, 8 * Cout)


# ----------------------------------------------------------------------------
# Fused kernel: up (sub-pixel) + conv0 (fused concat) + residual blocks.
# All intermediates stay in VMEM; one batch element per grid step.
# ----------------------------------------------------------------------------
def _fused_kernel(x_ref, br_ref, wup_ref, bup_ref, w0u_ref, w0b_ref,
                  b0_ref, a0_ref, wr_ref, rb_ref, ra_ref, o_ref,
                  xp_ref, pu_ref, pada_ref, padb_ref, pata_ref, patb_ref):
    D, H, W, Cin = x_ref.shape
    Ca = pada_ref.shape[-1]          # 8 * C_up  (== 8 * C_out)
    Cb = padb_ref.shape[-1]          # 8 * C_bridge
    R = wr_ref.shape[0]
    DHW = D * H * W
    dot_dt = _DOT_DTYPE

    def zero_halo(p, C):
        # Zero only the 1-voxel halo slabs (interior is rewritten every step).
        p[0:1, :, :, :] = jnp.zeros((1, H + 2, W + 2, C), p.dtype)
        p[D + 1:D + 2, :, :, :] = jnp.zeros((1, H + 2, W + 2, C), p.dtype)
        p[:, 0:1, :, :] = jnp.zeros((D + 2, 1, W + 2, C), p.dtype)
        p[:, H + 1:H + 2, :, :] = jnp.zeros((D + 2, 1, W + 2, C), p.dtype)
        p[:, :, 0:1, :] = jnp.zeros((D + 2, H + 2, 1, C), p.dtype)
        p[:, :, W + 1:W + 2, :] = jnp.zeros((D + 2, H + 2, 1, C), p.dtype)

    def im2col(pad, patch, C):
        # Fold the 27 coarse taps into the matmul contraction dim.
        for a in range(3):
            for b in range(3):
                for c in range(3):
                    t = (a * 3 + b) * 3 + c
                    patch[:, t * C:(t + 1) * C] = (
                        pad[a:a + D, b:b + H, c:c + W, :].reshape(DHW, C))

    # ---- transposed conv: sub-pixel phases folded into the matmul N dim ----
    # far-end 1-voxel zero pad for the odd-phase x[d+1] taps
    xp_ref[D:D + 1, :, :, :] = jnp.zeros((1, H + 1, W + 1, Cin), xp_ref.dtype)
    xp_ref[:, H:H + 1, :, :] = jnp.zeros((D + 1, 1, W + 1, Cin), xp_ref.dtype)
    xp_ref[:, :, W:W + 1, :] = jnp.zeros((D + 1, H + 1, 1, Cin), xp_ref.dtype)
    xp_ref[0:D, 0:H, 0:W, :] = x_ref[...]
    for od in range(2):
        for oh in range(2):
            for ow in range(2):
                t = (od * 2 + oh) * 2 + ow
                pu_ref[:, t * Cin:(t + 1) * Cin] = (
                    xp_ref[od:od + D, oh:oh + H, ow:ow + W, :].reshape(DHW, Cin))
    up = jnp.dot(pu_ref[...].astype(dot_dt), wup_ref[...],
                 preferred_element_type=jnp.float32) + bup_ref[...]
    # up: (DHW, 8*Cu); channel order (phase, cu) == phase-space layout.

    # ---- conv0 over the fused concat [up, bridge], in phase space ----------
    zero_halo(pada_ref, Ca)
    zero_halo(padb_ref, Cb)
    pada_ref[1:D + 1, 1:H + 1, 1:W + 1, :] = up.reshape(D, H, W, Ca)
    padb_ref[1:D + 1, 1:H + 1, 1:W + 1, :] = br_ref[...]
    im2col(pada_ref, pata_ref, Ca)
    im2col(padb_ref, patb_ref, Cb)
    h = jnp.dot(pata_ref[...].astype(dot_dt), w0u_ref[...],
                preferred_element_type=jnp.float32)
    h = h + jnp.dot(patb_ref[...].astype(dot_dt), w0b_ref[...],
                    preferred_element_type=jnp.float32)
    h = h + b0_ref[...]
    h = jnp.where(h > 0, h, a0_ref[0] * h)          # PReLU (shared alpha)

    # ---- residual blocks: conv + PReLU + add, fully VMEM-resident ----------
    for rblk in range(R):
        pada_ref[1:D + 1, 1:H + 1, 1:W + 1, :] = h.reshape(D, H, W, Ca)
        im2col(pada_ref, pata_ref, Ca)
        y = jnp.dot(pata_ref[...].astype(dot_dt), wr_ref[rblk],
                    preferred_element_type=jnp.float32)
        y = y + rb_ref[rblk]
        y = jnp.where(y > 0, y, ra_ref[rblk] * y)
        h = y + h

    o_ref[...] = h.reshape(D, H, W, Ca).astype(o_ref.dtype)


# ----------------------------------------------------------------------------
# UNetUpBlock forward (PyTorch NCDHW at the boundary).
# ----------------------------------------------------------------------------
def unet_up_block_forward(x, bridge, params):
    """x: (N, C_in, D, H, W); bridge: (N, C_in - C_out, 2D, 2H, 2W)."""
    N, Cin, D, H, W = x.shape
    Cu = params["up_b"].shape[0]              # out_size (up output channels)
    Cbr = Cin - Cu
    Cout = params["conv0_b"].shape[0]         # == out_size
    Ca, Cb = 8 * Cu, 8 * Cbr
    R = len(params["res_blocks"])
    DHW = D * H * W

    # --- inputs to channels-last phase space (the only XLA data movement) ---
    x_c = jnp.transpose(x, (0, 2, 3, 4, 1))                        # (N,D,H,W,Cin)
    br = bridge.reshape(N, Cbr, D, 2, H, 2, W, 2)
    br_ph = jnp.transpose(br, (0, 2, 4, 6, 3, 5, 7, 1)).reshape(N, D, H, W, Cb)

    # --- pre-packed phase-space weights (constant index maps in the kernel) -
    wup = _build_up_phase_weight(params["up_w"]).astype(_DOT_DTYPE)
    bup = jnp.tile(params["up_b"], 8).reshape(1, Ca)
    w0 = params["conv0_w"]
    w0u = _build_conv_phase_weight(w0[:, :Cu]).astype(_DOT_DTYPE)
    w0b = _build_conv_phase_weight(w0[:, Cu:]).astype(_DOT_DTYPE)
    b0 = jnp.tile(params["conv0_b"], 8).reshape(1, 8 * Cout)
    a0 = jnp.reshape(jnp.asarray(params["conv0_a"], jnp.float32), (1,))
    wr = jnp.stack([_build_conv_phase_weight(rw)
                    for (rw, _, _) in params["res_blocks"]]).astype(_DOT_DTYPE)
    rb = jnp.stack([jnp.tile(b, 8) for (_, b, _) in params["res_blocks"]])
    rb = rb.reshape(R, 1, 8 * Cout)
    ra = jnp.stack([jnp.asarray(a, jnp.float32).reshape(())
                    for (_, _, a) in params["res_blocks"]])

    flops = 2 * DHW * (8 * Cin) * Ca
    flops += 2 * DHW * (27 * Ca) * (8 * Cout)
    flops += 2 * DHW * (27 * Cb) * (8 * Cout)
    flops += R * 2 * DHW * (27 * Ca) * (8 * Cout)
    flops *= N
    bytes_accessed = 4 * (x_c.size + br_ph.size + N * DHW * 8 * Cout
                          + wup.size + w0u.size + w0b.size + wr.size
                          + bup.size + b0.size + rb.size)

    out_ph = pl.pallas_call(
        _fused_kernel,
        grid=(N,),
        in_specs=[
            pl.BlockSpec((None, D, H, W, Cin), lambda n: (n, 0, 0, 0, 0)),
            pl.BlockSpec((None, D, H, W, Cb), lambda n: (n, 0, 0, 0, 0)),
            pl.BlockSpec((8 * Cin, Ca), lambda n: (0, 0)),
            pl.BlockSpec((1, Ca), lambda n: (0, 0)),
            pl.BlockSpec((27 * Ca, 8 * Cout), lambda n: (0, 0)),
            pl.BlockSpec((27 * Cb, 8 * Cout), lambda n: (0, 0)),
            pl.BlockSpec((1, 8 * Cout), lambda n: (0, 0)),
            pl.BlockSpec(memory_space=pltpu.MemorySpace.SMEM),
            pl.BlockSpec((R, 27 * Ca, 8 * Cout), lambda n: (0, 0, 0)),
            pl.BlockSpec((R, 1, 8 * Cout), lambda n: (0, 0, 0)),
            pl.BlockSpec(memory_space=pltpu.MemorySpace.SMEM),
        ],
        out_specs=pl.BlockSpec((None, D, H, W, 8 * Cout),
                               lambda n: (n, 0, 0, 0, 0)),
        out_shape=jax.ShapeDtypeStruct((N, D, H, W, 8 * Cout), jnp.float32),
        scratch_shapes=[
            pltpu.VMEM((D + 1, H + 1, W + 1, Cin), jnp.float32),   # padded x
            pltpu.VMEM((DHW, 8 * Cin), jnp.float32),               # up patch
            pltpu.VMEM((D + 2, H + 2, W + 2, Ca), jnp.float32),    # up/h padded
            pltpu.VMEM((D + 2, H + 2, W + 2, Cb), jnp.float32),    # bridge padded
            pltpu.VMEM((DHW, 27 * Ca), jnp.float32),               # im2col A
            pltpu.VMEM((DHW, 27 * Cb), jnp.float32),               # im2col B
        ],
        compiler_params=pltpu.CompilerParams(
            dimension_semantics=("parallel",)),
        cost_estimate=pl.CostEstimate(flops=flops, transcendentals=0,
                                      bytes_accessed=bytes_accessed),
    )(x_c, br_ph, wup, bup, w0u, w0b, b0, a0, wr, rb, ra)

    # Phase de-interleave folded into the NDHWC -> NCDHW transpose that is
    # required anyway (single XLA pass over the output).
    out = out_ph.reshape(N, D, H, W, 2, 2, 2, Cout)
    out = jnp.transpose(out, (0, 7, 1, 4, 2, 5, 3, 6))
    return out.reshape(N, Cout, 2 * D, 2 * H, 2 * W)


# ---------------- pure-JAX reference (lax convs) for correctness check -------
def _prelu(x, a):
    return jnp.where(x > 0, x, a * x)


def ref_forward(x, bridge, params):
    dn = ("NCDHW", "OIDHW", "NCDHW")
    w_up_conv = jnp.transpose(params["up_w"][:, :, ::-1, ::-1, ::-1],
                              (1, 0, 2, 3, 4))
    up = lax.conv_general_dilated(x, w_up_conv, (1, 1, 1), [(1, 2)] * 3,
                                  lhs_dilation=(2, 2, 2), dimension_numbers=dn)
    up = up + params["up_b"][None, :, None, None, None]
    cat = jnp.concatenate([up, bridge], axis=1)
    h = lax.conv_general_dilated(cat, params["conv0_w"], (1, 1, 1),
                                 [(1, 1)] * 3, dimension_numbers=dn)
    h = _prelu(h + params["conv0_b"][None, :, None, None, None],
               params["conv0_a"])
    for (rw, rb, ra) in params["res_blocks"]:
        y = lax.conv_general_dilated(h, rw, (1, 1, 1), [(1, 1)] * 3,
                                     dimension_numbers=dn)
        y = _prelu(y + rb[None, :, None, None, None], ra)
        h = y + h
    return h


if __name__ == "__main__":
    key = jax.random.PRNGKey(0)
    in_size, out_size, num = 4, 2, 2
    N, D, H, W = 2, 4, 4, 4

    ks = jax.random.split(key, 8)
    params = {
        # ConvTranspose3d weight: (C_in, C_out, 3, 3, 3), bias (C_out,)
        "up_w": 0.1 * jax.random.normal(ks[0], (in_size, out_size, 3, 3, 3),
                                        jnp.float32),
        "up_b": 0.1 * jax.random.normal(ks[1], (out_size,), jnp.float32),
        # Conv3d weight: (C_out, C_in, 3, 3, 3), bias (C_out,), PReLU alpha
        "conv0_w": 0.1 * jax.random.normal(ks[2], (out_size, in_size, 3, 3, 3),
                                           jnp.float32),
        "conv0_b": 0.1 * jax.random.normal(ks[3], (out_size,), jnp.float32),
        "conv0_a": jnp.float32(0.25),
        "res_blocks": [
            (0.1 * jax.random.normal(ks[4], (out_size, out_size, 3, 3, 3),
                                     jnp.float32),
             0.1 * jax.random.normal(ks[5], (out_size,), jnp.float32),
             jnp.float32(0.25))
            for _ in range(max(num - 1, 1))
        ],
    }

    x = jax.random.normal(ks[6], (N, in_size, D, H, W), jnp.float32)
    bridge = jax.random.normal(ks[7],
                               (N, in_size - out_size, 2 * D, 2 * H, 2 * W),
                               jnp.float32)

    out = jax.jit(unet_up_block_forward)(x, bridge, params)
    out = jax.block_until_ready(out)

    ref = ref_forward(x, bridge, params)
    assert out.shape == (N, out_size, 2 * D, 2 * H, 2 * W), out.shape
    err = float(jnp.max(jnp.abs(out - ref)))
    if err > 1e-3:
        raise AssertionError(f"mismatch vs reference, max abs err = {err}")
    print("KERNEL_OK")
</pallas_src>

<mosaic_0001>
module attributes {stable_mosaic.version = 11 : i64} {
  func.func @_fused_kernel(%arg0: i32, %arg1: memref<1x4x4x4x4xf32, #tpu.memory_space<vmem>>, %arg2: memref<1x4x4x4x16xf32, #tpu.memory_space<vmem>>, %arg3: memref<32x16xf32, #tpu.memory_space<vmem>>, %arg4: memref<1x16xf32, #tpu.memory_space<vmem>>, %arg5: memref<432x16xf32, #tpu.memory_space<vmem>>, %arg6: memref<432x16xf32, #tpu.memory_space<vmem>>, %arg7: memref<1x16xf32, #tpu.memory_space<vmem>>, %arg8: memref<1xf32, #tpu.memory_space<smem>>, %arg9: memref<1x432x16xf32, #tpu.memory_space<vmem>>, %arg10: memref<1x1x16xf32, #tpu.memory_space<vmem>>, %arg11: memref<1xf32, #tpu.memory_space<smem>>, %arg12: memref<1x4x4x4x16xf32, #tpu.memory_space<vmem>>, %arg13: memref<5x5x5x4xf32, #tpu.memory_space<vmem>>, %arg14: memref<64x32xf32, #tpu.memory_space<vmem>>, %arg15: memref<6x6x6x16xf32, #tpu.memory_space<vmem>>, %arg16: memref<6x6x6x16xf32, #tpu.memory_space<vmem>>, %arg17: memref<64x432xf32, #tpu.memory_space<vmem>>, %arg18: memref<64x432xf32, #tpu.memory_space<vmem>>) attributes {dimension_semantics = [#tpu.dimension_semantics<parallel>], iteration_bounds = array<i64: 2>, scalar_prefetch = 0 : i64, scratch_operands = 6 : i64, tpu.core_type = #tpu.core_type<tc>, window_params = [{transform_indices = @transform_0, window_bounds = array<i64: 1, 4, 4, 4, 4>}, {transform_indices = @transform_1, window_bounds = array<i64: 1, 4, 4, 4, 16>}, {pipeline_mode = #tpu.pipeline_mode<synchronous>, transform_indices = @transform_2, window_bounds = array<i64: 32, 16>}, {pipeline_mode = #tpu.pipeline_mode<synchronous>, transform_indices = @transform_3, window_bounds = array<i64: 1, 16>}, {pipeline_mode = #tpu.pipeline_mode<synchronous>, transform_indices = @transform_4, window_bounds = array<i64: 432, 16>}, {pipeline_mode = #tpu.pipeline_mode<synchronous>, transform_indices = @transform_5, window_bounds = array<i64: 432, 16>}, {pipeline_mode = #tpu.pipeline_mode<synchronous>, transform_indices = @transform_6, window_bounds = array<i64: 1, 16>}, {transform_indices = @transform_7, window_bounds = array<i64: 1>}, {pipeline_mode = #tpu.pipeline_mode<synchronous>, transform_indices = @transform_8, window_bounds = array<i64: 1, 432, 16>}, {pipeline_mode = #tpu.pipeline_mode<synchronous>, transform_indices = @transform_9, window_bounds = array<i64: 1, 1, 16>}, {transform_indices = @transform_10, window_bounds = array<i64: 1>}, {transform_indices = @transform_11, window_bounds = array<i64: 1, 4, 4, 4, 16>}]} {
    %cst = arith.constant 0.000000e+00 : f32
    %0 = vector.broadcast %cst : f32 to vector<1x5x5x4xf32>
    %c4 = arith.constant 4 : index
    %c0 = arith.constant 0 : index
    %c0_0 = arith.constant 0 : index
    %c0_1 = arith.constant 0 : index
    %1 = vector.load %arg13[%c4, %c0, %c0_0, %c0_1] : memref<5x5x5x4xf32, #tpu.memory_space<vmem>>, vector<1x5x5x4xf32>
    tpu.vector_store %arg13[%c4, %c0, %c0_0, %c0_1], %0 {strides = array<i32>} : memref<5x5x5x4xf32, #tpu.memory_space<vmem>>, vector<1x5x5x4xf32>,
    %cst_2 = arith.constant 0.000000e+00 : f32
    %2 = vector.broadcast %cst_2 : f32 to vector<5x1x5x4xf32>
    %c0_3 = arith.constant 0 : index
    %c4_4 = arith.constant 4 : index
    %c0_5 = arith.constant 0 : index
    %c0_6 = arith.constant 0 : index
    %3 = vector.load %arg13[%c0_3, %c4_4, %c0_5, %c0_6] : memref<5x5x5x4xf32, #tpu.memory_space<vmem>>, vector<5x1x5x4xf32>
    tpu.vector_store %arg13[%c0_3, %c4_4, %c0_5, %c0_6], %2 {strides = array<i32>} : memref<5x5x5x4xf32, #tpu.memory_space<vmem>>, vector<5x1x5x4xf32>,
    %cst_7 = arith.constant 0.000000e+00 : f32
    %4 = vector.broadcast %cst_7 : f32 to vector<5x5x1x4xf32>
    %c0_8 = arith.constant 0 : index
    %c0_9 = arith.constant 0 : index
    %c4_10 = arith.constant 4 : index
    %c0_11 = arith.constant 0 : index
    %5 = vector.load %arg13[%c0_8, %c0_9, %c4_10, %c0_11] : memref<5x5x5x4xf32, #tpu.memory_space<vmem>>, vector<5x5x1x4xf32>
    tpu.vector_store %arg13[%c0_8, %c0_9, %c4_10, %c0_11], %4 {strides = array<i32>} : memref<5x5x5x4xf32, #tpu.memory_space<vmem>>, vector<5x5x1x4xf32>,
    %c0_12 = arith.constant 0 : index
    %c0_13 = arith.constant 0 : index
    %c0_14 = arith.constant 0 : index
    %c0_15 = arith.constant 0 : index
    %c0_16 = arith.constant 0 : index
    %6 = vector.load %arg1[%c0_12, %c0_13, %c0_14, %c0_15, %c0_16] : memref<1x4x4x4x4xf32, #tpu.memory_space<vmem>>, vector<1x4x4x4x4xf32>
    %7 = vector.shape_cast %6 : vector<1x4x4x4x4xf32> to vector<4x4x4x4xf32>
    %c0_17 = arith.constant 0 : index
    %c0_18 = arith.constant 0 : index
    %c0_19 = arith.constant 0 : index
    %c0_20 = arith.constant 0 : index
    %8 = vector.load %arg13[%c0_17, %c0_18, %c0_19, %c0_20] : memref<5x5x5x4xf32, #tpu.memory_space<vmem>>, vector<4x4x4x4xf32>
    tpu.vector_store %arg13[%c0_17, %c0_18, %c0_19, %c0_20], %7 {strides = array<i32>} : memref<5x5x5x4xf32, #tpu.memory_space<vmem>>, vector<4x4x4x4xf32>,
    %c0_21 = arith.constant 0 : index
    %c0_22 = arith.constant 0 : index
    %c0_23 = arith.constant 0 : index
    %c0_24 = arith.constant 0 : index
    %9 = vector.load %arg13[%c0_21, %c0_22, %c0_23, %c0_24] : memref<5x5x5x4xf32, #tpu.memory_space<vmem>>, vector<4x4x4x4xf32>
    %10 = vector.shape_cast %9 : vector<4x4x4x4xf32> to vector<64x4xf32>
    %c0_25 = arith.constant 0 : index
    %c0_26 = arith.constant 0 : index
    %11 = vector.load %arg14[%c0_25, %c0_26] : memref<64x32xf32, #tpu.memory_space<vmem>>, vector<64x4xf32>
    tpu.vector_store %arg14[%c0_25, %c0_26], %10 {strides = array<i32>} : memref<64x32xf32, #tpu.memory_space<vmem>>, vector<64x4xf32>,
    %c0_27 = arith.constant 0 : index
    %c0_28 = arith.constant 0 : index
    %c1 = arith.constant 1 : index
    %c0_29 = arith.constant 0 : index
    %12 = vector.load %arg13[%c0_27, %c0_28, %c1, %c0_29] : memref<5x5x5x4xf32, #tpu.memory_space<vmem>>, vector<4x4x4x4xf32>
    %13 = vector.shape_cast %12 : vector<4x4x4x4xf32> to vector<64x4xf32>
    %c0_30 = arith.constant 0 : index
    %c4_31 = arith.constant 4 : index
    %14 = vector.load %arg14[%c0_30, %c4_31] : memref<64x32xf32, #tpu.memory_space<vmem>>, vector<64x4xf32>
    tpu.vector_store %arg14[%c0_30, %c4_31], %13 {strides = array<i32>} : memref<64x32xf32, #tpu.memory_space<vmem>>, vector<64x4xf32>,
    %c0_32 = arith.constant 0 : index
    %c1_33 = arith.constant 1 : index
    %c0_34 = arith.constant 0 : index
    %c0_35 = arith.constant 0 : index
    %15 = vector.load %arg13[%c0_32, %c1_33, %c0_34, %c0_35] : memref<5x5x5x4xf32, #tpu.memory_space<vmem>>, vector<4x4x4x4xf32>
    %16 = vector.shape_cast %15 : vector<4x4x4x4xf32> to vector<64x4xf32>
    %c0_36 = arith.constant 0 : index
    %c8 = arith.constant 8 : index
    %17 = vector.load %arg14[%c0_36, %c8] : memref<64x32xf32, #tpu.memory_space<vmem>>, vector<64x4xf32>
    tpu.vector_store %arg14[%c0_36, %c8], %16 {strides = array<i32>} : memref<64x32xf32, #tpu.memory_space<vmem>>, vector<64x4xf32>,
    %c0_37 = arith.constant 0 : index
    %c1_38 = arith.constant 1 : index
    %c1_39 = arith.constant 1 : index
    %c0_40 = arith.constant 0 : index
    %18 = vector.load %arg13[%c0_37, %c1_38, %c1_39, %c0_40] : memref<5x5x5x4xf32, #tpu.memory_space<vmem>>, vector<4x4x4x4xf32>
    %19 = vector.shape_cast %18 : vector<4x4x4x4xf32> to vector<64x4xf32>
    %c0_41 = arith.constant 0 : index
    %c12 = arith.constant 12 : index
    %20 = vector.load %arg14[%c0_41, %c12] : memref<64x32xf32, #tpu.memory_space<vmem>>, vector<64x4xf32>
    tpu.vector_store %arg14[%c0_41, %c12], %19 {strides = array<i32>} : memref<64x32xf32, #tpu.memory_space<vmem>>, vector<64x4xf32>,
    %c1_42 = arith.constant 1 : index
    %c0_43 = arith.constant 0 : index
    %c0_44 = arith.constant 0 : index
    %c0_45 = arith.constant 0 : index
    %21 = vector.load %arg13[%c1_42, %c0_43, %c0_44, %c0_45] : memref<5x5x5x4xf32, #tpu.memory_space<vmem>>, vector<4x4x4x4xf32>
    %22 = vector.shape_cast %21 : vector<4x4x4x4xf32> to vector<64x4xf32>
    %c0_46 = arith.constant 0 : index
    %c16 = arith.constant 16 : index
    %23 = vector.load %arg14[%c0_46, %c16] : memref<64x32xf32, #tpu.memory_space<vmem>>, vector<64x4xf32>
    tpu.vector_store %arg14[%c0_46, %c16], %22 {strides = array<i32>} : memref<64x32xf32, #tpu.memory_space<vmem>>, vector<64x4xf32>,
    %c1_47 = arith.constant 1 : index
    %c0_48 = arith.constant 0 : index
    %c1_49 = arith.constant 1 : index
    %c0_50 = arith.constant 0 : index
    %24 = vector.load %arg13[%c1_47, %c0_48, %c1_49, %c0_50] : memref<5x5x5x4xf32, #tpu.memory_space<vmem>>, vector<4x4x4x4xf32>
    %25 = vector.shape_cast %24 : vector<4x4x4x4xf32> to vector<64x4xf32>
    %c0_51 = arith.constant 0 : index
    %c20 = arith.constant 20 : index
    %26 = vector.load %arg14[%c0_51, %c20] : memref<64x32xf32, #tpu.memory_space<vmem>>, vector<64x4xf32>
    tpu.vector_store %arg14[%c0_51, %c20], %25 {strides = array<i32>} : memref<64x32xf32, #tpu.memory_space<vmem>>, vector<64x4xf32>,
    %c1_52 = arith.constant 1 : index
    %c1_53 = arith.constant 1 : index
    %c0_54 = arith.constant 0 : index
    %c0_55 = arith.constant 0 : index
    %27 = vector.load %arg13[%c1_52, %c1_53, %c0_54, %c0_55] : memref<5x5x5x4xf32, #tpu.memory_space<vmem>>, vector<4x4x4x4xf32>
    %28 = vector.shape_cast %27 : vector<4x4x4x4xf32> to vector<64x4xf32>
    %c0_56 = arith.constant 0 : index
    %c24 = arith.constant 24 : index
    %29 = vector.load %arg14[%c0_56, %c24] : memref<64x32xf32, #tpu.memory_space<vmem>>, vector<64x4xf32>
    tpu.vector_store %arg14[%c0_56, %c24], %28 {strides = array<i32>} : memref<64x32xf32, #tpu.memory_space<vmem>>, vector<64x4xf32>,
    %c1_57 = arith.constant 1 : index
    %c1_58 = arith.constant 1 : index
    %c1_59 = arith.constant 1 : index
    %c0_60 = arith.constant 0 : index
    %30 = vector.load %arg13[%c1_57, %c1_58, %c1_59, %c0_60] : memref<5x5x5x4xf32, #tpu.memory_space<vmem>>, vector<4x4x4x4xf32>
    %31 = vector.shape_cast %30 : vector<4x4x4x4xf32> to vector<64x4xf32>
    %c0_61 = arith.constant 0 : index
    %c28 = arith.constant 28 : index
    %32 = vector.load %arg14[%c0_61, %c28] : memref<64x32xf32, #tpu.memory_space<vmem>>, vector<64x4xf32>
    tpu.vector_store %arg14[%c0_61, %c28], %31 {strides = array<i32>} : memref<64x32xf32, #tpu.memory_space<vmem>>, vector<64x4xf32>,
    %c0_62 = arith.constant 0 : index
    %c0_63 = arith.constant 0 : index
    %33 = vector.load %arg14[%c0_62, %c0_63] : memref<64x32xf32, #tpu.memory_space<vmem>>, vector<64x32xf32>
    %c0_64 = arith.constant 0 : index
    %c0_65 = arith.constant 0 : index
    %34 = vector.load %arg3[%c0_64, %c0_65] : memref<32x16xf32, #tpu.memory_space<vmem>>, vector<32x16xf32>
    %cst_66 = arith.constant dense<0.000000e+00> : vector<64x16xf32>
    %35 = tpu.matmul %33, %34, %cst_66 {dimension_numbers = #tpu.dot_dimension_numbers<[1], [0], [0], [1], [0, 0, 1, 1], [], []>} : vector<64x32xf32>, vector<32x16xf32>, vector<64x16xf32> -> vector<64x16xf32>
    %c0_67 = arith.constant 0 : index
    %c0_68 = arith.constant 0 : index
    %36 = vector.load %arg4[%c0_67, %c0_68] : memref<1x16xf32, #tpu.memory_space<vmem>>, vector<1x16xf32>
    %37 = vector.broadcast %36 : vector<1x16xf32> to vector<64x16xf32>
    %38 = arith.addf %35, %37 : vector<64x16xf32>
    %cst_69 = arith.constant 0.000000e+00 : f32
    %39 = vector.broadcast %cst_69 : f32 to vector<1x6x6x16xf32>
    %c0_70 = arith.constant 0 : index
    %c0_71 = arith.constant 0 : index
    %c0_72 = arith.constant 0 : index
    %c0_73 = arith.constant 0 : index
    %40 = vector.load %arg15[%c0_70, %c0_71, %c0_72, %c0_73] : memref<6x6x6x16xf32, #tpu.memory_space<vmem>>, vector<1x6x6x16xf32>
    tpu.vector_store %arg15[%c0_70, %c0_71, %c0_72, %c0_73], %39 {strides = array<i32>} : memref<6x6x6x16xf32, #tpu.memory_space<vmem>>, vector<1x6x6x16xf32>,
    %cst_74 = arith.constant 0.000000e+00 : f32
    %41 = vector.broadcast %cst_74 : f32 to vector<1x6x6x16xf32>
    %c5 = arith.constant 5 : index
    %c0_75 = arith.constant 0 : index
    %c0_76 = arith.constant 0 : index
    %c0_77 = arith.constant 0 : index
    %42 = vector.load %arg15[%c5, %c0_75, %c0_76, %c0_77] : memref<6x6x6x16xf32, #tpu.memory_space<vmem>>, vector<1x6x6x16xf32>
    tpu.vector_store %arg15[%c5, %c0_75, %c0_76, %c0_77], %41 {strides = array<i32>} : memref<6x6x6x16xf32, #tpu.memory_space<vmem>>, vector<1x6x6x16xf32>,
    %cst_78 = arith.constant 0.000000e+00 : f32
    %43 = vector.broadcast %cst_78 : f32 to vector<6x1x6x16xf32>
    %c0_79 = arith.constant 0 : index
    %c0_80 = arith.constant 0 : index
    %c0_81 = arith.constant 0 : index
    %c0_82 = arith.constant 0 : index
    %44 = vector.load %arg15[%c0_79, %c0_80, %c0_81, %c0_82] : memref<6x6x6x16xf32, #tpu.memory_space<vmem>>, vector<6x1x6x16xf32>
    tpu.vector_store %arg15[%c0_79, %c0_80, %c0_81, %c0_82], %43 {strides = array<i32>} : memref<6x6x6x16xf32, #tpu.memory_space<vmem>>, vector<6x1x6x16xf32>,
    %cst_83 = arith.constant 0.000000e+00 : f32
    %45 = vector.broadcast %cst_83 : f32 to vector<6x1x6x16xf32>
    %c0_84 = arith.constant 0 : index
    %c5_85 = arith.constant 5 : index
    %c0_86 = arith.constant 0 : index
    %c0_87 = arith.constant 0 : index
    %46 = vector.load %arg15[%c0_84, %c5_85, %c0_86, %c0_87] : memref<6x6x6x16xf32, #tpu.memory_space<vmem>>, vector<6x1x6x16xf32>
    tpu.vector_store %arg15[%c0_84, %c5_85, %c0_86, %c0_87], %45 {strides = array<i32>} : memref<6x6x6x16xf32, #tpu.memory_space<vmem>>, vector<6x1x6x16xf32>,
    %cst_88 = arith.constant 0.000000e+00 : f32
    %47 = vector.broadcast %cst_88 : f32 to vector<6x6x1x16xf32>
    %c0_89 = arith.constant 0 : index
    %c0_90 = arith.constant 0 : index
    %c0_91 = arith.constant 0 : index
    %c0_92 = arith.constant 0 : index
    %48 = vector.load %arg15[%c0_89, %c0_90, %c0_91, %c0_92] : memref<6x6x6x16xf32, #tpu.memory_space<vmem>>, vector<6x6x1x16xf32>
    tpu.vector_store %arg15[%c0_89, %c0_90, %c0_91, %c0_92], %47 {strides = array<i32>} : memref<6x6x6x16xf32, #tpu.memory_space<vmem>>, vector<6x6x1x16xf32>,
    %cst_93 = arith.constant 0.000000e+00 : f32
    %49 = vector.broadcast %cst_93 : f32 to vector<6x6x1x16xf32>
    %c0_94 = arith.constant 0 : index
    %c0_95 = arith.constant 0 : index
    %c5_96 = arith.constant 5 : index
    %c0_97 = arith.constant 0 : index
    %50 = vector.load %arg15[%c0_94, %c0_95, %c5_96, %c0_97] : memref<6x6x6x16xf32, #tpu.memory_space<vmem>>, vector<6x6x1x16xf32>
    tpu.vector_store %arg15[%c0_94, %c0_95, %c5_96, %c0_97], %49 {strides = array<i32>} : memref<6x6x6x16xf32, #tpu.memory_space<vmem>>, vector<6x6x1x16xf32>,
    %cst_98 = arith.constant 0.000000e+00 : f32
    %51 = vector.broadcast %cst_98 : f32 to vector<1x6x6x16xf32>
    %c0_99 = arith.constant 0 : index
    %c0_100 = arith.constant 0 : index
    %c0_101 = arith.constant 0 : index
    %c0_102 = arith.constant 0 : index
    %52 = vector.load %arg16[%c0_99, %c0_100, %c0_101, %c0_102] : memref<6x6x6x16xf32, #tpu.memory_space<vmem>>, vector<1x6x6x16xf32>
    tpu.vector_store %arg16[%c0_99, %c0_100, %c0_101, %c0_102], %51 {strides = array<i32>} : memref<6x6x6x16xf32, #tpu.memory_space<vmem>>, vector<1x6x6x16xf32>,
    %cst_103 = arith.constant 0.000000e+00 : f32
    %53 = vector.broadcast %cst_103 : f32 to vector<1x6x6x16xf32>
    %c5_104 = arith.constant 5 : index
    %c0_105 = arith.constant 0 : index
    %c0_106 = arith.constant 0 : index
    %c0_107 = arith.constant 0 : index
    %54 = vector.load %arg16[%c5_104, %c0_105, %c0_106, %c0_107] : memref<6x6x6x16xf32, #tpu.memory_space<vmem>>, vector<1x6x6x16xf32>
    tpu.vector_store %arg16[%c5_104, %c0_105, %c0_106, %c0_107], %53 {strides = array<i32>} : memref<6x6x6x16xf32, #tpu.memory_space<vmem>>, vector<1x6x6x16xf32>,
    %cst_108 = arith.constant 0.000000e+00 : f32
    %55 = vector.broadcast %cst_108 : f32 to vector<6x1x6x16xf32>
    %c0_109 = arith.constant 0 : index
    %c0_110 = arith.constant 0 : index
    %c0_111 = arith.constant 0 : index
    %c0_112 = arith.constant 0 : index
    %56 = vector.load %arg16[%c0_109, %c0_110, %c0_111, %c0_112] : memref<6x6x6x16xf32, #tpu.memory_space<vmem>>, vector<6x1x6x16xf32>
    tpu.vector_store %arg16[%c0_109, %c0_110, %c0_111, %c0_112], %55 {strides = array<i32>} : memref<6x6x6x16xf32, #tpu.memory_space<vmem>>, vector<6x1x6x16xf32>,
    %cst_113 = arith.constant 0.000000e+00 : f32
    %57 = vector.broadcast %cst_113 : f32 to vector<6x1x6x16xf32>
    %c0_114 = arith.constant 0 : index
    %c5_115 = arith.constant 5 : index
    %c0_116 = arith.constant 0 : index
    %c0_117 = arith.constant 0 : index
    %58 = vector.load %arg16[%c0_114, %c5_115, %c0_116, %c0_117] : memref<6x6x6x16xf32, #tpu.memory_space<vmem>>, vector<6x1x6x16xf32>
    tpu.vector_store %arg16[%c0_114, %c5_115, %c0_116, %c0_117], %57 {strides = array<i32>} : memref<6x6x6x16xf32, #tpu.memory_space<vmem>>, vector<6x1x6x16xf32>,
    %cst_118 = arith.constant 0.000000e+00 : f32
    %59 = vector.broadcast %cst_118 : f32 to vector<6x6x1x16xf32>
    %c0_119 = arith.constant 0 : index
    %c0_120 = arith.constant 0 : index
    %c0_121 = arith.constant 0 : index
    %c0_122 = arith.constant 0 : index
    %60 = vector.load %arg16[%c0_119, %c0_120, %c0_121, %c0_122] : memref<6x6x6x16xf32, #tpu.memory_space<vmem>>, vector<6x6x1x16xf32>
    tpu.vector_store %arg16[%c0_119, %c0_120, %c0_121, %c0_122], %59 {strides = array<i32>} : memref<6x6x6x16xf32, #tpu.memory_space<vmem>>, vector<6x6x1x16xf32>,
    %cst_123 = arith.constant 0.000000e+00 : f32
    %61 = vector.broadcast %cst_123 : f32 to vector<6x6x1x16xf32>
    %c0_124 = arith.constant 0 : index
    %c0_125 = arith.constant 0 : index
    %c5_126 = arith.constant 5 : index
    %c0_127 = arith.constant 0 : index
    %62 = vector.load %arg16[%c0_124, %c0_125, %c5_126, %c0_127] : memref<6x6x6x16xf32, #tpu.memory_space<vmem>>, vector<6x6x1x16xf32>
    tpu.vector_store %arg16[%c0_124, %c0_125, %c5_126, %c0_127], %61 {strides = array<i32>} : memref<6x6x6x16xf32, #tpu.memory_space<vmem>>, vector<6x6x1x16xf32>,
    %63 = vector.shape_cast %38 : vector<64x16xf32> to vector<4x4x4x16xf32>
    %c1_128 = arith.constant 1 : index
    %c1_129 = arith.constant 1 : index
    %c1_130 = arith.constant 1 : index
    %c0_131 = arith.constant 0 : index
    %64 = vector.load %arg15[%c1_128, %c1_129, %c1_130, %c0_131] : memref<6x6x6x16xf32, #tpu.memory_space<vmem>>, vector<4x4x4x16xf32>
    tpu.vector_store %arg15[%c1_128, %c1_129, %c1_130, %c0_131], %63 {strides = array<i32>} : memref<6x6x6x16xf32, #tpu.memory_space<vmem>>, vector<4x4x4x16xf32>,
    %c0_132 = arith.constant 0 : index
    %c0_133 = arith.constant 0 : index
    %c0_134 = arith.constant 0 : index
    %c0_135 = arith.constant 0 : index
    %c0_136 = arith.constant 0 : index
    %65 = vector.load %arg2[%c0_132, %c0_133, %c0_134, %c0_135, %c0_136] : memref<1x4x4x4x16xf32, #tpu.memory_space<vmem>>, vector<1x4x4x4x16xf32>
    %66 = vector.shape_cast %65 : vector<1x4x4x4x16xf32> to vector<4x4x4x16xf32>
    %c1_137 = arith.constant 1 : index
    %c1_138 = arith.constant 1 : index
    %c1_139 = arith.constant 1 : index
    %c0_140 = arith.constant 0 : index
    %67 = vector.load %arg16[%c1_137, %c1_138, %c1_139, %c0_140] : memref<6x6x6x16xf32, #tpu.memory_space<vmem>>, vector<4x4x4x16xf32>
    tpu.vector_store %arg16[%c1_137, %c1_138, %c1_139, %c0_140], %66 {strides = array<i32>} : memref<6x6x6x16xf32, #tpu.memory_space<vmem>>, vector<4x4x4x16xf32>,
    %c0_141 = arith.constant 0 : index
    %c0_142 = arith.constant 0 : index
    %c0_143 = arith.constant 0 : index
    %c0_144 = arith.constant 0 : index
    %68 = vector.load %arg15[%c0_141, %c0_142, %c0_143, %c0_144] : memref<6x6x6x16xf32, #tpu.memory_space<vmem>>, vector<4x4x4x16xf32>
    %69 = vector.shape_cast %68 : vector<4x4x4x16xf32> to vector<64x16xf32>
    %c0_145 = arith.constant 0 : index
    %c0_146 = arith.constant 0 : index
    %70 = vector.load %arg17[%c0_145, %c0_146] : memref<64x432xf32, #tpu.memory_space<vmem>>, vector<64x16xf32>
    tpu.vector_store %arg17[%c0_145, %c0_146], %69 {strides = array<i32>} : memref<64x432xf32, #tpu.memory_space<vmem>>, vector<64x16xf32>,
    %c0_147 = arith.constant 0 : index
    %c0_148 = arith.constant 0 : index
    %c1_149 = arith.constant 1 : index
    %c0_150 = arith.constant 0 : index
    %71 = vector.load %arg15[%c0_147, %c0_148, %c1_149, %c0_150] : memref<6x6x6x16xf32, #tpu.memory_space<vmem>>, vector<4x4x4x16xf32>
    %72 = vector.shape_cast %71 : vector<4x4x4x16xf32> to vector<64x16xf32>
    %c0_151 = arith.constant 0 : index
    %c16_152 = arith.constant 16 : index
    %73 = vector.load %arg17[%c0_151, %c16_152] : memref<64x432xf32, #tpu.memory_space<vmem>>, vector<64x16xf32>
    tpu.vector_store %arg17[%c0_151, %c16_152], %72 {strides = array<i32>} : memref<64x432xf32, #tpu.memory_space<vmem>>, vector<64x16xf32>,
    %c0_153 = arith.constant 0 : index
    %c0_154 = arith.constant 0 : index
    %c2 = arith.constant 2 : index
    %c0_155 = arith.constant 0 : index
    %74 = vector.load %arg15[%c0_153, %c0_154, %c2, %c0_155] : memref<6x6x6x16xf32, #tpu.memory_space<vmem>>, vector<4x4x4x16xf32>
    %75 = vector.shape_cast %74 : vector<4x4x4x16xf32> to vector<64x16xf32>
    %c0_156 = arith.constant 0 : index
    %c32 = arith.constant 32 : index
    %76 = vector.load %arg17[%c0_156, %c32] : memref<64x432xf32, #tpu.memory_space<vmem>>, vector<64x16xf32>
    tpu.vector_store %arg17[%c0_156, %c32], %75 {strides = array<i32>} : memref<64x432xf32, #tpu.memory_space<vmem>>, vector<64x16xf32>,
    %c0_157 = arith.constant 0 : index
    %c1_158 = arith.constant 1 : index
    %c0_159 = arith.constant 0 : index
    %c0_160 = arith.constant 0 : index
    %77 = vector.load %arg15[%c0_157, %c1_158, %c0_159, %c0_160] : memref<6x6x6x16xf32, #tpu.memory_space<vmem>>, vector<4x4x4x16xf32>
    %78 = vector.shape_cast %77 : vector<4x4x4x16xf32> to vector<64x16xf32>
    %c0_161 = arith.constant 0 : index
    %c48 = arith.constant 48 : index
    %79 = vector.load %arg17[%c0_161, %c48] : memref<64x432xf32, #tpu.memory_space<vmem>>, vector<64x16xf32>
    tpu.vector_store %arg17[%c0_161, %c48], %78 {strides = array<i32>} : memref<64x432xf32, #tpu.memory_space<vmem>>, vector<64x16xf32>,
    %c0_162 = arith.constant 0 : index
    %c1_163 = arith.constant 1 : index
    %c1_164 = arith.constant 1 : index
    %c0_165 = arith.constant 0 : index
    %80 = vector.load %arg15[%c0_162, %c1_163, %c1_164, %c0_165] : memref<6x6x6x16xf32, #tpu.memory_space<vmem>>, vector<4x4x4x16xf32>
    %81 = vector.shape_cast %80 : vector<4x4x4x16xf32> to vector<64x16xf32>
    %c0_166 = arith.constant 0 : index
    %c64 = arith.constant 64 : index
    %82 = vector.load %arg17[%c0_166, %c64] : memref<64x432xf32, #tpu.memory_space<vmem>>, vector<64x16xf32>
    tpu.vector_store %arg17[%c0_166, %c64], %81 {strides = array<i32>} : memref<64x432xf32, #tpu.memory_space<vmem>>, vector<64x16xf32>,
    %c0_167 = arith.constant 0 : index
    %c1_168 = arith.constant 1 : index
    %c2_169 = arith.constant 2 : index
    %c0_170 = arith.constant 0 : index
    %83 = vector.load %arg15[%c0_167, %c1_168, %c2_169, %c0_170] : memref<6x6x6x16xf32, #tpu.memory_space<vmem>>, vector<4x4x4x16xf32>
    %84 = vector.shape_cast %83 : vector<4x4x4x16xf32> to vector<64x16xf32>
    %c0_171 = arith.constant 0 : index
    %c80 = arith.constant 80 : index
    %85 = vector.load %arg17[%c0_171, %c80] : memref<64x432xf32, #tpu.memory_space<vmem>>, vector<64x16xf32>
    tpu.vector_store %arg17[%c0_171, %c80], %84 {strides = array<i32>} : memref<64x432xf32, #tpu.memory_space<vmem>>, vector<64x16xf32>,
    %c0_172 = arith.constant 0 : index
    %c2_173 = arith.constant 2 : index
    %c0_174 = arith.constant 0 : index
    %c0_175 = arith.constant 0 : index
    %86 = vector.load %arg15[%c0_172, %c2_173, %c0_174, %c0_175] : memref<6x6x6x16xf32, #tpu.memory_space<vmem>>, vector<4x4x4x16xf32>
    %87 = vector.shape_cast %86 : vector<4x4x4x16xf32> to vector<64x16xf32>
    %c0_176 = arith.constant 0 : index
    %c96 = arith.constant 96 : index
    %88 = vector.load %arg17[%c0_176, %c96] : memref<64x432xf32, #tpu.memory_space<vmem>>, vector<64x16xf32>
    tpu.vector_store %arg17[%c0_176, %c96], %87 {strides = array<i32>} : memref<64x432xf32, #tpu.memory_space<vmem>>, vector<64x16xf32>,
    %c0_177 = arith.constant 0 : index
    %c2_178 = arith.constant 2 : index
    %c1_179 = arith.constant 1 : index
    %c0_180 = arith.constant 0 : index
    %89 = vector.load %arg15[%c0_177, %c2_178, %c1_179, %c0_180] : memref<6x6x6x16xf32, #tpu.memory_space<vmem>>, vector<4x4x4x16xf32>
    %90 = vector.shape_cast %89 : vector<4x4x4x16xf32> to vector<64x16xf32>
    %c0_181 = arith.constant 0 : index
    %c112 = arith.constant 112 : index
    %91 = vector.load %arg17[%c0_181, %c112] : memref<64x432xf32, #tpu.memory_space<vmem>>, vector<64x16xf32>
    tpu.vector_store %arg17[%c0_181, %c112], %90 {strides = array<i32>} : memref<64x432xf32, #tpu.memory_space<vmem>>, vector<64x16xf32>,
    %c0_182 = arith.constant 0 : index
    %c2_183 = arith.constant 2 : index
    %c2_184 = arith.constant 2 : index
    %c0_185 = arith.constant 0 : index
    %92 = vector.load %arg15[%c0_182, %c2_183, %c2_184, %c0_185] : memref<6x6x6x16xf32, #tpu.memory_space<vmem>>, vector<4x4x4x16xf32>
    %93 = vector.shape_cast %92 : vector<4x4x4x16xf32> to vector<64x16xf32>
    %c0_186 = arith.constant 0 : index
    %c128 = arith.constant 128 : index
    %94 = vector.load %arg17[%c0_186, %c128] : memref<64x432xf32, #tpu.memory_space<vmem>>, vector<64x16xf32>
    tpu.vector_store %arg17[%c0_186, %c128], %93 {strides = array<i32>} : memref<64x432xf32, #tpu.memory_space<vmem>>, vector<64x16xf32>,
    %c1_187 = arith.constant 1 : index
    %c0_188 = arith.constant 0 : index
    %c0_189 = arith.constant 0 : index
    %c0_190 = arith.constant 0 : index
    %95 = vector.load %arg15[%c1_187, %c0_188, %c0_189, %c0_190] : memref<6x6x6x16xf32, #tpu.memory_space<vmem>>, vector<4x4x4x16xf32>
    %96 = vector.shape_cast %95 : vector<4x4x4x16xf32> to vector<64x16xf32>
    %c0_191 = arith.constant 0 : index
    %c144 = arith.constant 144 : index
    %97 = vector.load %arg17[%c0_191, %c144] : memref<64x432xf32, #tpu.memory_space<vmem>>, vector<64x16xf32>
    tpu.vector_store %arg17[%c0_191, %c144], %96 {strides = array<i32>} : memref<64x432xf32, #tpu.memory_space<vmem>>, vector<64x16xf32>,
    %c1_192 = arith.constant 1 : index
    %c0_193 = arith.constant 0 : index
    %c1_194 = arith.constant 1 : index
    %c0_195 = arith.constant 0 : index
    %98 = vector.load %arg15[%c1_192, %c0_193, %c1_194, %c0_195] : memref<6x6x6x16xf32, #tpu.memory_space<vmem>>, vector<4x4x4x16xf32>
    %99 = vector.shape_cast %98 : vector<4x4x4x16xf32> to vector<64x16xf32>
    %c0_196 = arith.constant 0 : index
    %c160 = arith.constant 160 : index
    %100 = vector.load %arg17[%c0_196, %c160] : memref<64x432xf32, #tpu.memory_space<vmem>>, vector<64x16xf32>
    tpu.vector_store %arg17[%c0_196, %c160], %99 {strides = array<i32>} : memref<64x432xf32, #tpu.memory_space<vmem>>, vector<64x16xf32>,
    %c1_197 = arith.constant 1 : index
    %c0_198 = arith.constant 0 : index
    %c2_199 = arith.constant 2 : index
    %c0_200 = arith.constant 0 : index
    %101 = vector.load %arg15[%c1_197, %c0_198, %c2_199, %c0_200] : memref<6x6x6x16xf32, #tpu.memory_space<vmem>>, vector<4x4x4x16xf32>
    %102 = vector.shape_cast %101 : vector<4x4x4x16xf32> to vector<64x16xf32>
    %c0_201 = arith.constant 0 : index
    %c176 = arith.constant 176 : index
    %103 = vector.load %arg17[%c0_201, %c176] : memref<64x432xf32, #tpu.memory_space<vmem>>, vector<64x16xf32>
    tpu.vector_store %arg17[%c0_201, %c176], %102 {strides = array<i32>} : memref<64x432xf32, #tpu.memory_space<vmem>>, vector<64x16xf32>,
    %c1_202 = arith.constant 1 : index
    %c1_203 = arith.constant 1 : index
    %c0_204 = arith.constant 0 : index
    %c0_205 = arith.constant 0 : index
    %104 = vector.load %arg15[%c1_202, %c1_203, %c0_204, %c0_205] : memref<6x6x6x16xf32, #tpu.memory_space<vmem>>, vector<4x4x4x16xf32>
    %105 = vector.shape_cast %104 : vector<4x4x4x16xf32> to vector<64x16xf32>
    %c0_206 = arith.constant 0 : index
    %c192 = arith.constant 192 : index
    %106 = vector.load %arg17[%c0_206, %c192] : memref<64x432xf32, #tpu.memory_space<vmem>>, vector<64x16xf32>
    tpu.vector_store %arg17[%c0_206, %c192], %105 {strides = array<i32>} : memref<64x432xf32, #tpu.memory_space<vmem>>, vector<64x16xf32>,
    %c1_207 = arith.constant 1 : index
    %c1_208 = arith.constant 1 : index
    %c1_209 = arith.constant 1 : index
    %c0_210 = arith.constant 0 : index
    %107 = vector.load %arg15[%c1_207, %c1_208, %c1_209, %c0_210] : memref<6x6x6x16xf32, #tpu.memory_space<vmem>>, vector<4x4x4x16xf32>
    %108 = vector.shape_cast %107 : vector<4x4x4x16xf32> to vector<64x16xf32>
    %c0_211 = arith.constant 0 : index
    %c208 = arith.constant 208 : index
    %109 = vector.load %arg17[%c0_211, %c208] : memref<64x432xf32, #tpu.memory_space<vmem>>, vector<64x16xf32>
    tpu.vector_store %arg17[%c0_211, %c208], %108 {strides = array<i32>} : memref<64x432xf32, #tpu.memory_space<vmem>>, vector<64x16xf32>,
    %c1_212 = arith.constant 1 : index
    %c1_213 = arith.constant 1 : index
    %c2_214 = arith.constant 2 : index
    %c0_215 = arith.constant 0 : index
    %110 = vector.load %arg15[%c1_212, %c1_213, %c2_214, %c0_215] : memref<6x6x6x16xf32, #tpu.memory_space<vmem>>, vector<4x4x4x16xf32>
    %111 = vector.shape_cast %110 : vector<4x4x4x16xf32> to vector<64x16xf32>
    %c0_216 = arith.constant 0 : index
    %c224 = arith.constant 224 : index
    %112 = vector.load %arg17[%c0_216, %c224] : memref<64x432xf32, #tpu.memory_space<vmem>>, vector<64x16xf32>
    tpu.vector_store %arg17[%c0_216, %c224], %111 {strides = array<i32>} : memref<64x432xf32, #tpu.memory_space<vmem>>, vector<64x16xf32>,
    %c1_217 = arith.constant 1 : index
    %c2_218 = arith.constant 2 : index
    %c0_219 = arith.constant 0 : index
    %c0_220 = arith.constant 0 : index
    %113 = vector.load %arg15[%c1_217, %c2_218, %c0_219, %c0_220] : memref<6x6x6x16xf32, #tpu.memory_space<vmem>>, vector<4x4x4x16xf32>
    %114 = vector.shape_cast %113 : vector<4x4x4x16xf32> to vector<64x16xf32>
    %c0_221 = arith.constant 0 : index
    %c240 = arith.constant 240 : index
    %115 = vector.load %arg17[%c0_221, %c240] : memref<64x432xf32, #tpu.memory_space<vmem>>, vector<64x16xf32>
    tpu.vector_store %arg17[%c0_221, %c240], %114 {strides = array<i32>} : memref<64x432xf32, #tpu.memory_space<vmem>>, vector<64x16xf32>,
    %c1_222 = arith.constant 1 : index
    %c2_223 = arith.constant 2 : index
    %c1_224 = arith.constant 1 : index
    %c0_225 = arith.constant 0 : index
    %116 = vector.load %arg15[%c1_222, %c2_223, %c1_224, %c0_225] : memref<6x6x6x16xf32, #tpu.memory_space<vmem>>, vector<4x4x4x16xf32>
    %117 = vector.shape_cast %116 : vector<4x4x4x16xf32> to vector<64x16xf32>
    %c0_226 = arith.constant 0 : index
    %c256 = arith.constant 256 : index
    %118 = vector.load %arg17[%c0_226, %c256] : memref<64x432xf32, #tpu.memory_space<vmem>>, vector<64x16xf32>
    tpu.vector_store %arg17[%c0_226, %c256], %117 {strides = array<i32>} : memref<64x432xf32, #tpu.memory_space<vmem>>, vector<64x16xf32>,
    %c1_227 = arith.constant 1 : index
    %c2_228 = arith.constant 2 : index
    %c2_229 = arith.constant 2 : index
    %c0_230 = arith.constant 0 : index
    %119 = vector.load %arg15[%c1_227, %c2_228, %c2_229, %c0_230] : memref<6x6x6x16xf32, #tpu.memory_space<vmem>>, vector<4x4x4x16xf32>
    %120 = vector.shape_cast %119 : vector<4x4x4x16xf32> to vector<64x16xf32>
    %c0_231 = arith.constant 0 : index
    %c272 = arith.constant 272 : index
    %121 = vector.load %arg17[%c0_231, %c272] : memref<64x432xf32, #tpu.memory_space<vmem>>, vector<64x16xf32>
    tpu.vector_store %arg17[%c0_231, %c272], %120 {strides = array<i32>} : memref<64x432xf32, #tpu.memory_space<vmem>>, vector<64x16xf32>,
    %c2_232 = arith.constant 2 : index
    %c0_233 = arith.constant 0 : index
    %c0_234 = arith.constant 0 : index
    %c0_235 = arith.constant 0 : index
    %122 = vector.load %arg15[%c2_232, %c0_233, %c0_234, %c0_235] : memref<6x6x6x16xf32, #tpu.memory_space<vmem>>, vector<4x4x4x16xf32>
    %123 = vector.shape_cast %122 : vector<4x4x4x16xf32> to vector<64x16xf32>
    %c0_236 = arith.constant 0 : index
    %c288 = arith.constant 288 : index
    %124 = vector.load %arg17[%c0_236, %c288] : memref<64x432xf32, #tpu.memory_space<vmem>>, vector<64x16xf32>
    tpu.vector_store %arg17[%c0_236, %c288], %123 {strides = array<i32>} : memref<64x432xf32, #tpu.memory_space<vmem>>, vector<64x16xf32>,
    %c2_237 = arith.constant 2 : index
    %c0_238 = arith.constant 0 : index
    %c1_239 = arith.constant 1 : index
    %c0_240 = arith.constant 0 : index
    %125 = vector.load %arg15[%c2_237, %c0_238, %c1_239, %c0_240] : memref<6x6x6x16xf32, #tpu.memory_space<vmem>>, vector<4x4x4x16xf32>
    %126 = vector.shape_cast %125 : vector<4x4x4x16xf32> to vector<64x16xf32>
    %c0_241 = arith.constant 0 : index
    %c304 = arith.constant 304 : index
    %127 = vector.load %arg17[%c0_241, %c304] : memref<64x432xf32, #tpu.memory_space<vmem>>, vector<64x16xf32>
    tpu.vector_store %arg17[%c0_241, %c304], %126 {strides = array<i32>} : memref<64x432xf32, #tpu.memory_space<vmem>>, vector<64x16xf32>,
    %c2_242 = arith.constant 2 : index
    %c0_243 = arith.constant 0 : index
    %c2_244 = arith.constant 2 : index
    %c0_245 = arith.constant 0 : index
    %128 = vector.load %arg15[%c2_242, %c0_243, %c2_244, %c0_245] : memref<6x6x6x16xf32, #tpu.memory_space<vmem>>, vector<4x4x4x16xf32>
    %129 = vector.shape_cast %128 : vector<4x4x4x16xf32> to vector<64x16xf32>
    %c0_246 = arith.constant 0 : index
    %c320 = arith.constant 320 : index
    %130 = vector.load %arg17[%c0_246, %c320] : memref<64x432xf32, #tpu.memory_space<vmem>>, vector<64x16xf32>
    tpu.vector_store %arg17[%c0_246, %c320], %129 {strides = array<i32>} : memref<64x432xf32, #tpu.memory_space<vmem>>, vector<64x16xf32>,
    %c2_247 = arith.constant 2 : index
    %c1_248 = arith.constant 1 : index
    %c0_249 = arith.constant 0 : index
    %c0_250 = arith.constant 0 : index
    %131 = vector.load %arg15[%c2_247, %c1_248, %c0_249, %c0_250] : memref<6x6x6x16xf32, #tpu.memory_space<vmem>>, vector<4x4x4x16xf32>
    %132 = vector.shape_cast %131 : vector<4x4x4x16xf32> to vector<64x16xf32>
    %c0_251 = arith.constant 0 : index
    %c336 = arith.constant 336 : index
    %133 = vector.load %arg17[%c0_251, %c336] : memref<64x432xf32, #tpu.memory_space<vmem>>, vector<64x16xf32>
    tpu.vector_store %arg17[%c0_251, %c336], %132 {strides = array<i32>} : memref<64x432xf32, #tpu.memory_space<vmem>>, vector<64x16xf32>,
    %c2_252 = arith.constant 2 : index
    %c1_253 = arith.constant 1 : index
    %c1_254 = arith.constant 1 : index
    %c0_255 = arith.constant 0 : index
    %134 = vector.load %arg15[%c2_252, %c1_253, %c1_254, %c0_255] : memref<6x6x6x16xf32, #tpu.memory_space<vmem>>, vector<4x4x4x16xf32>
    %135 = vector.shape_cast %134 : vector<4x4x4x16xf32> to vector<64x16xf32>
    %c0_256 = arith.constant 0 : index
    %c352 = arith.constant 352 : index
    %136 = vector.load %arg17[%c0_256, %c352] : memref<64x432xf32, #tpu.memory_space<vmem>>, vector<64x16xf32>
    tpu.vector_store %arg17[%c0_256, %c352], %135 {strides = array<i32>} : memref<64x432xf32, #tpu.memory_space<vmem>>, vector<64x16xf32>,
    %c2_257 = arith.constant 2 : index
    %c1_258 = arith.constant 1 : index
    %c2_259 = arith.constant 2 : index
    %c0_260 = arith.constant 0 : index
    %137 = vector.load %arg15[%c2_257, %c1_258, %c2_259, %c0_260] : memref<6x6x6x16xf32, #tpu.memory_space<vmem>>, vector<4x4x4x16xf32>
    %138 = vector.shape_cast %137 : vector<4x4x4x16xf32> to vector<64x16xf32>
    %c0_261 = arith.constant 0 : index
    %c368 = arith.constant 368 : index
    %139 = vector.load %arg17[%c0_261, %c368] : memref<64x432xf32, #tpu.memory_space<vmem>>, vector<64x16xf32>
    tpu.vector_store %arg17[%c0_261, %c368], %138 {strides = array<i32>} : memref<64x432xf32, #tpu.memory_space<vmem>>, vector<64x16xf32>,
    %c2_262 = arith.constant 2 : index
    %c2_263 = arith.constant 2 : index
    %c0_264 = arith.constant 0 : index
    %c0_265 = arith.constant 0 : index
    %140 = vector.load %arg15[%c2_262, %c2_263, %c0_264, %c0_265] : memref<6x6x6x16xf32, #tpu.memory_space<vmem>>, vector<4x4x4x16xf32>
    %141 = vector.shape_cast %140 : vector<4x4x4x16xf32> to vector<64x16xf32>
    %c0_266 = arith.constant 0 : index
    %c384 = arith.constant 384 : index
    %142 = vector.load %arg17[%c0_266, %c384] : memref<64x432xf32, #tpu.memory_space<vmem>>, vector<64x16xf32>
    tpu.vector_store %arg17[%c0_266, %c384], %141 {strides = array<i32>} : memref<64x432xf32, #tpu.memory_space<vmem>>, vector<64x16xf32>,
    %c2_267 = arith.constant 2 : index
    %c2_268 = arith.constant 2 : index
    %c1_269 = arith.constant 1 : index
    %c0_270 = arith.constant 0 : index
    %143 = vector.load %arg15[%c2_267, %c2_268, %c1_269, %c0_270] : memref<6x6x6x16xf32, #tpu.memory_space<vmem>>, vector<4x4x4x16xf32>
    %144 = vector.shape_cast %143 : vector<4x4x4x16xf32> to vector<64x16xf32>
    %c0_271 = arith.constant 0 : index
    %c400 = arith.constant 400 : index
    %145 = vector.load %arg17[%c0_271, %c400] : memref<64x432xf32, #tpu.memory_space<vmem>>, vector<64x16xf32>
    tpu.vector_store %arg17[%c0_271, %c400], %144 {strides = array<i32>} : memref<64x432xf32, #tpu.memory_space<vmem>>, vector<64x16xf32>,
    %c2_272 = arith.constant 2 : index
    %c2_273 = arith.constant 2 : index
    %c2_274 = arith.constant 2 : index
    %c0_275 = arith.constant 0 : index
    %146 = vector.load %arg15[%c2_272, %c2_273, %c2_274, %c0_275] : memref<6x6x6x16xf32, #tpu.memory_space<vmem>>, vector<4x4x4x16xf32>
    %147 = vector.shape_cast %146 : vector<4x4x4x16xf32> to vector<64x16xf32>
    %c0_276 = arith.constant 0 : index
    %c416 = arith.constant 416 : index
    %148 = vector.load %arg17[%c0_276, %c416] : memref<64x432xf32, #tpu.memory_space<vmem>>, vector<64x16xf32>
    tpu.vector_store %arg17[%c0_276, %c416], %147 {strides = array<i32>} : memref<64x432xf32, #tpu.memory_space<vmem>>, vector<64x16xf32>,
    %c0_277 = arith.constant 0 : index
    %c0_278 = arith.constant 0 : index
    %c0_279 = arith.constant 0 : index
    %c0_280 = arith.constant 0 : index
    %149 = vector.load %arg16[%c0_277, %c0_278, %c0_279, %c0_280] : memref<6x6x6x16xf32, #tpu.memory_space<vmem>>, vector<4x4x4x16xf32>
    %150 = vector.shape_cast %149 : vector<4x4x4x16xf32> to vector<64x16xf32>
    %c0_281 = arith.constant 0 : index
    %c0_282 = arith.constant 0 : index
    %151 = vector.load %arg18[%c0_281, %c0_282] : memref<64x432xf32, #tpu.memory_space<vmem>>, vector<64x16xf32>
    tpu.vector_store %arg18[%c0_281, %c0_282], %150 {strides = array<i32>} : memref<64x432xf32, #tpu.memory_space<vmem>>, vector<64x16xf32>,
    %c0_283 = arith.constant 0 : index
    %c0_284 = arith.constant 0 : index
    %c1_285 = arith.constant 1 : index
    %c0_286 = arith.constant 0 : index
    %152 = vector.load %arg16[%c0_283, %c0_284, %c1_285, %c0_286] : memref<6x6x6x16xf32, #tpu.memory_space<vmem>>, vector<4x4x4x16xf32>
    %153 = vector.shape_cast %152 : vector<4x4x4x16xf32> to vector<64x16xf32>
    %c0_287 = arith.constant 0 : index
    %c16_288 = arith.constant 16 : index
    %154 = vector.load %arg18[%c0_287, %c16_288] : memref<64x432xf32, #tpu.memory_space<vmem>>, vector<64x16xf32>
    tpu.vector_store %arg18[%c0_287, %c16_288], %153 {strides = array<i32>} : memref<64x432xf32, #tpu.memory_space<vmem>>, vector<64x16xf32>,
    %c0_289 = arith.constant 0 : index
    %c0_290 = arith.constant 0 : index
    %c2_291 = arith.constant 2 : index
    %c0_292 = arith.constant 0 : index
    %155 = vector.load %arg16[%c0_289, %c0_290, %c2_291, %c0_292] : memref<6x6x6x16xf32, #tpu.memory_space<vmem>>, vector<4x4x4x16xf32>
    %156 = vector.shape_cast %155 : vector<4x4x4x16xf32> to vector<64x16xf32>
    %c0_293 = arith.constant 0 : index
    %c32_294 = arith.constant 32 : index
    %157 = vector.load %arg18[%c0_293, %c32_294] : memref<64x432xf32, #tpu.memory_space<vmem>>, vector<64x16xf32>
    tpu.vector_store %arg18[%c0_293, %c32_294], %156 {strides = array<i32>} : memref<64x432xf32, #tpu.memory_space<vmem>>, vector<64x16xf32>,
    %c0_295 = arith.constant 0 : index
    %c1_296 = arith.constant 1 : index
    %c0_297 = arith.constant 0 : index
    %c0_298 = arith.constant 0 : index
    %158 = vector.load %arg16[%c0_295, %c1_296, %c0_297, %c0_298] : memref<6x6x6x16xf32, #tpu.memory_space<vmem>>, vector<4x4x4x16xf32>
    %159 = vector.shape_cast %158 : vector<4x4x4x16xf32> to vector<64x16xf32>
    %c0_299 = arith.constant 0 : index
    %c48_300 = arith.constant 48 : index
    %160 = vector.load %arg18[%c0_299, %c48_300] : memref<64x432xf32, #tpu.memory_space<vmem>>, vector<64x16xf32>
    tpu.vector_store %arg18[%c0_299, %c48_300], %159 {strides = array<i32>} : memref<64x432xf32, #tpu.memory_space<vmem>>, vector<64x16xf32>,
    %c0_301 = arith.constant 0 : index
    %c1_302 = arith.constant 1 : index
    %c1_303 = arith.constant 1 : index
    %c0_304 = arith.constant 0 : index
    %161 = vector.load %arg16[%c0_301, %c1_302, %c1_303, %c0_304] : memref<6x6x6x16xf32, #tpu.memory_space<vmem>>, vector<4x4x4x16xf32>
    %162 = vector.shape_cast %161 : vector<4x4x4x16xf32> to vector<64x16xf32>
    %c0_305 = arith.constant 0 : index
    %c64_306 = arith.constant 64 : index
    %163 = vector.load %arg18[%c0_305, %c64_306] : memref<64x432xf32, #tpu.memory_space<vmem>>, vector<64x16xf32>
    tpu.vector_store %arg18[%c0_305, %c64_306], %162 {strides = array<i32>} : memref<64x432xf32, #tpu.memory_space<vmem>>, vector<64x16xf32>,
    %c0_307 = arith.constant 0 : index
    %c1_308 = arith.constant 1 : index
    %c2_309 = arith.constant 2 : index
    %c0_310 = arith.constant 0 : index
    %164 = vector.load %arg16[%c0_307, %c1_308, %c2_309, %c0_310] : memref<6x6x6x16xf32, #tpu.memory_space<vmem>>, vector<4x4x4x16xf32>
    %165 = vector.shape_cast %164 : vector<4x4x4x16xf32> to vector<64x16xf32>
    %c0_311 = arith.constant 0 : index
    %c80_312 = arith.constant 80 : index
    %166 = vector.load %arg18[%c0_311, %c80_312] : memref<64x432xf32, #tpu.memory_space<vmem>>, vector<64x16xf32>
    tpu.vector_store %arg18[%c0_311, %c80_312], %165 {strides = array<i32>} : memref<64x432xf32, #tpu.memory_space<vmem>>, vector<64x16xf32>,
    %c0_313 = arith.constant 0 : index
    %c2_314 = arith.constant 2 : index
    %c0_315 = arith.constant 0 : index
    %c0_316 = arith.constant 0 : index
    %167 = vector.load %arg16[%c0_313, %c2_314, %c0_315, %c0_316] : memref<6x6x6x16xf32, #tpu.memory_space<vmem>>, vector<4x4x4x16xf32>
    %168 = vector.shape_cast %167 : vector<4x4x4x16xf32> to vector<64x16xf32>
    %c0_317 = arith.constant 0 : index
    %c96_318 = arith.constant 96 : index
    %169 = vector.load %arg18[%c0_317, %c96_318] : memref<64x432xf32, #tpu.memory_space<vmem>>, vector<64x16xf32>
    tpu.vector_store %arg18[%c0_317, %c96_318], %168 {strides = array<i32>} : memref<64x432xf32, #tpu.memory_space<vmem>>, vector<64x16xf32>,
    %c0_319 = arith.constant 0 : index
    %c2_320 = arith.constant 2 : index
    %c1_321 = arith.constant 1 : index
    %c0_322 = arith.constant 0 : index
    %170 = vector.load %arg16[%c0_319, %c2_320, %c1_321, %c0_322] : memref<6x6x6x16xf32, #tpu.memory_space<vmem>>, vector<4x4x4x16xf32>
    %171 = vector.shape_cast %170 : vector<4x4x4x16xf32> to vector<64x16xf32>
    %c0_323 = arith.constant 0 : index
    %c112_324 = arith.constant 112 : index
    %172 = vector.load %arg18[%c0_323, %c112_324] : memref<64x432xf32, #tpu.memory_space<vmem>>, vector<64x16xf32>
    tpu.vector_store %arg18[%c0_323, %c112_324], %171 {strides = array<i32>} : memref<64x432xf32, #tpu.memory_space<vmem>>, vector<64x16xf32>,
    %c0_325 = arith.constant 0 : index
    %c2_326 = arith.constant 2 : index
    %c2_327 = arith.constant 2 : index
    %c0_328 = arith.constant 0 : index
    %173 = vector.load %arg16[%c0_325, %c2_326, %c2_327, %c0_328] : memref<6x6x6x16xf32, #tpu.memory_space<vmem>>, vector<4x4x4x16xf32>
    %174 = vector.shape_cast %173 : vector<4x4x4x16xf32> to vector<64x16xf32>
    %c0_329 = arith.constant 0 : index
    %c128_330 = arith.constant 128 : index
    %175 = vector.load %arg18[%c0_329, %c128_330] : memref<64x432xf32, #tpu.memory_space<vmem>>, vector<64x16xf32>
    tpu.vector_store %arg18[%c0_329, %c128_330], %174 {strides = array<i32>} : memref<64x432xf32, #tpu.memory_space<vmem>>, vector<64x16xf32>,
    %c1_331 = arith.constant 1 : index
    %c0_332 = arith.constant 0 : index
    %c0_333 = arith.constant 0 : index
    %c0_334 = arith.constant 0 : index
    %176 = vector.load %arg16[%c1_331, %c0_332, %c0_333, %c0_334] : memref<6x6x6x16xf32, #tpu.memory_space<vmem>>, vector<4x4x4x16xf32>
    %177 = vector.shape_cast %176 : vector<4x4x4x16xf32> to vector<64x16xf32>
    %c0_335 = arith.constant 0 : index
    %c144_336 = arith.constant 144 : index
    %178 = vector.load %arg18[%c0_335, %c144_336] : memref<64x432xf32, #tpu.memory_space<vmem>>, vector<64x16xf32>
    tpu.vector_store %arg18[%c0_335, %c144_336], %177 {strides = array<i32>} : memref<64x432xf32, #tpu.memory_space<vmem>>, vector<64x16xf32>,
    %c1_337 = arith.constant 1 : index
    %c0_338 = arith.constant 0 : index
    %c1_339 = arith.constant 1 : index
    %c0_340 = arith.constant 0 : index
    %179 = vector.load %arg16[%c1_337, %c0_338, %c1_339, %c0_340] : memref<6x6x6x16xf32, #tpu.memory_space<vmem>>, vector<4x4x4x16xf32>
    %180 = vector.shape_cast %179 : vector<4x4x4x16xf32> to vector<64x16xf32>
    %c0_341 = arith.constant 0 : index
    %c160_342 = arith.constant 160 : index
    %181 = vector.load %arg18[%c0_341, %c160_342] : memref<64x432xf32, #tpu.memory_space<vmem>>, vector<64x16xf32>
    tpu.vector_store %arg18[%c0_341, %c160_342], %180 {strides = array<i32>} : memref<64x432xf32, #tpu.memory_space<vmem>>, vector<64x16xf32>,
    %c1_343 = arith.constant 1 : index
    %c0_344 = arith.constant 0 : index
    %c2_345 = arith.constant 2 : index
    %c0_346 = arith.constant 0 : index
    %182 = vector.load %arg16[%c1_343, %c0_344, %c2_345, %c0_346] : memref<6x6x6x16xf32, #tpu.memory_space<vmem>>, vector<4x4x4x16xf32>
    %183 = vector.shape_cast %182 : vector<4x4x4x16xf32> to vector<64x16xf32>
    %c0_347 = arith.constant 0 : index
    %c176_348 = arith.constant 176 : index
    %184 = vector.load %arg18[%c0_347, %c176_348] : memref<64x432xf32, #tpu.memory_space<vmem>>, vector<64x16xf32>
    tpu.vector_store %arg18[%c0_347, %c176_348], %183 {strides = array<i32>} : memref<64x432xf32, #tpu.memory_space<vmem>>, vector<64x16xf32>,
    %c1_349 = arith.constant 1 : index
    %c1_350 = arith.constant 1 : index
    %c0_351 = arith.constant 0 : index
    %c0_352 = arith.constant 0 : index
    %185 = vector.load %arg16[%c1_349, %c1_350, %c0_351, %c0_352] : memref<6x6x6x16xf32, #tpu.memory_space<vmem>>, vector<4x4x4x16xf32>
    %186 = vector.shape_cast %185 : vector<4x4x4x16xf32> to vector<64x16xf32>
    %c0_353 = arith.constant 0 : index
    %c192_354 = arith.constant 192 : index
    %187 = vector.load %arg18[%c0_353, %c192_354] : memref<64x432xf32, #tpu.memory_space<vmem>>, vector<64x16xf32>
    tpu.vector_store %arg18[%c0_353, %c192_354], %186 {strides = array<i32>} : memref<64x432xf32, #tpu.memory_space<vmem>>, vector<64x16xf32>,
    %c1_355 = arith.constant 1 : index
    %c1_356 = arith.constant 1 : index
    %c1_357 = arith.constant 1 : index
    %c0_358 = arith.constant 0 : index
    %188 = vector.load %arg16[%c1_355, %c1_356, %c1_357, %c0_358] : memref<6x6x6x16xf32, #tpu.memory_space<vmem>>, vector<4x4x4x16xf32>
    %189 = vector.shape_cast %188 : vector<4x4x4x16xf32> to vector<64x16xf32>
    %c0_359 = arith.constant 0 : index
    %c208_360 = arith.constant 208 : index
    %190 = vector.load %arg18[%c0_359, %c208_360] : memref<64x432xf32, #tpu.memory_space<vmem>>, vector<64x16xf32>
    tpu.vector_store %arg18[%c0_359, %c208_360], %189 {strides = array<i32>} : memref<64x432xf32, #tpu.memory_space<vmem>>, vector<64x16xf32>,
    %c1_361 = arith.constant 1 : index
    %c1_362 = arith.constant 1 : index
    %c2_363 = arith.constant 2 : index
    %c0_364 = arith.constant 0 : index
    %191 = vector.load %arg16[%c1_361, %c1_362, %c2_363, %c0_364] : memref<6x6x6x16xf32, #tpu.memory_space<vmem>>, vector<4x4x4x16xf32>
    %192 = vector.shape_cast %191 : vector<4x4x4x16xf32> to vector<64x16xf32>
    %c0_365 = arith.constant 0 : index
    %c224_366 = arith.constant 224 : index
    %193 = vector.load %arg18[%c0_365, %c224_366] : memref<64x432xf32, #tpu.memory_space<vmem>>, vector<64x16xf32>
    tpu.vector_store %arg18[%c0_365, %c224_366], %192 {strides = array<i32>} : memref<64x432xf32, #tpu.memory_space<vmem>>, vector<64x16xf32>,
    %c1_367 = arith.constant 1 : index
    %c2_368 = arith.constant 2 : index
    %c0_369 = arith.constant 0 : index
    %c0_370 = arith.constant 0 : index
    %194 = vector.load %arg16[%c1_367, %c2_368, %c0_369, %c0_370] : memref<6x6x6x16xf32, #tpu.memory_space<vmem>>, vector<4x4x4x16xf32>
    %195 = vector.shape_cast %194 : vector<4x4x4x16xf32> to vector<64x16xf32>
    %c0_371 = arith.constant 0 : index
    %c240_372 = arith.constant 240 : index
    %196 = vector.load %arg18[%c0_371, %c240_372] : memref<64x432xf32, #tpu.memory_space<vmem>>, vector<64x16xf32>
    tpu.vector_store %arg18[%c0_371, %c240_372], %195 {strides = array<i32>} : memref<64x432xf32, #tpu.memory_space<vmem>>, vector<64x16xf32>,
    %c1_373 = arith.constant 1 : index
    %c2_374 = arith.constant 2 : index
    %c1_375 = arith.constant 1 : index
    %c0_376 = arith.constant 0 : index
    %197 = vector.load %arg16[%c1_373, %c2_374, %c1_375, %c0_376] : memref<6x6x6x16xf32, #tpu.memory_space<vmem>>, vector<4x4x4x16xf32>
    %198 = vector.shape_cast %197 : vector<4x4x4x16xf32> to vector<64x16xf32>
    %c0_377 = arith.constant 0 : index
    %c256_378 = arith.constant 256 : index
    %199 = vector.load %arg18[%c0_377, %c256_378] : memref<64x432xf32, #tpu.memory_space<vmem>>, vector<64x16xf32>
    tpu.vector_store %arg18[%c0_377, %c256_378], %198 {strides = array<i32>} : memref<64x432xf32, #tpu.memory_space<vmem>>, vector<64x16xf32>,
    %c1_379 = arith.constant 1 : index
    %c2_380 = arith.constant 2 : index
    %c2_381 = arith.constant 2 : index
    %c0_382 = arith.constant 0 : index
    %200 = vector.load %arg16[%c1_379, %c2_380, %c2_381, %c0_382] : memref<6x6x6x16xf32, #tpu.memory_space<vmem>>, vector<4x4x4x16xf32>
    %201 = vector.shape_cast %200 : vector<4x4x4x16xf32> to vector<64x16xf32>
    %c0_383 = arith.constant 0 : index
    %c272_384 = arith.constant 272 : index
    %202 = vector.load %arg18[%c0_383, %c272_384] : memref<64x432xf32, #tpu.memory_space<vmem>>, vector<64x16xf32>
    tpu.vector_store %arg18[%c0_383, %c272_384], %201 {strides = array<i32>} : memref<64x432xf32, #tpu.memory_space<vmem>>, vector<64x16xf32>,
    %c2_385 = arith.constant 2 : index
    %c0_386 = arith.constant 0 : index
    %c0_387 = arith.constant 0 : index
    %c0_388 = arith.constant 0 : index
    %203 = vector.load %arg16[%c2_385, %c0_386, %c0_387, %c0_388] : memref<6x6x6x16xf32, #tpu.memory_space<vmem>>, vector<4x4x4x16xf32>
    %204 = vector.shape_cast %203 : vector<4x4x4x16xf32> to vector<64x16xf32>
    %c0_389 = arith.constant 0 : index
    %c288_390 = arith.constant 288 : index
    %205 = vector.load %arg18[%c0_389, %c288_390] : memref<64x432xf32, #tpu.memory_space<vmem>>, vector<64x16xf32>
    tpu.vector_store %arg18[%c0_389, %c288_390], %204 {strides = array<i32>} : memref<64x432xf32, #tpu.memory_space<vmem>>, vector<64x16xf32>,
    %c2_391 = arith.constant 2 : index
    %c0_392 = arith.constant 0 : index
    %c1_393 = arith.constant 1 : index
    %c0_394 = arith.constant 0 : index
    %206 = vector.load %arg16[%c2_391, %c0_392, %c1_393, %c0_394] : memref<6x6x6x16xf32, #tpu.memory_space<vmem>>, vector<4x4x4x16xf32>
    %207 = vector.shape_cast %206 : vector<4x4x4x16xf32> to vector<64x16xf32>
    %c0_395 = arith.constant 0 : index
    %c304_396 = arith.constant 304 : index
    %208 = vector.load %arg18[%c0_395, %c304_396] : memref<64x432xf32, #tpu.memory_space<vmem>>, vector<64x16xf32>
    tpu.vector_store %arg18[%c0_395, %c304_396], %207 {strides = array<i32>} : memref<64x432xf32, #tpu.memory_space<vmem>>, vector<64x16xf32>,
    %c2_397 = arith.constant 2 : index
    %c0_398 = arith.constant 0 : index
    %c2_399 = arith.constant 2 : index
    %c0_400 = arith.constant 0 : index
    %209 = vector.load %arg16[%c2_397, %c0_398, %c2_399, %c0_400] : memref<6x6x6x16xf32, #tpu.memory_space<vmem>>, vector<4x4x4x16xf32>
    %210 = vector.shape_cast %209 : vector<4x4x4x16xf32> to vector<64x16xf32>
    %c0_401 = arith.constant 0 : index
    %c320_402 = arith.constant 320 : index
    %211 = vector.load %arg18[%c0_401, %c320_402] : memref<64x432xf32, #tpu.memory_space<vmem>>, vector<64x16xf32>
    tpu.vector_store %arg18[%c0_401, %c320_402], %210 {strides = array<i32>} : memref<64x432xf32, #tpu.memory_space<vmem>>, vector<64x16xf32>,
    %c2_403 = arith.constant 2 : index
    %c1_404 = arith.constant 1 : index
    %c0_405 = arith.constant 0 : index
    %c0_406 = arith.constant 0 : index
    %212 = vector.load %arg16[%c2_403, %c1_404, %c0_405, %c0_406] : memref<6x6x6x16xf32, #tpu.memory_space<vmem>>, vector<4x4x4x16xf32>
    %213 = vector.shape_cast %212 : vector<4x4x4x16xf32> to vector<64x16xf32>
    %c0_407 = arith.constant 0 : index
    %c336_408 = arith.constant 336 : index
    %214 = vector.load %arg18[%c0_407, %c336_408] : memref<64x432xf32, #tpu.memory_space<vmem>>, vector<64x16xf32>
    tpu.vector_store %arg18[%c0_407, %c336_408], %213 {strides = array<i32>} : memref<64x432xf32, #tpu.memory_space<vmem>>, vector<64x16xf32>,
    %c2_409 = arith.constant 2 : index
    %c1_410 = arith.constant 1 : index
    %c1_411 = arith.constant 1 : index
    %c0_412 = arith.constant 0 : index
    %215 = vector.load %arg16[%c2_409, %c1_410, %c1_411, %c0_412] : memref<6x6x6x16xf32, #tpu.memory_space<vmem>>, vector<4x4x4x16xf32>
    %216 = vector.shape_cast %215 : vector<4x4x4x16xf32> to vector<64x16xf32>
    %c0_413 = arith.constant 0 : index
    %c352_414 = arith.constant 352 : index
    %217 = vector.load %arg18[%c0_413, %c352_414] : memref<64x432xf32, #tpu.memory_space<vmem>>, vector<64x16xf32>
    tpu.vector_store %arg18[%c0_413, %c352_414], %216 {strides = array<i32>} : memref<64x432xf32, #tpu.memory_space<vmem>>, vector<64x16xf32>,
    %c2_415 = arith.constant 2 : index
    %c1_416 = arith.constant 1 : index
    %c2_417 = arith.constant 2 : index
    %c0_418 = arith.constant 0 : index
    %218 = vector.load %arg16[%c2_415, %c1_416, %c2_417, %c0_418] : memref<6x6x6x16xf32, #tpu.memory_space<vmem>>, vector<4x4x4x16xf32>
    %219 = vector.shape_cast %218 : vector<4x4x4x16xf32> to vector<64x16xf32>
    %c0_419 = arith.constant 0 : index
    %c368_420 = arith.constant 368 : index
    %220 = vector.load %arg18[%c0_419, %c368_420] : memref<64x432xf32, #tpu.memory_space<vmem>>, vector<64x16xf32>
    tpu.vector_store %arg18[%c0_419, %c368_420], %219 {strides = array<i32>} : memref<64x432xf32, #tpu.memory_space<vmem>>, vector<64x16xf32>,
    %c2_421 = arith.constant 2 : index
    %c2_422 = arith.constant 2 : index
    %c0_423 = arith.constant 0 : index
    %c0_424 = arith.constant 0 : index
    %221 = vector.load %arg16[%c2_421, %c2_422, %c0_423, %c0_424] : memref<6x6x6x16xf32, #tpu.memory_space<vmem>>, vector<4x4x4x16xf32>
    %222 = vector.shape_cast %221 : vector<4x4x4x16xf32> to vector<64x16xf32>
    %c0_425 = arith.constant 0 : index
    %c384_426 = arith.constant 384 : index
    %223 = vector.load %arg18[%c0_425, %c384_426] : memref<64x432xf32, #tpu.memory_space<vmem>>, vector<64x16xf32>
    tpu.vector_store %arg18[%c0_425, %c384_426], %222 {strides = array<i32>} : memref<64x432xf32, #tpu.memory_space<vmem>>, vector<64x16xf32>,
    %c2_427 = arith.constant 2 : index
    %c2_428 = arith.constant 2 : index
    %c1_429 = arith.constant 1 : index
    %c0_430 = arith.constant 0 : index
    %224 = vector.load %arg16[%c2_427, %c2_428, %c1_429, %c0_430] : memref<6x6x6x16xf32, #tpu.memory_space<vmem>>, vector<4x4x4x16xf32>
    %225 = vector.shape_cast %224 : vector<4x4x4x16xf32> to vector<64x16xf32>
    %c0_431 = arith.constant 0 : index
    %c400_432 = arith.constant 400 : index
    %226 = vector.load %arg18[%c0_431, %c400_432] : memref<64x432xf32, #tpu.memory_space<vmem>>, vector<64x16xf32>
    tpu.vector_store %arg18[%c0_431, %c400_432], %225 {strides = array<i32>} : memref<64x432xf32, #tpu.memory_space<vmem>>, vector<64x16xf32>,
    %c2_433 = arith.constant 2 : index
    %c2_434 = arith.constant 2 : index
    %c2_435 = arith.constant 2 : index
    %c0_436 = arith.constant 0 : index
    %227 = vector.load %arg16[%c2_433, %c2_434, %c2_435, %c0_436] : memref<6x6x6x16xf32, #tpu.memory_space<vmem>>, vector<4x4x4x16xf32>
    %228 = vector.shape_cast %227 : vector<4x4x4x16xf32> to vector<64x16xf32>
    %c0_437 = arith.constant 0 : index
    %c416_438 = arith.constant 416 : index
    %229 = vector.load %arg18[%c0_437, %c416_438] : memref<64x432xf32, #tpu.memory_space<vmem>>, vector<64x16xf32>
    tpu.vector_store %arg18[%c0_437, %c416_438], %228 {strides = array<i32>} : memref<64x432xf32, #tpu.memory_space<vmem>>, vector<64x16xf32>,
    %c0_439 = arith.constant 0 : index
    %c0_440 = arith.constant 0 : index
    %230 = vector.load %arg17[%c0_439, %c0_440] : memref<64x432xf32, #tpu.memory_space<vmem>>, vector<64x432xf32>
    %c0_441 = arith.constant 0 : index
    %c0_442 = arith.constant 0 : index
    %231 = vector.load %arg5[%c0_441, %c0_442] : memref<432x16xf32, #tpu.memory_space<vmem>>, vector<432x16xf32>
    %cst_443 = arith.constant dense<0.000000e+00> : vector<64x16xf32>
    %232 = tpu.matmul %230, %231, %cst_443 {dimension_numbers = #tpu.dot_dimension_numbers<[1], [0], [0], [1], [0, 0, 1, 1], [], []>} : vector<64x432xf32>, vector<432x16xf32>, vector<64x16xf32> -> vector<64x16xf32>
    %c0_444 = arith.constant 0 : index
    %c0_445 = arith.constant 0 : index
    %233 = vector.load %arg18[%c0_444, %c0_445] : memref<64x432xf32, #tpu.memory_space<vmem>>, vector<64x432xf32>
    %c0_446 = arith.constant 0 : index
    %c0_447 = arith.constant 0 : index
    %234 = vector.load %arg6[%c0_446, %c0_447] : memref<432x16xf32, #tpu.memory_space<vmem>>, vector<432x16xf32>
    %cst_448 = arith.constant dense<0.000000e+00> : vector<64x16xf32>
    %235 = tpu.matmul %233, %234, %cst_448 {dimension_numbers = #tpu.dot_dimension_numbers<[1], [0], [0], [1], [0, 0, 1, 1], [], []>} : vector<64x432xf32>, vector<432x16xf32>, vector<64x16xf32> -> vector<64x16xf32>
    %236 = arith.addf %232, %235 : vector<64x16xf32>
    %c0_449 = arith.constant 0 : index
    %c0_450 = arith.constant 0 : index
    %237 = vector.load %arg7[%c0_449, %c0_450] : memref<1x16xf32, #tpu.memory_space<vmem>>, vector<1x16xf32>
    %238 = vector.broadcast %237 : vector<1x16xf32> to vector<64x16xf32>
    %239 = arith.addf %236, %238 : vector<64x16xf32>
    %cst_451 = arith.constant 0.000000e+00 : f32
    %240 = vector.broadcast %cst_451 : f32 to vector<64x16xf32>
    %241 = arith.cmpf ogt, %239, %240 : vector<64x16xf32>
    %c0_452 = arith.constant 0 : index
    %242 = memref.load %arg8[%c0_452] : memref<1xf32, #tpu.memory_space<smem>>
    %243 = vector.broadcast %242 : f32 to vector<64x16xf32>
    %244 = arith.mulf %243, %239 : vector<64x16xf32>
    %245 = arith.select %241, %239, %244 : vector<64x16xi1>, vector<64x16xf32>
    %246 = vector.shape_cast %245 : vector<64x16xf32> to vector<4x4x4x16xf32>
    %c1_453 = arith.constant 1 : index
    %c1_454 = arith.constant 1 : index
    %c1_455 = arith.constant 1 : index
    %c0_456 = arith.constant 0 : index
    %247 = vector.load %arg15[%c1_453, %c1_454, %c1_455, %c0_456] : memref<6x6x6x16xf32, #tpu.memory_space<vmem>>, vector<4x4x4x16xf32>
    tpu.vector_store %arg15[%c1_453, %c1_454, %c1_455, %c0_456], %246 {strides = array<i32>} : memref<6x6x6x16xf32, #tpu.memory_space<vmem>>, vector<4x4x4x16xf32>,
    %c0_457 = arith.constant 0 : index
    %c0_458 = arith.constant 0 : index
    %c0_459 = arith.constant 0 : index
    %c0_460 = arith.constant 0 : index
    %248 = vector.load %arg15[%c0_457, %c0_458, %c0_459, %c0_460] : memref<6x6x6x16xf32, #tpu.memory_space<vmem>>, vector<4x4x4x16xf32>
    %249 = vector.shape_cast %248 : vector<4x4x4x16xf32> to vector<64x16xf32>
    %c0_461 = arith.constant 0 : index
    %c0_462 = arith.constant 0 : index
    %250 = vector.load %arg17[%c0_461, %c0_462] : memref<64x432xf32, #tpu.memory_space<vmem>>, vector<64x16xf32>
    tpu.vector_store %arg17[%c0_461, %c0_462], %249 {strides = array<i32>} : memref<64x432xf32, #tpu.memory_space<vmem>>, vector<64x16xf32>,
    %c0_463 = arith.constant 0 : index
    %c0_464 = arith.constant 0 : index
    %c1_465 = arith.constant 1 : index
    %c0_466 = arith.constant 0 : index
    %251 = vector.load %arg15[%c0_463, %c0_464, %c1_465, %c0_466] : memref<6x6x6x16xf32, #tpu.memory_space<vmem>>, vector<4x4x4x16xf32>
    %252 = vector.shape_cast %251 : vector<4x4x4x16xf32> to vector<64x16xf32>
    %c0_467 = arith.constant 0 : index
    %c16_468 = arith.constant 16 : index
    %253 = vector.load %arg17[%c0_467, %c16_468] : memref<64x432xf32, #tpu.memory_space<vmem>>, vector<64x16xf32>
    tpu.vector_store %arg17[%c0_467, %c16_468], %252 {strides = array<i32>} : memref<64x432xf32, #tpu.memory_space<vmem>>, vector<64x16xf32>,
    %c0_469 = arith.constant 0 : index
    %c0_470 = arith.constant 0 : index
    %c2_471 = arith.constant 2 : index
    %c0_472 = arith.constant 0 : index
    %254 = vector.load %arg15[%c0_469, %c0_470, %c2_471, %c0_472] : memref<6x6x6x16xf32, #tpu.memory_space<vmem>>, vector<4x4x4x16xf32>
    %255 = vector.shape_cast %254 : vector<4x4x4x16xf32> to vector<64x16xf32>
    %c0_473 = arith.constant 0 : index
    %c32_474 = arith.constant 32 : index
    %256 = vector.load %arg17[%c0_473, %c32_474] : memref<64x432xf32, #tpu.memory_space<vmem>>, vector<64x16xf32>
    tpu.vector_store %arg17[%c0_473, %c32_474], %255 {strides = array<i32>} : memref<64x432xf32, #tpu.memory_space<vmem>>, vector<64x16xf32>,
    %c0_475 = arith.constant 0 : index
    %c1_476 = arith.constant 1 : index
    %c0_477 = arith.constant 0 : index
    %c0_478 = arith.constant 0 : index
    %257 = vector.load %arg15[%c0_475, %c1_476, %c0_477, %c0_478] : memref<6x6x6x16xf32, #tpu.memory_space<vmem>>, vector<4x4x4x16xf32>
    %258 = vector.shape_cast %257 : vector<4x4x4x16xf32> to vector<64x16xf32>
    %c0_479 = arith.constant 0 : index
    %c48_480 = arith.constant 48 : index
    %259 = vector.load %arg17[%c0_479, %c48_480] : memref<64x432xf32, #tpu.memory_space<vmem>>, vector<64x16xf32>
    tpu.vector_store %arg17[%c0_479, %c48_480], %258 {strides = array<i32>} : memref<64x432xf32, #tpu.memory_space<vmem>>, vector<64x16xf32>,
    %c0_481 = arith.constant 0 : index
    %c1_482 = arith.constant 1 : index
    %c1_483 = arith.constant 1 : index
    %c0_484 = arith.constant 0 : index
    %260 = vector.load %arg15[%c0_481, %c1_482, %c1_483, %c0_484] : memref<6x6x6x16xf32, #tpu.memory_space<vmem>>, vector<4x4x4x16xf32>
    %261 = vector.shape_cast %260 : vector<4x4x4x16xf32> to vector<64x16xf32>
    %c0_485 = arith.constant 0 : index
    %c64_486 = arith.constant 64 : index
    %262 = vector.load %arg17[%c0_485, %c64_486] : memref<64x432xf32, #tpu.memory_space<vmem>>, vector<64x16xf32>
    tpu.vector_store %arg17[%c0_485, %c64_486], %261 {strides = array<i32>} : memref<64x432xf32, #tpu.memory_space<vmem>>, vector<64x16xf32>,
    %c0_487 = arith.constant 0 : index
    %c1_488 = arith.constant 1 : index
    %c2_489 = arith.constant 2 : index
    %c0_490 = arith.constant 0 : index
    %263 = vector.load %arg15[%c0_487, %c1_488, %c2_489, %c0_490] : memref<6x6x6x16xf32, #tpu.memory_space<vmem>>, vector<4x4x4x16xf32>
    %264 = vector.shape_cast %263 : vector<4x4x4x16xf32> to vector<64x16xf32>
    %c0_491 = arith.constant 0 : index
    %c80_492 = arith.constant 80 : index
    %265 = vector.load %arg17[%c0_491, %c80_492] : memref<64x432xf32, #tpu.memory_space<vmem>>, vector<64x16xf32>
    tpu.vector_store %arg17[%c0_491, %c80_492], %264 {strides = array<i32>} : memref<64x432xf32, #tpu.memory_space<vmem>>, vector<64x16xf32>,
    %c0_493 = arith.constant 0 : index
    %c2_494 = arith.constant 2 : index
    %c0_495 = arith.constant 0 : index
    %c0_496 = arith.constant 0 : index
    %266 = vector.load %arg15[%c0_493, %c2_494, %c0_495, %c0_496] : memref<6x6x6x16xf32, #tpu.memory_space<vmem>>, vector<4x4x4x16xf32>
    %267 = vector.shape_cast %266 : vector<4x4x4x16xf32> to vector<64x16xf32>
    %c0_497 = arith.constant 0 : index
    %c96_498 = arith.constant 96 : index
    %268 = vector.load %arg17[%c0_497, %c96_498] : memref<64x432xf32, #tpu.memory_space<vmem>>, vector<64x16xf32>
    tpu.vector_store %arg17[%c0_497, %c96_498], %267 {strides = array<i32>} : memref<64x432xf32, #tpu.memory_space<vmem>>, vector<64x16xf32>,
    %c0_499 = arith.constant 0 : index
    %c2_500 = arith.constant 2 : index
    %c1_501 = arith.constant 1 : index
    %c0_502 = arith.constant 0 : index
    %269 = vector.load %arg15[%c0_499, %c2_500, %c1_501, %c0_502] : memref<6x6x6x16xf32, #tpu.memory_space<vmem>>, vector<4x4x4x16xf32>
    %270 = vector.shape_cast %269 : vector<4x4x4x16xf32> to vector<64x16xf32>
    %c0_503 = arith.constant 0 : index
    %c112_504 = arith.constant 112 : index
    %271 = vector.load %arg17[%c0_503, %c112_504] : memref<64x432xf32, #tpu.memory_space<vmem>>, vector<64x16xf32>
    tpu.vector_store %arg17[%c0_503, %c112_504], %270 {strides = array<i32>} : memref<64x432xf32, #tpu.memory_space<vmem>>, vector<64x16xf32>,
    %c0_505 = arith.constant 0 : index
    %c2_506 = arith.constant 2 : index
    %c2_507 = arith.constant 2 : index
    %c0_508 = arith.constant 0 : index
    %272 = vector.load %arg15[%c0_505, %c2_506, %c2_507, %c0_508] : memref<6x6x6x16xf32, #tpu.memory_space<vmem>>, vector<4x4x4x16xf32>
    %273 = vector.shape_cast %272 : vector<4x4x4x16xf32> to vector<64x16xf32>
    %c0_509 = arith.constant 0 : index
    %c128_510 = arith.constant 128 : index
    %274 = vector.load %arg17[%c0_509, %c128_510] : memref<64x432xf32, #tpu.memory_space<vmem>>, vector<64x16xf32>
    tpu.vector_store %arg17[%c0_509, %c128_510], %273 {strides = array<i32>} : memref<64x432xf32, #tpu.memory_space<vmem>>, vector<64x16xf32>,
    %c1_511 = arith.constant 1 : index
    %c0_512 = arith.constant 0 : index
    %c0_513 = arith.constant 0 : index
    %c0_514 = arith.constant 0 : index
    %275 = vector.load %arg15[%c1_511, %c0_512, %c0_513, %c0_514] : memref<6x6x6x16xf32, #tpu.memory_space<vmem>>, vector<4x4x4x16xf32>
    %276 = vector.shape_cast %275 : vector<4x4x4x16xf32> to vector<64x16xf32>
    %c0_515 = arith.constant 0 : index
    %c144_516 = arith.constant 144 : index
    %277 = vector.load %arg17[%c0_515, %c144_516] : memref<64x432xf32, #tpu.memory_space<vmem>>, vector<64x16xf32>
    tpu.vector_store %arg17[%c0_515, %c144_516], %276 {strides = array<i32>} : memref<64x432xf32, #tpu.memory_space<vmem>>, vector<64x16xf32>,
    %c1_517 = arith.constant 1 : index
    %c0_518 = arith.constant 0 : index
    %c1_519 = arith.constant 1 : index
    %c0_520 = arith.constant 0 : index
    %278 = vector.load %arg15[%c1_517, %c0_518, %c1_519, %c0_520] : memref<6x6x6x16xf32, #tpu.memory_space<vmem>>, vector<4x4x4x16xf32>
    %279 = vector.shape_cast %278 : vector<4x4x4x16xf32> to vector<64x16xf32>
    %c0_521 = arith.constant 0 : index
    %c160_522 = arith.constant 160 : index
    %280 = vector.load %arg17[%c0_521, %c160_522] : memref<64x432xf32, #tpu.memory_space<vmem>>, vector<64x16xf32>
    tpu.vector_store %arg17[%c0_521, %c160_522], %279 {strides = array<i32>} : memref<64x432xf32, #tpu.memory_space<vmem>>, vector<64x16xf32>,
    %c1_523 = arith.constant 1 : index
    %c0_524 = arith.constant 0 : index
    %c2_525 = arith.constant 2 : index
    %c0_526 = arith.constant 0 : index
    %281 = vector.load %arg15[%c1_523, %c0_524, %c2_525, %c0_526] : memref<6x6x6x16xf32, #tpu.memory_space<vmem>>, vector<4x4x4x16xf32>
    %282 = vector.shape_cast %281 : vector<4x4x4x16xf32> to vector<64x16xf32>
    %c0_527 = arith.constant 0 : index
    %c176_528 = arith.constant 176 : index
    %283 = vector.load %arg17[%c0_527, %c176_528] : memref<64x432xf32, #tpu.memory_space<vmem>>, vector<64x16xf32>
    tpu.vector_store %arg17[%c0_527, %c176_528], %282 {strides = array<i32>} : memref<64x432xf32, #tpu.memory_space<vmem>>, vector<64x16xf32>,
    %c1_529 = arith.constant 1 : index
    %c1_530 = arith.constant 1 : index
    %c0_531 = arith.constant 0 : index
    %c0_532 = arith.constant 0 : index
    %284 = vector.load %arg15[%c1_529, %c1_530, %c0_531, %c0_532] : memref<6x6x6x16xf32, #tpu.memory_space<vmem>>, vector<4x4x4x16xf32>
    %285 = vector.shape_cast %284 : vector<4x4x4x16xf32> to vector<64x16xf32>
    %c0_533 = arith.constant 0 : index
    %c192_534 = arith.constant 192 : index
    %286 = vector.load %arg17[%c0_533, %c192_534] : memref<64x432xf32, #tpu.memory_space<vmem>>, vector<64x16xf32>
    tpu.vector_store %arg17[%c0_533, %c192_534], %285 {strides = array<i32>} : memref<64x432xf32, #tpu.memory_space<vmem>>, vector<64x16xf32>,
    %c1_535 = arith.constant 1 : index
    %c1_536 = arith.constant 1 : index
    %c1_537 = arith.constant 1 : index
    %c0_538 = arith.constant 0 : index
    %287 = vector.load %arg15[%c1_535, %c1_536, %c1_537, %c0_538] : memref<6x6x6x16xf32, #tpu.memory_space<vmem>>, vector<4x4x4x16xf32>
    %288 = vector.shape_cast %287 : vector<4x4x4x16xf32> to vector<64x16xf32>
    %c0_539 = arith.constant 0 : index
    %c208_540 = arith.constant 208 : index
    %289 = vector.load %arg17[%c0_539, %c208_540] : memref<64x432xf32, #tpu.memory_space<vmem>>, vector<64x16xf32>
    tpu.vector_store %arg17[%c0_539, %c208_540], %288 {strides = array<i32>} : memref<64x432xf32, #tpu.memory_space<vmem>>, vector<64x16xf32>,
    %c1_541 = arith.constant 1 : index
    %c1_542 = arith.constant 1 : index
    %c2_543 = arith.constant 2 : index
    %c0_544 = arith.constant 0 : index
    %290 = vector.load %arg15[%c1_541, %c1_542, %c2_543, %c0_544] : memref<6x6x6x16xf32, #tpu.memory_space<vmem>>, vector<4x4x4x16xf32>
    %291 = vector.shape_cast %290 : vector<4x4x4x16xf32> to vector<64x16xf32>
    %c0_545 = arith.constant 0 : index
    %c224_546 = arith.constant 224 : index
    %292 = vector.load %arg17[%c0_545, %c224_546] : memref<64x432xf32, #tpu.memory_space<vmem>>, vector<64x16xf32>
    tpu.vector_store %arg17[%c0_545, %c224_546], %291 {strides = array<i32>} : memref<64x432xf32, #tpu.memory_space<vmem>>, vector<64x16xf32>,
    %c1_547 = arith.constant 1 : index
    %c2_548 = arith.constant 2 : index
    %c0_549 = arith.constant 0 : index
    %c0_550 = arith.constant 0 : index
    %293 = vector.load %arg15[%c1_547, %c2_548, %c0_549, %c0_550] : memref<6x6x6x16xf32, #tpu.memory_space<vmem>>, vector<4x4x4x16xf32>
    %294 = vector.shape_cast %293 : vector<4x4x4x16xf32> to vector<64x16xf32>
    %c0_551 = arith.constant 0 : index
    %c240_552 = arith.constant 240 : index
    %295 = vector.load %arg17[%c0_551, %c240_552] : memref<64x432xf32, #tpu.memory_space<vmem>>, vector<64x16xf32>
    tpu.vector_store %arg17[%c0_551, %c240_552], %294 {strides = array<i32>} : memref<64x432xf32, #tpu.memory_space<vmem>>, vector<64x16xf32>,
    %c1_553 = arith.constant 1 : index
    %c2_554 = arith.constant 2 : index
    %c1_555 = arith.constant 1 : index
    %c0_556 = arith.constant 0 : index
    %296 = vector.load %arg15[%c1_553, %c2_554, %c1_555, %c0_556] : memref<6x6x6x16xf32, #tpu.memory_space<vmem>>, vector<4x4x4x16xf32>
    %297 = vector.shape_cast %296 : vector<4x4x4x16xf32> to vector<64x16xf32>
    %c0_557 = arith.constant 0 : index
    %c256_558 = arith.constant 256 : index
    %298 = vector.load %arg17[%c0_557, %c256_558] : memref<64x432xf32, #tpu.memory_space<vmem>>, vector<64x16xf32>
    tpu.vector_store %arg17[%c0_557, %c256_558], %297 {strides = array<i32>} : memref<64x432xf32, #tpu.memory_space<vmem>>, vector<64x16xf32>,
    %c1_559 = arith.constant 1 : index
    %c2_560 = arith.constant 2 : index
    %c2_561 = arith.constant 2 : index
    %c0_562 = arith.constant 0 : index
    %299 = vector.load %arg15[%c1_559, %c2_560, %c2_561, %c0_562] : memref<6x6x6x16xf32, #tpu.memory_space<vmem>>, vector<4x4x4x16xf32>
    %300 = vector.shape_cast %299 : vector<4x4x4x16xf32> to vector<64x16xf32>
    %c0_563 = arith.constant 0 : index
    %c272_564 = arith.constant 272 : index
    %301 = vector.load %arg17[%c0_563, %c272_564] : memref<64x432xf32, #tpu.memory_space<vmem>>, vector<64x16xf32>
    tpu.vector_store %arg17[%c0_563, %c272_564], %300 {strides = array<i32>} : memref<64x432xf32, #tpu.memory_space<vmem>>, vector<64x16xf32>,
    %c2_565 = arith.constant 2 : index
    %c0_566 = arith.constant 0 : index
    %c0_567 = arith.constant 0 : index
    %c0_568 = arith.constant 0 : index
    %302 = vector.load %arg15[%c2_565, %c0_566, %c0_567, %c0_568] : memref<6x6x6x16xf32, #tpu.memory_space<vmem>>, vector<4x4x4x16xf32>
    %303 = vector.shape_cast %302 : vector<4x4x4x16xf32> to vector<64x16xf32>
    %c0_569 = arith.constant 0 : index
    %c288_570 = arith.constant 288 : index
    %304 = vector.load %arg17[%c0_569, %c288_570] : memref<64x432xf32, #tpu.memory_space<vmem>>, vector<64x16xf32>
    tpu.vector_store %arg17[%c0_569, %c288_570], %303 {strides = array<i32>} : memref<64x432xf32, #tpu.memory_space<vmem>>, vector<64x16xf32>,
    %c2_571 = arith.constant 2 : index
    %c0_572 = arith.constant 0 : index
    %c1_573 = arith.constant 1 : index
    %c0_574 = arith.constant 0 : index
    %305 = vector.load %arg15[%c2_571, %c0_572, %c1_573, %c0_574] : memref<6x6x6x16xf32, #tpu.memory_space<vmem>>, vector<4x4x4x16xf32>
    %306 = vector.shape_cast %305 : vector<4x4x4x16xf32> to vector<64x16xf32>
    %c0_575 = arith.constant 0 : index
    %c304_576 = arith.constant 304 : index
    %307 = vector.load %arg17[%c0_575, %c304_576] : memref<64x432xf32, #tpu.memory_space<vmem>>, vector<64x16xf32>
    tpu.vector_store %arg17[%c0_575, %c304_576], %306 {strides = array<i32>} : memref<64x432xf32, #tpu.memory_space<vmem>>, vector<64x16xf32>,
    %c2_577 = arith.constant 2 : index
    %c0_578 = arith.constant 0 : index
    %c2_579 = arith.constant 2 : index
    %c0_580 = arith.constant 0 : index
    %308 = vector.load %arg15[%c2_577, %c0_578, %c2_579, %c0_580] : memref<6x6x6x16xf32, #tpu.memory_space<vmem>>, vector<4x4x4x16xf32>
    %309 = vector.shape_cast %308 : vector<4x4x4x16xf32> to vector<64x16xf32>
    %c0_581 = arith.constant 0 : index
    %c320_582 = arith.constant 320 : index
    %310 = vector.load %arg17[%c0_581, %c320_582] : memref<64x432xf32, #tpu.memory_space<vmem>>, vector<64x16xf32>
    tpu.vector_store %arg17[%c0_581, %c320_582], %309 {strides = array<i32>} : memref<64x432xf32, #tpu.memory_space<vmem>>, vector<64x16xf32>,
    %c2_583 = arith.constant 2 : index
    %c1_584 = arith.constant 1 : index
    %c0_585 = arith.constant 0 : index
    %c0_586 = arith.constant 0 : index
    %311 = vector.load %arg15[%c2_583, %c1_584, %c0_585, %c0_586] : memref<6x6x6x16xf32, #tpu.memory_space<vmem>>, vector<4x4x4x16xf32>
    %312 = vector.shape_cast %311 : vector<4x4x4x16xf32> to vector<64x16xf32>
    %c0_587 = arith.constant 0 : index
    %c336_588 = arith.constant 336 : index
    %313 = vector.load %arg17[%c0_587, %c336_588] : memref<64x432xf32, #tpu.memory_space<vmem>>, vector<64x16xf32>
    tpu.vector_store %arg17[%c0_587, %c336_588], %312 {strides = array<i32>} : memref<64x432xf32, #tpu.memory_space<vmem>>, vector<64x16xf32>,
    %c2_589 = arith.constant 2 : index
    %c1_590 = arith.constant 1 : index
    %c1_591 = arith.constant 1 : index
    %c0_592 = arith.constant 0 : index
    %314 = vector.load %arg15[%c2_589, %c1_590, %c1_591, %c0_592] : memref<6x6x6x16xf32, #tpu.memory_space<vmem>>, vector<4x4x4x16xf32>
    %315 = vector.shape_cast %314 : vector<4x4x4x16xf32> to vector<64x16xf32>
    %c0_593 = arith.constant 0 : index
    %c352_594 = arith.constant 352 : index
    %316 = vector.load %arg17[%c0_593, %c352_594] : memref<64x432xf32, #tpu.memory_space<vmem>>, vector<64x16xf32>
    tpu.vector_store %arg17[%c0_593, %c352_594], %315 {strides = array<i32>} : memref<64x432xf32, #tpu.memory_space<vmem>>, vector<64x16xf32>,
    %c2_595 = arith.constant 2 : index
    %c1_596 = arith.constant 1 : index
    %c2_597 = arith.constant 2 : index
    %c0_598 = arith.constant 0 : index
    %317 = vector.load %arg15[%c2_595, %c1_596, %c2_597, %c0_598] : memref<6x6x6x16xf32, #tpu.memory_space<vmem>>, vector<4x4x4x16xf32>
    %318 = vector.shape_cast %317 : vector<4x4x4x16xf32> to vector<64x16xf32>
    %c0_599 = arith.constant 0 : index
    %c368_600 = arith.constant 368 : index
    %319 = vector.load %arg17[%c0_599, %c368_600] : memref<64x432xf32, #tpu.memory_space<vmem>>, vector<64x16xf32>
    tpu.vector_store %arg17[%c0_599, %c368_600], %318 {strides = array<i32>} : memref<64x432xf32, #tpu.memory_space<vmem>>, vector<64x16xf32>,
    %c2_601 = arith.constant 2 : index
    %c2_602 = arith.constant 2 : index
    %c0_603 = arith.constant 0 : index
    %c0_604 = arith.constant 0 : index
    %320 = vector.load %arg15[%c2_601, %c2_602, %c0_603, %c0_604] : memref<6x6x6x16xf32, #tpu.memory_space<vmem>>, vector<4x4x4x16xf32>
    %321 = vector.shape_cast %320 : vector<4x4x4x16xf32> to vector<64x16xf32>
    %c0_605 = arith.constant 0 : index
    %c384_606 = arith.constant 384 : index
    %322 = vector.load %arg17[%c0_605, %c384_606] : memref<64x432xf32, #tpu.memory_space<vmem>>, vector<64x16xf32>
    tpu.vector_store %arg17[%c0_605, %c384_606], %321 {strides = array<i32>} : memref<64x432xf32, #tpu.memory_space<vmem>>, vector<64x16xf32>,
    %c2_607 = arith.constant 2 : index
    %c2_608 = arith.constant 2 : index
    %c1_609 = arith.constant 1 : index
    %c0_610 = arith.constant 0 : index
    %323 = vector.load %arg15[%c2_607, %c2_608, %c1_609, %c0_610] : memref<6x6x6x16xf32, #tpu.memory_space<vmem>>, vector<4x4x4x16xf32>
    %324 = vector.shape_cast %323 : vector<4x4x4x16xf32> to vector<64x16xf32>
    %c0_611 = arith.constant 0 : index
    %c400_612 = arith.constant 400 : index
    %325 = vector.load %arg17[%c0_611, %c400_612] : memref<64x432xf32, #tpu.memory_space<vmem>>, vector<64x16xf32>
    tpu.vector_store %arg17[%c0_611, %c400_612], %324 {strides = array<i32>} : memref<64x432xf32, #tpu.memory_space<vmem>>, vector<64x16xf32>,
    %c2_613 = arith.constant 2 : index
    %c2_614 = arith.constant 2 : index
    %c2_615 = arith.constant 2 : index
    %c0_616 = arith.constant 0 : index
    %326 = vector.load %arg15[%c2_613, %c2_614, %c2_615, %c0_616] : memref<6x6x6x16xf32, #tpu.memory_space<vmem>>, vector<4x4x4x16xf32>
    %327 = vector.shape_cast %326 : vector<4x4x4x16xf32> to vector<64x16xf32>
    %c0_617 = arith.constant 0 : index
    %c416_618 = arith.constant 416 : index
    %328 = vector.load %arg17[%c0_617, %c416_618] : memref<64x432xf32, #tpu.memory_space<vmem>>, vector<64x16xf32>
    tpu.vector_store %arg17[%c0_617, %c416_618], %327 {strides = array<i32>} : memref<64x432xf32, #tpu.memory_space<vmem>>, vector<64x16xf32>,
    %c0_619 = arith.constant 0 : index
    %c0_620 = arith.constant 0 : index
    %329 = vector.load %arg17[%c0_619, %c0_620] : memref<64x432xf32, #tpu.memory_space<vmem>>, vector<64x432xf32>
    %c0_621 = arith.constant 0 : index
    %c0_622 = arith.constant 0 : index
    %c0_623 = arith.constant 0 : index
    %330 = vector.load %arg9[%c0_621, %c0_622, %c0_623] : memref<1x432x16xf32, #tpu.memory_space<vmem>>, vector<1x432x16xf32>
    %331 = vector.shape_cast %330 : vector<1x432x16xf32> to vector<432x16xf32>
    %cst_624 = arith.constant dense<0.000000e+00> : vector<64x16xf32>
    %332 = tpu.matmul %329, %331, %cst_624 {dimension_numbers = #tpu.dot_dimension_numbers<[1], [0], [0], [1], [0, 0, 1, 1], [], []>} : vector<64x432xf32>, vector<432x16xf32>, vector<64x16xf32> -> vector<64x16xf32>
    %c0_625 = arith.constant 0 : index
    %c0_626 = arith.constant 0 : index
    %c0_627 = arith.constant 0 : index
    %333 = vector.load %arg10[%c0_625, %c0_626, %c0_627] : memref<1x1x16xf32, #tpu.memory_space<vmem>>, vector<1x1x16xf32>
    %334 = vector.shape_cast %333 : vector<1x1x16xf32> to vector<1x16xf32>
    %335 = vector.broadcast %334 : vector<1x16xf32> to vector<64x16xf32>
    %336 = arith.addf %332, %335 : vector<64x16xf32>
    %cst_628 = arith.constant 0.000000e+00 : f32
    %337 = vector.broadcast %cst_628 : f32 to vector<64x16xf32>
    %338 = arith.cmpf ogt, %336, %337 : vector<64x16xf32>
    %c0_629 = arith.constant 0 : index
    %339 = memref.load %arg11[%c0_629] : memref<1xf32, #tpu.memory_space<smem>>
    %340 = vector.broadcast %339 : f32 to vector<64x16xf32>
    %341 = arith.mulf %340, %336 : vector<64x16xf32>
    %342 = arith.select %338, %336, %341 : vector<64x16xi1>, vector<64x16xf32>
    %343 = arith.addf %342, %245 : vector<64x16xf32>
    %344 = vector.shape_cast %343 : vector<64x16xf32> to vector<4x4x4x16xf32>
    %c0_630 = arith.constant 0 : index
    %c0_631 = arith.constant 0 : index
    %c0_632 = arith.constant 0 : index
    %c0_633 = arith.constant 0 : index
    %c0_634 = arith.constant 0 : index
    %345 = vector.load %arg12[%c0_630, %c0_631, %c0_632, %c0_633, %c0_634] : memref<1x4x4x4x16xf32, #tpu.memory_space<vmem>>, vector<1x4x4x4x16xf32>
    %346 = vector.shape_cast %345 : vector<1x4x4x4x16xf32> to vector<4x4x4x16xf32>
    %347 = vector.shape_cast %344 : vector<4x4x4x16xf32> to vector<1x4x4x4x16xf32>
    tpu.vector_store %arg12[%c0_630, %c0_631, %c0_632, %c0_633, %c0_634], %347 {strides = array<i32>} : memref<1x4x4x4x16xf32, #tpu.memory_space<vmem>>, vector<1x4x4x4x16xf32>,
    return
  }
  func.func @transform_0(%arg0: i32) -> (i32, i32, i32, i32, i32) {
    %c0_i32 = arith.constant 0 : i32
    %c0_i32_0 = arith.constant 0 : i32
    %c0_i32_1 = arith.constant 0 : i32
    %c0_i32_2 = arith.constant 0 : i32
    %c0_i32_3 = arith.constant 0 : i32
    return %arg0, %c0_i32, %c0_i32_0, %c0_i32_1, %c0_i32_2 : i32, i32, i32, i32, i32
  }
  func.func @transform_1(%arg0: i32) -> (i32, i32, i32, i32, i32) {
    %c0_i32 = arith.constant 0 : i32
    %c0_i32_0 = arith.constant 0 : i32
    %c0_i32_1 = arith.constant 0 : i32
    %c0_i32_2 = arith.constant 0 : i32
    %c0_i32_3 = arith.constant 0 : i32
    return %arg0, %c0_i32, %c0_i32_0, %c0_i32_1, %c0_i32_2 : i32, i32, i32, i32, i32
  }
  func.func @transform_2(%arg0: i32) -> (i32, i32) {
    %c0_i32 = arith.constant 0 : i32
    %c0_i32_0 = arith.constant 0 : i32
    %c0_i32_1 = arith.constant 0 : i32
    return %c0_i32, %c0_i32_0 : i32, i32
  }
  func.func @transform_3(%arg0: i32) -> (i32, i32) {
    %c0_i32 = arith.constant 0 : i32
    %c0_i32_0 = arith.constant 0 : i32
    %c0_i32_1 = arith.constant 0 : i32
    return %c0_i32, %c0_i32_0 : i32, i32
  }
  func.func @transform_4(%arg0: i32) -> (i32, i32) {
    %c0_i32 = arith.constant 0 : i32
    %c0_i32_0 = arith.constant 0 : i32
    %c0_i32_1 = arith.constant 0 : i32
    return %c0_i32, %c0_i32_0 : i32, i32
  }
  func.func @transform_5(%arg0: i32) -> (i32, i32) {
    %c0_i32 = arith.constant 0 : i32
    %c0_i32_0 = arith.constant 0 : i32
    %c0_i32_1 = arith.constant 0 : i32
    return %c0_i32, %c0_i32_0 : i32, i32
  }
  func.func @transform_6(%arg0: i32) -> (i32, i32) {
    %c0_i32 = arith.constant 0 : i32
    %c0_i32_0 = arith.constant 0 : i32
    %c0_i32_1 = arith.constant 0 : i32
    return %c0_i32, %c0_i32_0 : i32, i32
  }
  func.func @transform_7(%arg0: i32) -> i32 {
    %c0_i32 = arith.constant 0 : i32
    %c0_i32_0 = arith.constant 0 : i32
    return %c0_i32 : i32
  }
  func.func @transform_8(%arg0: i32) -> (i32, i32, i32) {
    %c0_i32 = arith.constant 0 : i32
    %c0_i32_0 = arith.constant 0 : i32
    %c0_i32_1 = arith.constant 0 : i32
    %c0_i32_2 = arith.constant 0 : i32
    return %c0_i32, %c0_i32_0, %c0_i32_1 : i32, i32, i32
  }
  func.func @transform_9(%arg0: i32) -> (i32, i32, i32) {
    %c0_i32 = arith.constant 0 : i32
    %c0_i32_0 = arith.constant 0 : i32
    %c0_i32_1 = arith.constant 0 : i32
    %c0_i32_2 = arith.constant 0 : i32
    return %c0_i32, %c0_i32_0, %c0_i32_1 : i32, i32, i32
  }
  func.func @transform_10(%arg0: i32) -> i32 {
    %c0_i32 = arith.constant 0 : i32
    %c0_i32_0 = arith.constant 0 : i32
    return %c0_i32 : i32
  }
  func.func @transform_11(%arg0: i32) -> (i32, i32, i32, i32, i32) {
    %c0_i32 = arith.constant 0 : i32
    %c0_i32_0 = arith.constant 0 : i32
    %c0_i32_1 = arith.constant 0 : i32
    %c0_i32_2 = arith.constant 0 : i32
    %c0_i32_3 = arith.constant 0 : i32
    return %arg0, %c0_i32, %c0_i32_0, %c0_i32_1, %c0_i32_2 : i32, i32, i32, i32, i32
  }
}

</mosaic_0001>

<bundles_post_ra>
// kernel: tile.18
= control target key start
LH: loop header
LB: loop body
LE: loop exit
PB: predicated region body
PF: predicated region fallthrough
CT: control target
= control target key end

     0   :  { %s22_s0 = inlined_call_operand.vmem [shape: f32[2], index: 0, kind: input, shape index: {}]   ;;  %s23_s1 = inlined_call_operand.vmem [shape: f32[8,2], index: 1, kind: output, shape index: {}]  }
   0x1   :  { %v4_v0 = vld [vmem:[%s22_s0] ss:$0 sm:$0xff] }
   0x2   :  { %5 = vst [vmem:[%s23_s1] sm:$0xff] %v4_v0 }

// kernel: tile.19
= control target key start
LH: loop header
LB: loop body
LE: loop exit
PB: predicated region body
PF: predicated region fallthrough
CT: control target
= control target key end

     0   :  { %s67_s10 = smov 14   ;;  %s68_s11 = smov 10   ;;  %vm3_vm0 = vcmask 15360   ;;  %vm9_vm1 = vcmask 130160   ;;  %vm15_vm2 = vcmask 113760   ;;  %vm21_vm3 = vcmask 97360   ;;  %s111_s0 = inlined_call_operand.vmem [shape: f32[8,2], index: 0, kind: input, shape index: {}]   ;;  %s112_s1 = inlined_call_operand.vmem [shape: f32[1,16], index: 1, kind: output, shape index: {}]  }
   0x1   :  { %v53_v0 = vld [vmem:[%s111_s0 + $0x7] sm:$0x1]   ;;  %v55_v1 = vld [vmem:[%s111_s0 + $0x5] sm:$0x1]   ;;  %v54_v2 = vld [vmem:[%s111_s0 + $0x6] sm:$0x1]  }
   0x2   :  { %7 = vrot.lane.b32.xlu0 %v53_v0, %s67_s10  ;;  %19 = vrot.lane.b32.xlu1 %v55_v1, %s68_s11  ;;  %v56_v3 = vld [vmem:[%s111_s0 + $0x4] sm:$0x1]   ;;  %v2_v4 = vld [vmem:[%s111_s0] sm:$0x1]   ;;  %s69_s18 = smov 12   ;;  %s70_s19 = smov 8  }
   0x3   :  { %4 = vst.msk [vmem:[#allocation0] sm:$0x1] %vm3_vm0, %v2_v4   ;;  %v57_v5 = vld [vmem:[%s111_s0 + $0x3] sm:$0x1]   ;;  %v58_v6 = vld [vmem:[%s111_s0 + $0x2] sm:$0x1]  }
   0x4   :  { %s71_s24 = smov 6   ;;  %s72_s25 = smov 4   ;;  %v59_v7 = vld [vmem:[%s111_s0 + $0x1] sm:$0x1]   ;;  %vm27_vm4 = vcmask 80960   ;;  %vm33_vm5 = vcmask 64560  }
   0x5   :  { %s73_s0 = smov 2   ;;  %vm39_vm6 = vcmask 48160   ;;  %vm45_vm7 = vcmask 31760  }
   0x6   :  { %13 = vrot.lane.b32.xlu0 %v54_v2, %s69_s18  ;;  %25 = vrot.lane.b32.xlu1 %v56_v3, %s70_s19 }
   0xa   :  { %31 = vrot.lane.b32.xlu0 %v57_v5, %s71_s24  ;;  %37 = vrot.lane.b32.xlu1 %v58_v6, %s72_s25 }
   0xe   :  { %43 = vrot.lane.b32.xlu0 %v59_v7, %s73_s0 }
  0x74   :  { %v8_v8 = vpop.permute.xlu0 %7   ;;  %v20_v9 = vpop.permute.xlu1 %19  }
  0x75   :  { %10 = vst.msk [vmem:[#allocation0] sm:$0x1] %vm9_vm1, %v8_v8  }
  0x78   :  { %v14_v10 = vpop.permute.xlu0 %13   ;;  %v26_v11 = vpop.permute.xlu1 %25  }
  0x79   :  { %16 = vst.msk [vmem:[#allocation0] sm:$0x1] %vm15_vm2, %v14_v10  }
  0x7a   :  { %22 = vst.msk [vmem:[#allocation0] sm:$0x1] %vm21_vm3, %v20_v9  }
  0x7b   :  { %28 = vst.msk [vmem:[#allocation0] sm:$0x1] %vm27_vm4, %v26_v11  }
  0x7c   :  { %v32_v12 = vpop.permute.xlu0 %31   ;;  %v38_v13 = vpop.permute.xlu1 %37  }
  0x7d   :  { %34 = vst.msk [vmem:[#allocation0] sm:$0x1] %vm33_vm5, %v32_v12  }
  0x7e   :  { %40 = vst.msk [vmem:[#allocation0] sm:$0x1] %vm39_vm6, %v38_v13  }
  0x80   :  { %v44_v14 = vpop.permute.xlu0 %43  }
  0x81   :  { %46 = vst.msk [vmem:[#allocation0] sm:$0x1] %vm45_vm7, %v44_v14  }
  0x88   :  { %v50_v15 = vld [vmem:[#allocation0] sm:$0x1] }
  0x89   :  { %52 = vst [vmem:[%s112_s1] sm:$0x1] %v50_v15 }

// kernel: tile.29
= control target key start
LH: loop header
LB: loop body
LE: loop exit
PB: predicated region body
PF: predicated region fallthrough
CT: control target
= control target key end

     0   :  { %s67_s10 = smov 14   ;;  %s68_s11 = smov 10   ;;  %vm3_vm0 = vcmask 15360   ;;  %vm9_vm1 = vcmask 130160   ;;  %vm15_vm2 = vcmask 113760   ;;  %vm21_vm3 = vcmask 97360   ;;  %s111_s0 = inlined_call_operand.vmem [shape: f32[8,2], index: 0, kind: input, shape index: {}]   ;;  %s112_s1 = inlined_call_operand.vmem [shape: f32[1,1,16], index: 1, kind: output, shape index: {}]  }
   0x1   :  { %v53_v0 = vld [vmem:[%s111_s0 + $0x7] sm:$0x1]   ;;  %v55_v1 = vld [vmem:[%s111_s0 + $0x5] sm:$0x1]   ;;  %v54_v2 = vld [vmem:[%s111_s0 + $0x6] sm:$0x1]  }
   0x2   :  { %7 = vrot.lane.b32.xlu0 %v53_v0, %s67_s10  ;;  %19 = vrot.lane.b32.xlu1 %v55_v1, %s68_s11  ;;  %v56_v3 = vld [vmem:[%s111_s0 + $0x4] sm:$0x1]   ;;  %v2_v4 = vld [vmem:[%s111_s0] sm:$0x1]   ;;  %s69_s18 = smov 12   ;;  %s70_s19 = smov 8  }
   0x3   :  { %4 = vst.msk [vmem:[#allocation0] sm:$0x1] %vm3_vm0, %v2_v4   ;;  %v57_v5 = vld [vmem:[%s111_s0 + $0x3] sm:$0x1]   ;;  %v58_v6 = vld [vmem:[%s111_s0 + $0x2] sm:$0x1]  }
   0x4   :  { %s71_s24 = smov 6   ;;  %s72_s25 = smov 4   ;;  %v59_v7 = vld [vmem:[%s111_s0 + $0x1] sm:$0x1]   ;;  %vm27_vm4 = vcmask 80960   ;;  %vm33_vm5 = vcmask 64560  }
   0x5   :  { %s73_s0 = smov 2   ;;  %vm39_vm6 = vcmask 48160   ;;  %vm45_vm7 = vcmask 31760  }
   0x6   :  { %13 = vrot.lane.b32.xlu0 %v54_v2, %s69_s18  ;;  %25 = vrot.lane.b32.xlu1 %v56_v3, %s70_s19 }
   0xa   :  { %31 = vrot.lane.b32.xlu0 %v57_v5, %s71_s24  ;;  %37 = vrot.lane.b32.xlu1 %v58_v6, %s72_s25 }
   0xe   :  { %43 = vrot.lane.b32.xlu0 %v59_v7, %s73_s0 }
  0x74   :  { %v8_v8 = vpop.permute.xlu0 %7   ;;  %v20_v9 = vpop.permute.xlu1 %19  }
  0x75   :  { %10 = vst.msk [vmem:[#allocation0] sm:$0x1] %vm9_vm1, %v8_v8  }
  0x78   :  { %v14_v10 = vpop.permute.xlu0 %13   ;;  %v26_v11 = vpop.permute.xlu1 %25  }
  0x79   :  { %16 = vst.msk [vmem:[#allocation0] sm:$0x1] %vm15_vm2, %v14_v10  }
  0x7a   :  { %22 = vst.msk [vmem:[#allocation0] sm:$0x1] %vm21_vm3, %v20_v9  }
  0x7b   :  { %28 = vst.msk [vmem:[#allocation0] sm:$0x1] %vm27_vm4, %v26_v11  }
  0x7c   :  { %v32_v12 = vpop.permute.xlu0 %31   ;;  %v38_v13 = vpop.permute.xlu1 %37  }
  0x7d   :  { %34 = vst.msk [vmem:[#allocation0] sm:$0x1] %vm33_vm5, %v32_v12  }
  0x7e   :  { %40 = vst.msk [vmem:[#allocation0] sm:$0x1] %vm39_vm6, %v38_v13  }
  0x80   :  { %v44_v14 = vpop.permute.xlu0 %43  }
  0x81   :  { %46 = vst.msk [vmem:[#allocation0] sm:$0x1] %vm45_vm7, %v44_v14  }
  0x88   :  { %v50_v15 = vld [vmem:[#allocation0] sm:$0x1] }
  0x89   :  { %52 = vst [vmem:[%s112_s1] sm:$0x1] %v50_v15 }

// kernel: unet_up_block_forward.1
= control target key start
LH: loop header
LB: loop body
LE: loop exit
PB: predicated region body
PF: predicated region fallthrough
CT: control target
= control target key end

     0   :  { %s9626_s21 = smov 0   ;;  %s12321_s0 = inlined_call_operand.vmem [shape: f32[2,4,4,4,4], index: 0, kind: input, shape index: {}]   ;;  %s12322_s1 = inlined_call_operand.vmem [shape: f32[2,4,4,4,16], index: 1, kind: input, shape index: {}]   ;;  %s12323_s2 = inlined_call_operand.vmem [shape: f32[32,16], index: 2, kind: input, shape index: {}]   ;;  %s12324_s3 = inlined_call_operand.vmem [shape: f32[1,16], index: 3, kind: input, shape index: {}]   ;;  %s12325_s4 = inlined_call_operand.vmem [shape: f32[432,16], index: 4, kind: input, shape index: {}]   ;;  %s12326_s5 = inlined_call_operand.vmem [shape: f32[432,16], index: 5, kind: input, shape index: {}]   ;;  %s12327_s6 = inlined_call_operand.vmem [shape: f32[1,16], index: 6, kind: input, shape index: {}]   ;;  %s12328_s7 = inlined_call_operand.<no memory space> [shape: f32[1], index: 7, kind: input, shape index: {}]   ;;  %s12329_s8 = inlined_call_operand.vmem [shape: f32[1,432,16], index: 8, kind: input, shape index: {}]   ;;  %s12330_s9 = inlined_call_operand.vmem [shape: f32[1,1,16], index: 9, kind: input, shape index: {}]   ;;  %s12331_s10 = inlined_call_operand.<no memory space> [shape: f32[1], index: 10, kind: input, shape index: {}]   ;;  %s12332_s11 = inlined_call_operand.vmem [shape: f32[2,4,4,4,16], index: 11, kind: output, shape index: {}]  }
   0x1   :  { %16 = sst [smem:[#allocation8]] %s12328_s7 }
   0x2   :  { %17 = sst [smem:[#allocation9]] %s12331_s10 }
   0x3 LB: > { %s8326_s22 = sadd.s32 4294967295, %s9543_s21   ;;  %p8330_p0 = scmp.ge.s32.totalorder %s9543_s21, 1  ;;  %s9543_s21 = sphi %s9626_s21, %s23_s21  }
   0x4   : > { %p349_p1 = scmp.lt.s32.totalorder %s9543_s21, 3 }
   0x6   : > { %p350_p2 = pnand %p8330_p0, %p349_p1 }
   0x7   : > { %p9636_p3 = scmp.lt.s32.totalorder (!%p350_p2), %s8326_s22, 1  ;;  %vm422_vm0 = vcmask (!%p350_p2), 24576   ;;  %vm410_vm1 = vcmask (!%p350_p2), 28672   ;;  %v9545_v0 = vmov (!%p350_p2), 0.0   ;;  %vm464_vm2 = vcmask (!%p350_p2), 27648   ;;  %s9546_s26 = smov (!%p350_p2), 4  }
   0x8   : > { %353 = sbr.rel (%p350_p2) target bundleno = 2245 (0x8c5), region = 64  ;;  %423 = vst.msk [vmem:[#allocation2 + $0x4] sm:$0x1] (!%p350_p2), %vm422_vm0, %v9545_v0  ;;  %424 = vst.msk [vmem:[#allocation2 + $0xc] sm:$0x1] (!%p350_p2), %vm422_vm0, %v9545_v0  ;;  %s9547_s27 = smov (!%p350_p2), 8  }
   0x9   : > { %425 = vst.msk [vmem:[#allocation2 + $0x14] sm:$0x1] (!%p350_p2), %vm422_vm0, %v9545_v0  ;;  %426 = vst.msk [vmem:[#allocation2 + $0x1c] sm:$0x1] (!%p350_p2), %vm422_vm0, %v9545_v0  ;;  %s9548_s28 = smov (!%p350_p2), 12   ;;  %vm529_vm3 = vcmask (!%p350_p2), 31744  }
   0xa   : > { %428 = vst.msk [vmem:[#allocation2 + $0x2c] sm:$0x1] (!%p350_p2), %vm422_vm0, %v9545_v0  ;;  %429 = vst.msk [vmem:[#allocation2 + $0x34] sm:$0x1] (!%p350_p2), %vm422_vm0, %v9545_v0  ;;  %s9549_s29 = smov (!%p350_p2), 16   ;;  %s9550_s30 = smov (!%p350_p2), 20  }
   0xb   : > { %430 = vst.msk [vmem:[#allocation2 + $0x3c] sm:$0x1] (!%p350_p2), %vm422_vm0, %v9545_v0  ;;  %431 = vst.msk [vmem:[#allocation2 + $0x44] sm:$0x1] (!%p350_p2), %vm422_vm0, %v9545_v0  ;;  %s9551_s12 = smov (!%p350_p2), 24   ;;  %vm1201_vm4 = vcmask (!%p350_p2), 128000  }
   0xc   : > { %433 = vst.msk [vmem:[#allocation2 + $0x54] sm:$0x1] (!%p350_p2), %vm422_vm0, %v9545_v0  ;;  %434 = vst.msk [vmem:[#allocation2 + $0x5c] sm:$0x1] (!%p350_p2), %vm422_vm0, %v9545_v0  ;;  %vm1228_vm5 = vcmask (!%p350_p2), 122880   ;;  %vm602_vm6 = vcmask (!%p350_p2), 64544  }
   0xd   : > { %435 = vst.msk [vmem:[#allocation2 + $0x64] sm:$0x1] (!%p350_p2), %vm422_vm0, %v9545_v0  ;;  %436 = vst.msk [vmem:[#allocation2 + $0x6c] sm:$0x1] (!%p350_p2), %vm422_vm0, %v9545_v0  ;;  %s9553_s7 = smov (!%p350_p2), 32   ;;  %vm676_vm7 = vcmask (!%p350_p2), 97344  }
   0xe   : > { %438 = vst.msk [vmem:[#allocation2 + $0x7c] sm:$0x1] (!%p350_p2), %vm422_vm0, %v9545_v0  ;;  %439 = vst.msk [vmem:[#allocation2 + $0x84] sm:$0x1] (!%p350_p2), %vm422_vm0, %v9545_v0  ;;  %s9554_s23 = smov (!%p350_p2), 48   ;;  %s9555_s24 = smov (!%p350_p2), 64  }
   0xf   : > { %440 = vst.msk [vmem:[#allocation2 + $0x8c] sm:$0x1] %vm422_vm0, %v9545_v0  ;;  %441 = vst.msk [vmem:[#allocation2 + $0x94] sm:$0x1] %vm422_vm0, %v9545_v0  ;;  %s12335_s22 = smov (!%p9636_p3, %s8326_s22), 1  ;;  %vm749_vm8 = vcmask 130144  }
  0x10   : > { %417 = vst.msk [vmem:[#allocation2 + $0x20] sm:$0x1f] %vm410_vm1, %v9545_v0  ;;  %411 = vst.msk [vmem:[#allocation2 + $0xa0] sm:$0x1f] %vm410_vm1, %v9545_v0  ;;  %s9714_s10 = sshll.u32 %s12335_s22, 6  ;;  %s9552_s22 = smov 28  }
  0x11   : > { %412 = vst.msk [vmem:[#allocation2 + $0xa8] sm:$0x1f] %vm410_vm1, %v9545_v0  ;;  %413 = vst.msk [vmem:[#allocation2 + $0xb0] sm:$0x1f] %vm410_vm1, %v9545_v0  ;;  %s398_s25 = scalar_lea.vmem %s12321_s0, %s9714_s10  ;;  %vm823_vm9 = vcmask 162944   ;;  %vm896_vm10 = vcmask 195744   ;;  %s10513_s14 = scalar_lea.vmem %s12322_s1, %s9714_s10 }
  0x12   : > { %414 = vst.msk [vmem:[#allocation2 + $0xb8] sm:$0x1f] %vm410_vm1, %v9545_v0  ;;  %415 = vst.msk [vmem:[#allocation2 + $0xc0] sm:$0x1f] %vm410_vm1, %v9545_v0  ;;  %v448_v1 = vld [vmem:[%s398_s25] sm:$0xf] }
  0x13   : > { %418 = vst.msk [vmem:[#allocation2 + $0x48] sm:$0x1f] %vm410_vm1, %v9545_v0  ;;  %419 = vst.msk [vmem:[#allocation2 + $0x70] sm:$0x1f] %vm410_vm1, %v9545_v0  ;;  %v449_v2 = vld [vmem:[%s398_s25 + $0x4] sm:$0xf] }
  0x14   : > { %420 = vst.msk [vmem:[#allocation2 + $0x98] sm:$0x1f] %vm410_vm1, %v9545_v0  ;;  %421 = vst.msk [vmem:[#allocation2 + $0xc0] sm:$0x1f] %vm410_vm1, %v9545_v0  ;;  %v452_v3 = vld [vmem:[%s398_s25 + $0x10] sm:$0xf] }
  0x15   : > { %427 = vst.msk [vmem:[#allocation2 + $0x24] sm:$0x1] %vm422_vm0, %v9545_v0  ;;  %432 = vst.msk [vmem:[#allocation2 + $0x4c] sm:$0x1] %vm422_vm0, %v9545_v0  ;;  %v453_v4 = vld [vmem:[%s398_s25 + $0x14] sm:$0xf] }
  0x16   : > { %437 = vst.msk [vmem:[#allocation2 + $0x74] sm:$0x1] %vm422_vm0, %v9545_v0  ;;  %442 = vst.msk [vmem:[#allocation2 + $0x9c] sm:$0x1] %vm422_vm0, %v9545_v0  ;;  %v450_v5 = vld [vmem:[%s398_s25 + $0x8] sm:$0xf] }
  0x17   : > { %443 = vst.msk [vmem:[#allocation2 + $0xa4] sm:$0x1] %vm422_vm0, %v9545_v0  ;;  %444 = vst.msk [vmem:[#allocation2 + $0xac] sm:$0x1] %vm422_vm0, %v9545_v0  ;;  %v451_v6 = vld [vmem:[%s398_s25 + $0xc] sm:$0xf] }
  0x18   : > { %445 = vst.msk [vmem:[#allocation2 + $0xb4] sm:$0x1] %vm422_vm0, %v9545_v0  ;;  %446 = vst.msk [vmem:[#allocation2 + $0xbc] sm:$0x1] %vm422_vm0, %v9545_v0  ;;  %v454_v7 = vld [vmem:[%s398_s25 + $0x18] sm:$0xf] }
  0x19   : > { %447 = vst.msk [vmem:[#allocation2 + $0xc4] sm:$0x1] %vm422_vm0, %v9545_v0  ;;  %v455_v8 = vld [vmem:[%s398_s25 + $0x1c] sm:$0xf]  ;;  %v456_v9 = vld [vmem:[%s398_s25 + $0x20] sm:$0xf] }
  0x1a   : > { %465 = vst.msk [vmem:[#allocation2] sm:$0xf] %vm464_vm2, %v448_v1  ;;  %466 = vst.msk [vmem:[#allocation2 + $0x8] sm:$0xf] %vm464_vm2, %v449_v2  ;;  %v457_v10 = vld [vmem:[%s398_s25 + $0x24] sm:$0xf] }
  0x1b   : > { %469 = vst.msk [vmem:[#allocation2 + $0x28] sm:$0xf] %vm464_vm2, %v452_v3  ;;  %470 = vst.msk [vmem:[#allocation2 + $0x30] sm:$0xf] %vm464_vm2, %v453_v4  ;;  %v458_v11 = vld [vmem:[%s398_s25 + $0x28] sm:$0xf] }
  0x1c   : > { %467 = vst.msk [vmem:[#allocation2 + $0x10] sm:$0xf] %vm464_vm2, %v450_v5  ;;  %468 = vst.msk [vmem:[#allocation2 + $0x18] sm:$0xf] %vm464_vm2, %v451_v6  ;;  %v459_v12 = vld [vmem:[%s398_s25 + $0x2c] sm:$0xf] }
  0x1d   : > { %471 = vst.msk [vmem:[#allocation2 + $0x38] sm:$0xf] %vm464_vm2, %v454_v7  ;;  %472 = vst.msk [vmem:[#allocation2 + $0x40] sm:$0xf] %vm464_vm2, %v455_v8  ;;  %v460_v13 = vld [vmem:[%s398_s25 + $0x30] sm:$0xf] }
  0x1e   : > { %473 = vst.msk [vmem:[#allocation2 + $0x50] sm:$0xf] %vm464_vm2, %v456_v9  ;;  %474 = vst.msk [vmem:[#allocation2 + $0x58] sm:$0xf] %vm464_vm2, %v457_v10  ;;  %v461_v14 = vld [vmem:[%s398_s25 + $0x34] sm:$0xf] }
  0x1f   : > { %475 = vst.msk [vmem:[#allocation2 + $0x60] sm:$0xf] %vm464_vm2, %v458_v11  ;;  %476 = vst.msk [vmem:[#allocation2 + $0x68] sm:$0xf] %vm464_vm2, %v459_v12  ;;  %v462_v15 = vld [vmem:[%s398_s25 + $0x38] sm:$0xf] }
  0x20   : > { %477 = vst.msk [vmem:[#allocation2 + $0x78] sm:$0xf] %vm464_vm2, %v460_v13  ;;  %478 = vst.msk [vmem:[#allocation2 + $0x80] sm:$0xf] %vm464_vm2, %v461_v14  ;;  %v463_v16 = vld [vmem:[%s398_s25 + $0x3c] sm:$0xf] }
  0x21   : > { %479 = vst.msk [vmem:[#allocation2 + $0x88] sm:$0xf] %vm464_vm2, %v462_v15  ;;  %480 = vst.msk [vmem:[#allocation2 + $0x90] sm:$0xf] %vm464_vm2, %v463_v16  ;;  %v8825_v17 = vld [vmem:[#allocation2 + $0x1] ss:$8 sps:$4 sm:$0xff]  }
  0x22   : > { %v8826_v18 = vld [vmem:[#allocation2 + $0x29] ss:$8 sps:$4 sm:$0xff]   ;;  %578 = vrot.lane.b32.xlu0 %v8825_v17, %s9546_s26  ;;  %v1060_v6 = vld [vmem:[%s12323_s2] sm:$0xff]  ;;  %v1063_v11 = vld [vmem:[%s12323_s2 + $0x18] sm:$0xff]  ;;  %1202 = vst.msk [vmem:[#allocation4] sm:$0x3f] %vm1201_vm4, %v9545_v0 }
  0x23   : > { %v8827_v19 = vld [vmem:[#allocation2 + $0x11] ss:$8 sps:$4 sm:$0xff]   ;;  %582 = vrot.lane.b32.xlu1 %v8826_v18, %s9546_s26  ;;  %v8875_v44 = vld [vmem:[#allocation2] ss:$8 sps:$4 sm:$0xff]   ;;  %1203 = vst.msk [vmem:[#allocation4 + $0x8] sm:$0x3f] %vm1201_vm4, %v9545_v0 }
  0x24   : > { %v8828_v20 = vld [vmem:[#allocation2 + $0x39] ss:$8 sps:$4 sm:$0xff]   ;;  %v8833_v25 = vld [vmem:[#allocation2 + $0x8] ss:$8 sps:$4 sm:$0xff]   ;;  %530 = vst.msk [vmem:[#allocation3] sm:$0xff] %vm529_vm3, %v8875_v44  ;;  %s9556_s25 = smov 80  }
  0x25   : > { %v8829_v21 = vld [vmem:[#allocation2 + $0x51] ss:$8 sps:$4 sm:$0xff]   ;;  %v8836_v28 = vld [vmem:[#allocation2 + $0x40] ss:$8 sps:$4 sm:$0xff]   ;;  %1204 = vst.msk [vmem:[#allocation4 + $0x10] sm:$0x3f] %vm1201_vm4, %v9545_v0 }
  0x26   : > { %580 = vrot.lane.b32.xlu0 %v8827_v19, %s9546_s26  ;;  %v8830_v22 = vld [vmem:[#allocation2 + $0x61] ss:$8 sps:$4 sm:$0xff]   ;;  %v8835_v27 = vld [vmem:[#allocation2 + $0x30] ss:$8 sps:$4 sm:$0xff]   ;;  %1205 = vst.msk [vmem:[#allocation4 + $0x18] sm:$0x3f] %vm1201_vm4, %v9545_v0 }
  0x27   : > { %584 = vrot.lane.b32.xlu1 %v8828_v20, %s9546_s26  ;;  %v8831_v23 = vld [vmem:[#allocation2 + $0x79] ss:$8 sps:$4 sm:$0xff]   ;;  %v8838_v30 = vld [vmem:[#allocation2 + $0x68] ss:$8 sps:$4 sm:$0xff]   ;;  %1206 = vst.msk [vmem:[#allocation4 + $0x20] sm:$0x3f] %vm1201_vm4, %v9545_v0 }
  0x28   : > { %v8832_v24 = vld [vmem:[#allocation2 + $0x89] ss:$8 sps:$4 sm:$0xff]   ;;  %v8834_v26 = vld [vmem:[#allocation2 + $0x18] ss:$8 sps:$4 sm:$0xff]   ;;  %1207 = vst.msk [vmem:[#allocation4 + $0x28] sm:$0x3f] %vm1201_vm4, %v9545_v0 }
  0x29   : > { %v8837_v29 = vld [vmem:[#allocation2 + $0x58] ss:$8 sps:$4 sm:$0xff]   ;;  %v8841_v33 = vld [vmem:[#allocation2 + $0x9] ss:$8 sps:$4 sm:$0xff]   ;;  %1209 = vst.msk [vmem:[#allocation4 + $0xf0] sm:$0x3f] %vm1201_vm4, %v9545_v0 }
  0x2a   : > { %586 = vrot.lane.b32.xlu0 %v8829_v21, %s9546_s26  ;;  %v8839_v31 = vld [vmem:[#allocation2 + $0x80] ss:$8 sps:$4 sm:$0xff]   ;;  %v8840_v32 = vld [vmem:[#allocation2 + $0x90] ss:$8 sps:$4 sm:$0xff]   ;;  %1210 = vst.msk [vmem:[#allocation4 + $0xf8] sm:$0x3f] %vm1201_vm4, %v9545_v0 }
  0x2b   : > { %588 = vrot.lane.b32.xlu1 %v8830_v22, %s9546_s26  ;;  %v8842_v34 = vld [vmem:[#allocation2 + $0x19] ss:$8 sps:$4 sm:$0xff]   ;;  %v8846_v38 = vld [vmem:[#allocation2 + $0x69] ss:$8 sps:$4 sm:$0xff]   ;;  %1211 = vst.msk [vmem:[#allocation4 + $0x100] sm:$0x3f] %vm1201_vm4, %v9545_v0 }
  0x2c   : > { %v8843_v35 = vld [vmem:[#allocation2 + $0x31] ss:$8 sps:$4 sm:$0xff]   ;;  %v8844_v36 = vld [vmem:[#allocation2 + $0x41] ss:$8 sps:$4 sm:$0xff]   ;;  %1212 = vst.msk [vmem:[#allocation4 + $0x108] sm:$0x3f] %vm1201_vm4, %v9545_v0 }
  0x2d   : > { %v8845_v37 = vld [vmem:[#allocation2 + $0x59] ss:$8 sps:$4 sm:$0xff]   ;;  %v8849_v41 = vld [vmem:[#allocation2 + $0x28] ss:$8 sps:$4 sm:$0xff]   ;;  %1213 = vst.msk [vmem:[#allocation4 + $0x110] sm:$0x3f] %vm1201_vm4, %v9545_v0 }
  0x2e   : > { %590 = vrot.lane.b32.xlu0 %v8831_v23, %s9546_s26  ;;  %v8847_v39 = vld [vmem:[#allocation2 + $0x81] ss:$8 sps:$4 sm:$0xff]   ;;  %v8848_v40 = vld [vmem:[#allocation2 + $0x91] ss:$8 sps:$4 sm:$0xff]   ;;  %1214 = vst.msk [vmem:[#allocation4 + $0x118] sm:$0x3f] %vm1201_vm4, %v9545_v0 }
  0x2f   : > { %592 = vrot.lane.b32.xlu1 %v8832_v24, %s9546_s26  ;;  %v8850_v42 = vld [vmem:[#allocation2 + $0x38] ss:$8 sps:$4 sm:$0xff]   ;;  %v8876_v46 = vld [vmem:[#allocation2 + $0x28] ss:$8 sps:$4 sm:$0xff]   ;;  %1216 = vst.msk [vmem:[#allocation4 + $0x30] sm:$0x3f] %vm1201_vm4, %v9545_v0 }
  0x30   : > { %v8851_v43 = vld [vmem:[#allocation2 + $0x50] ss:$8 sps:$4 sm:$0xff]   ;;  %v8852_v45 = vld [vmem:[#allocation2 + $0x60] ss:$8 sps:$4 sm:$0xff]   ;;  %532 = vst.msk [vmem:[#allocation3 + $0x10] sm:$0xff] %vm529_vm3, %v8876_v46  ;;  %s9557_s26 = smov 96  }
  0x31   : > { %v8877_v47 = vld [vmem:[#allocation2 + $0x10] ss:$8 sps:$4 sm:$0xff]   ;;  %v8880_v51 = vld [vmem:[#allocation2 + $0x60] ss:$8 sps:$4 sm:$0xff]   ;;  %1217 = vst.msk [vmem:[#allocation4 + $0x60] sm:$0x3f] %vm1201_vm4, %v9545_v0 }
  0x32   : > { %652 = vrot.lane.b32.xlu0 %v8833_v25, %s9547_s27  ;;  %v8878_v48 = vld [vmem:[#allocation2 + $0x38] ss:$8 sps:$4 sm:$0xff]   ;;  %531 = vst.msk [vmem:[#allocation3 + $0x8] sm:$0xff] %vm529_vm3, %v8877_v47  ;;  %v8854_v53 = vld [vmem:[#allocation2 + $0x88] ss:$8 sps:$4 sm:$0xff]   ;;  %535 = vst.msk [vmem:[#allocation3 + $0x28] sm:$0xff] %vm529_vm3, %v8880_v51 }
  0x33   : > { %654 = vrot.lane.b32.xlu1 %v8834_v26, %s9547_s27  ;;  %v8853_v49 = vld [vmem:[#allocation2 + $0x78] ss:$8 sps:$4 sm:$0xff]   ;;  %533 = vst.msk [vmem:[#allocation3 + $0x18] sm:$0xff] %vm529_vm3, %v8878_v48  ;;  %v8882_v54 = vld [vmem:[#allocation2 + $0x88] ss:$8 sps:$4 sm:$0xff]   ;;  %vm970_vm11 = vcmask 228544  }
  0x34   : > { %v8879_v50 = vld [vmem:[#allocation2 + $0x50] ss:$8 sps:$4 sm:$0xff]   ;;  %v8855_v55 = vld [vmem:[#allocation2 + $0xa0] ss:$8 sps:$4 sm:$0xff]   ;;  %537 = vst.msk [vmem:[#allocation3 + $0x38] sm:$0xff] %vm529_vm3, %v8882_v54  ;;  %vm1043_vm12 = vcmask 261344  }
  0x35   : > { %534 = vst.msk [vmem:[#allocation3 + $0x20] sm:$0xff] %vm529_vm3, %v8879_v50  ;;  %v8881_v52 = vld [vmem:[#allocation2 + $0x78] ss:$8 sps:$4 sm:$0xff]   ;;  %v8857_v57 = vld [vmem:[#allocation2 + $0x29] ss:$8 sps:$4 sm:$0xff]   ;;  %vm1071_vm13 = vcmask 261120  }
  0x36   : > { %656 = vrot.lane.b32.xlu0 %v8835_v27, %s9547_s27  ;;  %536 = vst.msk [vmem:[#allocation3 + $0x30] sm:$0xff] %vm529_vm3, %v8881_v52  ;;  %v8856_v56 = vld [vmem:[#allocation2 + $0xb0] ss:$8 sps:$4 sm:$0xff]   ;;  %v8860_v60 = vld [vmem:[#allocation2 + $0x61] ss:$8 sps:$4 sm:$0xff]   ;;  %vm1595_vm14 = vcmask 261248  }
  0x37   : > { %658 = vrot.lane.b32.xlu1 %v8836_v28, %s9547_s27  ;;  %v8858_v58 = vld [vmem:[#allocation2 + $0x39] ss:$8 sps:$4 sm:$0xff]   ;;  %v8862_v62 = vld [vmem:[#allocation2 + $0x89] ss:$8 sps:$4 sm:$0xff]   ;;  %1218 = vst.msk [vmem:[#allocation4 + $0x90] sm:$0x3f] %vm1201_vm4, %v9545_v0 }
  0x38   : > { %v8859_v59 = vld [vmem:[#allocation2 + $0x51] ss:$8 sps:$4 sm:$0xff]   ;;  %v8863_v63 = vld [vmem:[#allocation2 + $0xa1] ss:$8 sps:$4 sm:$0xff]   ;;  %1219 = vst.msk [vmem:[#allocation4 + $0xc0] sm:$0x3f] %vm1201_vm4, %v9545_v0 }
  0x39   : > { %v8861_v61 = vld [vmem:[#allocation2 + $0x79] ss:$8 sps:$4 sm:$0xff]   ;;  %v8868_v5 = vld [vmem:[#allocation2 + $0x68] ss:$8 sps:$4 sm:$0xff]   ;;  %1223 = vst.msk [vmem:[#allocation4 + $0x58] sm:$0x3f] %vm1201_vm4, %v9545_v0 }
  0x3a   : > { %660 = vrot.lane.b32.xlu0 %v8837_v29, %s9547_s27  ;;  %v8864_v1 = vld [vmem:[#allocation2 + $0xb1] ss:$8 sps:$4 sm:$0xff]   ;;  %v8866_v3 = vld [vmem:[#allocation2 + $0x40] ss:$8 sps:$4 sm:$0xff]   ;;  %1224 = vst.msk [vmem:[#allocation4 + $0x88] sm:$0x3f] %vm1201_vm4, %v9545_v0 }
  0x3b   : > { %662 = vrot.lane.b32.xlu1 %v8838_v30, %s9547_s27  ;;  %v8865_v2 = vld [vmem:[#allocation2 + $0x30] ss:$8 sps:$4 sm:$0xff]   ;;  %v1061_v7 = vld [vmem:[%s12323_s2 + $0x8] sm:$0xff]  ;;  %1225 = vst.msk [vmem:[#allocation4 + $0xb8] sm:$0x3f] %vm1201_vm4, %v9545_v0  ;;  %vm1522_vm15 = vcmask 130048  }
  0x3c   : > { %v8867_v4 = vld [vmem:[#allocation2 + $0x58] ss:$8 sps:$4 sm:$0xff]   ;;  %v8577_v8 = vpack.c.bf16 %v1061_v7, %v1060_v6  ;;  %v1062_v10 = vld [vmem:[%s12323_s2 + $0x10] sm:$0xff]  ;;  %1226 = vst.msk [vmem:[#allocation4 + $0xe8] sm:$0x3f] %vm1201_vm4, %v9545_v0  ;;  %vm1668_vm0 = vcmask 392448  }
  0x3d   : > { %v8869_v9 = vld [vmem:[#allocation2 + $0x80] ss:$8 sps:$4 sm:$0xff]   ;;  %v8870_v12 = vld [vmem:[#allocation2 + $0x90] ss:$8 sps:$4 sm:$0xff]   ;;  %v8581_v13 = vpack.c.bf16 %v1063_v11, %v1062_v10  ;;  %1301 = vst.msk [vmem:[#allocation5] sm:$0x3f] %vm1201_vm4, %v9545_v0 }
  0x3e   : > { %664 = vrot.lane.b32.xlu0 %v8839_v31, %s9547_s27  ;;  %8578 = vmatprep.subr.bf16.mxu0 %v8577_v8  ;;  %v8871_v14 = vld [vmem:[#allocation2 + $0xa8] ss:$8 sps:$4 sm:$0xff]   ;;  %v8872_v15 = vld [vmem:[#allocation2 + $0xb8] ss:$8 sps:$4 sm:$0xff]   ;;  %1302 = vst.msk [vmem:[#allocation5 + $0x8] sm:$0x3f] %vm1201_vm4, %v9545_v0 }
  0x3f   : > { %666 = vrot.lane.b32.xlu1 %v8840_v32, %s9547_s27  ;;  %8580 = vmatpush3.bf16.msra.mxu0 %v8577_v8  ;;  %v8873_v16 = vld [vmem:[#allocation2 + $0x31] ss:$8 sps:$4 sm:$0xff]   ;;  %v8874_v17 = vld [vmem:[#allocation2 + $0x41] ss:$8 sps:$4 sm:$0xff]   ;;  %1303 = vst.msk [vmem:[#allocation5 + $0x10] sm:$0x3f] %vm1201_vm4, %v9545_v0 }
  0x40   : > { %8582 = vmatprep.subr.bf16.mxu0 %v8581_v13  ;;  %v8883_v18 = vld [vmem:[#allocation2 + $0x59] ss:$8 sps:$4 sm:$0xff]   ;;  %v8884_v19 = vld [vmem:[#allocation2 + $0x69] ss:$8 sps:$4 sm:$0xff]   ;;  %1304 = vst.msk [vmem:[#allocation5 + $0x18] sm:$0x3f] %vm1201_vm4, %v9545_v0 }
  0x41   : > { %v9767_v20 = vld [vmem:[#allocation2 + $0x81] ss:$8 sps:$4 sm:$0xff]   ;;  %v9770_v21 = vld [vmem:[#allocation2 + $0x91] ss:$8 sps:$4 sm:$0xff]   ;;  %1305 = vst.msk [vmem:[#allocation5 + $0x20] sm:$0x3f] %vm1201_vm4, %v9545_v0 }
  0x42   : > { %725 = vrot.lane.b32.xlu0 %v8841_v33, %s9548_s28  ;;  %1306 = vst.msk [vmem:[#allocation5 + $0x28] sm:$0x3f] %vm1201_vm4, %v9545_v0  ;;  %1308 = vst.msk [vmem:[#allocation5 + $0xf0] sm:$0x3f] %vm1201_vm4, %v9545_v0  ;;  %v8887_v22 = vld [vmem:[#allocation2 + $0xa9] ss:$8 sps:$4 sm:$0xff]  }
  0x43   : > { %727 = vrot.lane.b32.xlu1 %v8842_v34, %s9548_s28  ;;  %8584 = vmatpush3.bf16.msra.mxu0 %v8581_v13  ;;  %1309 = vst.msk [vmem:[#allocation5 + $0xf8] sm:$0x3f] %vm1201_vm4, %v9545_v0  ;;  %1310 = vst.msk [vmem:[#allocation5 + $0x100] sm:$0x3f] %vm1201_vm4, %v9545_v0  ;;  %v8888_v23 = vld [vmem:[#allocation2 + $0xb9] ss:$8 sps:$4 sm:$0xff]  }
  0x44   : > { %1311 = vst.msk [vmem:[#allocation5 + $0x108] sm:$0x3f] %vm1201_vm4, %v9545_v0  ;;  %1312 = vst.msk [vmem:[#allocation5 + $0x110] sm:$0x3f] %vm1201_vm4, %v9545_v0  ;;  %v8890_v25 = vld [vmem:[#allocation4 + $0x11] ss:$8 sps:$4 sm:$0xff]  }
  0x45   : > { %1313 = vst.msk [vmem:[#allocation5 + $0x118] sm:$0x3f] %vm1201_vm4, %v9545_v0  ;;  %1315 = vst.msk [vmem:[#allocation5 + $0x30] sm:$0x3f] %vm1201_vm4, %v9545_v0  ;;  %v8895_v32 = vld [vmem:[#allocation4 + $0x9] ss:$8 sps:$4 sm:$0xff]  }
  0x46   : > { %729 = vrot.lane.b32.xlu0 %v8843_v35, %s9548_s28  ;;  %1316 = vst.msk [vmem:[#allocation5 + $0x60] sm:$0x3f] %vm1201_vm4, %v9545_v0  ;;  %1317 = vst.msk [vmem:[#allocation5 + $0x90] sm:$0x3f] %vm1201_vm4, %v9545_v0  ;;  %v8896_v34 = vld [vmem:[#allocation4 + $0x19] ss:$8 sps:$4 sm:$0xff]  }
  0x47   : > { %731 = vrot.lane.b32.xlu1 %v8844_v36, %s9548_s28  ;;  %1318 = vst.msk [vmem:[#allocation5 + $0xc0] sm:$0x3f] %vm1201_vm4, %v9545_v0  ;;  %1322 = vst.msk [vmem:[#allocation5 + $0x58] sm:$0x3f] %vm1201_vm4, %v9545_v0  ;;  %s9558_s27 = smov 112   ;;  %vm1742_vm1 = vcmask 523648  }
  0x48   : > { %1323 = vst.msk [vmem:[#allocation5 + $0x88] sm:$0x3f] %vm1201_vm4, %v9545_v0  ;;  %1324 = vst.msk [vmem:[#allocation5 + $0xb8] sm:$0x3f] %vm1201_vm4, %v9545_v0  ;;  %vm1815_vm2 = vcmask 654848   ;;  %vm1888_vm3 = vcmask 786048  }
  0x49   : > { %1325 = vst.msk [vmem:[#allocation5 + $0xe8] sm:$0x3f] %vm1201_vm4, %v9545_v0  ;;  %1215 = vst.msk [vmem:[#allocation4] sm:$0x3f] %vm1201_vm4, %v9545_v0 }
  0x4a   : > { %733 = vrot.lane.b32.xlu0 %v8845_v37, %s9548_s28  ;;  %1236 = vst.msk [vmem:[#allocation4 + $0x38] sm:$0x1] %vm1228_vm5, %v9545_v0  ;;  %1237 = vst.msk [vmem:[#allocation4 + $0x40] sm:$0x1] %vm1228_vm5, %v9545_v0 }
  0x4b   : > { %735 = vrot.lane.b32.xlu1 %v8846_v38, %s9548_s28  ;;  %1238 = vst.msk [vmem:[#allocation4 + $0x48] sm:$0x1] %vm1228_vm5, %v9545_v0  ;;  %1239 = vst.msk [vmem:[#allocation4 + $0x50] sm:$0x1] %vm1228_vm5, %v9545_v0 }
  0x4c   : > { %1242 = vst.msk [vmem:[#allocation4 + $0x68] sm:$0x1] %vm1228_vm5, %v9545_v0  ;;  %1243 = vst.msk [vmem:[#allocation4 + $0x70] sm:$0x1] %vm1228_vm5, %v9545_v0 }
  0x4d   : > { %1244 = vst.msk [vmem:[#allocation4 + $0x78] sm:$0x1] %vm1228_vm5, %v9545_v0  ;;  %1245 = vst.msk [vmem:[#allocation4 + $0x80] sm:$0x1] %vm1228_vm5, %v9545_v0 }
  0x4e   : > { %737 = vrot.lane.b32.xlu0 %v8847_v39, %s9548_s28  ;;  %1248 = vst.msk [vmem:[#allocation4 + $0x98] sm:$0x1] %vm1228_vm5, %v9545_v0  ;;  %1249 = vst.msk [vmem:[#allocation4 + $0xa0] sm:$0x1] %vm1228_vm5, %v9545_v0 }
  0x4f   : > { %739 = vrot.lane.b32.xlu1 %v8848_v40, %s9548_s28  ;;  %1250 = vst.msk [vmem:[#allocation4 + $0xa8] sm:$0x1] %vm1228_vm5, %v9545_v0  ;;  %1251 = vst.msk [vmem:[#allocation4 + $0xb0] sm:$0x1] %vm1228_vm5, %v9545_v0 }
  0x50   : > { %1254 = vst.msk [vmem:[#allocation4 + $0xc8] sm:$0x1] %vm1228_vm5, %v9545_v0  ;;  %1255 = vst.msk [vmem:[#allocation4 + $0xd0] sm:$0x1] %vm1228_vm5, %v9545_v0  ;;  %v8889_v24 = vld [vmem:[#allocation4 + $0x1] ss:$8 sps:$4 sm:$0xff]  }
  0x51   : > { %1256 = vst.msk [vmem:[#allocation4 + $0xd8] sm:$0x1] %vm1228_vm5, %v9545_v0  ;;  %1257 = vst.msk [vmem:[#allocation4 + $0xe0] sm:$0x1] %vm1228_vm5, %v9545_v0 }
  0x52   : > { %799 = vrot.lane.b32.xlu0 %v8849_v41, %s9549_s29  ;;  %1272 = vst.msk [vmem:[#allocation4 + $0x3d] sm:$0x1] %vm1228_vm5, %v9545_v0  ;;  %1273 = vst.msk [vmem:[#allocation4 + $0x45] sm:$0x1] %vm1228_vm5, %v9545_v0 }
  0x53   : > { %801 = vrot.lane.b32.xlu1 %v8850_v42, %s9549_s29  ;;  %1274 = vst.msk [vmem:[#allocation4 + $0x4d] sm:$0x1] %vm1228_vm5, %v9545_v0  ;;  %1275 = vst.msk [vmem:[#allocation4 + $0x55] sm:$0x1] %vm1228_vm5, %v9545_v0 }
  0x54   : > { %1278 = vst.msk [vmem:[#allocation4 + $0x6d] sm:$0x1] %vm1228_vm5, %v9545_v0  ;;  %1279 = vst.msk [vmem:[#allocation4 + $0x75] sm:$0x1] %vm1228_vm5, %v9545_v0 }
  0x55   : > { %1280 = vst.msk [vmem:[#allocation4 + $0x7d] sm:$0x1] %vm1228_vm5, %v9545_v0  ;;  %1281 = vst.msk [vmem:[#allocation4 + $0x85] sm:$0x1] %vm1228_vm5, %v9545_v0 }
  0x56   : > { %803 = vrot.lane.b32.xlu0 %v8851_v43, %s9549_s29  ;;  %1284 = vst.msk [vmem:[#allocation4 + $0x9d] sm:$0x1] %vm1228_vm5, %v9545_v0  ;;  %1285 = vst.msk [vmem:[#allocation4 + $0xa5] sm:$0x1] %vm1228_vm5, %v9545_v0 }
  0x57   : > { %805 = vrot.lane.b32.xlu1 %v8852_v45, %s9549_s29  ;;  %1286 = vst.msk [vmem:[#allocation4 + $0xad] sm:$0x1] %vm1228_vm5, %v9545_v0  ;;  %1287 = vst.msk [vmem:[#allocation4 + $0xb5] sm:$0x1] %vm1228_vm5, %v9545_v0 }
  0x58   : > { %1290 = vst.msk [vmem:[#allocation4 + $0xcd] sm:$0x1] %vm1228_vm5, %v9545_v0  ;;  %1291 = vst.msk [vmem:[#allocation4 + $0xd5] sm:$0x1] %vm1228_vm5, %v9545_v0 }
  0x59   : > { %1292 = vst.msk [vmem:[#allocation4 + $0xdd] sm:$0x1] %vm1228_vm5, %v9545_v0  ;;  %1293 = vst.msk [vmem:[#allocation4 + $0xe5] sm:$0x1] %vm1228_vm5, %v9545_v0 }
  0x5a   : > { %807 = vrot.lane.b32.xlu0 %v8853_v49, %s9549_s29  ;;  %1334 = vst.msk [vmem:[#allocation5 + $0x38] sm:$0x1] %vm1228_vm5, %v9545_v0  ;;  %1335 = vst.msk [vmem:[#allocation5 + $0x40] sm:$0x1] %vm1228_vm5, %v9545_v0 }
  0x5b   : > { %809 = vrot.lane.b32.xlu1 %v8854_v53, %s9549_s29  ;;  %1336 = vst.msk [vmem:[#allocation5 + $0x48] sm:$0x1] %vm1228_vm5, %v9545_v0  ;;  %1337 = vst.msk [vmem:[#allocation5 + $0x50] sm:$0x1] %vm1228_vm5, %v9545_v0 }
  0x5c   : > { %1340 = vst.msk [vmem:[#allocation5 + $0x68] sm:$0x1] %vm1228_vm5, %v9545_v0  ;;  %1341 = vst.msk [vmem:[#allocation5 + $0x70] sm:$0x1] %vm1228_vm5, %v9545_v0 }
  0x5d   : > { %1342 = vst.msk [vmem:[#allocation5 + $0x78] sm:$0x1] %vm1228_vm5, %v9545_v0  ;;  %1343 = vst.msk [vmem:[#allocation5 + $0x80] sm:$0x1] %vm1228_vm5, %v9545_v0 }
  0x5e   : > { %811 = vrot.lane.b32.xlu0 %v8855_v55, %s9549_s29  ;;  %1346 = vst.msk [vmem:[#allocation5 + $0x98] sm:$0x1] %vm1228_vm5, %v9545_v0  ;;  %1347 = vst.msk [vmem:[#allocation5 + $0xa0] sm:$0x1] %vm1228_vm5, %v9545_v0 }
  0x5f   : > { %813 = vrot.lane.b32.xlu1 %v8856_v56, %s9549_s29  ;;  %1348 = vst.msk [vmem:[#allocation5 + $0xa8] sm:$0x1] %vm1228_vm5, %v9545_v0  ;;  %1349 = vst.msk [vmem:[#allocation5 + $0xb0] sm:$0x1] %vm1228_vm5, %v9545_v0 }
  0x60   : > { %1352 = vst.msk [vmem:[#allocation5 + $0xc8] sm:$0x1] %vm1228_vm5, %v9545_v0  ;;  %1353 = vst.msk [vmem:[#allocation5 + $0xd0] sm:$0x1] %vm1228_vm5, %v9545_v0 }
  0x61   : > { %1354 = vst.msk [vmem:[#allocation5 + $0xd8] sm:$0x1] %vm1228_vm5, %v9545_v0  ;;  %1355 = vst.msk [vmem:[#allocation5 + $0xe0] sm:$0x1] %vm1228_vm5, %v9545_v0 }
  0x62   : > { %872 = vrot.lane.b32.xlu0 %v8857_v57, %s9550_s30  ;;  %1370 = vst.msk [vmem:[#allocation5 + $0x3d] sm:$0x1] %vm1228_vm5, %v9545_v0  ;;  %1371 = vst.msk [vmem:[#allocation5 + $0x45] sm:$0x1] %vm1228_vm5, %v9545_v0 }
  0x63   : > { %874 = vrot.lane.b32.xlu1 %v8858_v58, %s9550_s30  ;;  %1372 = vst.msk [vmem:[#allocation5 + $0x4d] sm:$0x1] %vm1228_vm5, %v9545_v0  ;;  %1373 = vst.msk [vmem:[#allocation5 + $0x55] sm:$0x1] %vm1228_vm5, %v9545_v0 }
  0x64   : > { %1376 = vst.msk [vmem:[#allocation5 + $0x6d] sm:$0x1] %vm1228_vm5, %v9545_v0  ;;  %1377 = vst.msk [vmem:[#allocation5 + $0x75] sm:$0x1] %vm1228_vm5, %v9545_v0 }
  0x65   : > { %1378 = vst.msk [vmem:[#allocation5 + $0x7d] sm:$0x1] %vm1228_vm5, %v9545_v0  ;;  %1379 = vst.msk [vmem:[#allocation5 + $0x85] sm:$0x1] %vm1228_vm5, %v9545_v0 }
  0x66   : > { %876 = vrot.lane.b32.xlu0 %v8859_v59, %s9550_s30  ;;  %1382 = vst.msk [vmem:[#allocation5 + $0x9d] sm:$0x1] %vm1228_vm5, %v9545_v0  ;;  %1383 = vst.msk [vmem:[#allocation5 + $0xa5] sm:$0x1] %vm1228_vm5, %v9545_v0 }
  0x67   : > { %878 = vrot.lane.b32.xlu1 %v8860_v60, %s9550_s30  ;;  %1384 = vst.msk [vmem:[#allocation5 + $0xad] sm:$0x1] %vm1228_vm5, %v9545_v0  ;;  %1385 = vst.msk [vmem:[#allocation5 + $0xb5] sm:$0x1] %vm1228_vm5, %v9545_v0 }
  0x68   : > { %1388 = vst.msk [vmem:[#allocation5 + $0xcd] sm:$0x1] %vm1228_vm5, %v9545_v0  ;;  %1389 = vst.msk [vmem:[#allocation5 + $0xd5] sm:$0x1] %vm1228_vm5, %v9545_v0 }
  0x69   : > { %1390 = vst.msk [vmem:[#allocation5 + $0xdd] sm:$0x1] %vm1228_vm5, %v9545_v0  ;;  %1391 = vst.msk [vmem:[#allocation5 + $0xe5] sm:$0x1] %vm1228_vm5, %v9545_v0 }
  0x6a   : > { %880 = vrot.lane.b32.xlu0 %v8861_v61, %s9550_s30  ;;  %1220 = vst.msk [vmem:[#allocation4 + $0xf0] sm:$0x3f] %vm1201_vm4, %v9545_v0  ;;  %1222 = vst.msk [vmem:[#allocation4 + $0x28] sm:$0x3f] %vm1201_vm4, %v9545_v0 }
  0x6b   : > { %882 = vrot.lane.b32.xlu1 %v8862_v62, %s9550_s30  ;;  %1227 = vst.msk [vmem:[#allocation4 + $0x118] sm:$0x3f] %vm1201_vm4, %v9545_v0  ;;  %1314 = vst.msk [vmem:[#allocation5] sm:$0x3f] %vm1201_vm4, %v9545_v0 }
  0x6c   : > { %1319 = vst.msk [vmem:[#allocation5 + $0xf0] sm:$0x3f] %vm1201_vm4, %v9545_v0  ;;  %1321 = vst.msk [vmem:[#allocation5 + $0x28] sm:$0x3f] %vm1201_vm4, %v9545_v0 }
  0x6d   : > { %1326 = vst.msk [vmem:[#allocation5 + $0x118] sm:$0x3f] %vm1201_vm4, %v9545_v0  ;;  %vm1962_vm4 = vcmask 917248  }
  0x6e   : > { %884 = vrot.lane.b32.xlu0 %v8863_v63, %s9550_s30  ;;  %1266 = vst.msk [vmem:[#allocation4 + $0xd] sm:$0x1] %vm1228_vm5, %v9545_v0  ;;  %1230 = vst.msk [vmem:[#allocation4 + $0x8] sm:$0x1] %vm1228_vm5, %v9545_v0 }
  0x6f   : > { %886 = vrot.lane.b32.xlu1 %v8864_v1, %s9550_s30  ;;  %1231 = vst.msk [vmem:[#allocation4 + $0x10] sm:$0x1] %vm1228_vm5, %v9545_v0  ;;  %1232 = vst.msk [vmem:[#allocation4 + $0x18] sm:$0x1] %vm1228_vm5, %v9545_v0 }
  0x70   : > { %1233 = vst.msk [vmem:[#allocation4 + $0x20] sm:$0x1] %vm1228_vm5, %v9545_v0  ;;  %1235 = vst.msk [vmem:[#allocation4 + $0x30] sm:$0x1] %vm1228_vm5, %v9545_v0 }
  0x71   : > { %1240 = vst.msk [vmem:[#allocation4 + $0x58] sm:$0x1] %vm1228_vm5, %v9545_v0  ;;  %1241 = vst.msk [vmem:[#allocation4 + $0x60] sm:$0x1] %vm1228_vm5, %v9545_v0 }
  0x72   : > { %946 = vrot.lane.b32.xlu0 %v8865_v2, %s9551_s12  ;;  %1246 = vst.msk [vmem:[#allocation4 + $0x88] sm:$0x1] %vm1228_vm5, %v9545_v0  ;;  %1247 = vst.msk [vmem:[#allocation4 + $0x90] sm:$0x1] %vm1228_vm5, %v9545_v0 }
  0x73   : > { %948 = vrot.lane.b32.xlu1 %v8866_v3, %s9551_s12  ;;  %1252 = vst.msk [vmem:[#allocation4 + $0xb8] sm:$0x1] %vm1228_vm5, %v9545_v0  ;;  %1253 = vst.msk [vmem:[#allocation4 + $0xc0] sm:$0x1] %vm1228_vm5, %v9545_v0 }
  0x74   : > { %1258 = vst.msk [vmem:[#allocation4 + $0xe8] sm:$0x1] %vm1228_vm5, %v9545_v0  ;;  %1260 = vst.msk [vmem:[#allocation4 + $0xf8] sm:$0x1] %vm1228_vm5, %v9545_v0 }
  0x75   : > { %1261 = vst.msk [vmem:[#allocation4 + $0x100] sm:$0x1] %vm1228_vm5, %v9545_v0  ;;  %1262 = vst.msk [vmem:[#allocation4 + $0x108] sm:$0x1] %vm1228_vm5, %v9545_v0 }
  0x76   : > { %950 = vrot.lane.b32.xlu0 %v8867_v4, %s9551_s12  ;;  %1263 = vst.msk [vmem:[#allocation4 + $0x110] sm:$0x1] %vm1228_vm5, %v9545_v0  ;;  %1267 = vst.msk [vmem:[#allocation4 + $0x15] sm:$0x1] %vm1228_vm5, %v9545_v0  ;;  %v8893_v29 = vld [vmem:[#allocation4 + $0x8] ss:$8 sps:$4 sm:$0xff]  }
  0x77   : > { %952 = vrot.lane.b32.xlu1 %v8868_v5, %s9551_s12  ;;  %1268 = vst.msk [vmem:[#allocation4 + $0x1d] sm:$0x1] %vm1228_vm5, %v9545_v0  ;;  %1269 = vst.msk [vmem:[#allocation4 + $0x25] sm:$0x1] %vm1228_vm5, %v9545_v0  ;;  %v8894_v30 = vld [vmem:[#allocation4 + $0x18] ss:$8 sps:$4 sm:$0xff]  }
  0x78   : > { %1271 = vst.msk [vmem:[#allocation4 + $0x35] sm:$0x1] %vm1228_vm5, %v9545_v0  ;;  %1276 = vst.msk [vmem:[#allocation4 + $0x5d] sm:$0x1] %vm1228_vm5, %v9545_v0  ;;  %v8899_v40 = vld [vmem:[#allocation4 + $0x10] ss:$8 sps:$4 sm:$0xff]  }
  0x79   : > { %1277 = vst.msk [vmem:[#allocation4 + $0x65] sm:$0x1] %vm1228_vm5, %v9545_v0  ;;  %1282 = vst.msk [vmem:[#allocation4 + $0x8d] sm:$0x1] %vm1228_vm5, %v9545_v0 }
  0x7a   : > { %954 = vrot.lane.b32.xlu0 %v8869_v9, %s9551_s12  ;;  %1283 = vst.msk [vmem:[#allocation4 + $0x95] sm:$0x1] %vm1228_vm5, %v9545_v0  ;;  %1288 = vst.msk [vmem:[#allocation4 + $0xbd] sm:$0x1] %vm1228_vm5, %v9545_v0 }
  0x7b   : > { %956 = vrot.lane.b32.xlu1 %v8870_v12, %s9551_s12  ;;  %1289 = vst.msk [vmem:[#allocation4 + $0xc5] sm:$0x1] %vm1228_vm5, %v9545_v0  ;;  %1294 = vst.msk [vmem:[#allocation4 + $0xed] sm:$0x1] %vm1228_vm5, %v9545_v0 }
  0x7c   : > { %1296 = vst.msk [vmem:[#allocation4 + $0xfd] sm:$0x1] %vm1228_vm5, %v9545_v0  ;;  %1297 = vst.msk [vmem:[#allocation4 + $0x105] sm:$0x1] %vm1228_vm5, %v9545_v0 }
  0x7d   : > { %1298 = vst.msk [vmem:[#allocation4 + $0x10d] sm:$0x1] %vm1228_vm5, %v9545_v0  ;;  %1299 = vst.msk [vmem:[#allocation4 + $0x115] sm:$0x1] %vm1228_vm5, %v9545_v0  ;;  %v8897_v36 = vld [vmem:[#allocation4 + $0xa] ss:$8 sps:$4 sm:$0xff]  }
  0x7e   : > { %958 = vrot.lane.b32.xlu0 %v8871_v14, %s9551_s12  ;;  %1328 = vst.msk [vmem:[#allocation5 + $0x8] sm:$0x1] %vm1228_vm5, %v9545_v0  ;;  %1329 = vst.msk [vmem:[#allocation5 + $0x10] sm:$0x1] %vm1228_vm5, %v9545_v0  ;;  %v8898_v38 = vld [vmem:[#allocation4 + $0x1a] ss:$8 sps:$4 sm:$0xff]  }
  0x7f   : > { %960 = vrot.lane.b32.xlu1 %v8872_v15, %s9551_s12  ;;  %1330 = vst.msk [vmem:[#allocation5 + $0x18] sm:$0x1] %vm1228_vm5, %v9545_v0  ;;  %1331 = vst.msk [vmem:[#allocation5 + $0x20] sm:$0x1] %vm1228_vm5, %v9545_v0 }
  0x80   : > { %1333 = vst.msk [vmem:[#allocation5 + $0x30] sm:$0x1] %vm1228_vm5, %v9545_v0  ;;  %1338 = vst.msk [vmem:[#allocation5 + $0x58] sm:$0x1] %vm1228_vm5, %v9545_v0 }
  0x81   : > { %1339 = vst.msk [vmem:[#allocation5 + $0x60] sm:$0x1] %vm1228_vm5, %v9545_v0  ;;  %1344 = vst.msk [vmem:[#allocation5 + $0x88] sm:$0x1] %vm1228_vm5, %v9545_v0 }
  0x82   : > { %1019 = vrot.lane.b32.xlu0 %v8873_v16, %s9552_s22  ;;  %1345 = vst.msk [vmem:[#allocation5 + $0x90] sm:$0x1] %vm1228_vm5, %v9545_v0  ;;  %1350 = vst.msk [vmem:[#allocation5 + $0xb8] sm:$0x1] %vm1228_vm5, %v9545_v0 }
  0x83   : > { %1021 = vrot.lane.b32.xlu1 %v8874_v17, %s9552_s22  ;;  %1351 = vst.msk [vmem:[#allocation5 + $0xc0] sm:$0x1] %vm1228_vm5, %v9545_v0  ;;  %1356 = vst.msk [vmem:[#allocation5 + $0xe8] sm:$0x1] %vm1228_vm5, %v9545_v0 }
  0x84   : > { %1358 = vst.msk [vmem:[#allocation5 + $0xf8] sm:$0x1] %vm1228_vm5, %v9545_v0  ;;  %1359 = vst.msk [vmem:[#allocation5 + $0x100] sm:$0x1] %vm1228_vm5, %v9545_v0 }
  0x85   : > { %1360 = vst.msk [vmem:[#allocation5 + $0x108] sm:$0x1] %vm1228_vm5, %v9545_v0  ;;  %1361 = vst.msk [vmem:[#allocation5 + $0x110] sm:$0x1] %vm1228_vm5, %v9545_v0 }
  0x86   : > { %1023 = vrot.lane.b32.xlu0 %v8883_v18, %s9552_s22  ;;  %1364 = vst.msk [vmem:[#allocation5 + $0xd] sm:$0x1] %vm1228_vm5, %v9545_v0  ;;  %1365 = vst.msk [vmem:[#allocation5 + $0x15] sm:$0x1] %vm1228_vm5, %v9545_v0 }
  0x87   : > { %1025 = vrot.lane.b32.xlu1 %v8884_v19, %s9552_s22  ;;  %1366 = vst.msk [vmem:[#allocation5 + $0x1d] sm:$0x1] %vm1228_vm5, %v9545_v0  ;;  %1367 = vst.msk [vmem:[#allocation5 + $0x25] sm:$0x1] %vm1228_vm5, %v9545_v0 }
  0x88   : > { %1369 = vst.msk [vmem:[#allocation5 + $0x35] sm:$0x1] %vm1228_vm5, %v9545_v0  ;;  %1374 = vst.msk [vmem:[#allocation5 + $0x5d] sm:$0x1] %vm1228_vm5, %v9545_v0 }
  0x89   : > { %1375 = vst.msk [vmem:[#allocation5 + $0x65] sm:$0x1] %vm1228_vm5, %v9545_v0  ;;  %1380 = vst.msk [vmem:[#allocation5 + $0x8d] sm:$0x1] %vm1228_vm5, %v9545_v0 }
  0x8a   : > { %1381 = vst.msk [vmem:[#allocation5 + $0x95] sm:$0x1] %vm1228_vm5, %v9545_v0  ;;  %1386 = vst.msk [vmem:[#allocation5 + $0xbd] sm:$0x1] %vm1228_vm5, %v9545_v0  ;;  %1027 = vrot.lane.b32.xlu0 %v9767_v20, %s9552_s22 }
  0x8b   : > { %1387 = vst.msk [vmem:[#allocation5 + $0xc5] sm:$0x1] %vm1228_vm5, %v9545_v0  ;;  %1392 = vst.msk [vmem:[#allocation5 + $0xed] sm:$0x1] %vm1228_vm5, %v9545_v0  ;;  %1029 = vrot.lane.b32.xlu1 %v9770_v21, %s9552_s22 }
  0x8c   : > { %1394 = vst.msk [vmem:[#allocation5 + $0xfd] sm:$0x1] %vm1228_vm5, %v9545_v0  ;;  %1395 = vst.msk [vmem:[#allocation5 + $0x105] sm:$0x1] %vm1228_vm5, %v9545_v0 }
  0x8d   : > { %1396 = vst.msk [vmem:[#allocation5 + $0x10d] sm:$0x1] %vm1228_vm5, %v9545_v0  ;;  %1397 = vst.msk [vmem:[#allocation5 + $0x115] sm:$0x1] %vm1228_vm5, %v9545_v0 }
  0x8e   : > { %1265 = vst.msk [vmem:[#allocation4 + $0x5] sm:$0x1] %vm1228_vm5, %v9545_v0  ;;  %1229 = vst.msk [vmem:[#allocation4] sm:$0x1] %vm1228_vm5, %v9545_v0  ;;  %1031 = vrot.lane.b32.xlu0 %v8887_v22, %s9552_s22 }
  0x8f   : > { %1234 = vst.msk [vmem:[#allocation4 + $0x28] sm:$0x1] %vm1228_vm5, %v9545_v0  ;;  %1259 = vst.msk [vmem:[#allocation4 + $0xf0] sm:$0x1] %vm1228_vm5, %v9545_v0  ;;  %1033 = vrot.lane.b32.xlu1 %v8888_v23, %s9552_s22 }
  0x90   : > { %1264 = vst.msk [vmem:[#allocation4 + $0x118] sm:$0x1] %vm1228_vm5, %v9545_v0  ;;  %1270 = vst.msk [vmem:[#allocation4 + $0x2d] sm:$0x1] %vm1228_vm5, %v9545_v0 }
  0x91   : > { %1295 = vst.msk [vmem:[#allocation4 + $0xf5] sm:$0x1] %vm1228_vm5, %v9545_v0  ;;  %1300 = vst.msk [vmem:[#allocation4 + $0x11d] sm:$0x1] %vm1228_vm5, %v9545_v0 }
  0x92   : > { %1327 = vst.msk [vmem:[#allocation5] sm:$0x1] %vm1228_vm5, %v9545_v0  ;;  %1332 = vst.msk [vmem:[#allocation5 + $0x28] sm:$0x1] %vm1228_vm5, %v9545_v0  ;;  %1571 = vrot.lane.b32.xlu0 %v8889_v24, %s9549_s29 }
  0x93   : > { %1357 = vst.msk [vmem:[#allocation5 + $0xf0] sm:$0x1] %vm1228_vm5, %v9545_v0  ;;  %1362 = vst.msk [vmem:[#allocation5 + $0x118] sm:$0x1] %vm1228_vm5, %v9545_v0  ;;  %1573 = vrot.lane.b32.xlu1 %v8890_v25, %s9549_s29 }
  0x94   : > { %1363 = vst.msk [vmem:[#allocation5 + $0x5] sm:$0x1] %vm1228_vm5, %v9545_v0  ;;  %1368 = vst.msk [vmem:[#allocation5 + $0x2d] sm:$0x1] %vm1228_vm5, %v9545_v0  ;;  %v579_v27 = vpop.permute.xlu0 %578 }
  0x95   : > { %1393 = vst.msk [vmem:[#allocation5 + $0xf5] sm:$0x1] %vm1228_vm5, %v9545_v0  ;;  %1398 = vst.msk [vmem:[#allocation5 + $0x11d] sm:$0x1] %vm1228_vm5, %v9545_v0  ;;  %v8891_v26 = vld [vmem:[#allocation4 + $0x2] ss:$8 sps:$4 sm:$0xff]   ;;  %v583_v28 = vpop.permute.xlu1 %582 }
  0x96   : > { %v8892_v0 = vld [vmem:[#allocation4 + $0x12] ss:$8 sps:$4 sm:$0xff]   ;;  %603 = vst.msk [vmem:[#allocation3] sm:$0xff] %vm602_vm6, %v579_v27  ;;  %605 = vst.msk [vmem:[#allocation3 + $0x10] sm:$0xff] %vm602_vm6, %v583_v28  ;;  %1644 = vrot.lane.b32.xlu0 %v8891_v26, %s9553_s7  ;;  %v8900_v42 = vld [vmem:[#allocation4 + $0x20] ss:$8 sps:$4 sm:$0xff]  }
  0x97   : > { %1646 = vrot.lane.b32.xlu1 %v8892_v0, %s9553_s7  ;;  %vm2035_vm5 = vcmask 1048448  }
  0x98   : > { %v581_v31 = vpop.permute.xlu0 %580 }
  0x99   : > { %604 = vst.msk [vmem:[#allocation3 + $0x8] sm:$0xff] %vm602_vm6, %v581_v31  ;;  %v585_v33 = vpop.permute.xlu1 %584 }
  0x9a   : > { %606 = vst.msk [vmem:[#allocation3 + $0x18] sm:$0xff] %vm602_vm6, %v585_v33  ;;  %1718 = vrot.lane.b32.xlu0 %v8893_v29, %s9554_s23 }
  0x9b   : > { %1720 = vrot.lane.b32.xlu1 %v8894_v30, %s9554_s23 }
  0x9c   : > { %v587_v35 = vpop.permute.xlu0 %586 }
  0x9d   : > { %607 = vst.msk [vmem:[#allocation3 + $0x20] sm:$0xff] %vm602_vm6, %v587_v35  ;;  %v589_v37 = vpop.permute.xlu1 %588  ;;  %v8901_v35 = vld [vmem:[#allocation4 + $0x11] ss:$8 sps:$4 sm:$0xff]  }
  0x9e   : > { %608 = vst.msk [vmem:[#allocation3 + $0x28] sm:$0xff] %vm602_vm6, %v589_v37  ;;  %1791 = vrot.lane.b32.xlu0 %v8895_v32, %s9555_s24  ;;  %v8903_v37 = vld [vmem:[#allocation4 + $0xf0] ss:$8 sps:$4 sm:$0xff]  }
  0x9f   : > { %1793 = vrot.lane.b32.xlu1 %v8896_v34, %s9555_s24 }
  0xa0   : > { %v591_v39 = vpop.permute.xlu0 %590 }
  0xa1   : > { %609 = vst.msk [vmem:[#allocation3 + $0x30] sm:$0xff] %vm602_vm6, %v591_v39  ;;  %v593_v41 = vpop.permute.xlu1 %592  ;;  %v8905_v39 = vld [vmem:[#allocation4 + $0xf1] ss:$8 sps:$4 sm:$0xff]  }
  0xa2   : > { %610 = vst.msk [vmem:[#allocation3 + $0x38] sm:$0xff] %vm602_vm6, %v593_v41  ;;  %1864 = vrot.lane.b32.xlu0 %v8897_v36, %s9556_s25  ;;  %v8902_v36 = vld [vmem:[#allocation4 + $0x21] ss:$8 sps:$4 sm:$0xff]   ;;  %vm1424_vm6 = vcmask 125952  }
  0xa3   : > { %1866 = vrot.lane.b32.xlu1 %v8898_v38, %s9556_s25  ;;  %v8904_v38 = vld [vmem:[#allocation4 + $0x100] ss:$8 sps:$4 sm:$0xff]  }
  0xa4   : > { %v653_v43 = vpop.permute.xlu0 %652  ;;  %v8947_v41 = vld [vmem:[#allocation4] ss:$8 sps:$4 sm:$0xff]  }
  0xa5   : > { %677 = vst.msk [vmem:[#allocation3] sm:$0xff] %vm676_vm7, %v653_v43  ;;  %v655_v44 = vpop.permute.xlu1 %654  ;;  %v8948_v43 = vld [vmem:[#allocation4 + $0x10] ss:$8 sps:$4 sm:$0xff]  }
  0xa6   : > { %678 = vst.msk [vmem:[#allocation3 + $0x8] sm:$0xff] %vm676_vm7, %v655_v44  ;;  %1938 = vrot.lane.b32.xlu0 %v8899_v40, %s9557_s26  ;;  %v8906_v40 = vld [vmem:[#allocation4 + $0x101] ss:$8 sps:$4 sm:$0xff]  }
  0xa7   : > { %1940 = vrot.lane.b32.xlu1 %v8900_v42, %s9557_s26  ;;  %1523 = vst.msk [vmem:[#allocation6] sm:$0xff] %vm1522_vm15, %v8947_v41  ;;  %1524 = vst.msk [vmem:[#allocation6 + $0x20] sm:$0xff] %vm1522_vm15, %v8948_v43 }
  0xa8   : > { %v657_v45 = vpop.permute.xlu0 %656 }
  0xa9   : > { %679 = vst.msk [vmem:[#allocation3 + $0x10] sm:$0xff] %vm676_vm7, %v657_v45  ;;  %v659_v46 = vpop.permute.xlu1 %658 }
  0xaa   : > { %680 = vst.msk [vmem:[#allocation3 + $0x18] sm:$0xff] %vm676_vm7, %v659_v46  ;;  %2011 = vrot.lane.b32.xlu0 %v8901_v35, %s9558_s27 }
  0xab   : > { %2013 = vrot.lane.b32.xlu1 %v8902_v36, %s9558_s27 }
  0xac   : > { %v661_v47 = vpop.permute.xlu0 %660 }
  0xad   : > { %681 = vst.msk [vmem:[#allocation3 + $0x20] sm:$0xff] %vm676_vm7, %v661_v47  ;;  %v663_v48 = vpop.permute.xlu1 %662 }
  0xae   : > { %682 = vst.msk [vmem:[#allocation3 + $0x28] sm:$0xff] %vm676_vm7, %v663_v48  ;;  %2787 = vrot.lane.b32.xlu0 %v8903_v37, %s9553_s7 }
  0xaf   : > { %2789 = vrot.lane.b32.xlu1 %v8904_v38, %s9553_s7 }
  0xb0   : > { %v665_v49 = vpop.permute.xlu0 %664 }
  0xb1   : > { %683 = vst.msk [vmem:[#allocation3 + $0x30] sm:$0xff] %vm676_vm7, %v665_v49  ;;  %v667_v50 = vpop.permute.xlu1 %666 }
  0xb2   : > { %684 = vst.msk [vmem:[#allocation3 + $0x38] sm:$0xff] %vm676_vm7, %v667_v50  ;;  %2859 = vrot.lane.b32.xlu0 %v8905_v39, %s9554_s23  ;;  %vm5428_vm7 = vcmask 392192  }
  0xb3   : > { %2861 = vrot.lane.b32.xlu1 %v8906_v40, %s9554_s23 }
  0xb4   : > { %v726_v51 = vpop.permute.xlu0 %725 }
  0xb5   : > { %750 = vst.msk [vmem:[#allocation3] sm:$0xff] %vm749_vm8, %v726_v51  ;;  %v728_v52 = vpop.permute.xlu1 %727 }
  0xb6   : > { %751 = vst.msk [vmem:[#allocation3 + $0x8] sm:$0xff] %vm749_vm8, %v728_v52 }
  0xb8   : > { %v730_v53 = vpop.permute.xlu0 %729 }
  0xb9   : > { %752 = vst.msk [vmem:[#allocation3 + $0x10] sm:$0xff] %vm749_vm8, %v730_v53  ;;  %v732_v54 = vpop.permute.xlu1 %731 }
  0xba   : > { %753 = vst.msk [vmem:[#allocation3 + $0x18] sm:$0xff] %vm749_vm8, %v732_v54 }
  0xbc   : > { %v734_v55 = vpop.permute.xlu0 %733 }
  0xbd   : > { %754 = vst.msk [vmem:[#allocation3 + $0x20] sm:$0xff] %vm749_vm8, %v734_v55  ;;  %v736_v56 = vpop.permute.xlu1 %735 }
  0xbe   : > { %755 = vst.msk [vmem:[#allocation3 + $0x28] sm:$0xff] %vm749_vm8, %v736_v56 }
  0xc0   : > { %v738_v57 = vpop.permute.xlu0 %737 }
  0xc1   : > { %756 = vst.msk [vmem:[#allocation3 + $0x30] sm:$0xff] %vm749_vm8, %v738_v57  ;;  %v740_v58 = vpop.permute.xlu1 %739  ;;  %v10263_v57 = vld [vmem:[%s12324_s3] ss:$0 sm:$0xff] }
  0xc2   : > { %757 = vst.msk [vmem:[#allocation3 + $0x38] sm:$0xff] %vm749_vm8, %v740_v58 }
  0xc4   : > { %v800_v59 = vpop.permute.xlu0 %799 }
  0xc5   : > { %824 = vst.msk [vmem:[#allocation3] sm:$0xff] %vm823_vm9, %v800_v59  ;;  %v802_v60 = vpop.permute.xlu1 %801 }
  0xc6   : > { %825 = vst.msk [vmem:[#allocation3 + $0x8] sm:$0xff] %vm823_vm9, %v802_v60 }
  0xc8   : > { %v804_v61 = vpop.permute.xlu0 %803 }
  0xc9   : > { %826 = vst.msk [vmem:[#allocation3 + $0x10] sm:$0xff] %vm823_vm9, %v804_v61  ;;  %v806_v62 = vpop.permute.xlu1 %805 }
  0xca   : > { %827 = vst.msk [vmem:[#allocation3 + $0x18] sm:$0xff] %vm823_vm9, %v806_v62 }
  0xcc   : > { %v808_v63 = vpop.permute.xlu0 %807 }
  0xcd   : > { %828 = vst.msk [vmem:[#allocation3 + $0x20] sm:$0xff] %vm823_vm9, %v808_v63  ;;  %v810_v1 = vpop.permute.xlu1 %809 }
  0xce   : > { %829 = vst.msk [vmem:[#allocation3 + $0x28] sm:$0xff] %vm823_vm9, %v810_v1 }
  0xd0   : > { %v812_v2 = vpop.permute.xlu0 %811 }
  0xd1   : > { %830 = vst.msk [vmem:[#allocation3 + $0x30] sm:$0xff] %vm823_vm9, %v812_v2  ;;  %v814_v3 = vpop.permute.xlu1 %813 }
  0xd2   : > { %831 = vst.msk [vmem:[#allocation3 + $0x38] sm:$0xff] %vm823_vm9, %v814_v3 }
  0xd4   : > { %v873_v4 = vpop.permute.xlu0 %872 }
  0xd5   : > { %897 = vst.msk [vmem:[#allocation3] sm:$0xff] %vm896_vm10, %v873_v4  ;;  %v875_v5 = vpop.permute.xlu1 %874 }
  0xd6   : > { %898 = vst.msk [vmem:[#allocation3 + $0x8] sm:$0xff] %vm896_vm10, %v875_v5  ;;  %v8972_v5 = vld [vmem:[#allocation4 + $0x12] ss:$8 sps:$4 sm:$0xff]  }
  0xd7   : > { %2092 = vst.msk [vmem:[#allocation6 + $0x8] sm:$0xff] %vm1522_vm15, %v8972_v5 }
  0xd8   : > { %v877_v6 = vpop.permute.xlu0 %876 }
  0xd9   : > { %899 = vst.msk [vmem:[#allocation3 + $0x10] sm:$0xff] %vm896_vm10, %v877_v6  ;;  %v879_v7 = vpop.permute.xlu1 %878 }
  0xda   : > { %900 = vst.msk [vmem:[#allocation3 + $0x18] sm:$0xff] %vm896_vm10, %v879_v7 }
  0xdc   : > { %v881_v8 = vpop.permute.xlu0 %880 }
  0xdd   : > { %901 = vst.msk [vmem:[#allocation3 + $0x20] sm:$0xff] %vm896_vm10, %v881_v8  ;;  %v883_v9 = vpop.permute.xlu1 %882 }
  0xde   : > { %902 = vst.msk [vmem:[#allocation3 + $0x28] sm:$0xff] %vm896_vm10, %v883_v9 }
  0xe0   : > { %v885_v10 = vpop.permute.xlu0 %884 }
  0xe1   : > { %903 = vst.msk [vmem:[#allocation3 + $0x30] sm:$0xff] %vm896_vm10, %v885_v10  ;;  %v887_v11 = vpop.permute.xlu1 %886 }
  0xe2   : > { %904 = vst.msk [vmem:[#allocation3 + $0x38] sm:$0xff] %vm896_vm10, %v887_v11 }
  0xe4   : > { %v947_v12 = vpop.permute.xlu0 %946 }
  0xe5   : > { %971 = vst.msk [vmem:[#allocation3] sm:$0xff] %vm970_vm11, %v947_v12  ;;  %v949_v13 = vpop.permute.xlu1 %948 }
  0xe6   : > { %972 = vst.msk [vmem:[#allocation3 + $0x8] sm:$0xff] %vm970_vm11, %v949_v13 }
  0xe8   : > { %v951_v14 = vpop.permute.xlu0 %950 }
  0xe9   : > { %973 = vst.msk [vmem:[#allocation3 + $0x10] sm:$0xff] %vm970_vm11, %v951_v14  ;;  %v953_v15 = vpop.permute.xlu1 %952 }
  0xea   : > { %974 = vst.msk [vmem:[#allocation3 + $0x18] sm:$0xff] %vm970_vm11, %v953_v15 }
  0xec   : > { %v955_v16 = vpop.permute.xlu0 %954 }
  0xed   : > { %975 = vst.msk [vmem:[#allocation3 + $0x20] sm:$0xff] %vm970_vm11, %v955_v16  ;;  %v957_v17 = vpop.permute.xlu1 %956 }
  0xee   : > { %976 = vst.msk [vmem:[#allocation3 + $0x28] sm:$0xff] %vm970_vm11, %v957_v17 }
  0xf0   : > { %v959_v18 = vpop.permute.xlu0 %958 }
  0xf1   : > { %977 = vst.msk [vmem:[#allocation3 + $0x30] sm:$0xff] %vm970_vm11, %v959_v18  ;;  %v961_v19 = vpop.permute.xlu1 %960 }
  0xf2   : > { %978 = vst.msk [vmem:[#allocation3 + $0x38] sm:$0xff] %vm970_vm11, %v961_v19 }
  0xf4   : > { %v1020_v20 = vpop.permute.xlu0 %1019 }
  0xf5   : > { %1044 = vst.msk [vmem:[#allocation3] sm:$0xff] %vm1043_vm12, %v1020_v20  ;;  %v1022_v21 = vpop.permute.xlu1 %1021 }
  0xf6   : > { %1045 = vst.msk [vmem:[#allocation3 + $0x8] sm:$0xff] %vm1043_vm12, %v1022_v21 }
  0xf8   : > { %v1024_v22 = vpop.permute.xlu0 %1023 }
  0xf9   : > { %1046 = vst.msk [vmem:[#allocation3 + $0x10] sm:$0xff] %vm1043_vm12, %v1024_v22  ;;  %v1026_v23 = vpop.permute.xlu1 %1025 }
  0xfa   : > { %1047 = vst.msk [vmem:[#allocation3 + $0x18] sm:$0xff] %vm1043_vm12, %v1026_v23 }
  0xfc   : > { %v1052_v24 = vld [vmem:[#allocation3] sm:$0xff]  ;;  %v1028_v25 = vpop.permute.xlu0 %1027 }
  0xfd   : > { %8565 = vmatprep.mubr.msk.f32.mxu0 %vm1071_vm13, %v1052_v24  ;;  %v1053_v26 = vld [vmem:[#allocation3 + $0x8] sm:$0xff]  ;;  %1048 = vst.msk [vmem:[#allocation3 + $0x20] sm:$0xff] %vm1043_vm12, %v1028_v25  ;;  %v1030_v0 = vpop.permute.xlu1 %1029 }
  0xfe   : > { %8566 = vmatmul.mubr.msk.f32.vlgmr.msra.gmra.mrb[0].mxu0 %vm1071_vm13, %v1053_v26  ;;  %1049 = vst.msk [vmem:[#allocation3 + $0x28] sm:$0xff] %vm1043_vm12, %v1030_v0 }
 0x100   : > { %v1054_v27 = vld [vmem:[#allocation3 + $0x10] sm:$0xff]  ;;  %v1032_v28 = vpop.permute.xlu0 %1031 }
 0x101   : > { %8568 = vmatprep.mubr.msk.f32.mxu0 %vm1071_vm13, %v1054_v27  ;;  %v1055_v29 = vld [vmem:[#allocation3 + $0x18] sm:$0xff]  ;;  %1050 = vst.msk [vmem:[#allocation3 + $0x30] sm:$0xff] %vm1043_vm12, %v1032_v28  ;;  %v1034_v30 = vpop.permute.xlu1 %1033 }
 0x102   : > { %8569 = vmatmul.mubr.msk.f32.gmra.mrb[2].mxu0 %vm1071_vm13, %v1055_v29  ;;  %1051 = vst.msk [vmem:[#allocation3 + $0x38] sm:$0xff] %vm1043_vm12, %v1034_v30 }
 0x104   : > { %v1056_v31 = vld [vmem:[#allocation3 + $0x20] sm:$0xff]  ;;  %v1572_v42 = vpop.permute.xlu0 %1571 }
 0x105   : > { %8571 = vmatprep.mubr.msk.f32.mxu0 %vm1071_vm13, %v1056_v31  ;;  %v1057_v32 = vld [vmem:[#allocation3 + $0x28] sm:$0xff]  ;;  %v1574_v44 = vpop.permute.xlu1 %1573  ;;  %1596 = vst.msk [vmem:[#allocation6] sm:$0xff] %vm1595_vm14, %v1572_v42 }
 0x106   : > { %8572 = vmatmul.mubr.msk.f32.gmra.mrb[4].mxu0 %vm1071_vm13, %v1057_v32  ;;  %1597 = vst.msk [vmem:[#allocation6 + $0x20] sm:$0xff] %vm1595_vm14, %v1574_v44 }
 0x108   : > { %v1058_v33 = vld [vmem:[#allocation3 + $0x30] sm:$0xff]  ;;  %v1645_v45 = vpop.permute.xlu0 %1644 }
 0x109   : > { %8574 = vmatprep.mubr.msk.f32.mxu0 %vm1071_vm13, %v1058_v33  ;;  %v1059_v34 = vld [vmem:[#allocation3 + $0x38] sm:$0xff]  ;;  %v1647_v46 = vpop.permute.xlu1 %1646  ;;  %1669 = vst.msk [vmem:[#allocation6] sm:$0xff] %vm1668_vm0, %v1645_v45 }
 0x10a   : > { %8575 = vmatmul.mubr.msk.f32.gmra.mrb[6].mxu0 %vm1071_vm13, %v1059_v34  ;;  %1670 = vst.msk [vmem:[#allocation6 + $0x20] sm:$0xff] %vm1668_vm0, %v1647_v46 }
 0x10c   : > { %v1719_v47 = vpop.permute.xlu0 %1718 }
 0x10d   : > { %v1721_v48 = vpop.permute.xlu1 %1720  ;;  %1743 = vst.msk [vmem:[#allocation6] sm:$0xff] %vm1742_vm1, %v1719_v47 }
 0x10e   : > { %1744 = vst.msk [vmem:[#allocation6 + $0x20] sm:$0xff] %vm1742_vm1, %v1721_v48 }
 0x110   : > { %v1792_v49 = vpop.permute.xlu0 %1791 }
 0x111   : > { %v1794_v50 = vpop.permute.xlu1 %1793  ;;  %1816 = vst.msk [vmem:[#allocation6] sm:$0xff] %vm1815_vm2, %v1792_v49 }
 0x112   : > { %1817 = vst.msk [vmem:[#allocation6 + $0x20] sm:$0xff] %vm1815_vm2, %v1794_v50 }
 0x114   : > { %v1865_v51 = vpop.permute.xlu0 %1864 }
 0x115   : > { %v1867_v52 = vpop.permute.xlu1 %1866  ;;  %1889 = vst.msk [vmem:[#allocation6] sm:$0xff] %vm1888_vm3, %v1865_v51 }
 0x116   : > { %1890 = vst.msk [vmem:[#allocation6 + $0x20] sm:$0xff] %vm1888_vm3, %v1867_v52 }
 0x118   : > { %v1939_v53 = vpop.permute.xlu0 %1938 }
 0x119   : > { %v1941_v54 = vpop.permute.xlu1 %1940  ;;  %1963 = vst.msk [vmem:[#allocation6] sm:$0xff] %vm1962_vm4, %v1939_v53 }
 0x11a   : > { %1964 = vst.msk [vmem:[#allocation6 + $0x20] sm:$0xff] %vm1962_vm4, %v1941_v54  ;;  %v8995_v54 = vld [vmem:[#allocation4 + $0x22] ss:$8 sps:$4 sm:$0xff]  }
 0x11b   : > { %2093 = vst.msk [vmem:[#allocation6 + $0x28] sm:$0xff] %vm1522_vm15, %v8995_v54 }
 0x11c   : > { %v2012_v55 = vpop.permute.xlu0 %2011 }
 0x11d   : > { %2036 = vst.msk [vmem:[#allocation6] sm:$0xff] %vm2035_vm5, %v2012_v55  ;;  %v2014_v56 = vpop.permute.xlu1 %2013 }
 0x11e   : > { %2037 = vst.msk [vmem:[#allocation6 + $0x20] sm:$0xff] %vm2035_vm5, %v2014_v56 }
 0x1d1   : > { %v8567_v58 = vpop.f32.mrb[0].mxu0 }
 0x1d2   : > { %v1168_v59 = vadd.f32 %v8567_v58, %v10263_v57  ;;  %v1162_v60 = vpop.f32.mrb[1].mxu0 }
 0x1d3   : > { %v1163_v61 = vadd.f32 %v10263_v57, %v1162_v60 }
 0x1d4   : > { %v1408_v62 = vcombine.high %v1168_v59, %v1168_v59  ;;  %1427 = vst.msk [vmem:[#allocation4 + $0x49] sm:$0xf] %vm1424_vm6, %v1168_v59 }
 0x1d5   : > { %v1407_v63 = vcombine.high %v1163_v61, %v1163_v61  ;;  %1425 = vst.msk [vmem:[#allocation4 + $0x39] sm:$0xf] %vm1424_vm6, %v1163_v61  ;;  %v8570_v1 = vpop.f32.mrb[2].mxu0 }
 0x1d6   : > { %1428 = vst.msk [vmem:[#allocation4 + $0x51] sm:$0xf] %vm1424_vm6, %v1408_v62  ;;  %v1178_v2 = vadd.f32 %v8570_v1, %v10263_v57  ;;  %v1172_v3 = vpop.f32.mrb[3].mxu0 }
 0x1d7   : > { %1426 = vst.msk [vmem:[#allocation4 + $0x41] sm:$0xf] %vm1424_vm6, %v1407_v63  ;;  %v1173_v4 = vadd.f32 %v10263_v57, %v1172_v3 }
 0x1d8   : > { %v1410_v6 = vcombine.high %v1178_v2, %v1178_v2  ;;  %1431 = vst.msk [vmem:[#allocation4 + $0x79] sm:$0xf] %vm1424_vm6, %v1178_v2 }
 0x1d9   : > { %v1409_v7 = vcombine.high %v1173_v4, %v1173_v4  ;;  %1429 = vst.msk [vmem:[#allocation4 + $0x69] sm:$0xf] %vm1424_vm6, %v1173_v4  ;;  %v8573_v8 = vpop.f32.mrb[4].mxu0 }
 0x1da   : > { %1432 = vst.msk [vmem:[#allocation4 + $0x81] sm:$0xf] %vm1424_vm6, %v1410_v6  ;;  %v1188_v9 = vadd.f32 %v8573_v8, %v10263_v57  ;;  %v1182_v10 = vpop.f32.mrb[5].mxu0 }
 0x1db   : > { %1430 = vst.msk [vmem:[#allocation4 + $0x71] sm:$0xf] %vm1424_vm6, %v1409_v7  ;;  %v1183_v11 = vadd.f32 %v10263_v57, %v1182_v10 }
 0x1dc   : > { %v8907_v12 = vld [vmem:[#allocation4 + $0x31] ss:$8 sps:$4 sm:$0xff]   ;;  %v1412_v13 = vcombine.high %v1188_v9, %v1188_v9  ;;  %1435 = vst.msk [vmem:[#allocation4 + $0xa9] sm:$0xf] %vm1424_vm6, %v1188_v9 }
 0x1dd   : > { %v8908_v14 = vld [vmem:[#allocation4 + $0x48] ss:$8 sps:$4 sm:$0xff]   ;;  %v1411_v15 = vcombine.high %v1183_v11, %v1183_v11  ;;  %1433 = vst.msk [vmem:[#allocation4 + $0x99] sm:$0xf] %vm1424_vm6, %v1183_v11  ;;  %1575 = vrot.lane.b32.xlu0 %v8907_v12, %s9549_s29  ;;  %v8576_v2 = vpop.f32.mrb[6].mxu0 }
 0x1de   : > { %1436 = vst.msk [vmem:[#allocation4 + $0xb1] sm:$0xf] %vm1424_vm6, %v1412_v13  ;;  %1724 = vrot.lane.b32.xlu1 %v8908_v14, %s9554_s23  ;;  %v8909_v16 = vld [vmem:[#allocation4 + $0x32] ss:$8 sps:$4 sm:$0xff]   ;;  %v8923_v29 = vld [vmem:[#allocation4 + $0x40] ss:$8 sps:$4 sm:$0xff]   ;;  %v1198_v3 = vadd.f32 %v8576_v2, %v10263_v57 }
 0x1df   : > { %1434 = vst.msk [vmem:[#allocation4 + $0xa1] sm:$0xf] %vm1424_vm6, %v1411_v15  ;;  %v8910_v17 = vld [vmem:[#allocation4 + $0x49] ss:$8 sps:$4 sm:$0xff]   ;;  %v8917_v24 = vld [vmem:[#allocation4 + $0x38] ss:$8 sps:$4 sm:$0xff]  }
 0x1e0   : > { %v8911_v18 = vld [vmem:[#allocation4 + $0x30] ss:$8 sps:$4 sm:$0xff]   ;;  %v8925_v31 = vld [vmem:[#allocation4 + $0x41] ss:$8 sps:$4 sm:$0xff]   ;;  %v1192_v4 = vpop.f32.mrb[7].mxu0  ;;  %v1414_v7 = vcombine.high %v1198_v3, %v1198_v3 }
 0x1e1   : > { %1648 = vrot.lane.b32.xlu0 %v8909_v16, %s9553_s7  ;;  %v8912_v19 = vld [vmem:[#allocation4 + $0x4a] ss:$8 sps:$4 sm:$0xff]   ;;  %v8919_v26 = vld [vmem:[#allocation4 + $0x39] ss:$8 sps:$4 sm:$0xff]   ;;  %v1193_v5 = vadd.f32 %v10263_v57, %v1192_v4  ;;  %1439 = vst.msk [vmem:[#allocation4 + $0xd9] sm:$0xf] %vm1424_vm6, %v1198_v3 }
 0x1e2   : > { %1797 = vrot.lane.b32.xlu1 %v8910_v17, %s9555_s24  ;;  %v8913_v20 = vld [vmem:[#allocation4 + $0x31] ss:$8 sps:$4 sm:$0xff]   ;;  %v8928_v34 = vld [vmem:[#allocation4 + $0x41] ss:$8 sps:$4 sm:$0xff]   ;;  %1440 = vst.msk [vmem:[#allocation4 + $0xe1] sm:$0xf] %vm1424_vm6, %v1414_v7 }
 0x1e3   : > { %v8914_v21 = vld [vmem:[#allocation4 + $0x50] ss:$8 sps:$4 sm:$0xff]   ;;  %v8930_v36 = vld [vmem:[#allocation4 + $0x42] ss:$8 sps:$4 sm:$0xff]   ;;  %v1413_v9 = vcombine.high %v1193_v5, %v1193_v5  ;;  %1437 = vst.msk [vmem:[#allocation4 + $0xc9] sm:$0xf] %vm1424_vm6, %v1193_v5 }
 0x1e4   : > { %v8915_v22 = vld [vmem:[#allocation4 + $0x32] ss:$8 sps:$4 sm:$0xff]   ;;  %v8932_v38 = vld [vmem:[#allocation4 + $0x40] ss:$8 sps:$4 sm:$0xff]  }
 0x1e5   : > { %2141 = vrot.lane.b32.xlu0 %v8911_v18, %s9549_s29  ;;  %v8916_v23 = vld [vmem:[#allocation4 + $0x51] ss:$8 sps:$4 sm:$0xff]   ;;  %v8933_v40 = vld [vmem:[#allocation4 + $0x40] ss:$8 sps:$4 sm:$0xff]   ;;  %1438 = vst.msk [vmem:[#allocation4 + $0xd1] sm:$0xf] %vm1424_vm6, %v1413_v9  ;;  %v10350_v18 = vpop.permute.xlu0 %2787 }
 0x1e6   : > { %1870 = vrot.lane.b32.xlu1 %v8912_v19, %s9556_s25  ;;  %v8918_v25 = vld [vmem:[#allocation4 + $0x48] ss:$8 sps:$4 sm:$0xff]   ;;  %v8921_v27 = vld [vmem:[#allocation4 + $0x3a] ss:$8 sps:$4 sm:$0xff]  }
 0x1e7   : > { %v8920_v0 = vld [vmem:[#allocation4 + $0x49] ss:$8 sps:$4 sm:$0xff]   ;;  %v8927_v33 = vld [vmem:[#allocation4 + $0x38] ss:$8 sps:$4 sm:$0xff]  }
 0x1e8   : > { %v8922_v28 = vld [vmem:[#allocation4 + $0x4a] ss:$8 sps:$4 sm:$0xff]   ;;  %v8929_v35 = vld [vmem:[#allocation4 + $0x39] ss:$8 sps:$4 sm:$0xff]  }
 0x1e9   : > { %2213 = vrot.lane.b32.xlu0 %v8913_v20, %s9553_s7  ;;  %v8924_v30 = vld [vmem:[#allocation4 + $0x50] ss:$8 sps:$4 sm:$0xff]   ;;  %v8934_v41 = vld [vmem:[#allocation4 + $0x41] ss:$8 sps:$4 sm:$0xff]   ;;  %v10353_v20 = vpop.permute.xlu1 %2789 }
 0x1ea   : > { %1944 = vrot.lane.b32.xlu1 %v8914_v21, %s9557_s26  ;;  %v8926_v32 = vld [vmem:[#allocation4 + $0x52] ss:$8 sps:$4 sm:$0xff]   ;;  %v8935_v42 = vld [vmem:[#allocation4 + $0x42] ss:$8 sps:$4 sm:$0xff]  }
 0x1eb   : > { %v8931_v37 = vld [vmem:[#allocation4 + $0x3a] ss:$8 sps:$4 sm:$0xff]   ;;  %v8955_v10 = vld [vmem:[#allocation4 + $0x68] ss:$8 sps:$4 sm:$0xff]  }
 0x1ec   : > { %v8967_v39 = vld [vmem:[#allocation4 + $0x30] ss:$8 sps:$4 sm:$0xff]   ;;  %v8936_v43 = vld [vmem:[#allocation4 + $0x42] ss:$8 sps:$4 sm:$0xff]  }
 0x1ed   : > { %2285 = vrot.lane.b32.xlu0 %v8915_v22, %s9554_s23  ;;  %1525 = vst.msk [vmem:[#allocation6 + $0x40] sm:$0xff] %vm1522_vm15, %v8967_v39  ;;  %v8937_v44 = vld [vmem:[#allocation4 + $0x61] ss:$8 sps:$4 sm:$0xff]   ;;  %v8987_v48 = vld [vmem:[#allocation4 + $0x51] ss:$8 sps:$4 sm:$0xff]  }
 0x1ee   : > { %2017 = vrot.lane.b32.xlu1 %v8916_v23, %s9558_s27  ;;  %v8938_v45 = vld [vmem:[#allocation4 + $0x78] ss:$8 sps:$4 sm:$0xff]   ;;  %2655 = vst.msk [vmem:[#allocation6 + $0x30] sm:$0xff] %vm1522_vm15, %v8987_v48  ;;  %v8957_v12 = vld [vmem:[#allocation4 + $0x69] ss:$8 sps:$4 sm:$0xff]  }
 0x1ef   : > { %v8939_v46 = vld [vmem:[#allocation4 + $0x62] ss:$8 sps:$4 sm:$0xff]   ;;  %v8960_v15 = vld [vmem:[#allocation4 + $0x71] ss:$8 sps:$4 sm:$0xff]  }
 0x1f0   : > { %v8940_v47 = vld [vmem:[#allocation4 + $0x79] ss:$8 sps:$4 sm:$0xff]   ;;  %v8959_v14 = vld [vmem:[#allocation4 + $0x6a] ss:$8 sps:$4 sm:$0xff]  }
 0x1f1   : > { %1722 = vrot.lane.b32.xlu0 %v8917_v24, %s9554_s23  ;;  %v8941_v49 = vld [vmem:[#allocation4 + $0x60] ss:$8 sps:$4 sm:$0xff]   ;;  %v9026_v16 = vld [vmem:[#allocation4 + $0x70] ss:$8 sps:$4 sm:$0xff]   ;;  %v10359_v24 = vpop.permute.xlu0 %2859 }
 0x1f2   : > { %2359 = vrot.lane.b32.xlu1 %v8918_v25, %s9555_s24  ;;  %v8942_v50 = vld [vmem:[#allocation4 + $0x7a] ss:$8 sps:$4 sm:$0xff]   ;;  %1528 = vst.msk [vmem:[#allocation6 + $0xa0] sm:$0xff] %vm1522_vm15, %v9026_v16  ;;  %v10362_v25 = vpop.permute.xlu1 %2861 }
 0x1f3   : > { %v8990_v51 = vld [vmem:[#allocation4 + $0x40] ss:$8 sps:$4 sm:$0xff]   ;;  %v8961_v17 = vld [vmem:[#allocation4 + $0x70] ss:$8 sps:$4 sm:$0xff]  }
 0x1f4   : > { %1526 = vst.msk [vmem:[#allocation6 + $0x60] sm:$0xff] %vm1522_vm15, %v8990_v51  ;;  %v8943_v52 = vld [vmem:[#allocation4 + $0x61] ss:$8 sps:$4 sm:$0xff]   ;;  %v8962_v19 = vld [vmem:[#allocation4 + $0x72] ss:$8 sps:$4 sm:$0xff]  }
 0x1f5   : > { %1795 = vrot.lane.b32.xlu0 %v8919_v26, %s9555_s24  ;;  %v8944_v53 = vld [vmem:[#allocation4 + $0x80] ss:$8 sps:$4 sm:$0xff]   ;;  %v9031_v21 = vld [vmem:[#allocation4 + $0x52] ss:$8 sps:$4 sm:$0xff]  }
 0x1f6   : > { %2431 = vrot.lane.b32.xlu1 %v8920_v0, %s9556_s25  ;;  %v8945_v55 = vld [vmem:[#allocation4 + $0x62] ss:$8 sps:$4 sm:$0xff]   ;;  %v8963_v22 = vld [vmem:[#allocation4 + $0x71] ss:$8 sps:$4 sm:$0xff]   ;;  %2095 = vst.msk [vmem:[#allocation6 + $0x68] sm:$0xff] %vm1522_vm15, %v9031_v21 }
 0x1f7   : > { %v8946_v56 = vld [vmem:[#allocation4 + $0x81] ss:$8 sps:$4 sm:$0xff]   ;;  %v8964_v23 = vld [vmem:[#allocation4 + $0x70] ss:$8 sps:$4 sm:$0xff]  }
 0x1f8   : > { %v9000_v58 = vld [vmem:[#allocation4 + $0x41] ss:$8 sps:$4 sm:$0xff]   ;;  %v8966_v0 = vld [vmem:[#allocation4 + $0x71] ss:$8 sps:$4 sm:$0xff]  }
 0x1f9   : > { %1868 = vrot.lane.b32.xlu0 %v8921_v27, %s9556_s25  ;;  %v8949_v59 = vld [vmem:[#allocation4 + $0x60] ss:$8 sps:$4 sm:$0xff]   ;;  %2654 = vst.msk [vmem:[#allocation6 + $0x10] sm:$0xff] %vm1522_vm15, %v9000_v58  ;;  %v9065_v48 = vld [vmem:[#allocation4 + $0xb1] ss:$8 sps:$4 sm:$0xff]  }
 0x1fa   : > { %2503 = vrot.lane.b32.xlu1 %v8922_v28, %s9557_s26  ;;  %v9003_v60 = vld [vmem:[#allocation4 + $0x60] ss:$8 sps:$4 sm:$0xff]   ;;  %v8969_v28 = vld [vmem:[#allocation4 + $0x72] ss:$8 sps:$4 sm:$0xff]   ;;  %2659 = vst.msk [vmem:[#allocation6 + $0xb0] sm:$0xff] %vm1522_vm15, %v9065_v48 }
 0x1fb   : > { %v8950_v61 = vld [vmem:[#allocation4 + $0x78] ss:$8 sps:$4 sm:$0xff]   ;;  %1527 = vst.msk [vmem:[#allocation6 + $0x80] sm:$0xff] %vm1522_vm15, %v9003_v60  ;;  %v8965_v26 = vld [vmem:[#allocation4 + $0x68] ss:$8 sps:$4 sm:$0xff]  }
 0x1fc   : > { %v8951_v62 = vld [vmem:[#allocation4 + $0x61] ss:$8 sps:$4 sm:$0xff]   ;;  %v8988_v9 = vld [vmem:[#allocation4 + $0x90] ss:$8 sps:$4 sm:$0xff]  }
 0x1fd   : > { %1942 = vrot.lane.b32.xlu0 %v8923_v29, %s9557_s26  ;;  %v8952_v63 = vld [vmem:[#allocation4 + $0x79] ss:$8 sps:$4 sm:$0xff]   ;;  %v8968_v27 = vld [vmem:[#allocation4 + $0x69] ss:$8 sps:$4 sm:$0xff]  }
 0x1fe   : > { %2576 = vrot.lane.b32.xlu1 %v8924_v30, %s9558_s27  ;;  %v9008_v1 = vld [vmem:[#allocation4 + $0x42] ss:$8 sps:$4 sm:$0xff]   ;;  %v9042_v30 = vld [vmem:[#allocation4 + $0x71] ss:$8 sps:$4 sm:$0xff]  }
 0x1ff   : > { %2094 = vst.msk [vmem:[#allocation6 + $0x48] sm:$0xff] %vm1522_vm15, %v9008_v1  ;;  %v8953_v6 = vld [vmem:[#allocation4 + $0x62] ss:$8 sps:$4 sm:$0xff]   ;;  %2656 = vst.msk [vmem:[#allocation6 + $0x50] sm:$0xff] %vm1522_vm15, %v9042_v30 }
 0x200   : > { %v8954_v8 = vld [vmem:[#allocation4 + $0x7a] ss:$8 sps:$4 sm:$0xff]  }
 0x201   : > { %2015 = vrot.lane.b32.xlu0 %v8925_v31, %s9558_s27  ;;  %v8956_v11 = vld [vmem:[#allocation4 + $0x80] ss:$8 sps:$4 sm:$0xff]  }
 0x202   : > { %2704 = vrot.lane.b32.xlu1 %v8926_v32, %s9549_s29  ;;  %v9023_v57 = vld [vmem:[#allocation4 + $0x81] ss:$8 sps:$4 sm:$0xff]   ;;  %v9045_v32 = vld [vmem:[#allocation4 + $0x90] ss:$8 sps:$4 sm:$0xff]  }
 0x203   : > { %2657 = vst.msk [vmem:[#allocation6 + $0x70] sm:$0xff] %vm1522_vm15, %v9023_v57  ;;  %v8958_v13 = vld [vmem:[#allocation4 + $0x82] ss:$8 sps:$4 sm:$0xff]   ;;  %1529 = vst.msk [vmem:[#allocation6 + $0xc0] sm:$0xff] %vm1522_vm15, %v9045_v32  ;;  %v8997_v32 = vld [vmem:[#allocation4 + $0xb0] ss:$8 sps:$4 sm:$0xff]  }
 0x204   : > { %v9068_v51 = vld [vmem:[#allocation4 + $0xa0] ss:$8 sps:$4 sm:$0xff]  }
 0x205   : > { %2357 = vrot.lane.b32.xlu0 %v8927_v33, %s9555_s24  ;;  %1530 = vst.msk [vmem:[#allocation6 + $0xe0] sm:$0xff] %vm1522_vm15, %v9068_v51  ;;  %v9082_v3 = vld [vmem:[#allocation4 + $0xa1] ss:$8 sps:$4 sm:$0xff]  }
 0x206   : > { %1577 = vrot.lane.b32.xlu1 %v8928_v34, %s9549_s29  ;;  %v8970_v34 = vld [vmem:[#allocation4 + $0x6a] ss:$8 sps:$4 sm:$0xff]   ;;  %2658 = vst.msk [vmem:[#allocation6 + $0x90] sm:$0xff] %vm1522_vm15, %v9082_v3 }
 0x207   : > { %v9085_v4 = vld [vmem:[#allocation4 + $0xa2] ss:$8 sps:$4 sm:$0xff]  }
 0x208   : > { %2098 = vst.msk [vmem:[#allocation6 + $0xc8] sm:$0xff] %vm1522_vm15, %v9085_v4  ;;  %v9140_v16 = vld [vmem:[#allocation4 + $0x80] ss:$8 sps:$4 sm:$0xff]  }
 0x209   : > { %2429 = vrot.lane.b32.xlu0 %v8929_v35, %s9556_s25  ;;  %3218 = vst.msk [vmem:[#allocation6 + $0x38] sm:$0xff] %vm1522_vm15, %v9140_v16  ;;  %v9007_v51 = vld [vmem:[#allocation4 + $0xa0] ss:$8 sps:$4 sm:$0xff]  }
 0x20a   : > { %1650 = vrot.lane.b32.xlu1 %v8930_v36, %s9553_s7  ;;  %v8971_v36 = vld [vmem:[#allocation4 + $0x70] ss:$8 sps:$4 sm:$0xff]   ;;  %v9015_v3 = vld [vmem:[#allocation4 + $0xa2] ss:$8 sps:$4 sm:$0xff]  }
 0x20b   : > { %v9022_v16 = vld [vmem:[#allocation4 + $0xda] ss:$8 sps:$4 sm:$0xff]  }
 0x20d   : > { %2501 = vrot.lane.b32.xlu0 %v8931_v37, %s9557_s26  ;;  %v9050_v37 = vld [vmem:[#allocation4 + $0x72] ss:$8 sps:$4 sm:$0xff]  }
 0x20e   : > { %2143 = vrot.lane.b32.xlu1 %v8932_v38, %s9549_s29  ;;  %v8973_v38 = vld [vmem:[#allocation4 + $0x70] ss:$8 sps:$4 sm:$0xff]   ;;  %2096 = vst.msk [vmem:[#allocation6 + $0x88] sm:$0xff] %vm1522_vm15, %v9050_v37  ;;  %v9001_v37 = vld [vmem:[#allocation4 + $0xa0] ss:$8 sps:$4 sm:$0xff]  }
 0x211   : > { %2574 = vrot.lane.b32.xlu0 %v8933_v40, %s9558_s27  ;;  %v8974_v40 = vld [vmem:[#allocation4 + $0x71] ss:$8 sps:$4 sm:$0xff]  }
 0x212   : > { %2215 = vrot.lane.b32.xlu1 %v8934_v41, %s9553_s7 }
 0x215   : > { %2702 = vrot.lane.b32.xlu0 %v8935_v42, %s9549_s29 }
 0x216   : > { %2287 = vrot.lane.b32.xlu1 %v8936_v43, %s9554_s23  ;;  %v8975_v43 = vld [vmem:[#allocation4 + $0x72] ss:$8 sps:$4 sm:$0xff]  }
 0x219   : > { %1579 = vrot.lane.b32.xlu0 %v8937_v44, %s9549_s29 }
 0x21a   : > { %1728 = vrot.lane.b32.xlu1 %v8938_v45, %s9554_s23  ;;  %v8976_v45 = vld [vmem:[#allocation4 + $0x72] ss:$8 sps:$4 sm:$0xff]  }
 0x21d   : > { %1652 = vrot.lane.b32.xlu0 %v8939_v46, %s9553_s7  ;;  %v8977_v46 = vld [vmem:[#allocation4 + $0x91] ss:$8 sps:$4 sm:$0xff]  }
 0x21e   : > { %1801 = vrot.lane.b32.xlu1 %v8940_v47, %s9555_s24 }
 0x221   : > { %2145 = vrot.lane.b32.xlu0 %v8941_v49, %s9549_s29 }
 0x222   : > { %1874 = vrot.lane.b32.xlu1 %v8942_v50, %s9556_s25  ;;  %v8978_v50 = vld [vmem:[#allocation4 + $0xa8] ss:$8 sps:$4 sm:$0xff]  }
 0x225   : > { %2217 = vrot.lane.b32.xlu0 %v8943_v52, %s9553_s7 }
 0x226   : > { %1948 = vrot.lane.b32.xlu1 %v8944_v53, %s9557_s26  ;;  %v8979_v53 = vld [vmem:[#allocation4 + $0x92] ss:$8 sps:$4 sm:$0xff]  }
 0x229   : > { %2289 = vrot.lane.b32.xlu0 %v8945_v55, %s9554_s23  ;;  %v8980_v55 = vld [vmem:[#allocation4 + $0xa9] ss:$8 sps:$4 sm:$0xff]  }
 0x22a   : > { %2021 = vrot.lane.b32.xlu1 %v8946_v56, %s9558_s27  ;;  %v8981_v56 = vld [vmem:[#allocation4 + $0x90] ss:$8 sps:$4 sm:$0xff]  }
 0x22d   : > { %2775 = vrot.lane.b32.xlu0 %v8949_v59, %s9553_s7  ;;  %v9073_v59 = vld [vmem:[#allocation4 + $0x82] ss:$8 sps:$4 sm:$0xff]  }
 0x22e   : > { %2363 = vrot.lane.b32.xlu1 %v8950_v61, %s9555_s24  ;;  %v8982_v61 = vld [vmem:[#allocation4 + $0xaa] ss:$8 sps:$4 sm:$0xff]   ;;  %2097 = vst.msk [vmem:[#allocation6 + $0xa8] sm:$0xff] %vm1522_vm15, %v9073_v59 }
 0x231   : > { %2847 = vrot.lane.b32.xlu0 %v8951_v62, %s9554_s23  ;;  %v8983_v62 = vld [vmem:[#allocation4 + $0x91] ss:$8 sps:$4 sm:$0xff]  }
 0x232   : > { %2435 = vrot.lane.b32.xlu1 %v8952_v63, %s9556_s25  ;;  %v8984_v63 = vld [vmem:[#allocation4 + $0xb0] ss:$8 sps:$4 sm:$0xff]  }
 0x235   : > { %2919 = vrot.lane.b32.xlu0 %v8953_v6, %s9555_s24  ;;  %v8985_v6 = vld [vmem:[#allocation4 + $0x92] ss:$8 sps:$4 sm:$0xff]  }
 0x236   : > { %2507 = vrot.lane.b32.xlu1 %v8954_v8, %s9557_s26  ;;  %v8986_v8 = vld [vmem:[#allocation4 + $0xb1] ss:$8 sps:$4 sm:$0xff]  }
 0x239   : > { %1726 = vrot.lane.b32.xlu0 %v8955_v10, %s9554_s23 }
 0x23a   : > { %2580 = vrot.lane.b32.xlu1 %v8956_v11, %s9558_s27  ;;  %v9097_v11 = vld [vmem:[#allocation4 + $0xb2] ss:$8 sps:$4 sm:$0xff]  }
 0x23b   : > { %2099 = vst.msk [vmem:[#allocation6 + $0xe8] sm:$0xff] %vm1522_vm15, %v9097_v11  ;;  %v9019_v11 = vld [vmem:[#allocation4 + $0xc1] ss:$8 sps:$4 sm:$0xff]  }
 0x23d   : > { %1799 = vrot.lane.b32.xlu0 %v8957_v12, %s9555_s24  ;;  %v8989_v12 = vld [vmem:[#allocation4 + $0xa8] ss:$8 sps:$4 sm:$0xff]  }
 0x23e   : > { %2708 = vrot.lane.b32.xlu1 %v8958_v13, %s9549_s29  ;;  %v8991_v13 = vld [vmem:[#allocation4 + $0x91] ss:$8 sps:$4 sm:$0xff]  }
 0x241   : > { %1872 = vrot.lane.b32.xlu0 %v8959_v14, %s9556_s25  ;;  %v8992_v14 = vld [vmem:[#allocation4 + $0xa9] ss:$8 sps:$4 sm:$0xff]  }
 0x242   : > { %1581 = vrot.lane.b32.xlu1 %v8960_v15, %s9549_s29  ;;  %v9139_v15 = vld [vmem:[#allocation4 + $0x70] ss:$8 sps:$4 sm:$0xff]  }
 0x243   : > { %3217 = vst.msk [vmem:[#allocation6 + $0x18] sm:$0xff] %vm1522_vm15, %v9139_v15 }
 0x245   : > { %1946 = vrot.lane.b32.xlu0 %v8961_v17, %s9557_s26 }
 0x246   : > { %1654 = vrot.lane.b32.xlu1 %v8962_v19, %s9553_s7  ;;  %v9143_v19 = vld [vmem:[#allocation4 + $0xa0] ss:$8 sps:$4 sm:$0xff]  }
 0x247   : > { %3219 = vst.msk [vmem:[#allocation6 + $0x58] sm:$0xff] %vm1522_vm15, %v9143_v19  ;;  %v1442_v19 = vld [vmem:[%s10513_s14 + $0x4] sm:$0xf] }
 0x248   : > { %1459 = vst.msk [vmem:[#allocation5 + $0x41] sm:$0xf] %vm1424_vm6, %v1442_v19 }
 0x249   : > { %2019 = vrot.lane.b32.xlu0 %v8963_v22, %s9558_s27  ;;  %v9144_v22 = vld [vmem:[#allocation4 + $0xb0] ss:$8 sps:$4 sm:$0xff]  }
 0x24a   : > { %2147 = vrot.lane.b32.xlu1 %v8964_v23, %s9549_s29  ;;  %3220 = vst.msk [vmem:[#allocation6 + $0x78] sm:$0xff] %vm1522_vm15, %v9144_v22 }
 0x24d   : > { %2361 = vrot.lane.b32.xlu0 %v8965_v26, %s9555_s24  ;;  %v8993_v26 = vld [vmem:[#allocation4 + $0x98] ss:$8 sps:$4 sm:$0xff]  }
 0x24e   : > { %2219 = vrot.lane.b32.xlu1 %v8966_v0, %s9553_s7 }
 0x24f   : > { %v1576_v29 = vpop.permute.xlu0 %1575 }
 0x250   : > { %1598 = vst.msk [vmem:[#allocation6 + $0x40] sm:$0xff] %vm1595_vm14, %v1576_v29  ;;  %v10367_v31 = vpop.permute.xlu1 %1724  ;;  %v8996_v29 = vld [vmem:[#allocation4 + $0x99] ss:$8 sps:$4 sm:$0xff]  }
 0x251   : > { %2433 = vrot.lane.b32.xlu0 %v8968_v27, %s9556_s25  ;;  %v8994_v27 = vld [vmem:[#allocation4 + $0xaa] ss:$8 sps:$4 sm:$0xff]  }
 0x252   : > { %2291 = vrot.lane.b32.xlu1 %v8969_v28, %s9554_s23 }
 0x253   : > { %v1649_v33 = vpop.permute.xlu0 %1648 }
 0x254   : > { %1671 = vst.msk [vmem:[#allocation6 + $0x40] sm:$0xff] %vm1668_vm0, %v1649_v33  ;;  %v10373_v35 = vpop.permute.xlu1 %1797  ;;  %v8998_v33 = vld [vmem:[#allocation4 + $0x9a] ss:$8 sps:$4 sm:$0xff]  }
 0x255   : > { %2505 = vrot.lane.b32.xlu0 %v8970_v34, %s9557_s26 }
 0x256   : > { %2777 = vrot.lane.b32.xlu1 %v8971_v36, %s9553_s7 }
 0x257   : > { %v2142_v39 = vpop.permute.xlu0 %2141 }
 0x258   : > { %2165 = vst.msk [vmem:[#allocation6 + $0x8] sm:$0xff] %vm1595_vm14, %v2142_v39  ;;  %v10380_v41 = vpop.permute.xlu1 %1870  ;;  %v9002_v39 = vld [vmem:[#allocation4 + $0xa1] ss:$8 sps:$4 sm:$0xff]  }
 0x259   : > { %2578 = vrot.lane.b32.xlu0 %v8973_v38, %s9558_s27 }
 0x25a   : > { %2849 = vrot.lane.b32.xlu1 %v8974_v40, %s9554_s23 }
 0x25b   : > { %v2214_v42 = vpop.permute.xlu0 %2213 }
 0x25c   : > { %2237 = vst.msk [vmem:[#allocation6 + $0x8] sm:$0xff] %vm1668_vm0, %v2214_v42  ;;  %v10385_v44 = vpop.permute.xlu1 %1944  ;;  %v9106_v42 = vld [vmem:[#allocation4 + $0xd1] ss:$8 sps:$4 sm:$0xff]  }
 0x25d   : > { %2706 = vrot.lane.b32.xlu0 %v8975_v43, %s9549_s29  ;;  %2660 = vst.msk [vmem:[#allocation6 + $0xd0] sm:$0xff] %vm1522_vm15, %v9106_v42  ;;  %v1451_v42 = vld [vmem:[%s10513_s14 + $0x28] sm:$0xf] }
 0x25e   : > { %2921 = vrot.lane.b32.xlu1 %v8976_v45, %s9555_s24  ;;  %v9147_v45 = vld [vmem:[#allocation4 + $0xd0] ss:$8 sps:$4 sm:$0xff]   ;;  %1468 = vst.msk [vmem:[#allocation5 + $0xa9] sm:$0xf] %vm1424_vm6, %v1451_v42 }
 0x25f   : > { %v2286_v47 = vpop.permute.xlu0 %2285  ;;  %3221 = vst.msk [vmem:[#allocation6 + $0x98] sm:$0xff] %vm1522_vm15, %v9147_v45  ;;  %v9033_v45 = vld [vmem:[#allocation4 + $0xd1] ss:$8 sps:$4 sm:$0xff]  }
 0x260   : > { %2309 = vst.msk [vmem:[#allocation6 + $0x8] sm:$0xff] %vm1742_vm1, %v2286_v47  ;;  %v10390_v49 = vpop.permute.xlu1 %2017  ;;  %v9148_v47 = vld [vmem:[#allocation4 + $0xe0] ss:$8 sps:$4 sm:$0xff]  }
 0x261   : > { %1583 = vrot.lane.b32.xlu0 %v8977_v46, %s9549_s29  ;;  %v9094_v46 = vld [vmem:[#allocation4 + $0xe1] ss:$8 sps:$4 sm:$0xff]   ;;  %3222 = vst.msk [vmem:[#allocation6 + $0xb8] sm:$0xff] %vm1522_vm15, %v9148_v47 }
 0x262   : > { %1732 = vrot.lane.b32.xlu1 %v8978_v50, %s9554_s23  ;;  %2661 = vst.msk [vmem:[#allocation6 + $0xf0] sm:$0xff] %vm1522_vm15, %v9094_v46  ;;  %v9035_v46 = vld [vmem:[#allocation4 + $0xd2] ss:$8 sps:$4 sm:$0xff]  }
 0x263   : > { %v1723_v52 = vpop.permute.xlu0 %1722 }
 0x264   : > { %1745 = vst.msk [vmem:[#allocation6 + $0x40] sm:$0xff] %vm1742_vm1, %v1723_v52  ;;  %v10396_v54 = vpop.permute.xlu1 %2359 }
 0x265   : > { %1656 = vrot.lane.b32.xlu0 %v8979_v53, %s9553_s7  ;;  %v9009_v53 = vld [vmem:[#allocation4 + $0x99] ss:$8 sps:$4 sm:$0xff]  }
 0x266   : > { %1805 = vrot.lane.b32.xlu1 %v8980_v55, %s9555_s24  ;;  %v9010_v55 = vld [vmem:[#allocation4 + $0xa1] ss:$8 sps:$4 sm:$0xff]  }
 0x267   : > { %v1796_v58 = vpop.permute.xlu0 %1795 }
 0x268   : > { %1818 = vst.msk [vmem:[#allocation6 + $0x40] sm:$0xff] %vm1815_vm2, %v1796_v58  ;;  %v10402_v60 = vpop.permute.xlu1 %2431  ;;  %v9011_v58 = vld [vmem:[#allocation4 + $0x9a] ss:$8 sps:$4 sm:$0xff]  }
 0x269   : > { %2149 = vrot.lane.b32.xlu0 %v8981_v56, %s9549_s29 }
 0x26a   : > { %1878 = vrot.lane.b32.xlu1 %v8982_v61, %s9556_s25 }
 0x26b   : > { %v1869_v1 = vpop.permute.xlu0 %1868 }
 0x26c   : > { %1891 = vst.msk [vmem:[#allocation6 + $0x40] sm:$0xff] %vm1888_vm3, %v1869_v1  ;;  %v10408_v2 = vpop.permute.xlu1 %2503  ;;  %v9014_v1 = vld [vmem:[#allocation4 + $0xa0] ss:$8 sps:$4 sm:$0xff]  }
 0x26d   : > { %2221 = vrot.lane.b32.xlu0 %v8983_v62, %s9553_s7  ;;  %v9013_v62 = vld [vmem:[#allocation4 + $0xa0] ss:$8 sps:$4 sm:$0xff]  }
 0x26e   : > { %1952 = vrot.lane.b32.xlu1 %v8984_v63, %s9557_s26 }
 0x26f   : > { %v1943_v5 = vpop.permute.xlu0 %1942 }
 0x270   : > { %1965 = vst.msk [vmem:[#allocation6 + $0x40] sm:$0xff] %vm1962_vm4, %v1943_v5  ;;  %v10415_v7 = vpop.permute.xlu1 %2576  ;;  %v9016_v5 = vld [vmem:[#allocation4 + $0xa1] ss:$8 sps:$4 sm:$0xff]  }
 0x271   : > { %2293 = vrot.lane.b32.xlu0 %v8985_v6, %s9554_s23  ;;  %v9017_v6 = vld [vmem:[#allocation4 + $0xc0] ss:$8 sps:$4 sm:$0xff]  }
 0x272   : > { %2025 = vrot.lane.b32.xlu1 %v8986_v8, %s9558_s27 }
 0x273   : > { %v2016_v10 = vpop.permute.xlu0 %2015 }
 0x274   : > { %2038 = vst.msk [vmem:[#allocation6 + $0x40] sm:$0xff] %vm2035_vm5, %v2016_v10  ;;  %v2705_v57 = vpop.permute.xlu1 %2704 }
 0x275   : > { %2727 = vst.msk [vmem:[#allocation6 + $0x30] sm:$0xff] %vm1595_vm14, %v2705_v57  ;;  %2779 = vrot.lane.b32.xlu0 %v8988_v9, %s9553_s7  ;;  %v9018_v9 = vld [vmem:[#allocation4 + $0xd8] ss:$8 sps:$4 sm:$0xff]  }
 0x276   : > { %2367 = vrot.lane.b32.xlu1 %v8989_v12, %s9555_s24  ;;  %v9020_v12 = vld [vmem:[#allocation4 + $0xd9] ss:$8 sps:$4 sm:$0xff]  }
 0x277   : > { %v2358_v17 = vpop.permute.xlu0 %2357 }
 0x278   : > { %2381 = vst.msk [vmem:[#allocation6 + $0x8] sm:$0xff] %vm1815_vm2, %v2358_v17  ;;  %v1578_v21 = vpop.permute.xlu1 %1577  ;;  %v1441_v17 = vld [vmem:[%s10513_s14] sm:$0xf] }
 0x279   : > { %1599 = vst.msk [vmem:[#allocation6 + $0x60] sm:$0xff] %vm1595_vm14, %v1578_v21  ;;  %2851 = vrot.lane.b32.xlu0 %v8991_v13, %s9554_s23  ;;  %v1443_v21 = vld [vmem:[%s10513_s14 + $0x8] sm:$0xf] }
 0x27a   : > { %2439 = vrot.lane.b32.xlu1 %v8992_v14, %s9556_s25  ;;  %v9021_v14 = vld [vmem:[#allocation4 + $0xc2] ss:$8 sps:$4 sm:$0xff]   ;;  %1458 = vst.msk [vmem:[#allocation5 + $0x39] sm:$0xf] %vm1424_vm6, %v1441_v17  ;;  %1460 = vst.msk [vmem:[#allocation5 + $0x49] sm:$0xf] %vm1424_vm6, %v1443_v21 }
 0x27b   : > { %v2430_v23 = vpop.permute.xlu0 %2429  ;;  %v9054_v17 = vld [vmem:[#allocation4 + $0xd8] ss:$8 sps:$4 sm:$0xff]  }
 0x27c   : > { %2453 = vst.msk [vmem:[#allocation6 + $0x8] sm:$0xff] %vm1888_vm3, %v2430_v23  ;;  %v1651_v0 = vpop.permute.xlu1 %1650  ;;  %v9024_v23 = vld [vmem:[#allocation4 + $0xc0] ss:$8 sps:$4 sm:$0xff]  }
 0x27d   : > { %1672 = vst.msk [vmem:[#allocation6 + $0x60] sm:$0xff] %vm1668_vm0, %v1651_v0  ;;  %1730 = vrot.lane.b32.xlu0 %v8993_v26, %s9554_s23  ;;  %v9025_v0 = vld [vmem:[#allocation4 + $0xe0] ss:$8 sps:$4 sm:$0xff]  }
 0x27e   : > { %1746 = vst.msk [vmem:[#allocation6 + $0x60] sm:$0xff] %vm1742_vm1, %v10367_v31  ;;  %2511 = vrot.lane.b32.xlu1 %v8994_v27, %s9557_s26  ;;  %v1445_v27 = vld [vmem:[%s10513_s14 + $0x10] sm:$0xf] }
 0x27f   : > { %1819 = vst.msk [vmem:[#allocation6 + $0x60] sm:$0xff] %vm1815_vm2, %v10373_v35  ;;  %v2502_v28 = vpop.permute.xlu0 %2501  ;;  %v8999_v35 = vld [vmem:[#allocation4 + $0xb2] ss:$8 sps:$4 sm:$0xff]  }
 0x280   : > { %1892 = vst.msk [vmem:[#allocation6 + $0x60] sm:$0xff] %vm1888_vm3, %v10380_v41  ;;  %v2144_v30 = vpop.permute.xlu1 %2143  ;;  %v9004_v41 = vld [vmem:[#allocation4 + $0xa1] ss:$8 sps:$4 sm:$0xff]  }
 0x281   : > { %2525 = vst.msk [vmem:[#allocation6 + $0x8] sm:$0xff] %vm1962_vm4, %v2502_v28  ;;  %1966 = vst.msk [vmem:[#allocation6 + $0x60] sm:$0xff] %vm1962_vm4, %v10385_v44  ;;  %1803 = vrot.lane.b32.xlu0 %v8996_v29, %s9555_s24  ;;  %v9005_v44 = vld [vmem:[#allocation4 + $0xa2] ss:$8 sps:$4 sm:$0xff]   ;;  %v1447_v29 = vld [vmem:[%s10513_s14 + $0x18] sm:$0xf] }
 0x282   : > { %2166 = vst.msk [vmem:[#allocation6 + $0x28] sm:$0xff] %vm1595_vm14, %v2144_v30  ;;  %2584 = vrot.lane.b32.xlu1 %v8997_v32, %s9558_s27  ;;  %v1446_v28 = vld [vmem:[%s10513_s14 + $0x14] sm:$0xf] }
 0x283   : > { %2039 = vst.msk [vmem:[#allocation6 + $0x60] sm:$0xff] %vm2035_vm5, %v10390_v49  ;;  %v2575_v31 = vpop.permute.xlu0 %2574  ;;  %v9006_v49 = vld [vmem:[#allocation4 + $0x98] ss:$8 sps:$4 sm:$0xff]  }
 0x284   : > { %2598 = vst.msk [vmem:[#allocation6 + $0x8] sm:$0xff] %vm2035_vm5, %v2575_v31  ;;  %v2216_v34 = vpop.permute.xlu1 %2215  ;;  %v9027_v32 = vld [vmem:[#allocation4 + $0xc1] ss:$8 sps:$4 sm:$0xff]  }
 0x285   : > { %2238 = vst.msk [vmem:[#allocation6 + $0x28] sm:$0xff] %vm1668_vm0, %v2216_v34  ;;  %1876 = vrot.lane.b32.xlu0 %v8998_v33, %s9556_s25  ;;  %v9028_v33 = vld [vmem:[#allocation4 + $0xe2] ss:$8 sps:$4 sm:$0xff]  }
 0x286   : > { %2712 = vrot.lane.b32.xlu1 %v8999_v35, %s9549_s29  ;;  %1462 = vst.msk [vmem:[#allocation5 + $0x69] sm:$0xf] %vm1424_vm6, %v1445_v27  ;;  %1463 = vst.msk [vmem:[#allocation5 + $0x71] sm:$0xf] %vm1424_vm6, %v1446_v28  ;;  %v9029_v34 = vld [vmem:[#allocation4 + $0xc8] ss:$8 sps:$4 sm:$0xff]  }
 0x287   : > { %v2703_v36 = vpop.permute.xlu0 %2702  ;;  %1464 = vst.msk [vmem:[#allocation5 + $0x79] sm:$0xf] %vm1424_vm6, %v1447_v29  ;;  %v9030_v35 = vld [vmem:[#allocation4 + $0xd0] ss:$8 sps:$4 sm:$0xff]  }
 0x288   : > { %2726 = vst.msk [vmem:[#allocation6 + $0x10] sm:$0xff] %vm1595_vm14, %v2703_v36  ;;  %v2288_v38 = vpop.permute.xlu1 %2287  ;;  %v9057_v27 = vld [vmem:[#allocation4 + $0x69] ss:$8 sps:$4 sm:$0xff]   ;;  %v9058_v28 = vld [vmem:[#allocation4 + $0x79] ss:$8 sps:$4 sm:$0xff]  }
 0x289   : > { %2310 = vst.msk [vmem:[#allocation6 + $0x28] sm:$0xff] %vm1742_vm1, %v2288_v38  ;;  %1950 = vrot.lane.b32.xlu0 %v9001_v37, %s9557_s26  ;;  %v1449_v38 = vld [vmem:[%s10513_s14 + $0x20] sm:$0xf] }
 0x28a   : > { %2382 = vst.msk [vmem:[#allocation6 + $0x28] sm:$0xff] %vm1815_vm2, %v10396_v54  ;;  %1585 = vrot.lane.b32.xlu1 %v9002_v39, %s9549_s29 }
 0x28b   : > { %2454 = vst.msk [vmem:[#allocation6 + $0x28] sm:$0xff] %vm1888_vm3, %v10402_v60  ;;  %v1580_v40 = vpop.permute.xlu0 %1579  ;;  %v9012_v60 = vld [vmem:[#allocation4 + $0xa2] ss:$8 sps:$4 sm:$0xff]  }
 0x28c   : > { %2526 = vst.msk [vmem:[#allocation6 + $0x28] sm:$0xff] %vm1962_vm4, %v10408_v2  ;;  %v10465_v43 = vpop.permute.xlu1 %1728 }
 0x28d   : > { %1600 = vst.msk [vmem:[#allocation6 + $0x80] sm:$0xff] %vm1595_vm14, %v1580_v40  ;;  %2023 = vrot.lane.b32.xlu0 %v9004_v41, %s9558_s27  ;;  %v9032_v40 = vld [vmem:[#allocation4 + $0xc9] ss:$8 sps:$4 sm:$0xff]   ;;  %v1450_v41 = vld [vmem:[%s10513_s14 + $0x24] sm:$0xf] }
 0x28e   : > { %2599 = vst.msk [vmem:[#allocation6 + $0x28] sm:$0xff] %vm2035_vm5, %v10415_v7  ;;  %1658 = vrot.lane.b32.xlu1 %v9005_v44, %s9553_s7 }
 0x28f   : > { %v1653_v48 = vpop.permute.xlu0 %1652  ;;  %1466 = vst.msk [vmem:[#allocation5 + $0x99] sm:$0xf] %vm1424_vm6, %v1449_v38  ;;  %1467 = vst.msk [vmem:[#allocation5 + $0xa1] sm:$0xf] %vm1424_vm6, %v1450_v41 }
 0x290   : > { %1673 = vst.msk [vmem:[#allocation6 + $0x80] sm:$0xff] %vm1668_vm0, %v1653_v48  ;;  %v10475_v50 = vpop.permute.xlu1 %1801 }
 0x291   : > { %2365 = vrot.lane.b32.xlu0 %v9006_v49, %s9555_s24  ;;  %v9036_v49 = vld [vmem:[#allocation4 + $0xd0] ss:$8 sps:$4 sm:$0xff]  }
 0x292   : > { %2151 = vrot.lane.b32.xlu1 %v9007_v51, %s9549_s29  ;;  %v9037_v51 = vld [vmem:[#allocation4 + $0xd0] ss:$8 sps:$4 sm:$0xff]  }
 0x293   : > { %v2146_v52 = vpop.permute.xlu0 %2145 }
 0x294   : > { %2167 = vst.msk [vmem:[#allocation6 + $0x48] sm:$0xff] %vm1595_vm14, %v2146_v52  ;;  %v10481_v54 = vpop.permute.xlu1 %1874 }
 0x295   : > { %2437 = vrot.lane.b32.xlu0 %v9009_v53, %s9556_s25  ;;  %v9038_v53 = vld [vmem:[#allocation4 + $0xd2] ss:$8 sps:$4 sm:$0xff]  }
 0x296   : > { %2223 = vrot.lane.b32.xlu1 %v9010_v55, %s9553_s7 }
 0x297   : > { %v2218_v56 = vpop.permute.xlu0 %2217 }
 0x298   : > { %2239 = vst.msk [vmem:[#allocation6 + $0x48] sm:$0xff] %vm1668_vm0, %v2218_v56  ;;  %v10486_v59 = vpop.permute.xlu1 %1948 }
 0x299   : > { %2509 = vrot.lane.b32.xlu0 %v9011_v58, %s9557_s26  ;;  %v9040_v58 = vld [vmem:[#allocation4 + $0x92] ss:$8 sps:$4 sm:$0xff]  }
 0x29a   : > { %2295 = vrot.lane.b32.xlu1 %v9012_v60, %s9554_s23 }
 0x29b   : > { %v2290_v61 = vpop.permute.xlu0 %2289 }
 0x29c   : > { %2311 = vst.msk [vmem:[#allocation6 + $0x48] sm:$0xff] %vm1742_vm1, %v2290_v61  ;;  %v10491_v63 = vpop.permute.xlu1 %2021 }
 0x29d   : > { %2582 = vrot.lane.b32.xlu0 %v9013_v62, %s9558_s27  ;;  %v9043_v62 = vld [vmem:[#allocation4 + $0xc2] ss:$8 sps:$4 sm:$0xff]  }
 0x29e   : > { %2781 = vrot.lane.b32.xlu1 %v9014_v1, %s9553_s7  ;;  %v9044_v1 = vld [vmem:[#allocation4 + $0xd2] ss:$8 sps:$4 sm:$0xff]  }
 0x29f   : > { %v2776_v2 = vpop.permute.xlu0 %2775 }
 0x2a0   : > { %2799 = vst.msk [vmem:[#allocation6 + $0x10] sm:$0xff] %vm1668_vm0, %v2776_v2  ;;  %v10496_v4 = vpop.permute.xlu1 %2363 }
 0x2a1   : > { %2710 = vrot.lane.b32.xlu0 %v9015_v3, %s9549_s29  ;;  %v9046_v3 = vld [vmem:[#allocation4 + $0xf2] ss:$8 sps:$4 sm:$0xff]  }
 0x2a2   : > { %2853 = vrot.lane.b32.xlu1 %v9016_v5, %s9554_s23  ;;  %v9047_v5 = vld [vmem:[#allocation4 + $0x102] ss:$8 sps:$4 sm:$0xff]  }
 0x2a3   : > { %v2848_v7 = vpop.permute.xlu0 %2847 }
 0x2a4   : > { %2871 = vst.msk [vmem:[#allocation6 + $0x10] sm:$0xff] %vm1742_vm1, %v2848_v7  ;;  %v10501_v8 = vpop.permute.xlu1 %2435 }
 0x2a5   : > { %2153 = vrot.lane.b32.xlu0 %v9017_v6, %s9549_s29  ;;  %v1448_v6 = vld [vmem:[%s10513_s14 + $0x1c] sm:$0xf] }
 0x2a6   : > { %2371 = vrot.lane.b32.xlu1 %v9018_v9, %s9555_s24  ;;  %1465 = vst.msk [vmem:[#allocation5 + $0x81] sm:$0xf] %vm1424_vm6, %v1448_v6  ;;  %v9048_v9 = vld [vmem:[#allocation4 + $0x68] ss:$8 sps:$4 sm:$0xff]  }
 0x2a7   : > { %v2920_v10 = vpop.permute.xlu0 %2919 }
 0x2a8   : > { %2943 = vst.msk [vmem:[#allocation6 + $0x10] sm:$0xff] %vm1815_vm2, %v2920_v10  ;;  %v10506_v57 = vpop.permute.xlu1 %2507  ;;  %v9049_v10 = vld [vmem:[#allocation4 + $0x78] ss:$8 sps:$4 sm:$0xff]  }
 0x2a9   : > { %2225 = vrot.lane.b32.xlu0 %v9019_v11, %s9553_s7 }
 0x2aa   : > { %2443 = vrot.lane.b32.xlu1 %v9020_v12, %s9556_s25  ;;  %v9051_v12 = vld [vmem:[#allocation4 + $0x98] ss:$8 sps:$4 sm:$0xff]  }
 0x2ab   : > { %v1727_v13 = vpop.permute.xlu0 %1726 }
 0x2ac   : > { %1747 = vst.msk [vmem:[#allocation6 + $0x80] sm:$0xff] %vm1742_vm1, %v1727_v13  ;;  %v10517_v15 = vpop.permute.xlu1 %2580  ;;  %v9052_v13 = vld [vmem:[#allocation4 + $0xa8] ss:$8 sps:$4 sm:$0xff]  }
 0x2ad   : > { %2297 = vrot.lane.b32.xlu0 %v9021_v14, %s9554_s23 }
 0x2ae   : > { %2515 = vrot.lane.b32.xlu1 %v9022_v16, %s9557_s26  ;;  %v9053_v16 = vld [vmem:[#allocation4 + $0xc8] ss:$8 sps:$4 sm:$0xff]  }
 0x2af   : > { %v1800_v22 = vpop.permute.xlu0 %1799 }
 0x2b0   : > { %1820 = vst.msk [vmem:[#allocation6 + $0x80] sm:$0xff] %vm1815_vm2, %v1800_v22  ;;  %v2709_v26 = vpop.permute.xlu1 %2708  ;;  %v9055_v22 = vld [vmem:[#allocation4 + $0xf8] ss:$8 sps:$4 sm:$0xff]  }
 0x2b1   : > { %2729 = vst.msk [vmem:[#allocation6 + $0x70] sm:$0xff] %vm1595_vm14, %v2709_v26  ;;  %2783 = vrot.lane.b32.xlu0 %v9024_v23, %s9553_s7  ;;  %v9056_v23 = vld [vmem:[#allocation4 + $0x108] ss:$8 sps:$4 sm:$0xff]  }
 0x2b2   : > { %2588 = vrot.lane.b32.xlu1 %v9025_v0, %s9558_s27 }
 0x2b3   : > { %v1873_v30 = vpop.permute.xlu0 %1872 }
 0x2b4   : > { %1893 = vst.msk [vmem:[#allocation6 + $0x80] sm:$0xff] %vm1888_vm3, %v1873_v30  ;;  %v1582_v31 = vpop.permute.xlu1 %1581 }
 0x2b5   : > { %1601 = vst.msk [vmem:[#allocation6 + $0xa0] sm:$0xff] %vm1595_vm14, %v1582_v31  ;;  %2855 = vrot.lane.b32.xlu0 %v9027_v32, %s9554_s23  ;;  %v9059_v32 = vld [vmem:[#allocation4 + $0x99] ss:$8 sps:$4 sm:$0xff]   ;;  %v9060_v31 = vld [vmem:[#allocation4 + $0xa9] ss:$8 sps:$4 sm:$0xff]  }
 0x2b6   : > { %2716 = vrot.lane.b32.xlu1 %v9028_v33, %s9549_s29 }
 0x2b7   : > { %v1947_v36 = vpop.permute.xlu0 %1946 }
 0x2b8   : > { %1967 = vst.msk [vmem:[#allocation6 + $0x80] sm:$0xff] %vm1962_vm4, %v1947_v36  ;;  %v1655_v37 = vpop.permute.xlu1 %1654  ;;  %v9062_v36 = vld [vmem:[#allocation4 + $0xd9] ss:$8 sps:$4 sm:$0xff]  }
 0x2b9   : > { %1674 = vst.msk [vmem:[#allocation6 + $0xa0] sm:$0xff] %vm1668_vm0, %v1655_v37  ;;  %2369 = vrot.lane.b32.xlu0 %v9029_v34, %s9555_s24 }
 0x2ba   : > { %1748 = vst.msk [vmem:[#allocation6 + $0xa0] sm:$0xff] %vm1742_vm1, %v10465_v43  ;;  %2155 = vrot.lane.b32.xlu1 %v9030_v35, %s9549_s29  ;;  %v9034_v43 = vld [vmem:[#allocation4 + $0xca] ss:$8 sps:$4 sm:$0xff]  }
 0x2bb   : > { %1821 = vst.msk [vmem:[#allocation6 + $0xa0] sm:$0xff] %vm1815_vm2, %v10475_v50  ;;  %v2020_v39 = vpop.permute.xlu0 %2019  ;;  %v9061_v35 = vld [vmem:[#allocation4 + $0xc9] ss:$8 sps:$4 sm:$0xff]  }
 0x2bc   : > { %1894 = vst.msk [vmem:[#allocation6 + $0xa0] sm:$0xff] %vm1888_vm3, %v10481_v54  ;;  %v2148_v44 = vpop.permute.xlu1 %2147  ;;  %v9039_v54 = vld [vmem:[#allocation4 + $0xd1] ss:$8 sps:$4 sm:$0xff]  }
 0x2bd   : > { %2040 = vst.msk [vmem:[#allocation6 + $0x80] sm:$0xff] %vm2035_vm5, %v2020_v39  ;;  %2441 = vrot.lane.b32.xlu0 %v9032_v40, %s9556_s25  ;;  %v9063_v39 = vld [vmem:[#allocation4 + $0xf9] ss:$8 sps:$4 sm:$0xff]   ;;  %v9064_v40 = vld [vmem:[#allocation4 + $0x109] ss:$8 sps:$4 sm:$0xff]  }
 0x2be   : > { %1968 = vst.msk [vmem:[#allocation6 + $0xa0] sm:$0xff] %vm1962_vm4, %v10486_v59  ;;  %2227 = vrot.lane.b32.xlu1 %v9033_v45, %s9553_s7  ;;  %v9041_v59 = vld [vmem:[#allocation4 + $0xa2] ss:$8 sps:$4 sm:$0xff]  }
 0x2bf   : > { %2168 = vst.msk [vmem:[#allocation6 + $0x68] sm:$0xff] %vm1595_vm14, %v2148_v44  ;;  %v2362_v47 = vpop.permute.xlu0 %2361  ;;  %v9066_v44 = vld [vmem:[#allocation4 + $0x6a] ss:$8 sps:$4 sm:$0xff]   ;;  %v9067_v45 = vld [vmem:[#allocation4 + $0x7a] ss:$8 sps:$4 sm:$0xff]  }
 0x2c0   : > { %2041 = vst.msk [vmem:[#allocation6 + $0xa0] sm:$0xff] %vm2035_vm5, %v10491_v63  ;;  %v2220_v48 = vpop.permute.xlu1 %2219  ;;  %v1444_v63 = vld [vmem:[%s10513_s14 + $0xc] sm:$0xf] }
 0x2c1   : > { %2383 = vst.msk [vmem:[#allocation6 + $0x48] sm:$0xff] %vm1815_vm2, %v2362_v47  ;;  %2513 = vrot.lane.b32.xlu0 %v9034_v43, %s9557_s26  ;;  %v9069_v47 = vld [vmem:[#allocation4 + $0x9a] ss:$8 sps:$4 sm:$0xff]  }
 0x2c2   : > { %2240 = vst.msk [vmem:[#allocation6 + $0x68] sm:$0xff] %vm1668_vm0, %v2220_v48  ;;  %2299 = vrot.lane.b32.xlu1 %v9035_v46, %s9554_s23  ;;  %v9070_v48 = vld [vmem:[#allocation4 + $0xaa] ss:$8 sps:$4 sm:$0xff]  }
 0x2c3   : > { %v2434_v50 = vpop.permute.xlu0 %2433  ;;  %1461 = vst.msk [vmem:[#allocation5 + $0x51] sm:$0xf] %vm1424_vm6, %v1444_v63 }
 0x2c4   : > { %2455 = vst.msk [vmem:[#allocation6 + $0x48] sm:$0xff] %vm1888_vm3, %v2434_v50  ;;  %v2292_v52 = vpop.permute.xlu1 %2291 }
 0x2c5   : > { %2312 = vst.msk [vmem:[#allocation6 + $0x68] sm:$0xff] %vm1742_vm1, %v2292_v52  ;;  %2586 = vrot.lane.b32.xlu0 %v9036_v49, %s9558_s27  ;;  %v9072_v52 = vld [vmem:[#allocation4 + $0xda] ss:$8 sps:$4 sm:$0xff]  }
 0x2c6   : > { %2384 = vst.msk [vmem:[#allocation6 + $0x68] sm:$0xff] %vm1815_vm2, %v10496_v4  ;;  %2785 = vrot.lane.b32.xlu1 %v9037_v51, %s9553_s7  ;;  %v9071_v51 = vld [vmem:[#allocation4 + $0xca] ss:$8 sps:$4 sm:$0xff]  }
 0x2c7   : > { %2456 = vst.msk [vmem:[#allocation6 + $0x68] sm:$0xff] %vm1888_vm3, %v10501_v8  ;;  %v2506_v55 = vpop.permute.xlu0 %2505 }
 0x2c8   : > { %2528 = vst.msk [vmem:[#allocation6 + $0x68] sm:$0xff] %vm1962_vm4, %v10506_v57  ;;  %2527 = vst.msk [vmem:[#allocation6 + $0x48] sm:$0xff] %vm1962_vm4, %v2506_v55  ;;  %v2778_v56 = vpop.permute.xlu1 %2777  ;;  %v9074_v55 = vld [vmem:[#allocation4 + $0xfa] ss:$8 sps:$4 sm:$0xff]  }
 0x2c9   : > { %2601 = vst.msk [vmem:[#allocation6 + $0x68] sm:$0xff] %vm2035_vm5, %v10517_v15  ;;  %2714 = vrot.lane.b32.xlu0 %v9038_v53, %s9549_s29 }
 0x2ca   : > { %2800 = vst.msk [vmem:[#allocation6 + $0x30] sm:$0xff] %vm1668_vm0, %v2778_v56  ;;  %2857 = vrot.lane.b32.xlu1 %v9039_v54, %s9554_s23  ;;  %v9075_v56 = vld [vmem:[#allocation4 + $0x10a] ss:$8 sps:$4 sm:$0xff]  }
 0x2cb   : > { %v2579_v60 = vpop.permute.xlu0 %2578 }
 0x2cc   : > { %2600 = vst.msk [vmem:[#allocation6 + $0x48] sm:$0xff] %vm2035_vm5, %v2579_v60  ;;  %v2850_v61 = vpop.permute.xlu1 %2849  ;;  %v9076_v60 = vld [vmem:[#allocation4 + $0x71] ss:$8 sps:$4 sm:$0xff]  }
 0x2cd   : > { %2872 = vst.msk [vmem:[#allocation6 + $0x30] sm:$0xff] %vm1742_vm1, %v2850_v61  ;;  %2923 = vrot.lane.b32.xlu0 %v9040_v58, %s9555_s24  ;;  %v9077_v61 = vld [vmem:[#allocation4 + $0x81] ss:$8 sps:$4 sm:$0xff]  }
 0x2ce   : > { %2925 = vrot.lane.b32.xlu1 %v9041_v59, %s9555_s24 }
 0x2cf   : > { %v2707_v2 = vpop.permute.xlu0 %2706 }
 0x2d0   : > { %2728 = vst.msk [vmem:[#allocation6 + $0x50] sm:$0xff] %vm1595_vm14, %v2707_v2  ;;  %v2922_v4 = vpop.permute.xlu1 %2921  ;;  %v9152_v2 = vld [vmem:[#allocation4 + $0x110] ss:$8 sps:$4 sm:$0xff]  }
 0x2d1   : > { %2944 = vst.msk [vmem:[#allocation6 + $0x30] sm:$0xff] %vm1815_vm2, %v2922_v4  ;;  %2927 = vrot.lane.b32.xlu0 %v9043_v62, %s9555_s24  ;;  %v9151_v62 = vld [vmem:[#allocation4 + $0x100] ss:$8 sps:$4 sm:$0xff]   ;;  %v9079_v4 = vld [vmem:[#allocation4 + $0xb1] ss:$8 sps:$4 sm:$0xff]  }
 0x2d2   : > { %2929 = vrot.lane.b32.xlu1 %v9044_v1, %s9555_s24  ;;  %3223 = vst.msk [vmem:[#allocation6 + $0xd8] sm:$0xff] %vm1522_vm15, %v9151_v62  ;;  %3224 = vst.msk [vmem:[#allocation6 + $0xf8] sm:$0xff] %vm1522_vm15, %v9152_v2  ;;  %v5406_v62 = vld [vmem:[%s12326_s5 + $0x100] sm:$0xff] }
 0x2d3   : > { %v1584_v7 = vpop.permute.xlu0 %1583 }
 0x2d4   : > { %1602 = vst.msk [vmem:[#allocation6 + $0xc0] sm:$0xff] %vm1595_vm14, %v1584_v7  ;;  %v10598_v8 = vpop.permute.xlu1 %1732  ;;  %v9080_v7 = vld [vmem:[#allocation4 + $0xd1] ss:$8 sps:$4 sm:$0xff]  }
 0x2d5   : > { %2931 = vrot.lane.b32.xlu0 %v9046_v3, %s9555_s24  ;;  %v9078_v3 = vld [vmem:[#allocation4 + $0xa1] ss:$8 sps:$4 sm:$0xff]  }
 0x2d6   : > { %2933 = vrot.lane.b32.xlu1 %v9047_v5, %s9555_s24 }
 0x2d7   : > { %v1657_v11 = vpop.permute.xlu0 %1656 }
 0x2d8   : > { %1675 = vst.msk [vmem:[#allocation6 + $0xc0] sm:$0xff] %vm1668_vm0, %v1657_v11  ;;  %v10603_v57 = vpop.permute.xlu1 %1805  ;;  %v9083_v11 = vld [vmem:[#allocation4 + $0x101] ss:$8 sps:$4 sm:$0xff]  }
 0x2d9   : > { %2992 = vrot.lane.b32.xlu0 %v9048_v9, %s9556_s25 }
 0x2da   : > { %2994 = vrot.lane.b32.xlu1 %v9049_v10, %s9556_s25 }
 0x2db   : > { %v2150_v14 = vpop.permute.xlu0 %2149 }
 0x2dc   : > { %2169 = vst.msk [vmem:[#allocation6 + $0x88] sm:$0xff] %vm1595_vm14, %v2150_v14  ;;  %v10608_v15 = vpop.permute.xlu1 %1878 }
 0x2dd   : > { %2996 = vrot.lane.b32.xlu0 %v9051_v12, %s9556_s25 }
 0x2de   : > { %2998 = vrot.lane.b32.xlu1 %v9052_v13, %s9556_s25 }
 0x2df   : > { %v2222_v19 = vpop.permute.xlu0 %2221 }
 0x2e0   : > { %2241 = vst.msk [vmem:[#allocation6 + $0x88] sm:$0xff] %vm1668_vm0, %v2222_v19  ;;  %v10613_v21 = vpop.permute.xlu1 %1952  ;;  %v9163_v19 = vld [vmem:[#allocation5] ss:$8 sps:$4 sm:$0xff]  }
 0x2e1   : > { %3000 = vrot.lane.b32.xlu0 %v9053_v16, %s9556_s25  ;;  %3417 = vst.msk [vmem:[#allocation7] sm:$0xff] %vm1522_vm15, %v9163_v19  ;;  %v5413_v19 = vld [vmem:[%s12326_s5 + $0x138] sm:$0xff] }
 0x2e2   : > { %3002 = vrot.lane.b32.xlu1 %v9054_v17, %s9556_s25  ;;  %v9087_v17 = vld [vmem:[#allocation4 + $0x82] ss:$8 sps:$4 sm:$0xff]  }
 0x2e3   : > { %v2294_v26 = vpop.permute.xlu0 %2293 }
 0x2e4   : > { %2313 = vst.msk [vmem:[#allocation6 + $0x88] sm:$0xff] %vm1742_vm1, %v2294_v26  ;;  %v10618_v0 = vpop.permute.xlu1 %2025  ;;  %v9089_v26 = vld [vmem:[#allocation4 + $0xb2] ss:$8 sps:$4 sm:$0xff]  }
 0x2e5   : > { %3004 = vrot.lane.b32.xlu0 %v9055_v22, %s9556_s25  ;;  %v9088_v22 = vld [vmem:[#allocation4 + $0xa2] ss:$8 sps:$4 sm:$0xff]  }
 0x2e6   : > { %3006 = vrot.lane.b32.xlu1 %v9056_v23, %s9556_s25 }
 0x2e7   : > { %v2780_v29 = vpop.permute.xlu0 %2779 }
 0x2e8   : > { %2801 = vst.msk [vmem:[#allocation6 + $0x50] sm:$0xff] %vm1668_vm0, %v2780_v29  ;;  %v10623_v30 = vpop.permute.xlu1 %2367  ;;  %v9090_v29 = vld [vmem:[#allocation4 + $0xd2] ss:$8 sps:$4 sm:$0xff]  }
 0x2e9   : > { %3064 = vrot.lane.b32.xlu0 %v9057_v27, %s9557_s26  ;;  %v9167_v27 = vld [vmem:[#allocation5 + $0x30] ss:$8 sps:$4 sm:$0xff]  }
 0x2ea   : > { %3066 = vrot.lane.b32.xlu1 %v9058_v28, %s9557_s26  ;;  %3419 = vst.msk [vmem:[#allocation7 + $0x40] sm:$0xff] %vm1522_vm15, %v9167_v27  ;;  %v9115_v27 = vld [vmem:[#allocation5 + $0x38] ss:$8 sps:$4 sm:$0xff]  }
 0x2eb   : > { %v2852_v33 = vpop.permute.xlu0 %2851 }
 0x2ec   : > { %2873 = vst.msk [vmem:[#allocation6 + $0x50] sm:$0xff] %vm1742_vm1, %v2852_v33  ;;  %v10628_v34 = vpop.permute.xlu1 %2439  ;;  %v9092_v33 = vld [vmem:[#allocation4 + $0x102] ss:$8 sps:$4 sm:$0xff]  }
 0x2ed   : > { %3068 = vrot.lane.b32.xlu0 %v9059_v32, %s9557_s26  ;;  %v9091_v32 = vld [vmem:[#allocation4 + $0xe2] ss:$8 sps:$4 sm:$0xff]  }
 0x2ee   : > { %3070 = vrot.lane.b32.xlu1 %v9060_v31, %s9557_s26  ;;  %v9168_v31 = vld [vmem:[#allocation5 + $0x40] ss:$8 sps:$4 sm:$0xff]  }
 0x2ef   : > { %v1731_v37 = vpop.permute.xlu0 %1730  ;;  %3420 = vst.msk [vmem:[#allocation7 + $0x60] sm:$0xff] %vm1522_vm15, %v9168_v31 }
 0x2f0   : > { %1749 = vst.msk [vmem:[#allocation6 + $0xc0] sm:$0xff] %vm1742_vm1, %v1731_v37  ;;  %v10633_v38 = vpop.permute.xlu1 %2511 }
 0x2f1   : > { %3072 = vrot.lane.b32.xlu0 %v9061_v35, %s9557_s26  ;;  %v9171_v35 = vld [vmem:[#allocation5 + $0x60] ss:$8 sps:$4 sm:$0xff]  }
 0x2f2   : > { %3074 = vrot.lane.b32.xlu1 %v9062_v36, %s9557_s26  ;;  %3421 = vst.msk [vmem:[#allocation7 + $0x80] sm:$0xff] %vm1522_vm15, %v9171_v35  ;;  %v5416_v35 = vld [vmem:[%s12326_s5 + $0x150] sm:$0xff] }
 0x2f3   : > { %v1804_v41 = vpop.permute.xlu0 %1803 }
 0x2f4   : > { %1822 = vst.msk [vmem:[#allocation6 + $0xc0] sm:$0xff] %vm1815_vm2, %v1804_v41  ;;  %v10638_v42 = vpop.permute.xlu1 %2584  ;;  %v9175_v41 = vld [vmem:[#allocation5 + $0x90] ss:$8 sps:$4 sm:$0xff]  }
 0x2f5   : > { %3076 = vrot.lane.b32.xlu0 %v9063_v39, %s9557_s26  ;;  %v9095_v39 = vld [vmem:[#allocation5 + $0x1] ss:$8 sps:$4 sm:$0xff]   ;;  %3423 = vst.msk [vmem:[#allocation7 + $0xc0] sm:$0xff] %vm1522_vm15, %v9175_v41  ;;  %v9198_v41 = vld [vmem:[#allocation5 + $0x70] ss:$8 sps:$4 sm:$0xff]  }
 0x2f6   : > { %3078 = vrot.lane.b32.xlu1 %v9064_v40, %s9557_s26  ;;  %v9096_v40 = vld [vmem:[#allocation5 + $0x11] ss:$8 sps:$4 sm:$0xff]   ;;  %5104 = vst.msk [vmem:[#allocation7 + $0x18] sm:$0xff] %vm1522_vm15, %v9198_v41 }
 0x2f7   : > { %v1877_v43 = vpop.permute.xlu0 %1876 }
 0x2f8   : > { %1895 = vst.msk [vmem:[#allocation6 + $0xc0] sm:$0xff] %vm1888_vm3, %v1877_v43  ;;  %v2713_v46 = vpop.permute.xlu1 %2712  ;;  %v9098_v43 = vld [vmem:[#allocation5 + $0x31] ss:$8 sps:$4 sm:$0xff]  }
 0x2f9   : > { %2731 = vst.msk [vmem:[#allocation6 + $0xb0] sm:$0xff] %vm1595_vm14, %v2713_v46  ;;  %3136 = vrot.lane.b32.xlu0 %v9066_v44, %s9558_s27  ;;  %v9099_v46 = vld [vmem:[#allocation5 + $0x41] ss:$8 sps:$4 sm:$0xff]  }
 0x2fa   : > { %3138 = vrot.lane.b32.xlu1 %v9067_v45, %s9558_s27  ;;  %v9176_v45 = vld [vmem:[#allocation5 + $0xa0] ss:$8 sps:$4 sm:$0xff]  }
 0x2fb   : > { %v1951_v49 = vpop.permute.xlu0 %1950  ;;  %3424 = vst.msk [vmem:[#allocation7 + $0xe0] sm:$0xff] %vm1522_vm15, %v9176_v45  ;;  %v5419_v45 = vld [vmem:[%s12326_s5 + $0x168] sm:$0xff] }
 0x2fc   : > { %1969 = vst.msk [vmem:[#allocation6 + $0xc0] sm:$0xff] %vm1962_vm4, %v1951_v49  ;;  %v1586_v50 = vpop.permute.xlu1 %1585  ;;  %v9100_v49 = vld [vmem:[#allocation5 + $0x61] ss:$8 sps:$4 sm:$0xff]  }
 0x2fd   : > { %1603 = vst.msk [vmem:[#allocation6 + $0xe0] sm:$0xff] %vm1595_vm14, %v1586_v50  ;;  %3140 = vrot.lane.b32.xlu0 %v9069_v47, %s9558_s27 }
 0x2fe   : > { %3142 = vrot.lane.b32.xlu1 %v9070_v48, %s9558_s27 }
 0x2ff   : > { %v2024_v53 = vpop.permute.xlu0 %2023 }
 0x300   : > { %2042 = vst.msk [vmem:[#allocation6 + $0xc0] sm:$0xff] %vm2035_vm5, %v2024_v53  ;;  %v1659_v54 = vpop.permute.xlu1 %1658 }
 0x301   : > { %1676 = vst.msk [vmem:[#allocation6 + $0xe0] sm:$0xff] %vm1668_vm0, %v1659_v54  ;;  %3144 = vrot.lane.b32.xlu0 %v9071_v51, %s9558_s27 }
 0x302   : > { %1750 = vst.msk [vmem:[#allocation6 + $0xe0] sm:$0xff] %vm1742_vm1, %v10598_v8  ;;  %3146 = vrot.lane.b32.xlu1 %v9072_v52, %s9558_s27  ;;  %v9081_v8 = vld [vmem:[#allocation4 + $0xe1] ss:$8 sps:$4 sm:$0xff]  }
 0x303   : > { %1823 = vst.msk [vmem:[#allocation6 + $0xe0] sm:$0xff] %vm1815_vm2, %v10603_v57  ;;  %v2366_v58 = vpop.permute.xlu0 %2365  ;;  %v9084_v57 = vld [vmem:[#allocation4 + $0x111] ss:$8 sps:$4 sm:$0xff]   ;;  %v9103_v52 = vld [vmem:[#allocation5 + $0xa1] ss:$8 sps:$4 sm:$0xff]  }
 0x304   : > { %1896 = vst.msk [vmem:[#allocation6 + $0xe0] sm:$0xff] %vm1888_vm3, %v10608_v15  ;;  %v2152_v59 = vpop.permute.xlu1 %2151  ;;  %v9086_v15 = vld [vmem:[#allocation4 + $0x72] ss:$8 sps:$4 sm:$0xff]  }
 0x305   : > { %2385 = vst.msk [vmem:[#allocation6 + $0x88] sm:$0xff] %vm1815_vm2, %v2366_v58  ;;  %3148 = vrot.lane.b32.xlu0 %v9074_v55, %s9558_s27  ;;  %v9104_v55 = vld [vmem:[#allocation5 + $0x2] ss:$8 sps:$4 sm:$0xff]  }
 0x306   : > { %1970 = vst.msk [vmem:[#allocation6 + $0xe0] sm:$0xff] %vm1962_vm4, %v10613_v21  ;;  %3150 = vrot.lane.b32.xlu1 %v9075_v56, %s9558_s27  ;;  %v9105_v56 = vld [vmem:[#allocation5 + $0x12] ss:$8 sps:$4 sm:$0xff]  }
 0x307   : > { %2170 = vst.msk [vmem:[#allocation6 + $0xa8] sm:$0xff] %vm1595_vm14, %v2152_v59  ;;  %v2438_v63 = vpop.permute.xlu0 %2437 }
 0x308   : > { %2043 = vst.msk [vmem:[#allocation6 + $0xe0] sm:$0xff] %vm2035_vm5, %v10618_v0  ;;  %v2224_v1 = vpop.permute.xlu1 %2223  ;;  %v9164_v0 = vld [vmem:[#allocation5 + $0x10] ss:$8 sps:$4 sm:$0xff]  }
 0x309   : > { %2457 = vst.msk [vmem:[#allocation6 + $0x88] sm:$0xff] %vm1888_vm3, %v2438_v63  ;;  %3265 = vrot.lane.b32.xlu0 %v9076_v60, %s9549_s29  ;;  %v9107_v60 = vld [vmem:[#allocation5 + $0x32] ss:$8 sps:$4 sm:$0xff]   ;;  %v5407_v63 = vld [vmem:[%s12326_s5 + $0x108] sm:$0xff] }
 0x30a   : > { %2242 = vst.msk [vmem:[#allocation6 + $0xa8] sm:$0xff] %vm1668_vm0, %v2224_v1  ;;  %3267 = vrot.lane.b32.xlu1 %v9077_v61, %s9549_s29  ;;  %v9559_v61 = vmov 0.0|0.0   ;;  %v9108_v1 = vld [vmem:[#allocation5 + $0x42] ss:$8 sps:$4 sm:$0xff]   ;;  %v8618_v2 = vpack.c.bf16 %v5407_v63, %v5406_v62 }
 0x30b   : > { %v2510_v5 = vpop.permute.xlu0 %2509  ;;  %3418 = vst.msk [vmem:[#allocation7 + $0x20] sm:$0xff] %vm1522_vm15, %v9164_v0  ;;  %8617 = vmatprep.subr.bf16.mxu0 %v9559_v61 }
 0x30c   : > { %2529 = vst.msk [vmem:[#allocation6 + $0x88] sm:$0xff] %vm1962_vm4, %v2510_v5  ;;  %v2296_v6 = vpop.permute.xlu1 %2295  ;;  %8619 = vmatpush1.bf16.msra.mxu0 %v8618_v2  ;;  %v9109_v5 = vld [vmem:[#allocation5 + $0x62] ss:$8 sps:$4 sm:$0xff]   ;;  %v5390_v2 = vld [vmem:[%s12326_s5 + $0x80] sm:$0xff] }
 0x30d   : > { %2314 = vst.msk [vmem:[#allocation6 + $0xa8] sm:$0xff] %vm1742_vm1, %v2296_v6  ;;  %3269 = vrot.lane.b32.xlu0 %v9078_v3, %s9549_s29  ;;  %8620 = vmatprep.subr.bf16.mxu0 %v9559_v61  ;;  %v5408_v6 = vld [vmem:[%s12326_s5 + $0x110] sm:$0xff] }
 0x30e   : > { %2386 = vst.msk [vmem:[#allocation6 + $0xa8] sm:$0xff] %vm1815_vm2, %v10623_v30  ;;  %3271 = vrot.lane.b32.xlu1 %v9079_v4, %s9549_s29 }
 0x30f   : > { %2458 = vst.msk [vmem:[#allocation6 + $0xa8] sm:$0xff] %vm1888_vm3, %v10628_v34  ;;  %v2583_v9 = vpop.permute.xlu0 %2582  ;;  %v9093_v34 = vld [vmem:[#allocation4 + $0x112] ss:$8 sps:$4 sm:$0xff]  }
 0x310   : > { %2530 = vst.msk [vmem:[#allocation6 + $0xa8] sm:$0xff] %vm1962_vm4, %v10633_v38  ;;  %v2782_v10 = vpop.permute.xlu1 %2781  ;;  %v9172_v38 = vld [vmem:[#allocation5 + $0x70] ss:$8 sps:$4 sm:$0xff]  }
 0x311   : > { %2602 = vst.msk [vmem:[#allocation6 + $0x88] sm:$0xff] %vm2035_vm5, %v2583_v9  ;;  %2603 = vst.msk [vmem:[#allocation6 + $0xa8] sm:$0xff] %vm2035_vm5, %v10638_v42  ;;  %3273 = vrot.lane.b32.xlu0 %v9080_v7, %s9549_s29  ;;  %v5409_v7 = vld [vmem:[%s12326_s5 + $0x118] sm:$0xff] }
 0x312   : > { %2802 = vst.msk [vmem:[#allocation6 + $0x70] sm:$0xff] %vm1668_vm0, %v2782_v10  ;;  %3275 = vrot.lane.b32.xlu1 %v9081_v8, %s9549_s29  ;;  %v8621_v8 = vpack.c.bf16 %v5409_v7, %v5408_v6  ;;  %v5375_v6 = vld [vmem:[%s12326_s5 + $0x8] sm:$0xff]  ;;  %v5424_v7 = vld [vmem:[%s12326_s5 + $0x190] sm:$0xff] }
 0x313   : > { %v2711_v12 = vpop.permute.xlu0 %2710  ;;  %3422 = vst.msk [vmem:[#allocation7 + $0xa0] sm:$0xff] %vm1522_vm15, %v9172_v38 }
 0x314   : > { %2730 = vst.msk [vmem:[#allocation6 + $0x90] sm:$0xff] %vm1595_vm14, %v2711_v12  ;;  %v2854_v13 = vpop.permute.xlu1 %2853  ;;  %8622 = vmatpush1.bf16.msra.mxu0 %v8621_v8  ;;  %v9112_v12 = vld [vmem:[#allocation5 + $0xa2] ss:$8 sps:$4 sm:$0xff]  }
 0x315   : > { %2874 = vst.msk [vmem:[#allocation6 + $0x70] sm:$0xff] %vm1742_vm1, %v2854_v13  ;;  %3277 = vrot.lane.b32.xlu0 %v9083_v11, %s9549_s29  ;;  %v9111_v11 = vld [vmem:[#allocation5 + $0x92] ss:$8 sps:$4 sm:$0xff]   ;;  %8623 = vmatprep.subr.bf16.mxu0 %v9559_v61 }
 0x316   : > { %3279 = vrot.lane.b32.xlu1 %v9084_v57, %s9549_s29  ;;  %v5411_v57 = vld [vmem:[%s12326_s5 + $0x128] sm:$0xff] }
 0x317   : > { %v2154_v14 = vpop.permute.xlu0 %2153 }
 0x318   : > { %2171 = vst.msk [vmem:[#allocation6 + $0xc8] sm:$0xff] %vm1595_vm14, %v2154_v14  ;;  %v10695_v16 = vpop.permute.xlu1 %2371 }
 0x319   : > { %3337 = vrot.lane.b32.xlu0 %v9086_v15, %s9553_s7 }
 0x31a   : > { %3339 = vrot.lane.b32.xlu1 %v9087_v17, %s9553_s7  ;;  %v5412_v17 = vld [vmem:[%s12326_s5 + $0x130] sm:$0xff] }
 0x31b   : > { %v2226_v21 = vpop.permute.xlu0 %2225 }
 0x31c   : > { %2243 = vst.msk [vmem:[#allocation6 + $0xc8] sm:$0xff] %vm1668_vm0, %v2226_v21  ;;  %v10700_v23 = vpop.permute.xlu1 %2443  ;;  %v9114_v21 = vld [vmem:[#allocation5 + $0x18] ss:$8 sps:$4 sm:$0xff]  }
 0x31d   : > { %3341 = vrot.lane.b32.xlu0 %v9088_v22, %s9553_s7  ;;  %v8627_v22 = vpack.c.bf16 %v5413_v19, %v5412_v17  ;;  %v5426_v17 = vld [vmem:[%s12326_s5 + $0x1a0] sm:$0xff] }
 0x31e   : > { %3343 = vrot.lane.b32.xlu1 %v9089_v26, %s9553_s7  ;;  %v9128_v19 = vld [vmem:[#allocation5 + $0x31] ss:$8 sps:$4 sm:$0xff]  }
 0x31f   : > { %v2298_v28 = vpop.permute.xlu0 %2297 }
 0x320   : > { %2315 = vst.msk [vmem:[#allocation6 + $0xc8] sm:$0xff] %vm1742_vm1, %v2298_v28  ;;  %v2516_v30 = vpop.permute.xlu1 %2515  ;;  %v5414_v28 = vld [vmem:[%s12326_s5 + $0x140] sm:$0xff] }
 0x321   : > { %3345 = vrot.lane.b32.xlu0 %v9090_v29, %s9553_s7  ;;  %v5415_v29 = vld [vmem:[%s12326_s5 + $0x148] sm:$0xff] }
 0x322   : > { %3347 = vrot.lane.b32.xlu1 %v9091_v32, %s9553_s7  ;;  %v8630_v32 = vpack.c.bf16 %v5415_v29, %v5414_v28  ;;  %v5394_v28 = vld [vmem:[%s12326_s5 + $0xa0] sm:$0xff]  ;;  %v5395_v29 = vld [vmem:[%s12326_s5 + $0xa8] sm:$0xff] }
 0x323   : > { %v2784_v36 = vpop.permute.xlu0 %2783 }
 0x324   : > { %2803 = vst.msk [vmem:[#allocation6 + $0x90] sm:$0xff] %vm1668_vm0, %v2784_v36  ;;  %v2589_v37 = vpop.permute.xlu1 %2588  ;;  %v5417_v36 = vld [vmem:[%s12326_s5 + $0x158] sm:$0xff] }
 0x325   : > { %3349 = vrot.lane.b32.xlu0 %v9092_v33, %s9553_s7  ;;  %v8633_v38 = vpack.c.bf16 %v5417_v36, %v5416_v35 }
 0x326   : > { %3351 = vrot.lane.b32.xlu1 %v9093_v34, %s9553_s7  ;;  %v9117_v34 = vld [vmem:[#allocation5 + $0x68] ss:$8 sps:$4 sm:$0xff]  }
 0x327   : > { %v2856_v42 = vpop.permute.xlu0 %2855 }
 0x328   : > { %2875 = vst.msk [vmem:[#allocation6 + $0x90] sm:$0xff] %vm1742_vm1, %v2856_v42  ;;  %v2717_v44 = vpop.permute.xlu1 %2716  ;;  %v9119_v42 = vld [vmem:[#allocation5 + $0x42] ss:$8 sps:$4 sm:$0xff]  }
 0x329   : > { %2733 = vst.msk [vmem:[#allocation6 + $0xf0] sm:$0xff] %vm1595_vm14, %v2717_v44  ;;  %3465 = vrot.lane.b32.xlu0 %v9095_v39, %s9549_s29  ;;  %v5418_v44 = vld [vmem:[%s12326_s5 + $0x160] sm:$0xff] }
 0x32a   : > { %2806 = vst.msk [vmem:[#allocation6 + $0xf0] sm:$0xff] %vm1668_vm0, %v10353_v20  ;;  %3467 = vrot.lane.b32.xlu1 %v9096_v40, %s9549_s29  ;;  %v9101_v20 = vld [vmem:[#allocation5 + $0x71] ss:$8 sps:$4 sm:$0xff]  }
 0x32b   : > { %2878 = vst.msk [vmem:[#allocation6 + $0xf0] sm:$0xff] %vm1742_vm1, %v10362_v25  ;;  %v2370_v47 = vpop.permute.xlu0 %2369  ;;  %v9102_v25 = vld [vmem:[#allocation5 + $0x91] ss:$8 sps:$4 sm:$0xff]  }
 0x32c   : > { %2387 = vst.msk [vmem:[#allocation6 + $0xc8] sm:$0xff] %vm1815_vm2, %v2370_v47  ;;  %v2156_v48 = vpop.permute.xlu1 %2155  ;;  %v9201_v47 = vld [vmem:[#allocation5 + $0x12] ss:$8 sps:$4 sm:$0xff]  }
 0x32d   : > { %2172 = vst.msk [vmem:[#allocation6 + $0xe8] sm:$0xff] %vm1595_vm14, %v2156_v48  ;;  %3469 = vrot.lane.b32.xlu0 %v9098_v43, %s9549_s29  ;;  %v9120_v43 = vld [vmem:[#allocation5 + $0x60] ss:$8 sps:$4 sm:$0xff]  }
 0x32e   : > { %3471 = vrot.lane.b32.xlu1 %v9099_v46, %s9549_s29  ;;  %v8636_v46 = vpack.c.bf16 %v5419_v45, %v5418_v44  ;;  %3979 = vst.msk [vmem:[#allocation7 + $0x8] sm:$0xff] %vm1522_vm15, %v9201_v47  ;;  %v5381_v44 = vld [vmem:[%s12326_s5 + $0x38] sm:$0xff] }
 0x32f   : > { %v2442_v50 = vpop.permute.xlu0 %2441  ;;  %v9132_v45 = vld [vmem:[#allocation5 + $0x9] ss:$8 sps:$4 sm:$0xff]  }
 0x330   : > { %2459 = vst.msk [vmem:[#allocation6 + $0xc8] sm:$0xff] %vm1888_vm3, %v2442_v50  ;;  %v2228_v51 = vpop.permute.xlu1 %2227  ;;  %v5420_v50 = vld [vmem:[%s12326_s5 + $0x170] sm:$0xff] }
 0x331   : > { %2244 = vst.msk [vmem:[#allocation6 + $0xe8] sm:$0xff] %vm1668_vm0, %v2228_v51  ;;  %3473 = vrot.lane.b32.xlu0 %v9100_v49, %s9549_s29  ;;  %v5421_v51 = vld [vmem:[%s12326_s5 + $0x178] sm:$0xff] }
 0x332   : > { %3475 = vrot.lane.b32.xlu1 %v9101_v20, %s9549_s29  ;;  %v9121_v20 = vld [vmem:[#allocation5 + $0x61] ss:$8 sps:$4 sm:$0xff]  }
 0x333   : > { %v2514_v53 = vpop.permute.xlu0 %2513 }
 0x334   : > { %2531 = vst.msk [vmem:[#allocation6 + $0xc8] sm:$0xff] %vm1962_vm4, %v2514_v53  ;;  %v2300_v54 = vpop.permute.xlu1 %2299 }
 0x335   : > { %2316 = vst.msk [vmem:[#allocation6 + $0xe8] sm:$0xff] %vm1742_vm1, %v2300_v54  ;;  %3477 = vrot.lane.b32.xlu0 %v9102_v25, %s9549_s29  ;;  %v9122_v25 = vld [vmem:[#allocation5 + $0x62] ss:$8 sps:$4 sm:$0xff]  }
 0x336   : > { %2388 = vst.msk [vmem:[#allocation6 + $0xe8] sm:$0xff] %vm1815_vm2, %v10695_v16  ;;  %3479 = vrot.lane.b32.xlu1 %v9103_v52, %s9549_s29  ;;  %v9113_v16 = vld [vmem:[#allocation5 + $0x8] ss:$8 sps:$4 sm:$0xff]   ;;  %v8639_v52 = vpack.c.bf16 %v5421_v51, %v5420_v50  ;;  %v5382_v51 = vld [vmem:[%s12326_s5 + $0x40] sm:$0xff] }
 0x337   : > { %2460 = vst.msk [vmem:[#allocation6 + $0xe8] sm:$0xff] %vm1888_vm3, %v10700_v23  ;;  %v2587_v58 = vpop.permute.xlu0 %2586  ;;  %v9193_v23 = vld [vmem:[#allocation5 + $0x41] ss:$8 sps:$4 sm:$0xff]  }
 0x338   : > { %2532 = vst.msk [vmem:[#allocation6 + $0xe8] sm:$0xff] %vm1962_vm4, %v2516_v30  ;;  %v2786_v59 = vpop.permute.xlu1 %2785  ;;  %v9116_v30 = vld [vmem:[#allocation5 + $0x48] ss:$8 sps:$4 sm:$0xff]  }
 0x339   : > { %2604 = vst.msk [vmem:[#allocation6 + $0xc8] sm:$0xff] %vm2035_vm5, %v2587_v58  ;;  %2605 = vst.msk [vmem:[#allocation6 + $0xe8] sm:$0xff] %vm2035_vm5, %v2589_v37  ;;  %3537 = vrot.lane.b32.xlu0 %v9104_v55, %s9553_s7  ;;  %v9118_v37 = vld [vmem:[#allocation5 + $0x78] ss:$8 sps:$4 sm:$0xff]   ;;  %v9123_v55 = vld [vmem:[#allocation5 + $0x68] ss:$8 sps:$4 sm:$0xff]  }
 0x33a   : > { %2804 = vst.msk [vmem:[#allocation6 + $0xb0] sm:$0xff] %vm1668_vm0, %v2786_v59  ;;  %3539 = vrot.lane.b32.xlu1 %v9105_v56, %s9553_s7  ;;  %v5422_v56 = vld [vmem:[%s12326_s5 + $0x180] sm:$0xff]  ;;  %v5423_v58 = vld [vmem:[%s12326_s5 + $0x188] sm:$0xff] }
 0x33b   : > { %v2715_v3 = vpop.permute.xlu0 %2714  ;;  %4541 = vst.msk [vmem:[#allocation7 + $0x10] sm:$0xff] %vm1522_vm15, %v9193_v23  ;;  %v9124_v59 = vld [vmem:[#allocation5 + $0x71] ss:$8 sps:$4 sm:$0xff]  }
 0x33c   : > { %2732 = vst.msk [vmem:[#allocation6 + $0xd0] sm:$0xff] %vm1595_vm14, %v2715_v3  ;;  %v2858_v4 = vpop.permute.xlu1 %2857  ;;  %v5391_v3 = vld [vmem:[%s12326_s5 + $0x88] sm:$0xff] }
 0x33d   : > { %2805 = vst.msk [vmem:[#allocation6 + $0xd0] sm:$0xff] %vm1668_vm0, %v10350_v18  ;;  %3541 = vrot.lane.b32.xlu0 %v9107_v60, %s9553_s7  ;;  %v9110_v18 = vld [vmem:[#allocation5 + $0x72] ss:$8 sps:$4 sm:$0xff]   ;;  %v8642_v60 = vpack.c.bf16 %v5423_v58, %v5422_v56  ;;  %v5400_v56 = vld [vmem:[%s12326_s5 + $0xd0] sm:$0xff] }
 0x33e   : > { %2876 = vst.msk [vmem:[#allocation6 + $0xb0] sm:$0xff] %vm1742_vm1, %v2858_v4  ;;  %2877 = vst.msk [vmem:[#allocation6 + $0xd0] sm:$0xff] %vm1742_vm1, %v10359_v24  ;;  %3543 = vrot.lane.b32.xlu1 %v9108_v1, %s9553_s7  ;;  %v5410_v24 = vld [vmem:[%s12326_s5 + $0x120] sm:$0xff]  ;;  %v8585_v4 = vpack.c.bf16 %v5391_v3, %v5390_v2  ;;  %v5401_v58 = vld [vmem:[%s12326_s5 + $0xd8] sm:$0xff] }
 0x33f   : > { %v2924_v9 = vpop.permute.xlu0 %2923  ;;  %v8624_v13 = vpack.c.bf16 %v5411_v57, %v5410_v24  ;;  %v9125_v1 = vld [vmem:[#allocation5 + $0x30] ss:$8 sps:$4 sm:$0xff]  }
 0x340   : > { %2945 = vst.msk [vmem:[#allocation6 + $0x50] sm:$0xff] %vm1815_vm2, %v2924_v9  ;;  %v2926_v10 = vpop.permute.xlu1 %2925  ;;  %v5425_v9 = vld [vmem:[%s12326_s5 + $0x198] sm:$0xff]  ;;  %8586 = vmatprep.subr.bf16.mxu1 %v8585_v4 }
 0x341   : > { %2946 = vst.msk [vmem:[#allocation6 + $0x70] sm:$0xff] %vm1815_vm2, %v2926_v10  ;;  %3545 = vrot.lane.b32.xlu0 %v9109_v5, %s9553_s7  ;;  %8625 = vmatpush1.bf16.msra.mxu0 %v8624_v13  ;;  %v5374_v5 = vld [vmem:[%s12326_s5] sm:$0xff]  ;;  %v5393_v13 = vld [vmem:[%s12326_s5 + $0x98] sm:$0xff] }
 0x342   : > { %3547 = vrot.lane.b32.xlu1 %v9110_v18, %s9553_s7  ;;  %8626 = vmatprep.subr.bf16.mxu0 %v9559_v61  ;;  %v9126_v18 = vld [vmem:[#allocation5 + $0x69] ss:$8 sps:$4 sm:$0xff]   ;;  %v8587_v8 = vpack.c.bf16 %v5375_v6, %v5374_v5  ;;  %v5402_v5 = vld [vmem:[%s12326_s5 + $0xe0] sm:$0xff]  ;;  %v5403_v6 = vld [vmem:[%s12326_s5 + $0xe8] sm:$0xff] }
 0x343   : > { %v2928_v14 = vpop.permute.xlu0 %2927  ;;  %v9127_v57 = vld [vmem:[#allocation5 + $0x72] ss:$8 sps:$4 sm:$0xff]  }
 0x344   : > { %2947 = vst.msk [vmem:[#allocation6 + $0x90] sm:$0xff] %vm1815_vm2, %v2928_v14  ;;  %v2930_v15 = vpop.permute.xlu1 %2929  ;;  %8588 = vmatpush3.bf16.msra.mxu1 %v8587_v8  ;;  %v5386_v8 = vld [vmem:[%s12326_s5 + $0x60] sm:$0xff] }
 0x345   : > { %2948 = vst.msk [vmem:[#allocation6 + $0xb0] sm:$0xff] %vm1815_vm2, %v2930_v15  ;;  %3549 = vrot.lane.b32.xlu0 %v9111_v11, %s9553_s7  ;;  %8628 = vmatpush1.bf16.msra.mxu0 %v8627_v22  ;;  %v8645_v11 = vpack.c.bf16 %v5425_v9, %v5424_v7  ;;  %v5376_v15 = vld [vmem:[%s12326_s5 + $0x10] sm:$0xff]  ;;  %v5427_v22 = vld [vmem:[%s12326_s5 + $0x1a8] sm:$0xff] }
 0x346   : > { %3551 = vrot.lane.b32.xlu1 %v9112_v12, %s9553_s7  ;;  %8629 = vmatprep.subr.bf16.mxu0 %v9559_v61  ;;  %v5392_v12 = vld [vmem:[%s12326_s5 + $0x90] sm:$0xff]  ;;  %v9137_v7 = vld [vmem:[#allocation5 + $0x3a] ss:$8 sps:$4 sm:$0xff]  }
 0x347   : > { %v2932_v26 = vpop.permute.xlu0 %2931  ;;  %v8589_v14 = vpack.c.bf16 %v5393_v13, %v5392_v12  ;;  %v5387_v9 = vld [vmem:[%s12326_s5 + $0x68] sm:$0xff]  ;;  %v5404_v12 = vld [vmem:[%s12326_s5 + $0xf0] sm:$0xff]  ;;  %v5405_v13 = vld [vmem:[%s12326_s5 + $0xf8] sm:$0xff] }
 0x348   : > { %2949 = vst.msk [vmem:[#allocation6 + $0xd0] sm:$0xff] %vm1815_vm2, %v2932_v26  ;;  %v2934_v0 = vpop.permute.xlu1 %2933  ;;  %v8648_v26 = vpack.c.bf16 %v5427_v22, %v5426_v17  ;;  %v5388_v17 = vld [vmem:[%s12326_s5 + $0x70] sm:$0xff] }
 0x349   : > { %2950 = vst.msk [vmem:[#allocation6 + $0xf0] sm:$0xff] %vm1815_vm2, %v2934_v0  ;;  %3610 = vrot.lane.b32.xlu0 %v9113_v16, %s9554_s23  ;;  %8631 = vmatpush1.bf16.msra.mxu0 %v8630_v32  ;;  %v5377_v16 = vld [vmem:[%s12326_s5 + $0x18] sm:$0xff]  ;;  %v9210_v0 = vld [vmem:[#allocation5 + $0x22] ss:$8 sps:$4 sm:$0xff]   ;;  %v8593_v32 = vpack.c.bf16 %v5395_v29, %v5394_v28 }
 0x34a   : > { %3612 = vrot.lane.b32.xlu1 %v9114_v21, %s9554_s23  ;;  %8632 = vmatprep.subr.bf16.mxu0 %v9559_v61  ;;  %v8591_v21 = vpack.c.bf16 %v5377_v16, %v5376_v15  ;;  %3980 = vst.msk [vmem:[#allocation7 + $0x28] sm:$0xff] %vm1522_vm15, %v9210_v0  ;;  %v9141_v15 = vld [vmem:[#allocation5 + $0x42] ss:$8 sps:$4 sm:$0xff]   ;;  %v8613_v16 = vpack.c.bf16 %v5405_v13, %v5404_v12  ;;  %v9145_v0 = vld [vmem:[#allocation5 + $0x11] ss:$8 sps:$4 sm:$0xff]  }
 0x34b   : > { %v2993_v31 = vpop.permute.xlu0 %2992  ;;  %8590 = vmatprep.subr.bf16.mxu1 %v8589_v14  ;;  %v9221_v14 = vld [vmem:[#allocation5 + $0x42] ss:$8 sps:$4 sm:$0xff]  }
 0x34c   : > { %3016 = vst.msk [vmem:[#allocation6 + $0x10] sm:$0xff] %vm1888_vm3, %v2993_v31  ;;  %v2995_v33 = vpop.permute.xlu1 %2994  ;;  %8592 = vmatpush3.bf16.msra.mxu1 %v8591_v21  ;;  %v5378_v31 = vld [vmem:[%s12326_s5 + $0x20] sm:$0xff]  ;;  %v9142_v21 = vld [vmem:[#allocation5 + $0x40] ss:$8 sps:$4 sm:$0xff]  }
 0x34d   : > { %3017 = vst.msk [vmem:[#allocation6 + $0x30] sm:$0xff] %vm1888_vm3, %v2995_v33  ;;  %3614 = vrot.lane.b32.xlu0 %v9115_v27, %s9554_s23  ;;  %8634 = vmatpush1.bf16.msra.mxu0 %v8633_v38  ;;  %v5379_v33 = vld [vmem:[%s12326_s5 + $0x28] sm:$0xff]  ;;  %v5396_v38 = vld [vmem:[%s12326_s5 + $0xb0] sm:$0xff] }
 0x34e   : > { %3616 = vrot.lane.b32.xlu1 %v9116_v30, %s9554_s23  ;;  %8635 = vmatprep.subr.bf16.mxu0 %v9559_v61  ;;  %v9129_v30 = vld [vmem:[#allocation5 + $0x6a] ss:$8 sps:$4 sm:$0xff]   ;;  %v8595_v35 = vpack.c.bf16 %v5379_v33, %v5378_v31  ;;  %3981 = vst.msk [vmem:[#allocation7 + $0x48] sm:$0xff] %vm1522_vm15, %v9221_v14 }
 0x34f   : > { %v2997_v39 = vpop.permute.xlu0 %2996  ;;  %8594 = vmatprep.subr.bf16.mxu1 %v8593_v32  ;;  %v9150_v32 = vld [vmem:[#allocation5 + $0x60] ss:$8 sps:$4 sm:$0xff]   ;;  %v9181_v14 = vld [vmem:[#allocation5 + $0x72] ss:$8 sps:$4 sm:$0xff]  }
 0x350   : > { %3018 = vst.msk [vmem:[#allocation6 + $0x50] sm:$0xff] %vm1888_vm3, %v2997_v39  ;;  %v2999_v40 = vpop.permute.xlu1 %2998  ;;  %8596 = vmatpush3.bf16.msra.mxu1 %v8595_v35  ;;  %v5397_v39 = vld [vmem:[%s12326_s5 + $0xb8] sm:$0xff]  ;;  %v1452_v35 = vld [vmem:[%s10513_s14 + $0x2c] sm:$0xf] }
 0x351   : > { %3019 = vst.msk [vmem:[#allocation6 + $0x70] sm:$0xff] %vm1888_vm3, %v2999_v40  ;;  %3618 = vrot.lane.b32.xlu0 %v9117_v34, %s9554_s23  ;;  %8637 = vmatpush1.bf16.msra.mxu0 %v8636_v46  ;;  %v9130_v34 = vld [vmem:[#allocation5 + $0x32] ss:$8 sps:$4 sm:$0xff]   ;;  %v8597_v41 = vpack.c.bf16 %v5397_v39, %v5396_v38 }
 0x352   : > { %3620 = vrot.lane.b32.xlu1 %v9118_v37, %s9554_s23  ;;  %8638 = vmatprep.subr.bf16.mxu0 %v9559_v61  ;;  %v9131_v40 = vld [vmem:[#allocation5 + $0x38] ss:$8 sps:$4 sm:$0xff]   ;;  %1469 = vst.msk [vmem:[#allocation5 + $0xb1] sm:$0xf] %vm1424_vm6, %v1452_v35 }
 0x353   : > { %v3001_v48 = vpop.permute.xlu0 %3000  ;;  %8598 = vmatprep.subr.bf16.mxu1 %v8597_v41  ;;  %v9230_v39 = vld [vmem:[#allocation5 + $0x51] ss:$8 sps:$4 sm:$0xff]  }
 0x354   : > { %3020 = vst.msk [vmem:[#allocation6 + $0x90] sm:$0xff] %vm1888_vm3, %v3001_v48  ;;  %v3003_v49 = vpop.permute.xlu1 %3002  ;;  %v5398_v48 = vld [vmem:[%s12326_s5 + $0xc0] sm:$0xff]  ;;  %v9156_v41 = vld [vmem:[#allocation5 + $0x4a] ss:$8 sps:$4 sm:$0xff]  }
 0x355   : > { %3021 = vst.msk [vmem:[#allocation6 + $0xb0] sm:$0xff] %vm1888_vm3, %v3003_v49  ;;  %4589 = vrot.lane.b32.xlu0 %v9119_v42, %s9549_s29  ;;  %8640 = vmatpush1.bf16.msra.mxu0 %v8639_v52  ;;  %v5380_v42 = vld [vmem:[%s12326_s5 + $0x30] sm:$0xff]  ;;  %v5399_v49 = vld [vmem:[%s12326_s5 + $0xc8] sm:$0xff] }
 0x356   : > { %4662 = vrot.lane.b32.xlu1 %v9120_v43, %s9553_s7  ;;  %8641 = vmatprep.subr.bf16.mxu0 %v9559_v61  ;;  %v8599_v43 = vpack.c.bf16 %v5381_v44, %v5380_v42  ;;  %v8601_v50 = vpack.c.bf16 %v5399_v49, %v5398_v48  ;;  %v9134_v52 = vld [vmem:[#allocation5 + $0x39] ss:$8 sps:$4 sm:$0xff]   ;;  %4542 = vst.msk [vmem:[#allocation7 + $0x30] sm:$0xff] %vm1522_vm15, %v9230_v39 }
 0x357   : > { %v3005_v53 = vpop.permute.xlu0 %3004  ;;  %v9159_v49 = vld [vmem:[#allocation5 + $0x50] ss:$8 sps:$4 sm:$0xff]  }
 0x358   : > { %3022 = vst.msk [vmem:[#allocation6 + $0xd0] sm:$0xff] %vm1888_vm3, %v3005_v53  ;;  %v3007_v54 = vpop.permute.xlu1 %3006  ;;  %8600 = vmatpush3.bf16.msra.mxu1 %v8599_v43  ;;  %v9158_v43 = vld [vmem:[#allocation5 + $0x62] ss:$8 sps:$4 sm:$0xff]  }
 0x359   : > { %3023 = vst.msk [vmem:[#allocation6 + $0xf0] sm:$0xff] %vm1888_vm3, %v3007_v54  ;;  %4734 = vrot.lane.b32.xlu0 %v9121_v20, %s9554_s23  ;;  %8643 = vmatpush1.bf16.msra.mxu0 %v8642_v60  ;;  %v9133_v20 = vld [vmem:[#allocation5 + $0x40] ss:$8 sps:$4 sm:$0xff]   ;;  %v8605_v60 = vpack.c.bf16 %v5401_v58, %v5400_v56  ;;  %v9165_v56 = vld [vmem:[#allocation5 + $0x70] ss:$8 sps:$4 sm:$0xff]  }
 0x35a   : > { %4806 = vrot.lane.b32.xlu1 %v9122_v25, %s9555_s24  ;;  %8644 = vmatprep.subr.bf16.mxu0 %v9559_v61  ;;  %v5383_v25 = vld [vmem:[%s12326_s5 + $0x48] sm:$0xff] }
 0x35b   : > { %v3065_v62 = vpop.permute.xlu0 %3064  ;;  %v8603_v53 = vpack.c.bf16 %v5383_v25, %v5382_v51  ;;  %8602 = vmatprep.subr.bf16.mxu1 %v8601_v50  ;;  %v9237_v50 = vld [vmem:[#allocation5 + $0x52] ss:$8 sps:$4 sm:$0xff]  }
 0x35c   : > { %3088 = vst.msk [vmem:[#allocation6 + $0x10] sm:$0xff] %vm1962_vm4, %v3065_v62  ;;  %v3067_v63 = vpop.permute.xlu1 %3066  ;;  %v5384_v62 = vld [vmem:[%s12326_s5 + $0x50] sm:$0xff]  ;;  %v9166_v58 = vld [vmem:[#allocation5 + $0x39] ss:$8 sps:$4 sm:$0xff]  }
 0x35d   : > { %3089 = vst.msk [vmem:[#allocation6 + $0x30] sm:$0xff] %vm1962_vm4, %v3067_v63  ;;  %4879 = vrot.lane.b32.xlu0 %v9123_v55, %s9556_s25  ;;  %8646 = vmatpush1.bf16.msra.mxu0 %v8645_v11  ;;  %v5385_v63 = vld [vmem:[%s12326_s5 + $0x58] sm:$0xff]  ;;  %v8611_v11 = vpack.c.bf16 %v5387_v9, %v5386_v8 }
 0x35e   : > { %5152 = vrot.lane.b32.xlu1 %v9124_v59, %s9549_s29  ;;  %8647 = vmatprep.subr.bf16.mxu0 %v9559_v61  ;;  %v9135_v59 = vld [vmem:[#allocation5 + $0xa] ss:$8 sps:$4 sm:$0xff]   ;;  %v8607_v2 = vpack.c.bf16 %v5385_v63, %v5384_v62  ;;  %3982 = vst.msk [vmem:[#allocation7 + $0x68] sm:$0xff] %vm1522_vm15, %v9237_v50 }
 0x35f   : > { %v3069_v10 = vpop.permute.xlu0 %3068  ;;  %8604 = vmatpush3.bf16.msra.mxu1 %v8603_v53  ;;  %v9162_v53 = vld [vmem:[#allocation5 + $0x68] ss:$8 sps:$4 sm:$0xff]  }
 0x360   : > { %3090 = vst.msk [vmem:[#allocation6 + $0x50] sm:$0xff] %vm1962_vm4, %v3069_v10  ;;  %v3071_v24 = vpop.permute.xlu1 %3070  ;;  %8606 = vmatprep.subr.bf16.mxu1 %v8605_v60  ;;  %v9138_v10 = vld [vmem:[#allocation5 + $0x10] ss:$8 sps:$4 sm:$0xff]  }
 0x361   : > { %3091 = vst.msk [vmem:[#allocation6 + $0x70] sm:$0xff] %vm1962_vm4, %v3071_v24  ;;  %4028 = vrot.lane.b32.xlu0 %v9125_v1, %s9549_s29  ;;  %8649 = vmatpush1.bf16.msra.mxu0 %v8648_v26  ;;  %v9136_v1 = vld [vmem:[#allocation5 + $0x41] ss:$8 sps:$4 sm:$0xff]   ;;  %v9169_v62 = vld [vmem:[#allocation5 + $0x70] ss:$8 sps:$4 sm:$0xff]  }
 0x362   : > { %4951 = vrot.lane.b32.xlu1 %v9126_v18, %s9557_s26  ;;  %8682 = vmatprep.subr.bf16.mxu0 %v9559_v61  ;;  %v8609_v18 = vpack.c.bf16 %v5403_v6, %v5402_v5  ;;  %v9170_v63 = vld [vmem:[#allocation5 + $0x69] ss:$8 sps:$4 sm:$0xff]  }
 0x363   : > { %v3073_v23 = vpop.permute.xlu0 %3072  ;;  %8608 = vmatpush3.bf16.msra.mxu1 %v8607_v2  ;;  %v9248_v8 = vld [vmem:[#allocation5 + $0x71] ss:$8 sps:$4 sm:$0xff]  }
 0x364   : > { %3092 = vst.msk [vmem:[#allocation6 + $0x90] sm:$0xff] %vm1962_vm4, %v3073_v23  ;;  %v3075_v27 = vpop.permute.xlu1 %3074  ;;  %8610 = vmatprep.subr.bf16.mxu1 %v8609_v18  ;;  %v9178_v18 = vld [vmem:[#allocation5 + $0x6a] ss:$8 sps:$4 sm:$0xff]  }
 0x365   : > { %3093 = vst.msk [vmem:[#allocation6 + $0xb0] sm:$0xff] %vm1962_vm4, %v3075_v27  ;;  %5224 = vrot.lane.b32.xlu0 %v9127_v57, %s9553_s7  ;;  %v9146_v27 = vld [vmem:[#allocation5 + $0x48] ss:$8 sps:$4 sm:$0xff]  }
 0x366   : > { %4100 = vrot.lane.b32.xlu1 %v9128_v19, %s9553_s7  ;;  %v5389_v19 = vld [vmem:[%s12326_s5 + $0x78] sm:$0xff]  ;;  %4543 = vst.msk [vmem:[#allocation7 + $0x50] sm:$0xff] %vm1522_vm15, %v9248_v8 }
 0x367   : > { %v3077_v36 = vpop.permute.xlu0 %3076  ;;  %8612 = vmatpush3.bf16.msra.mxu1 %v8611_v11  ;;  %v8615_v22 = vpack.c.bf16 %v5389_v19, %v5388_v17  ;;  %v9179_v11 = vld [vmem:[#allocation5 + $0x72] ss:$8 sps:$4 sm:$0xff]  }
 0x368   : > { %3094 = vst.msk [vmem:[#allocation6 + $0xd0] sm:$0xff] %vm1962_vm4, %v3077_v36  ;;  %v3079_v37 = vpop.permute.xlu1 %3078  ;;  %8614 = vmatprep.subr.bf16.mxu1 %v8613_v16  ;;  %v9154_v36 = vld [vmem:[#allocation5 + $0x1a] ss:$8 sps:$4 sm:$0xff]  }
 0x369   : > { %3095 = vst.msk [vmem:[#allocation6 + $0xf0] sm:$0xff] %vm1962_vm4, %v3079_v37  ;;  %5023 = vrot.lane.b32.xlu0 %v9129_v30, %s9558_s27  ;;  %v9149_v30 = vld [vmem:[#allocation5 + $0x19] ss:$8 sps:$4 sm:$0xff]  }
 0x36a   : > { %4172 = vrot.lane.b32.xlu1 %v9130_v34, %s9554_s23  ;;  %v9153_v34 = vld [vmem:[#allocation5 + $0x49] ss:$8 sps:$4 sm:$0xff]  }
 0x36b   : > { %v3137_v46 = vpop.permute.xlu0 %3136  ;;  %8616 = vmatpush3.bf16.msra.mxu1 %v8615_v22  ;;  %v9182_v16 = vld [vmem:[#allocation5 + $0x70] ss:$8 sps:$4 sm:$0xff]  }
 0x36c   : > { %3160 = vst.msk [vmem:[#allocation6 + $0x10] sm:$0xff] %vm2035_vm5, %v3137_v46  ;;  %v3139_v47 = vpop.permute.xlu1 %3138  ;;  %v1455_v22 = vld [vmem:[%s10513_s14 + $0x38] sm:$0xf] }
 0x36d   : > { %3161 = vst.msk [vmem:[#allocation6 + $0x30] sm:$0xff] %vm2035_vm5, %v3139_v47  ;;  %4244 = vrot.lane.b32.xlu0 %v9131_v40, %s9555_s24  ;;  %v9155_v40 = vld [vmem:[#allocation5 + $0x61] ss:$8 sps:$4 sm:$0xff]   ;;  %v9209_v8 = vld [vmem:[#allocation5 + $0x51] ss:$8 sps:$4 sm:$0xff]  }
 0x36e   : > { %3682 = vrot.lane.b32.xlu1 %v9132_v45, %s9555_s24  ;;  %v9157_v45 = vld [vmem:[#allocation5 + $0x20] ss:$8 sps:$4 sm:$0xff]   ;;  %1472 = vst.msk [vmem:[#allocation5 + $0xd9] sm:$0xf] %vm1424_vm6, %v1455_v22 }
 0x36f   : > { %v3141_v54 = vpop.permute.xlu0 %3140  ;;  %v1453_v47 = vld [vmem:[%s10513_s14 + $0x30] sm:$0xf] }
 0x370   : > { %3162 = vst.msk [vmem:[#allocation6 + $0x50] sm:$0xff] %vm2035_vm5, %v3141_v54  ;;  %v3143_v55 = vpop.permute.xlu1 %3142  ;;  %v9215_v22 = vld [vmem:[#allocation5 + $0x69] ss:$8 sps:$4 sm:$0xff]  }
 0x371   : > { %3163 = vst.msk [vmem:[#allocation6 + $0x70] sm:$0xff] %vm2035_vm5, %v3143_v55  ;;  %4030 = vrot.lane.b32.xlu0 %v9133_v20, %s9549_s29  ;;  %v9160_v20 = vld [vmem:[#allocation5 + $0x52] ss:$8 sps:$4 sm:$0xff]  }
 0x372   : > { %4316 = vrot.lane.b32.xlu1 %v9134_v52, %s9556_s25  ;;  %1470 = vst.msk [vmem:[#allocation5 + $0xc9] sm:$0xf] %vm1424_vm6, %v1453_v47  ;;  %v9161_v52 = vld [vmem:[#allocation5 + $0x21] ss:$8 sps:$4 sm:$0xff]  }
 0x373   : > { %v3145_v3 = vpop.permute.xlu0 %3144 }
 0x374   : > { %3164 = vst.msk [vmem:[#allocation6 + $0x90] sm:$0xff] %vm2035_vm5, %v3145_v3  ;;  %v3147_v4 = vpop.permute.xlu1 %3146  ;;  %v9173_v3 = vld [vmem:[#allocation5 + $0x71] ss:$8 sps:$4 sm:$0xff]  }
 0x375   : > { %3165 = vst.msk [vmem:[#allocation6 + $0xb0] sm:$0xff] %vm2035_vm5, %v3147_v4  ;;  %3754 = vrot.lane.b32.xlu0 %v9135_v59, %s9556_s25  ;;  %v9174_v4 = vld [vmem:[#allocation5 + $0x3a] ss:$8 sps:$4 sm:$0xff]  }
 0x376   : > { %4102 = vrot.lane.b32.xlu1 %v9136_v1, %s9553_s7 }
 0x377   : > { %v3149_v24 = vpop.permute.xlu0 %3148 }
 0x378   : > { %3166 = vst.msk [vmem:[#allocation6 + $0xd0] sm:$0xff] %vm2035_vm5, %v3149_v24  ;;  %v3151_v57 = vpop.permute.xlu1 %3150  ;;  %v9180_v24 = vld [vmem:[#allocation5 + $0x40] ss:$8 sps:$4 sm:$0xff]  }
 0x379   : > { %3167 = vst.msk [vmem:[#allocation6 + $0xf0] sm:$0xff] %vm2035_vm5, %v3151_v57  ;;  %4388 = vrot.lane.b32.xlu0 %v9137_v7, %s9557_s26  ;;  %v9177_v7 = vld [vmem:[#allocation5 + $0x71] ss:$8 sps:$4 sm:$0xff]   ;;  %v9251_v57 = vld [vmem:[#allocation5 + $0x80] ss:$8 sps:$4 sm:$0xff]  }
 0x37a   : > { %3827 = vrot.lane.b32.xlu1 %v9138_v10, %s9557_s26  ;;  %5105 = vst.msk [vmem:[#allocation7 + $0x38] sm:$0xff] %vm1522_vm15, %v9251_v57  ;;  %v9211_v57 = vld [vmem:[#allocation5 + $0x98] ss:$8 sps:$4 sm:$0xff]  }
 0x37b   : > { %v3266_v23 = vpop.permute.xlu0 %3265 }
 0x37c   : > { %3289 = vst.msk [vmem:[#allocation6 + $0x18] sm:$0xff] %vm1595_vm14, %v3266_v23  ;;  %v3268_v26 = vpop.permute.xlu1 %3267  ;;  %v9184_v23 = vld [vmem:[#allocation5 + $0x78] ss:$8 sps:$4 sm:$0xff]  }
 0x37d   : > { %3290 = vst.msk [vmem:[#allocation6 + $0x38] sm:$0xff] %vm1595_vm14, %v3268_v26  ;;  %4174 = vrot.lane.b32.xlu0 %v9141_v15, %s9554_s23  ;;  %v1454_v15 = vld [vmem:[%s10513_s14 + $0x34] sm:$0xf] }
 0x37e   : > { %4461 = vrot.lane.b32.xlu1 %v9142_v21, %s9558_s27  ;;  %1471 = vst.msk [vmem:[#allocation5 + $0xd1] sm:$0xf] %vm1424_vm6, %v1454_v15  ;;  %v9183_v21 = vld [vmem:[#allocation5 + $0x72] ss:$8 sps:$4 sm:$0xff]  }
 0x37f   : > { %v3270_v28 = vpop.permute.xlu0 %3269 }
 0x380   : > { %3291 = vst.msk [vmem:[#allocation6 + $0x58] sm:$0xff] %vm1595_vm14, %v3270_v28  ;;  %v3272_v29 = vpop.permute.xlu1 %3271  ;;  %v9186_v28 = vld [vmem:[#allocation5 + $0x41] ss:$8 sps:$4 sm:$0xff]  }
 0x381   : > { %3292 = vst.msk [vmem:[#allocation6 + $0x78] sm:$0xff] %vm1595_vm14, %v3272_v29  ;;  %3899 = vrot.lane.b32.xlu0 %v9145_v0, %s9558_s27 }
 0x382   : > { %4246 = vrot.lane.b32.xlu1 %v9146_v27, %s9555_s24  ;;  %v9185_v27 = vld [vmem:[#allocation5 + $0x81] ss:$8 sps:$4 sm:$0xff]  }
 0x383   : > { %v3274_v31 = vpop.permute.xlu0 %3273 }
 0x384   : > { %3293 = vst.msk [vmem:[#allocation6 + $0x98] sm:$0xff] %vm1595_vm14, %v3274_v31  ;;  %v3276_v33 = vpop.permute.xlu1 %3275  ;;  %v9187_v31 = vld [vmem:[#allocation5 + $0x78] ss:$8 sps:$4 sm:$0xff]  }
 0x385   : > { %3294 = vst.msk [vmem:[#allocation6 + $0xb8] sm:$0xff] %vm1595_vm14, %v3276_v33  ;;  %3684 = vrot.lane.b32.xlu0 %v9149_v30, %s9555_s24  ;;  %v9188_v33 = vld [vmem:[#allocation5 + $0x90] ss:$8 sps:$4 sm:$0xff]  }
 0x386   : > { %4032 = vrot.lane.b32.xlu1 %v9150_v32, %s9549_s29  ;;  %v9258_v32 = vld [vmem:[#allocation5 + $0x72] ss:$8 sps:$4 sm:$0xff]  }
 0x387   : > { %v3278_v37 = vpop.permute.xlu0 %3277  ;;  %3983 = vst.msk [vmem:[#allocation7 + $0x88] sm:$0xff] %vm1522_vm15, %v9258_v32  ;;  %v9219_v32 = vld [vmem:[#allocation5 + $0x9a] ss:$8 sps:$4 sm:$0xff]  }
 0x388   : > { %3295 = vst.msk [vmem:[#allocation6 + $0xd8] sm:$0xff] %vm1595_vm14, %v3278_v37  ;;  %v3280_v38 = vpop.permute.xlu1 %3279  ;;  %v9190_v37 = vld [vmem:[#allocation5 + $0x82] ss:$8 sps:$4 sm:$0xff]  }
 0x389   : > { %3296 = vst.msk [vmem:[#allocation6 + $0xf8] sm:$0xff] %vm1595_vm14, %v3280_v38  ;;  %4318 = vrot.lane.b32.xlu0 %v9153_v34, %s9556_s25 }
 0x38a   : > { %3756 = vrot.lane.b32.xlu1 %v9154_v36, %s9556_s25  ;;  %v9189_v36 = vld [vmem:[#allocation5 + $0x79] ss:$8 sps:$4 sm:$0xff]  }
 0x38b   : > { %v3338_v42 = vpop.permute.xlu0 %3337 }
 0x38c   : > { %3361 = vst.msk [vmem:[#allocation6 + $0x18] sm:$0xff] %vm1668_vm0, %v3338_v42  ;;  %v3340_v44 = vpop.permute.xlu1 %3339 }
 0x38d   : > { %3362 = vst.msk [vmem:[#allocation6 + $0x38] sm:$0xff] %vm1668_vm0, %v3340_v44  ;;  %4104 = vrot.lane.b32.xlu0 %v9155_v40, %s9553_s7  ;;  %v9191_v40 = vld [vmem:[#allocation5 + $0x49] ss:$8 sps:$4 sm:$0xff]  }
 0x38e   : > { %4390 = vrot.lane.b32.xlu1 %v9156_v41, %s9557_s26  ;;  %v9192_v41 = vld [vmem:[#allocation5 + $0x90] ss:$8 sps:$4 sm:$0xff]  }
 0x38f   : > { %v3342_v46 = vpop.permute.xlu0 %3341 }
 0x390   : > { %3363 = vst.msk [vmem:[#allocation6 + $0x58] sm:$0xff] %vm1668_vm0, %v3342_v46  ;;  %v3344_v48 = vpop.permute.xlu1 %3343 }
 0x391   : > { %3364 = vst.msk [vmem:[#allocation6 + $0x78] sm:$0xff] %vm1668_vm0, %v3344_v48  ;;  %3829 = vrot.lane.b32.xlu0 %v9157_v45, %s9557_s26  ;;  %v9194_v45 = vld [vmem:[#allocation5 + $0x79] ss:$8 sps:$4 sm:$0xff]  }
 0x392   : > { %4176 = vrot.lane.b32.xlu1 %v9158_v43, %s9554_s23  ;;  %v9195_v43 = vld [vmem:[#allocation5 + $0x91] ss:$8 sps:$4 sm:$0xff]  }
 0x393   : > { %v3346_v51 = vpop.permute.xlu0 %3345  ;;  %v9196_v48 = vld [vmem:[#allocation5 + $0x7a] ss:$8 sps:$4 sm:$0xff]  }
 0x394   : > { %3365 = vst.msk [vmem:[#allocation6 + $0x98] sm:$0xff] %vm1668_vm0, %v3346_v51  ;;  %v3348_v25 = vpop.permute.xlu1 %3347  ;;  %v9199_v51 = vld [vmem:[#allocation5 + $0x91] ss:$8 sps:$4 sm:$0xff]  }
 0x395   : > { %3366 = vst.msk [vmem:[#allocation6 + $0xb8] sm:$0xff] %vm1668_vm0, %v3348_v25  ;;  %4463 = vrot.lane.b32.xlu0 %v9159_v49, %s9558_s27  ;;  %v9197_v49 = vld [vmem:[#allocation5 + $0x4a] ss:$8 sps:$4 sm:$0xff]   ;;  %v9200_v25 = vld [vmem:[#allocation5 + $0x7a] ss:$8 sps:$4 sm:$0xff]  }
 0x396   : > { %4591 = vrot.lane.b32.xlu1 %v9160_v20, %s9549_s29 }
 0x397   : > { %v3350_v54 = vpop.permute.xlu0 %3349 }
 0x398   : > { %3367 = vst.msk [vmem:[#allocation6 + $0xd8] sm:$0xff] %vm1668_vm0, %v3350_v54  ;;  %v3352_v55 = vpop.permute.xlu1 %3351 }
 0x399   : > { %3368 = vst.msk [vmem:[#allocation6 + $0xf8] sm:$0xff] %vm1668_vm0, %v3352_v55  ;;  %3901 = vrot.lane.b32.xlu0 %v9161_v52, %s9558_s27  ;;  %v9271_v52 = vld [vmem:[#allocation5 + $0x81] ss:$8 sps:$4 sm:$0xff]   ;;  %v9202_v55 = vld [vmem:[#allocation5 + $0x92] ss:$8 sps:$4 sm:$0xff]  }
 0x39a   : > { %4248 = vrot.lane.b32.xlu1 %v9162_v53, %s9555_s24  ;;  %4544 = vst.msk [vmem:[#allocation7 + $0x70] sm:$0xff] %vm1522_vm15, %v9271_v52 }
 0x39b   : > { %v3466_v59 = vpop.permute.xlu0 %3465 }
 0x39c   : > { %3489 = vst.msk [vmem:[#allocation7] sm:$0xff] %vm1595_vm14, %v3466_v59  ;;  %v3468_v60 = vpop.permute.xlu1 %3467 }
 0x39d   : > { %3490 = vst.msk [vmem:[#allocation7 + $0x20] sm:$0xff] %vm1595_vm14, %v3468_v60  ;;  %4664 = vrot.lane.b32.xlu0 %v9165_v56, %s9553_s7  ;;  %v9203_v56 = vld [vmem:[#allocation5 + $0x50] ss:$8 sps:$4 sm:$0xff]  }
 0x39e   : > { %3686 = vrot.lane.b32.xlu1 %v9166_v58, %s9555_s24  ;;  %v9274_v58 = vld [vmem:[#allocation5 + $0xa0] ss:$8 sps:$4 sm:$0xff]  }
 0x39f   : > { %v3470_v1 = vpop.permute.xlu0 %3469  ;;  %5106 = vst.msk [vmem:[#allocation7 + $0x58] sm:$0xff] %vm1522_vm15, %v9274_v58  ;;  %v9304_v58 = vld [vmem:[#allocation5 + $0xa2] ss:$8 sps:$4 sm:$0xff]  }
 0x3a0   : > { %3491 = vst.msk [vmem:[#allocation7 + $0x40] sm:$0xff] %vm1595_vm14, %v3470_v1  ;;  %v3472_v2 = vpop.permute.xlu1 %3471 }
 0x3a1   : > { %3492 = vst.msk [vmem:[#allocation7 + $0x60] sm:$0xff] %vm1595_vm14, %v3472_v2  ;;  %4034 = vrot.lane.b32.xlu0 %v9169_v62, %s9549_s29  ;;  %v9204_v62 = vld [vmem:[#allocation5 + $0x92] ss:$8 sps:$4 sm:$0xff]  }
 0x3a2   : > { %4320 = vrot.lane.b32.xlu1 %v9170_v63, %s9556_s25  ;;  %v9205_v63 = vld [vmem:[#allocation5 + $0x80] ss:$8 sps:$4 sm:$0xff]   ;;  %3985 = vst.msk [vmem:[#allocation7 + $0xc8] sm:$0xff] %vm1522_vm15, %v9304_v58 }
 0x3a3   : > { %v3474_v5 = vpop.permute.xlu0 %3473 }
 0x3a4   : > { %3493 = vst.msk [vmem:[#allocation7 + $0x80] sm:$0xff] %vm1595_vm14, %v3474_v5  ;;  %v3476_v6 = vpop.permute.xlu1 %3475  ;;  %v9207_v5 = vld [vmem:[#allocation5 + $0x98] ss:$8 sps:$4 sm:$0xff]  }
 0x3a5   : > { %3494 = vst.msk [vmem:[#allocation7 + $0xa0] sm:$0xff] %vm1595_vm14, %v3476_v6  ;;  %4736 = vrot.lane.b32.xlu0 %v9173_v3, %s9554_s23  ;;  %v9206_v3 = vld [vmem:[#allocation5 + $0x82] ss:$8 sps:$4 sm:$0xff]  }
 0x3a6   : > { %3758 = vrot.lane.b32.xlu1 %v9174_v4, %s9556_s25  ;;  %v1456_v4 = vld [vmem:[%s10513_s14 + $0x3c] sm:$0xf]  ;;  %s5920_s14 = sld [smem:[#allocation8]] }
 0x3a7   : > { %v3478_v9 = vpop.permute.xlu0 %3477  ;;  %1473 = vst.msk [vmem:[#allocation5 + $0xe1] sm:$0xf] %vm1424_vm6, %v1456_v4 }
 0x3a8   : > { %3495 = vst.msk [vmem:[#allocation7 + $0xc0] sm:$0xff] %vm1595_vm14, %v3478_v9  ;;  %v3480_v10 = vpop.permute.xlu1 %3479 }
 0x3a9   : > { %3496 = vst.msk [vmem:[#allocation7 + $0xe0] sm:$0xff] %vm1595_vm14, %v3480_v10  ;;  %4106 = vrot.lane.b32.xlu0 %v9177_v7, %s9553_s7 }
 0x3aa   : > { %4392 = vrot.lane.b32.xlu1 %v9178_v18, %s9557_s26  ;;  %v9208_v18 = vld [vmem:[#allocation5 + $0xa1] ss:$8 sps:$4 sm:$0xff]  }
 0x3ab   : > { %v3538_v12 = vpop.permute.xlu0 %3537 }
 0x3ac   : > { %3561 = vst.msk [vmem:[#allocation7] sm:$0xff] %vm1668_vm0, %v3538_v12  ;;  %v3540_v13 = vpop.permute.xlu1 %3539  ;;  %v9212_v12 = vld [vmem:[#allocation5 + $0xa0] ss:$8 sps:$4 sm:$0xff]  }
 0x3ad   : > { %3562 = vst.msk [vmem:[#allocation7 + $0x20] sm:$0xff] %vm1668_vm0, %v3540_v13  ;;  %4808 = vrot.lane.b32.xlu0 %v9179_v11, %s9555_s24 }
 0x3ae   : > { %3831 = vrot.lane.b32.xlu1 %v9180_v24, %s9557_s26  ;;  %v9281_v24 = vld [vmem:[#allocation5 + $0x82] ss:$8 sps:$4 sm:$0xff]  }
 0x3af   : > { %v3542_v17 = vpop.permute.xlu0 %3541  ;;  %3984 = vst.msk [vmem:[#allocation7 + $0xa8] sm:$0xff] %vm1522_vm15, %v9281_v24 }
 0x3b0   : > { %3563 = vst.msk [vmem:[#allocation7 + $0x40] sm:$0xff] %vm1668_vm0, %v3542_v17  ;;  %v3544_v19 = vpop.permute.xlu1 %3543  ;;  %v9214_v17 = vld [vmem:[#allocation5 + $0xa2] ss:$8 sps:$4 sm:$0xff]  }
 0x3b1   : > { %3564 = vst.msk [vmem:[#allocation7 + $0x60] sm:$0xff] %vm1668_vm0, %v3544_v19  ;;  %4178 = vrot.lane.b32.xlu0 %v9181_v14, %s9554_s23 }
 0x3b2   : > { %4465 = vrot.lane.b32.xlu1 %v9182_v16, %s9558_s27  ;;  %v9213_v16 = vld [vmem:[#allocation5 + $0x99] ss:$8 sps:$4 sm:$0xff]  }
 0x3b3   : > { %v3546_v26 = vpop.permute.xlu0 %3545 }
 0x3b4   : > { %3565 = vst.msk [vmem:[#allocation7 + $0x80] sm:$0xff] %vm1668_vm0, %v3546_v26  ;;  %v3548_v0 = vpop.permute.xlu1 %3547 }
 0x3b5   : > { %3566 = vst.msk [vmem:[#allocation7 + $0xa0] sm:$0xff] %vm1668_vm0, %v3548_v0  ;;  %4593 = vrot.lane.b32.xlu0 %v9183_v21, %s9549_s29 }
 0x3b6   : > { %4881 = vrot.lane.b32.xlu1 %v9184_v23, %s9556_s25  ;;  %v9216_v23 = vld [vmem:[#allocation5 + $0xa0] ss:$8 sps:$4 sm:$0xff]  }
 0x3b7   : > { %v3550_v29 = vpop.permute.xlu0 %3549 }
 0x3b8   : > { %3567 = vst.msk [vmem:[#allocation7 + $0xc0] sm:$0xff] %vm1668_vm0, %v3550_v29  ;;  %v3552_v30 = vpop.permute.xlu1 %3551 }
 0x3b9   : > { %3568 = vst.msk [vmem:[#allocation7 + $0xe0] sm:$0xff] %vm1668_vm0, %v3552_v30  ;;  %5154 = vrot.lane.b32.xlu0 %v9185_v27, %s9549_s29  ;;  %v9217_v27 = vld [vmem:[#allocation5 + $0x99] ss:$8 sps:$4 sm:$0xff]  }
 0x3ba   : > { %3903 = vrot.lane.b32.xlu1 %v9186_v28, %s9558_s27  ;;  %v9218_v28 = vld [vmem:[#allocation5 + $0xa1] ss:$8 sps:$4 sm:$0xff]  }
 0x3bb   : > { %v3611_v34 = vpop.permute.xlu0 %3610 }
 0x3bc   : > { %3634 = vst.msk [vmem:[#allocation7] sm:$0xff] %vm1742_vm1, %v3611_v34  ;;  %v3613_v35 = vpop.permute.xlu1 %3612 }
 0x3bd   : > { %3635 = vst.msk [vmem:[#allocation7 + $0x20] sm:$0xff] %vm1742_vm1, %v3613_v35  ;;  %4250 = vrot.lane.b32.xlu0 %v9187_v31, %s9555_s24  ;;  %v9220_v31 = vld [vmem:[#allocation5 + $0x6a] ss:$8 sps:$4 sm:$0xff]  }
 0x3be   : > { %4666 = vrot.lane.b32.xlu1 %v9188_v33, %s9553_s7  ;;  %v9222_v35 = vld [vmem:[#allocation5 + $0xa1] ss:$8 sps:$4 sm:$0xff]  }
 0x3bf   : > { %v3615_v38 = vpop.permute.xlu0 %3614 }
 0x3c0   : > { %3636 = vst.msk [vmem:[#allocation7 + $0x40] sm:$0xff] %vm1742_vm1, %v3615_v38  ;;  %v3617_v39 = vpop.permute.xlu1 %3616 }
 0x3c1   : > { %3637 = vst.msk [vmem:[#allocation7 + $0x60] sm:$0xff] %vm1742_vm1, %v3617_v39  ;;  %4953 = vrot.lane.b32.xlu0 %v9189_v36, %s9557_s26  ;;  %v9223_v36 = vld [vmem:[#allocation5 + $0x9a] ss:$8 sps:$4 sm:$0xff]  }
 0x3c2   : > { %5226 = vrot.lane.b32.xlu1 %v9190_v37, %s9553_s7  ;;  %v9294_v37 = vld [vmem:[#allocation5 + $0xa1] ss:$8 sps:$4 sm:$0xff]  }
 0x3c3   : > { %v3619_v42 = vpop.permute.xlu0 %3618  ;;  %4545 = vst.msk [vmem:[#allocation7 + $0x90] sm:$0xff] %vm1522_vm15, %v9294_v37 }
 0x3c4   : > { %3638 = vst.msk [vmem:[#allocation7 + $0x80] sm:$0xff] %vm1742_vm1, %v3619_v42  ;;  %v3621_v44 = vpop.permute.xlu1 %3620  ;;  %v9225_v42 = vld [vmem:[#allocation5 + $0x70] ss:$8 sps:$4 sm:$0xff]  }
 0x3c5   : > { %3639 = vst.msk [vmem:[#allocation7 + $0xa0] sm:$0xff] %vm1742_vm1, %v3621_v44  ;;  %3688 = vrot.lane.b32.xlu0 %v9191_v40, %s9555_s24  ;;  %v9297_v44 = vld [vmem:[#allocation5 + $0xb0] ss:$8 sps:$4 sm:$0xff]  }
 0x3c6   : > { %4036 = vrot.lane.b32.xlu1 %v9192_v41, %s9549_s29  ;;  %v9224_v41 = vld [vmem:[#allocation5 + $0xa2] ss:$8 sps:$4 sm:$0xff]   ;;  %5107 = vst.msk [vmem:[#allocation7 + $0x78] sm:$0xff] %vm1522_vm15, %v9297_v44  ;;  %v9315_v44 = vld [vmem:[#allocation5 + $0xb2] ss:$8 sps:$4 sm:$0xff]  }
 0x3c7   : > { %v4590_v46 = vpop.permute.xlu0 %4589  ;;  %3986 = vst.msk [vmem:[#allocation7 + $0xe8] sm:$0xff] %vm1522_vm15, %v9315_v44 }
 0x3c8   : > { %4613 = vst.msk [vmem:[#allocation7 + $0x10] sm:$0xff] %vm1595_vm14, %v4590_v46  ;;  %v4663_v47 = vpop.permute.xlu1 %4662 }
 0x3c9   : > { %4686 = vst.msk [vmem:[#allocation7 + $0x10] sm:$0xff] %vm1668_vm0, %v4663_v47  ;;  %4322 = vrot.lane.b32.xlu0 %v9194_v45, %s9556_s25  ;;  %v9226_v47 = vld [vmem:[#allocation5 + $0xa2] ss:$8 sps:$4 sm:$0xff]  }
 0x3ca   : > { %4738 = vrot.lane.b32.xlu1 %v9195_v43, %s9554_s23 }
 0x3cb   : > { %v4735_v20 = vpop.permute.xlu0 %4734 }
 0x3cc   : > { %4758 = vst.msk [vmem:[#allocation7 + $0x10] sm:$0xff] %vm1742_vm1, %v4735_v20  ;;  %v4807_v50 = vpop.permute.xlu1 %4806 }
 0x3cd   : > { %4830 = vst.msk [vmem:[#allocation7 + $0x10] sm:$0xff] %vm1815_vm2, %v4807_v50  ;;  %5025 = vrot.lane.b32.xlu0 %v9196_v48, %s9558_s27  ;;  %v9227_v48 = vld [vmem:[#allocation5 + $0xa0] ss:$8 sps:$4 sm:$0xff]  }
 0x3ce   : > { %3760 = vrot.lane.b32.xlu1 %v9197_v49, %s9556_s25  ;;  %v9228_v50 = vld [vmem:[#allocation5 + $0xa2] ss:$8 sps:$4 sm:$0xff]  }
 0x3cf   : > { %v4880_v53 = vpop.permute.xlu0 %4879 }
 0x3d0   : > { %4903 = vst.msk [vmem:[#allocation7 + $0x10] sm:$0xff] %vm1888_vm3, %v4880_v53  ;;  %v5153_v54 = vpop.permute.xlu1 %5152  ;;  %v9231_v53 = vld [vmem:[#allocation5 + $0xb1] ss:$8 sps:$4 sm:$0xff]  }
 0x3d1   : > { %5176 = vst.msk [vmem:[#allocation7 + $0x18] sm:$0xff] %vm1595_vm14, %v5153_v54  ;;  %4108 = vrot.lane.b32.xlu0 %v9199_v51, %s9553_s7  ;;  %v9229_v51 = vld [vmem:[#allocation5 + $0xa8] ss:$8 sps:$4 sm:$0xff]  }
 0x3d2   : > { %4394 = vrot.lane.b32.xlu1 %v9200_v25, %s9557_s26  ;;  %v9232_v54 = vld [vmem:[#allocation5 + $0x71] ss:$8 sps:$4 sm:$0xff]  }
 0x3d3   : > { %v4029_v59 = vpop.permute.xlu0 %4028 }
 0x3d4   : > { %4052 = vst.msk [vmem:[#allocation7 + $0x8] sm:$0xff] %vm1595_vm14, %v4029_v59  ;;  %v4952_v60 = vpop.permute.xlu1 %4951  ;;  %v9233_v59 = vld [vmem:[#allocation5 + $0xa8] ss:$8 sps:$4 sm:$0xff]  }
 0x3d5   : > { %4975 = vst.msk [vmem:[#allocation7 + $0x10] sm:$0xff] %vm1962_vm4, %v4952_v60  ;;  %4810 = vrot.lane.b32.xlu0 %v9202_v55, %s9555_s24  ;;  %v9234_v60 = vld [vmem:[#allocation5 + $0xc0] ss:$8 sps:$4 sm:$0xff]  }
 0x3d6   : > { %3833 = vrot.lane.b32.xlu1 %v9203_v56, %s9557_s26 }
 0x3d7   : > { %v5225_v1 = vpop.permute.xlu0 %5224 }
 0x3d8   : > { %5248 = vst.msk [vmem:[#allocation7 + $0x18] sm:$0xff] %vm1668_vm0, %v5225_v1  ;;  %v4101_v2 = vpop.permute.xlu1 %4100  ;;  %v9235_v1 = vld [vmem:[#allocation5 + $0xa9] ss:$8 sps:$4 sm:$0xff]  }
 0x3d9   : > { %4124 = vst.msk [vmem:[#allocation7 + $0x8] sm:$0xff] %vm1668_vm0, %v4101_v2  ;;  %4180 = vrot.lane.b32.xlu0 %v9204_v62, %s9554_s23  ;;  %v9236_v2 = vld [vmem:[#allocation5 + $0xb2] ss:$8 sps:$4 sm:$0xff]  }
 0x3da   : > { %4467 = vrot.lane.b32.xlu1 %v9205_v63, %s9558_s27 }
 0x3db   : > { %v5024_v6 = vpop.permute.xlu0 %5023 }
 0x3dc   : > { %5047 = vst.msk [vmem:[#allocation7 + $0x10] sm:$0xff] %vm2035_vm5, %v5024_v6  ;;  %v4173_v7 = vpop.permute.xlu1 %4172  ;;  %v9238_v6 = vld [vmem:[#allocation5 + $0x79] ss:$8 sps:$4 sm:$0xff]  }
 0x3dd   : > { %4196 = vst.msk [vmem:[#allocation7 + $0x8] sm:$0xff] %vm1742_vm1, %v4173_v7  ;;  %4595 = vrot.lane.b32.xlu0 %v9206_v3, %s9549_s29  ;;  %v9239_v7 = vld [vmem:[#allocation5 + $0xc0] ss:$8 sps:$4 sm:$0xff]  }
 0x3de   : > { %4883 = vrot.lane.b32.xlu1 %v9207_v5, %s9556_s25 }
 0x3df   : > { %v4245_v9 = vpop.permute.xlu0 %4244  ;;  %v5345_v10 = vld [vmem:[#allocation7 + $0x18] sm:$0xff] }
 0x3e0   : > { %4268 = vst.msk [vmem:[#allocation7 + $0x8] sm:$0xff] %vm1815_vm2, %v4245_v9  ;;  %8346 = vmatprep.mubr.msk.f32.mxu0 %vm5428_vm7, %v5345_v10  ;;  %v3683_v11 = vpop.permute.xlu1 %3682  ;;  %v9240_v10 = vld [vmem:[#allocation5 + $0xa9] ss:$8 sps:$4 sm:$0xff]  }
 0x3e1   : > { %3706 = vst.msk [vmem:[#allocation7] sm:$0xff] %vm1815_vm2, %v3683_v11  ;;  %5156 = vrot.lane.b32.xlu0 %v9208_v18, %s9549_s29  ;;  %v9241_v11 = vld [vmem:[#allocation5 + $0xc1] ss:$8 sps:$4 sm:$0xff]  }
 0x3e2   : > { %3905 = vrot.lane.b32.xlu1 %v9209_v8, %s9558_s27 }
 0x3e3   : > { %v4031_v13 = vpop.permute.xlu0 %4030  ;;  %v5344_v14 = vld [vmem:[#allocation7 + $0x10] sm:$0xff] }
 0x3e4   : > { %4053 = vst.msk [vmem:[#allocation7 + $0x28] sm:$0xff] %vm1595_vm14, %v4031_v13  ;;  %5623 = vmatmul.mubr.f32.vlgmr.msra.gmra.mrb[8].mxu0 %v5344_v14  ;;  %v4317_v15 = vpop.permute.xlu1 %4316  ;;  %v9243_v13 = vld [vmem:[#allocation5 + $0x7a] ss:$8 sps:$4 sm:$0xff]  }
 0x3e5   : > { %4340 = vst.msk [vmem:[#allocation7 + $0x8] sm:$0xff] %vm1888_vm3, %v4317_v15  ;;  %4252 = vrot.lane.b32.xlu0 %v9211_v57, %s9555_s24 }
 0x3e6   : > { %4668 = vrot.lane.b32.xlu1 %v9212_v12, %s9553_s7  ;;  %v9242_v12 = vld [vmem:[#allocation5 + $0xaa] ss:$8 sps:$4 sm:$0xff]  }
 0x3e7   : > { %v3755_v19 = vpop.permute.xlu0 %3754 }
 0x3e8   : > { %3778 = vst.msk [vmem:[#allocation7] sm:$0xff] %vm1888_vm3, %v3755_v19  ;;  %v4103_v21 = vpop.permute.xlu1 %4102  ;;  %v9245_v19 = vld [vmem:[#allocation5 + $0xaa] ss:$8 sps:$4 sm:$0xff]  }
 0x3e9   : > { %4125 = vst.msk [vmem:[#allocation7 + $0x28] sm:$0xff] %vm1668_vm0, %v4103_v21  ;;  %4955 = vrot.lane.b32.xlu0 %v9213_v16, %s9557_s26  ;;  %v9244_v16 = vld [vmem:[#allocation5 + $0xc1] ss:$8 sps:$4 sm:$0xff]  }
 0x3ea   : > { %5228 = vrot.lane.b32.xlu1 %v9214_v17, %s9553_s7  ;;  %v9313_v17 = vld [vmem:[#allocation5 + $0xb1] ss:$8 sps:$4 sm:$0xff]  }
 0x3eb   : > { %v4389_v26 = vpop.permute.xlu0 %4388  ;;  %4546 = vst.msk [vmem:[#allocation7 + $0xb0] sm:$0xff] %vm1522_vm15, %v9313_v17 }
 0x3ec   : > { %4412 = vst.msk [vmem:[#allocation7 + $0x8] sm:$0xff] %vm1962_vm4, %v4389_v26  ;;  %v3828_v0 = vpop.permute.xlu1 %3827  ;;  %v9314_v26 = vld [vmem:[#allocation5 + $0xd0] ss:$8 sps:$4 sm:$0xff]  }
 0x3ed   : > { %3851 = vst.msk [vmem:[#allocation7] sm:$0xff] %vm1962_vm4, %v3828_v0  ;;  %3690 = vrot.lane.b32.xlu0 %v9215_v22, %s9555_s24  ;;  %v9247_v0 = vld [vmem:[#allocation5 + $0x80] ss:$8 sps:$4 sm:$0xff]  }
 0x3ee   : > { %4038 = vrot.lane.b32.xlu1 %v9216_v23, %s9549_s29  ;;  %v9246_v23 = vld [vmem:[#allocation5 + $0xc2] ss:$8 sps:$4 sm:$0xff]   ;;  %5108 = vst.msk [vmem:[#allocation7 + $0x98] sm:$0xff] %vm1522_vm15, %v9314_v26 }
 0x3ef   : > { %v4175_v29 = vpop.permute.xlu0 %4174 }
 0x3f0   : > { %4197 = vst.msk [vmem:[#allocation7 + $0x28] sm:$0xff] %vm1742_vm1, %v4175_v29  ;;  %v4462_v30 = vpop.permute.xlu1 %4461  ;;  %v9249_v29 = vld [vmem:[#allocation5 + $0xc2] ss:$8 sps:$4 sm:$0xff]  }
 0x3f1   : > { %4485 = vst.msk [vmem:[#allocation7 + $0x8] sm:$0xff] %vm2035_vm5, %v4462_v30  ;;  %4324 = vrot.lane.b32.xlu0 %v9217_v27, %s9556_s25  ;;  %v9250_v30 = vld [vmem:[#allocation5 + $0xb0] ss:$8 sps:$4 sm:$0xff]  }
 0x3f2   : > { %4740 = vrot.lane.b32.xlu1 %v9218_v28, %s9554_s23 }
 0x3f3   : > { %v3900_v33 = vpop.permute.xlu0 %3899 }
 0x3f4   : > { %3923 = vst.msk [vmem:[#allocation7] sm:$0xff] %vm2035_vm5, %v3900_v33  ;;  %v4247_v34 = vpop.permute.xlu1 %4246  ;;  %v9252_v33 = vld [vmem:[#allocation5 + $0xb2] ss:$8 sps:$4 sm:$0xff]  }
 0x3f5   : > { %4269 = vst.msk [vmem:[#allocation7 + $0x28] sm:$0xff] %vm1815_vm2, %v4247_v34  ;;  %5027 = vrot.lane.b32.xlu0 %v9219_v32, %s9558_s27  ;;  %v9253_v34 = vld [vmem:[#allocation5 + $0xc8] ss:$8 sps:$4 sm:$0xff]  }
 0x3f6   : > { %3762 = vrot.lane.b32.xlu1 %v9220_v31, %s9556_s25 }
 0x3f7   : > { %v3685_v38 = vpop.permute.xlu0 %3684 }
 0x3f8   : > { %3707 = vst.msk [vmem:[#allocation7 + $0x20] sm:$0xff] %vm1815_vm2, %v3685_v38  ;;  %v4033_v39 = vpop.permute.xlu1 %4032  ;;  %v5343_v40 = vld [vmem:[#allocation7 + $0x8] sm:$0xff]  ;;  %v9254_v38 = vld [vmem:[#allocation5 + $0xd1] ss:$8 sps:$4 sm:$0xff]  }
 0x3f9   : > { %4054 = vst.msk [vmem:[#allocation7 + $0x48] sm:$0xff] %vm1595_vm14, %v4033_v39  ;;  %4110 = vrot.lane.b32.xlu0 %v9222_v35, %s9553_s7  ;;  %5517 = vmatprep.mubr.f32.mxu1 %v5343_v40  ;;  %v9255_v39 = vld [vmem:[#allocation5 + $0x98] ss:$8 sps:$4 sm:$0xff]  }
 0x3fa   : > { %4396 = vrot.lane.b32.xlu1 %v9223_v36, %s9557_s26 }
 0x3fb   : > { %v4319_v45 = vpop.permute.xlu0 %4318  ;;  %v5342_v43 = vld [vmem:[#allocation7] sm:$0xff] }
 0x3fc   : > { %4341 = vst.msk [vmem:[#allocation7 + $0x28] sm:$0xff] %vm1888_vm3, %v4319_v45  ;;  %5518 = vmatmul.mubr.f32.vlgmr.msra.gmra.mrb[0].mxu1 %v5342_v43  ;;  %v3757_v46 = vpop.permute.xlu1 %3756  ;;  %v9257_v45 = vld [vmem:[#allocation5 + $0xc8] ss:$8 sps:$4 sm:$0xff]  }
 0x3fd   : > { %3779 = vst.msk [vmem:[#allocation7 + $0x20] sm:$0xff] %vm1888_vm3, %v3757_v46  ;;  %4812 = vrot.lane.b32.xlu0 %v9224_v41, %s9555_s24 }
 0x3fe   : > { %3835 = vrot.lane.b32.xlu1 %v9225_v42, %s9557_s26  ;;  %v9256_v42 = vld [vmem:[#allocation5 + $0x81] ss:$8 sps:$4 sm:$0xff]  }
 0x3ff   : > { %v4105_v49 = vpop.permute.xlu0 %4104 }
 0x400   : > { %4126 = vst.msk [vmem:[#allocation7 + $0x48] sm:$0xff] %vm1668_vm0, %v4105_v49  ;;  %v4391_v20 = vpop.permute.xlu1 %4390  ;;  %v9260_v49 = vld [vmem:[#allocation5 + $0xc9] ss:$8 sps:$4 sm:$0xff]  }
 0x401   : > { %4413 = vst.msk [vmem:[#allocation7 + $0x28] sm:$0xff] %vm1962_vm4, %v4391_v20  ;;  %4182 = vrot.lane.b32.xlu0 %v9226_v47, %s9554_s23 }
 0x402   : > { %4469 = vrot.lane.b32.xlu1 %v9227_v48, %s9558_s27  ;;  %v9259_v48 = vld [vmem:[#allocation5 + $0xd0] ss:$8 sps:$4 sm:$0xff]  }
 0x403   : > { %v3830_v25 = vpop.permute.xlu0 %3829 }
 0x404   : > { %3852 = vst.msk [vmem:[#allocation7 + $0x20] sm:$0xff] %vm1962_vm4, %v3830_v25  ;;  %v4177_v52 = vpop.permute.xlu1 %4176  ;;  %v9262_v25 = vld [vmem:[#allocation5 + $0x99] ss:$8 sps:$4 sm:$0xff]  }
 0x405   : > { %4198 = vst.msk [vmem:[#allocation7 + $0x48] sm:$0xff] %vm1742_vm1, %v4177_v52  ;;  %4597 = vrot.lane.b32.xlu0 %v9228_v50, %s9549_s29 }
 0x406   : > { %4885 = vrot.lane.b32.xlu1 %v9229_v51, %s9556_s25  ;;  %v9261_v51 = vld [vmem:[#allocation5 + $0xd2] ss:$8 sps:$4 sm:$0xff]  }
 0x407   : > { %v4464_v55 = vpop.permute.xlu0 %4463 }
 0x408   : > { %4486 = vst.msk [vmem:[#allocation7 + $0x28] sm:$0xff] %vm2035_vm5, %v4464_v55  ;;  %v4592_v56 = vpop.permute.xlu1 %4591  ;;  %v9263_v55 = vld [vmem:[#allocation5 + $0xd0] ss:$8 sps:$4 sm:$0xff]  }
 0x409   : > { %4614 = vst.msk [vmem:[#allocation7 + $0x30] sm:$0xff] %vm1595_vm14, %v4592_v56  ;;  %5158 = vrot.lane.b32.xlu0 %v9231_v53, %s9549_s29  ;;  %v9264_v56 = vld [vmem:[#allocation5 + $0xc9] ss:$8 sps:$4 sm:$0xff]  }
 0x40a   : > { %3907 = vrot.lane.b32.xlu1 %v9232_v54, %s9558_s27 }
 0x40b   : > { %v3902_v62 = vpop.permute.xlu0 %3901 }
 0x40c   : > { %3924 = vst.msk [vmem:[#allocation7 + $0x20] sm:$0xff] %vm2035_vm5, %v3902_v62  ;;  %v4249_v63 = vpop.permute.xlu1 %4248  ;;  %v9266_v62 = vld [vmem:[#allocation5 + $0xca] ss:$8 sps:$4 sm:$0xff]  }
 0x40d   : > { %4270 = vst.msk [vmem:[#allocation7 + $0x48] sm:$0xff] %vm1815_vm2, %v4249_v63  ;;  %4254 = vrot.lane.b32.xlu0 %v9233_v59, %s9555_s24 }
 0x40e   : > { %4670 = vrot.lane.b32.xlu1 %v9234_v60, %s9553_s7  ;;  %v9265_v60 = vld [vmem:[#allocation5 + $0xd1] ss:$8 sps:$4 sm:$0xff]  }
 0x40f   : > { %v4665_v3 = vpop.permute.xlu0 %4664  ;;  %v5347_v4 = vld [vmem:[#allocation7 + $0x28] sm:$0xff] }
 0x410   : > { %4687 = vst.msk [vmem:[#allocation7 + $0x30] sm:$0xff] %vm1668_vm0, %v4665_v3  ;;  %5522 = vmatprep.mubr.f32.mxu1 %v5347_v4  ;;  %v3687_v5 = vpop.permute.xlu1 %3686  ;;  %v9268_v3 = vld [vmem:[#allocation5 + $0xd1] ss:$8 sps:$4 sm:$0xff]  }
 0x411   : > { %3708 = vst.msk [vmem:[#allocation7 + $0x40] sm:$0xff] %vm1815_vm2, %v3687_v5  ;;  %4957 = vrot.lane.b32.xlu0 %v9235_v1, %s9557_s26 }
 0x412   : > { %5230 = vrot.lane.b32.xlu1 %v9236_v2, %s9553_s7  ;;  %v9267_v2 = vld [vmem:[#allocation5 + $0x9a] ss:$8 sps:$4 sm:$0xff]  }
 0x413   : > { %v4035_v18 = vpop.permute.xlu0 %4034  ;;  %v5346_v8 = vld [vmem:[#allocation7 + $0x20] sm:$0xff] }
 0x414   : > { %4055 = vst.msk [vmem:[#allocation7 + $0x68] sm:$0xff] %vm1595_vm14, %v4035_v18  ;;  %5523 = vmatmul.mubr.f32.gmra.mrb[2].mxu1 %v5346_v8  ;;  %v4321_v9 = vpop.permute.xlu1 %4320  ;;  %v9269_v18 = vld [vmem:[#allocation5 + $0xca] ss:$8 sps:$4 sm:$0xff]  }
 0x415   : > { %4342 = vst.msk [vmem:[#allocation7 + $0x48] sm:$0xff] %vm1888_vm3, %v4321_v9  ;;  %3692 = vrot.lane.b32.xlu0 %v9238_v6, %s9555_s24  ;;  %v9270_v8 = vld [vmem:[#allocation5 + $0xd2] ss:$8 sps:$4 sm:$0xff]  }
 0x416   : > { %4040 = vrot.lane.b32.xlu1 %v9239_v7, %s9549_s29  ;;  %v9316_v7 = vld [vmem:[#allocation5 + $0xd1] ss:$8 sps:$4 sm:$0xff]  }
 0x417   : > { %v4737_v24 = vpop.permute.xlu0 %4736  ;;  %4547 = vst.msk [vmem:[#allocation7 + $0xd0] sm:$0xff] %vm1522_vm15, %v9316_v7  ;;  %v5310_v7 = vld [vmem:[%s12325_s4 + $0xb0] sm:$0xff] }
 0x418   : > { %4759 = vst.msk [vmem:[#allocation7 + $0x30] sm:$0xff] %vm1742_vm1, %v4737_v24  ;;  %v3759_v57 = vpop.permute.xlu1 %3758  ;;  %v9272_v24 = vld [vmem:[#allocation5 + $0xa0] ss:$8 sps:$4 sm:$0xff]  }
 0x419   : > { %3780 = vst.msk [vmem:[#allocation7 + $0x40] sm:$0xff] %vm1888_vm3, %v3759_v57  ;;  %4326 = vrot.lane.b32.xlu0 %v9240_v10, %s9556_s25  ;;  %v9273_v57 = vld [vmem:[#allocation5 + $0xd2] ss:$8 sps:$4 sm:$0xff]  }
 0x41a   : > { %4742 = vrot.lane.b32.xlu1 %v9241_v11, %s9554_s23  ;;  %v9317_v11 = vld [vmem:[#allocation5 + $0xe0] ss:$8 sps:$4 sm:$0xff]  }
 0x41b   : > { %v4107_v14 = vpop.permute.xlu0 %4106  ;;  %5109 = vst.msk [vmem:[#allocation7 + $0xb8] sm:$0xff] %vm1522_vm15, %v9317_v11  ;;  %v5295_v11 = vld [vmem:[%s12325_s4 + $0x38] sm:$0xff] }
 0x41c   : > { %4127 = vst.msk [vmem:[#allocation7 + $0x68] sm:$0xff] %vm1668_vm0, %v4107_v14  ;;  %v4393_v15 = vpop.permute.xlu1 %4392  ;;  %v9275_v14 = vld [vmem:[#allocation5 + $0xd0] ss:$8 sps:$4 sm:$0xff]  }
 0x41d   : > { %4414 = vst.msk [vmem:[#allocation7 + $0x48] sm:$0xff] %vm1962_vm4, %v4393_v15  ;;  %5029 = vrot.lane.b32.xlu0 %v9242_v12, %s9558_s27  ;;  %v9276_v15 = vld [vmem:[#allocation5 + $0xd2] ss:$8 sps:$4 sm:$0xff]  }
 0x41e   : > { %3764 = vrot.lane.b32.xlu1 %v9243_v13, %s9556_s25 }
 0x41f   : > { %v4809_v21 = vpop.permute.xlu0 %4808 }
 0x420   : > { %4831 = vst.msk [vmem:[#allocation7 + $0x30] sm:$0xff] %vm1815_vm2, %v4809_v21  ;;  %v3832_v22 = vpop.permute.xlu1 %3831  ;;  %v9277_v21 = vld [vmem:[#allocation5 + $0xd8] ss:$8 sps:$4 sm:$0xff]  }
 0x421   : > { %3853 = vst.msk [vmem:[#allocation7 + $0x40] sm:$0xff] %vm1962_vm4, %v3832_v22  ;;  %4112 = vrot.lane.b32.xlu0 %v9244_v16, %s9553_s7  ;;  %v9278_v22 = vld [vmem:[#allocation5 + $0xe1] ss:$8 sps:$4 sm:$0xff]  }
 0x422   : > { %4398 = vrot.lane.b32.xlu1 %v9245_v19, %s9557_s26 }
 0x423   : > { %v4179_v27 = vpop.permute.xlu0 %4178 }
 0x424   : > { %4199 = vst.msk [vmem:[#allocation7 + $0x68] sm:$0xff] %vm1742_vm1, %v4179_v27  ;;  %v4466_v28 = vpop.permute.xlu1 %4465  ;;  %v9280_v27 = vld [vmem:[#allocation5 + $0xa1] ss:$8 sps:$4 sm:$0xff]  }
 0x425   : > { %4487 = vst.msk [vmem:[#allocation7 + $0x48] sm:$0xff] %vm2035_vm5, %v4466_v28  ;;  %4814 = vrot.lane.b32.xlu0 %v9246_v23, %s9555_s24 }
 0x426   : > { %3837 = vrot.lane.b32.xlu1 %v9247_v0, %s9557_s26  ;;  %v9279_v0 = vld [vmem:[#allocation5 + $0xa8] ss:$8 sps:$4 sm:$0xff]  }
 0x427   : > { %v4594_v32 = vpop.permute.xlu0 %4593 }
 0x428   : > { %4615 = vst.msk [vmem:[#allocation7 + $0x50] sm:$0xff] %vm1595_vm14, %v4594_v32  ;;  %v4882_v31 = vpop.permute.xlu1 %4881  ;;  %v9282_v32 = vld [vmem:[#allocation5 + $0xd8] ss:$8 sps:$4 sm:$0xff]  }
 0x429   : > { %4904 = vst.msk [vmem:[#allocation7 + $0x30] sm:$0xff] %vm1888_vm3, %v4882_v31  ;;  %4184 = vrot.lane.b32.xlu0 %v9249_v29, %s9554_s23  ;;  %v9283_v31 = vld [vmem:[#allocation5 + $0xf0] ss:$8 sps:$4 sm:$0xff]  }
 0x42a   : > { %4471 = vrot.lane.b32.xlu1 %v9250_v30, %s9558_s27 }
 0x42b   : > { %v5155_v35 = vpop.permute.xlu0 %5154 }
 0x42c   : > { %5177 = vst.msk [vmem:[#allocation7 + $0x38] sm:$0xff] %vm1595_vm14, %v5155_v35  ;;  %v3904_v36 = vpop.permute.xlu1 %3903  ;;  %v5351_v37 = vld [vmem:[#allocation7 + $0x48] sm:$0xff]  ;;  %v5304_v35 = vld [vmem:[%s12325_s4 + $0x80] sm:$0xff] }
 0x42d   : > { %3925 = vst.msk [vmem:[#allocation7 + $0x40] sm:$0xff] %vm2035_vm5, %v3904_v36  ;;  %4599 = vrot.lane.b32.xlu0 %v9252_v33, %s9549_s29  ;;  %5527 = vmatprep.mubr.f32.mxu1 %v5351_v37  ;;  %v5305_v36 = vld [vmem:[%s12325_s4 + $0x88] sm:$0xff] }
 0x42e   : > { %4887 = vrot.lane.b32.xlu1 %v9253_v34, %s9556_s25  ;;  %v9284_v37 = vld [vmem:[#allocation5 + $0xd9] ss:$8 sps:$4 sm:$0xff]  }
 0x42f   : > { %v4251_v40 = vpop.permute.xlu0 %4250 }
 0x430   : > { %4271 = vst.msk [vmem:[#allocation7 + $0x68] sm:$0xff] %vm1815_vm2, %v4251_v40  ;;  %v4667_v41 = vpop.permute.xlu1 %4666  ;;  %v5289_v40 = vld [vmem:[%s12325_s4 + $0x8] sm:$0xff] }
 0x431   : > { %4688 = vst.msk [vmem:[#allocation7 + $0x50] sm:$0xff] %vm1668_vm0, %v4667_v41  ;;  %5160 = vrot.lane.b32.xlu0 %v9254_v38, %s9549_s29  ;;  %v8650_v38 = vpack.c.bf16 %v5305_v36, %v5304_v35  ;;  %v9285_v41 = vld [vmem:[#allocation5 + $0xe2] ss:$8 sps:$4 sm:$0xff]  }
 0x432   : > { %3622 = vrot.lane.b32.xlu1 %v9255_v39, %s9554_s23  ;;  %v5288_v39 = vld [vmem:[%s12325_s4] sm:$0xff]  ;;  %v9295_v35 = vld [vmem:[#allocation5 + $0xe0] ss:$8 sps:$4 sm:$0xff]  }
 0x433   : > { %v4954_v43 = vpop.permute.xlu0 %4953  ;;  %8651 = vmatprep.subr.bf16.mxu1 %v8650_v38  ;;  %v5314_v36 = vld [vmem:[%s12325_s4 + $0xd0] sm:$0xff] }
 0x434   : > { %4976 = vst.msk [vmem:[#allocation7 + $0x30] sm:$0xff] %vm1962_vm4, %v4954_v43  ;;  %v5227_v46 = vpop.permute.xlu1 %5226  ;;  %v5350_v47 = vld [vmem:[#allocation7 + $0x40] sm:$0xff] }
 0x435   : > { %5249 = vst.msk [vmem:[#allocation7 + $0x38] sm:$0xff] %vm1668_vm0, %v5227_v46  ;;  %3909 = vrot.lane.b32.xlu0 %v9256_v42, %s9558_s27  ;;  %5528 = vmatmul.mubr.f32.gmra.mrb[4].mxu1 %v5350_v47  ;;  %v8652_v42 = vpack.c.bf16 %v5289_v40, %v5288_v39  ;;  %v5306_v46 = vld [vmem:[%s12325_s4 + $0x90] sm:$0xff]  ;;  %v5307_v47 = vld [vmem:[%s12325_s4 + $0x98] sm:$0xff] }
 0x436   : > { %4256 = vrot.lane.b32.xlu1 %v9257_v45, %s9555_s24  ;;  %v5298_v39 = vld [vmem:[%s12325_s4 + $0x50] sm:$0xff]  ;;  %v5299_v40 = vld [vmem:[%s12325_s4 + $0x58] sm:$0xff] }
 0x437   : > { %v3689_v20 = vpop.permute.xlu0 %3688  ;;  %8653 = vmatpush3.bf16.msra.mxu1 %v8652_v42  ;;  %v9296_v42 = vld [vmem:[#allocation5 + $0xe2] ss:$8 sps:$4 sm:$0xff]  }
 0x438   : > { %3709 = vst.msk [vmem:[#allocation7 + $0x60] sm:$0xff] %vm1815_vm2, %v3689_v20  ;;  %v4037_v50 = vpop.permute.xlu1 %4036  ;;  %v5290_v20 = vld [vmem:[%s12325_s4 + $0x10] sm:$0xff] }
 0x439   : > { %4056 = vst.msk [vmem:[#allocation7 + $0x88] sm:$0xff] %vm1595_vm14, %v4037_v50  ;;  %4672 = vrot.lane.b32.xlu0 %v9259_v48, %s9553_s7  ;;  %v9286_v48 = vld [vmem:[#allocation5 + $0xa9] ss:$8 sps:$4 sm:$0xff]  }
 0x43a   : > { %4959 = vrot.lane.b32.xlu1 %v9260_v49, %s9557_s26  ;;  %v8654_v49 = vpack.c.bf16 %v5307_v47, %v5306_v46  ;;  %v5291_v50 = vld [vmem:[%s12325_s4 + $0x18] sm:$0xff] }
 0x43b   : > { %v4323_v52 = vpop.permute.xlu0 %4322 }
 0x43c   : > { %4343 = vst.msk [vmem:[#allocation7 + $0x68] sm:$0xff] %vm1888_vm3, %v4323_v52  ;;  %v4739_v53 = vpop.permute.xlu1 %4738  ;;  %v5349_v54 = vld [vmem:[#allocation7 + $0x38] sm:$0xff]  ;;  %8655 = vmatprep.subr.bf16.mxu1 %v8654_v49 }
 0x43d   : > { %4760 = vst.msk [vmem:[#allocation7 + $0x50] sm:$0xff] %vm1742_vm1, %v4739_v53  ;;  %5232 = vrot.lane.b32.xlu0 %v9261_v51, %s9553_s7  ;;  %8347 = vmatprep.mubr.msk.f32.mxu0 %vm5428_vm7, %v5349_v54  ;;  %v9287_v51 = vld [vmem:[#allocation5 + $0xd9] ss:$8 sps:$4 sm:$0xff]  }
 0x43e   : > { %3694 = vrot.lane.b32.xlu1 %v9262_v25, %s9555_s24  ;;  %v8656_v25 = vpack.c.bf16 %v5291_v50, %v5290_v20  ;;  %v9288_v54 = vld [vmem:[#allocation5 + $0xf1] ss:$8 sps:$4 sm:$0xff]   ;;  %v5317_v20 = vld [vmem:[%s12325_s4 + $0xe8] sm:$0xff] }
 0x43f   : > { %v5026_v58 = vpop.permute.xlu0 %5025  ;;  %v5316_v49 = vld [vmem:[%s12325_s4 + $0xe0] sm:$0xff] }
 0x440   : > { %5048 = vst.msk [vmem:[#allocation7 + $0x30] sm:$0xff] %vm2035_vm5, %v5026_v58  ;;  %v3761_v59 = vpop.permute.xlu1 %3760  ;;  %8657 = vmatpush3.bf16.msra.mxu1 %v8656_v25  ;;  %v5309_v58 = vld [vmem:[%s12325_s4 + $0xa8] sm:$0xff]  ;;  %v8674_v50 = vpack.c.bf16 %v5317_v20, %v5316_v49 }
 0x441   : > { %3781 = vst.msk [vmem:[#allocation7 + $0x60] sm:$0xff] %vm1888_vm3, %v3761_v59  ;;  %4042 = vrot.lane.b32.xlu0 %v9263_v55, %s9549_s29  ;;  %v9289_v55 = vld [vmem:[#allocation5 + $0xda] ss:$8 sps:$4 sm:$0xff]  }
 0x442   : > { %4328 = vrot.lane.b32.xlu1 %v9264_v56, %s9556_s25  ;;  %v5308_v56 = vld [vmem:[%s12325_s4 + $0xa0] sm:$0xff]  ;;  %v5301_v25 = vld [vmem:[%s12325_s4 + $0x68] sm:$0xff] }
 0x443   : > { %v4109_v63 = vpop.permute.xlu0 %4108  ;;  %v5292_v59 = vld [vmem:[%s12325_s4 + $0x20] sm:$0xff] }
 0x444   : > { %4128 = vst.msk [vmem:[#allocation7 + $0x88] sm:$0xff] %vm1668_vm0, %v4109_v63  ;;  %v4395_v1 = vpop.permute.xlu1 %4394  ;;  %v5320_v63 = vld [vmem:[%s12325_s4 + $0x100] sm:$0xff] }
 0x445   : > { %4415 = vst.msk [vmem:[#allocation7 + $0x68] sm:$0xff] %vm1962_vm4, %v4395_v1  ;;  %4744 = vrot.lane.b32.xlu0 %v9265_v60, %s9554_s23  ;;  %v8658_v60 = vpack.c.bf16 %v5309_v58, %v5308_v56  ;;  %v5321_v1 = vld [vmem:[%s12325_s4 + $0x108] sm:$0xff]  ;;  %v9300_v58 = vld [vmem:[#allocation5 + $0xb1] ss:$8 sps:$4 sm:$0xff]  }
 0x446   : > { %5031 = vrot.lane.b32.xlu1 %v9266_v62, %s9558_s27  ;;  %v5293_v62 = vld [vmem:[%s12325_s4 + $0x28] sm:$0xff] }
 0x447   : > { %v4811_v4 = vpop.permute.xlu0 %4810  ;;  %v5348_v5 = vld [vmem:[#allocation7 + $0x30] sm:$0xff]  ;;  %8659 = vmatprep.subr.bf16.mxu1 %v8658_v60 }
 0x448   : > { %4832 = vst.msk [vmem:[#allocation7 + $0x50] sm:$0xff] %vm1815_vm2, %v4811_v4  ;;  %5628 = vmatmul.mubr.f32.gmra.mrb[10].mxu0 %v5348_v5  ;;  %v3834_v6 = vpop.permute.xlu1 %3833  ;;  %v8660_v4 = vpack.c.bf16 %v5293_v62, %v5292_v59  ;;  %v8683_v5 = vpack.c.bf16 %v5321_v1, %v5320_v63  ;;  %v5318_v63 = vld [vmem:[%s12325_s4 + $0xf0] sm:$0xff]  ;;  %v5319_v1 = vld [vmem:[%s12325_s4 + $0xf8] sm:$0xff] }
 0x449   : > { %3854 = vst.msk [vmem:[#allocation7 + $0x60] sm:$0xff] %vm1962_vm4, %v3834_v6  ;;  %3766 = vrot.lane.b32.xlu0 %v9267_v2, %s9556_s25 }
 0x44a   : > { %4114 = vrot.lane.b32.xlu1 %v9268_v3, %s9553_s7  ;;  %v9290_v3 = vld [vmem:[#allocation5 + $0xaa] ss:$8 sps:$4 sm:$0xff]   ;;  %8661 = vmatpush3.bf16.msra.mxu1 %v8660_v4 }
 0x44b   : > { %v4181_v9 = vpop.permute.xlu0 %4180  ;;  %8684 = vmatpush1.bf16.msra.mxu0 %v8683_v5  ;;  %v5303_v4 = vld [vmem:[%s12325_s4 + $0x78] sm:$0xff]  ;;  %v5330_v5 = vld [vmem:[%s12325_s4 + $0x150] sm:$0xff] }
 0x44c   : > { %4200 = vst.msk [vmem:[#allocation7 + $0x88] sm:$0xff] %vm1742_vm1, %v4181_v9  ;;  %v4468_v10 = vpop.permute.xlu1 %4467  ;;  %8685 = vmatprep.subr.bf16.mxu0 %v9559_v61 }
 0x44d   : > { %4488 = vst.msk [vmem:[#allocation7 + $0x68] sm:$0xff] %vm2035_vm5, %v4468_v10  ;;  %4400 = vrot.lane.b32.xlu0 %v9269_v18, %s9557_s26  ;;  %v5311_v18 = vld [vmem:[%s12325_s4 + $0xb8] sm:$0xff]  ;;  %v5294_v10 = vld [vmem:[%s12325_s4 + $0x30] sm:$0xff] }
 0x44e   : > { %4816 = vrot.lane.b32.xlu1 %v9270_v8, %s9555_s24  ;;  %v9318_v8 = vld [vmem:[#allocation5 + $0xe1] ss:$8 sps:$4 sm:$0xff]   ;;  %v8662_v9 = vpack.c.bf16 %v5311_v18, %v5310_v7  ;;  %v5331_v18 = vld [vmem:[%s12325_s4 + $0x158] sm:$0xff] }
 0x44f   : > { %v4596_v12 = vpop.permute.xlu0 %4595  ;;  %4548 = vst.msk [vmem:[#allocation7 + $0xf0] sm:$0xff] %vm1522_vm15, %v9318_v8 }
 0x450   : > { %4616 = vst.msk [vmem:[#allocation7 + $0x70] sm:$0xff] %vm1595_vm14, %v4596_v12  ;;  %v4884_v13 = vpop.permute.xlu1 %4883  ;;  %v8664_v12 = vpack.c.bf16 %v5295_v11, %v5294_v10  ;;  %8663 = vmatprep.subr.bf16.mxu1 %v8662_v9  ;;  %v8698_v9 = vpack.c.bf16 %v5331_v18, %v5330_v5  ;;  %v9302_v11 = vld [vmem:[#allocation5 + $0xf9] ss:$8 sps:$4 sm:$0xff]  }
 0x451   : > { %4905 = vst.msk [vmem:[#allocation7 + $0x50] sm:$0xff] %vm1888_vm3, %v4884_v13  ;;  %3839 = vrot.lane.b32.xlu0 %v9272_v24, %s9557_s26  ;;  %v5322_v24 = vld [vmem:[%s12325_s4 + $0x110] sm:$0xff]  ;;  %v5323_v13 = vld [vmem:[%s12325_s4 + $0x118] sm:$0xff] }
 0x452   : > { %4186 = vrot.lane.b32.xlu1 %v9273_v57, %s9554_s23  ;;  %v9291_v57 = vld [vmem:[#allocation5 + $0xda] ss:$8 sps:$4 sm:$0xff]   ;;  %8665 = vmatpush3.bf16.msra.mxu1 %v8664_v12 }
 0x453   : > { %v5157_v16 = vpop.permute.xlu0 %5156  ;;  %v9320_v12 = vld [vmem:[#allocation5 + $0x110] ss:$8 sps:$4 sm:$0xff]  }
 0x454   : > { %5178 = vst.msk [vmem:[#allocation7 + $0x58] sm:$0xff] %vm1595_vm14, %v5157_v16  ;;  %v3906_v17 = vpop.permute.xlu1 %3905  ;;  %v5355_v19 = vld [vmem:[#allocation7 + $0x68] sm:$0xff]  ;;  %v9292_v16 = vld [vmem:[#allocation5 + $0xf2] ss:$8 sps:$4 sm:$0xff]  }
 0x455   : > { %3926 = vst.msk [vmem:[#allocation7 + $0x60] sm:$0xff] %vm2035_vm5, %v3906_v17  ;;  %4473 = vrot.lane.b32.xlu0 %v9275_v14, %s9558_s27  ;;  %5532 = vmatprep.mubr.f32.mxu1 %v5355_v19  ;;  %v8686_v17 = vpack.c.bf16 %v5323_v13, %v5322_v24  ;;  %v5332_v24 = vld [vmem:[%s12325_s4 + $0x160] sm:$0xff]  ;;  %v9303_v13 = vld [vmem:[#allocation5 + $0x102] ss:$8 sps:$4 sm:$0xff]  }
 0x456   : > { %4601 = vrot.lane.b32.xlu1 %v9276_v15, %s9549_s29  ;;  %5111 = vst.msk [vmem:[#allocation7 + $0xf8] sm:$0xff] %vm1522_vm15, %v9320_v12 }
 0x457   : > { %v4253_v23 = vpop.permute.xlu0 %4252  ;;  %8687 = vmatpush1.bf16.msra.mxu0 %v8686_v17 }
 0x458   : > { %4272 = vst.msk [vmem:[#allocation7 + $0x88] sm:$0xff] %vm1815_vm2, %v4253_v23  ;;  %v4669_v26 = vpop.permute.xlu1 %4668  ;;  %v9319_v23 = vld [vmem:[#allocation5 + $0x100] ss:$8 sps:$4 sm:$0xff]   ;;  %8688 = vmatprep.subr.bf16.mxu0 %v9559_v61 }
 0x459   : > { %4689 = vst.msk [vmem:[#allocation7 + $0x70] sm:$0xff] %vm1668_vm0, %v4669_v26  ;;  %4889 = vrot.lane.b32.xlu0 %v9277_v21, %s9556_s25  ;;  %v5312_v21 = vld [vmem:[%s12325_s4 + $0xc0] sm:$0xff] }
 0x45a   : > { %5162 = vrot.lane.b32.xlu1 %v9278_v22, %s9549_s29  ;;  %v5313_v22 = vld [vmem:[%s12325_s4 + $0xc8] sm:$0xff]  ;;  %5110 = vst.msk [vmem:[#allocation7 + $0xd8] sm:$0xff] %vm1522_vm15, %v9319_v23 }
 0x45b   : > { %v4956_v28 = vpop.permute.xlu0 %4955  ;;  %v8666_v26 = vpack.c.bf16 %v5313_v22, %v5312_v21  ;;  %v5334_v21 = vld [vmem:[%s12325_s4 + $0x170] sm:$0xff]  ;;  %v5335_v22 = vld [vmem:[%s12325_s4 + $0x178] sm:$0xff]  ;;  %v9306_v23 = vld [vmem:[#allocation5 + $0xfa] ss:$8 sps:$4 sm:$0xff]  }
 0x45c   : > { %4977 = vst.msk [vmem:[#allocation7 + $0x50] sm:$0xff] %vm1962_vm4, %v4956_v28  ;;  %v5229_v29 = vpop.permute.xlu1 %5228  ;;  %v5354_v30 = vld [vmem:[#allocation7 + $0x60] sm:$0xff]  ;;  %v5324_v28 = vld [vmem:[%s12325_s4 + $0x120] sm:$0xff] }
 0x45d   : > { %5250 = vst.msk [vmem:[#allocation7 + $0x58] sm:$0xff] %vm1668_vm0, %v5229_v29  ;;  %3624 = vrot.lane.b32.xlu0 %v9279_v0, %s9554_s23  ;;  %5533 = vmatmul.mubr.f32.gmra.mrb[6].mxu1 %v5354_v30  ;;  %v5296_v0 = vld [vmem:[%s12325_s4 + $0x40] sm:$0xff] }
 0x45e   : > { %3911 = vrot.lane.b32.xlu1 %v9280_v27, %s9558_s27  ;;  %v5297_v27 = vld [vmem:[%s12325_s4 + $0x48] sm:$0xff]  ;;  %v9293_v29 = vld [vmem:[#allocation5 + $0xb0] ss:$8 sps:$4 sm:$0xff]   ;;  %8667 = vmatprep.subr.bf16.mxu1 %v8666_v26 }
 0x45f   : > { %v3691_v33 = vpop.permute.xlu0 %3690  ;;  %v8668_v30 = vpack.c.bf16 %v5297_v27, %v5296_v0  ;;  %v8704_v0 = vpack.c.bf16 %v5335_v22, %v5334_v21 }
 0x460   : > { %3710 = vst.msk [vmem:[#allocation7 + $0x80] sm:$0xff] %vm1815_vm2, %v3691_v33  ;;  %v4039_v34 = vpop.permute.xlu1 %4038 }
 0x461   : > { %4057 = vst.msk [vmem:[#allocation7 + $0xa8] sm:$0xff] %vm1595_vm14, %v4039_v34  ;;  %4258 = vrot.lane.b32.xlu0 %v9282_v32, %s9555_s24  ;;  %v5325_v32 = vld [vmem:[%s12325_s4 + $0x128] sm:$0xff]  ;;  %8669 = vmatpush3.bf16.msra.mxu1 %v8668_v30  ;;  %v5336_v30 = vld [vmem:[%s12325_s4 + $0x180] sm:$0xff] }
 0x462   : > { %4674 = vrot.lane.b32.xlu1 %v9283_v31, %s9553_s7  ;;  %v8689_v33 = vpack.c.bf16 %v5325_v32, %v5324_v28  ;;  %v9307_v28 = vld [vmem:[#allocation5 + $0x102] ss:$8 sps:$4 sm:$0xff]  }
 0x463   : > { %v4325_v44 = vpop.permute.xlu0 %4324  ;;  %v5337_v32 = vld [vmem:[%s12325_s4 + $0x188] sm:$0xff] }
 0x464   : > { %4344 = vst.msk [vmem:[#allocation7 + $0x88] sm:$0xff] %vm1888_vm3, %v4325_v44  ;;  %v4741_v45 = vpop.permute.xlu1 %4740  ;;  %v5353_v43 = vld [vmem:[#allocation7 + $0x58] sm:$0xff]  ;;  %8690 = vmatpush1.bf16.msra.mxu0 %v8689_v33  ;;  %v8672_v44 = vpack.c.bf16 %v5299_v40, %v5298_v39  ;;  %v8707_v33 = vpack.c.bf16 %v5337_v32, %v5336_v30  ;;  %v9310_v39 = vld [vmem:[#allocation5 + $0x109] ss:$8 sps:$4 sm:$0xff]  }
 0x465   : > { %4761 = vst.msk [vmem:[#allocation7 + $0x70] sm:$0xff] %vm1742_vm1, %v4741_v45  ;;  %4961 = vrot.lane.b32.xlu0 %v9284_v37, %s9557_s26  ;;  %8348 = vmatprep.mubr.msk.f32.mxu0 %vm5428_vm7, %v5353_v43  ;;  %v5315_v37 = vld [vmem:[%s12325_s4 + $0xd8] sm:$0xff] }
 0x466   : > { %5234 = vrot.lane.b32.xlu1 %v9285_v41, %s9553_s7  ;;  %v8670_v38 = vpack.c.bf16 %v5315_v37, %v5314_v36  ;;  %v5326_v41 = vld [vmem:[%s12325_s4 + $0x130] sm:$0xff]  ;;  %v5327_v45 = vld [vmem:[%s12325_s4 + $0x138] sm:$0xff]  ;;  %8691 = vmatprep.subr.bf16.mxu0 %v9559_v61 }
 0x467   : > { %v5028_v52 = vpop.permute.xlu0 %5027  ;;  %v8692_v46 = vpack.c.bf16 %v5327_v45, %v5326_v41  ;;  %v9309_v36 = vld [vmem:[#allocation5 + $0x111] ss:$8 sps:$4 sm:$0xff]   ;;  %v5338_v37 = vld [vmem:[%s12325_s4 + $0x190] sm:$0xff] }
 0x468   : > { %5049 = vst.msk [vmem:[#allocation7 + $0x50] sm:$0xff] %vm2035_vm5, %v5028_v52  ;;  %v3763_v53 = vpop.permute.xlu1 %3762  ;;  %8671 = vmatprep.subr.bf16.mxu1 %v8670_v38  ;;  %v5328_v52 = vld [vmem:[%s12325_s4 + $0x140] sm:$0xff]  ;;  %v5339_v38 = vld [vmem:[%s12325_s4 + $0x198] sm:$0xff] }
 0x469   : > { %3782 = vst.msk [vmem:[#allocation7 + $0x80] sm:$0xff] %vm1888_vm3, %v3763_v53  ;;  %3696 = vrot.lane.b32.xlu0 %v9286_v48, %s9555_s24  ;;  %v9298_v48 = vld [vmem:[#allocation5 + $0xf8] ss:$8 sps:$4 sm:$0xff]   ;;  %8673 = vmatpush3.bf16.msra.mxu1 %v8672_v44  ;;  %v8710_v41 = vpack.c.bf16 %v5339_v38, %v5338_v37 }
 0x46a   : > { %4330 = vrot.lane.b32.xlu1 %v9287_v51, %s9556_s25  ;;  %v5300_v51 = vld [vmem:[%s12325_s4 + $0x60] sm:$0xff]  ;;  %v9299_v53 = vld [vmem:[#allocation5 + $0x101] ss:$8 sps:$4 sm:$0xff]   ;;  %8693 = vmatpush1.bf16.msra.mxu0 %v8692_v46 }
 0x46b   : > { %v4111_v2 = vpop.permute.xlu0 %4110  ;;  %8675 = vmatprep.subr.bf16.mxu1 %v8674_v50  ;;  %8694 = vmatprep.subr.bf16.mxu0 %v9559_v61  ;;  %v9311_v44 = vld [vmem:[#allocation5 + $0x112] ss:$8 sps:$4 sm:$0xff]  }
 0x46c   : > { %4129 = vst.msk [vmem:[#allocation7 + $0xa8] sm:$0xff] %vm1668_vm0, %v4111_v2  ;;  %v4397_v6 = vpop.permute.xlu1 %4396  ;;  %v8678_v2 = vpack.c.bf16 %v5319_v1, %v5318_v63  ;;  %v5340_v45 = vld [vmem:[%s12325_s4 + $0x1a0] sm:$0xff]  ;;  %v9312_v46 = vld [vmem:[#allocation5 + $0x10a] ss:$8 sps:$4 sm:$0xff]  }
 0x46d   : > { %4416 = vst.msk [vmem:[#allocation7 + $0x88] sm:$0xff] %vm1962_vm4, %v4397_v6  ;;  %4746 = vrot.lane.b32.xlu0 %v9288_v54, %s9554_s23  ;;  %v8676_v54 = vpack.c.bf16 %v5301_v25, %v5300_v51  ;;  %v9301_v6 = vld [vmem:[#allocation5 + $0x100] ss:$8 sps:$4 sm:$0xff]  }
 0x46e   : > { %5033 = vrot.lane.b32.xlu1 %v9289_v55, %s9558_s27  ;;  %v5329_v55 = vld [vmem:[%s12325_s4 + $0x148] sm:$0xff] }
 0x46f   : > { %v4813_v14 = vpop.permute.xlu0 %4812  ;;  %v5352_v15 = vld [vmem:[#allocation7 + $0x50] sm:$0xff]  ;;  %v8695_v59 = vpack.c.bf16 %v5329_v55, %v5328_v52  ;;  %8677 = vmatpush3.bf16.msra.mxu1 %v8676_v54 }
 0x470   : > { %4833 = vst.msk [vmem:[#allocation7 + $0x70] sm:$0xff] %vm1815_vm2, %v4813_v14  ;;  %5633 = vmatmul.mubr.f32.gmra.mrb[12].mxu0 %v5352_v15  ;;  %v3836_v19 = vpop.permute.xlu1 %3835  ;;  %8679 = vmatprep.subr.bf16.mxu1 %v8678_v2 }
 0x471   : > { %3855 = vst.msk [vmem:[#allocation7 + $0x80] sm:$0xff] %vm1962_vm4, %v3836_v19  ;;  %3768 = vrot.lane.b32.xlu0 %v9290_v3, %s9556_s25  ;;  %v5302_v3 = vld [vmem:[%s12325_s4 + $0x70] sm:$0xff]  ;;  %8696 = vmatpush1.bf16.msra.mxu0 %v8695_v59 }
 0x472   : > { %4402 = vrot.lane.b32.xlu1 %v9291_v57, %s9557_s26  ;;  %v8680_v7 = vpack.c.bf16 %v5303_v4, %v5302_v3  ;;  %8697 = vmatprep.subr.bf16.mxu0 %v9559_v61  ;;  %v5333_v57 = vld [vmem:[%s12325_s4 + $0x168] sm:$0xff] }
 0x473   : > { %v4183_v31 = vpop.permute.xlu0 %4182  ;;  %v8701_v15 = vpack.c.bf16 %v5333_v57, %v5332_v24  ;;  %v9305_v19 = vld [vmem:[#allocation5 + $0x101] ss:$8 sps:$4 sm:$0xff]  }
 0x474   : > { %4201 = vst.msk [vmem:[#allocation7 + $0xa8] sm:$0xff] %vm1742_vm1, %v4183_v31  ;;  %v4470_v34 = vpop.permute.xlu1 %4469  ;;  %8681 = vmatpush3.bf16.msra.mxu1 %v8680_v7 }
 0x475   : > { %4489 = vst.msk [vmem:[#allocation7 + $0x88] sm:$0xff] %vm2035_vm5, %v4470_v34  ;;  %4818 = vrot.lane.b32.xlu0 %v9292_v16, %s9555_s24  ;;  %8699 = vmatpush1.bf16.msra.mxu0 %v8698_v9 }
 0x476   : > { %3841 = vrot.lane.b32.xlu1 %v9293_v29, %s9557_s26  ;;  %8700 = vmatprep.subr.bf16.mxu0 %v9559_v61  ;;  %v9308_v29 = vld [vmem:[#allocation5 + $0x108] ss:$8 sps:$4 sm:$0xff]  }
 0x477   : > { %v4598_v43 = vpop.permute.xlu0 %4597 }
 0x478   : > { %4617 = vst.msk [vmem:[#allocation7 + $0x90] sm:$0xff] %vm1595_vm14, %v4598_v43  ;;  %v4886_v47 = vpop.permute.xlu1 %4885  ;;  %v5341_v43 = vld [vmem:[%s12325_s4 + $0x1a8] sm:$0xff] }
 0x479   : > { %4906 = vst.msk [vmem:[#allocation7 + $0x70] sm:$0xff] %vm1888_vm3, %v4886_v47  ;;  %4475 = vrot.lane.b32.xlu0 %v9295_v35, %s9558_s27  ;;  %8702 = vmatpush1.bf16.msra.mxu0 %v8701_v15 }
 0x47a   : > { %4603 = vrot.lane.b32.xlu1 %v9296_v42, %s9549_s29  ;;  %8703 = vmatprep.subr.bf16.mxu0 %v9559_v61 }
 0x47b   : > { %v5159_v56 = vpop.permute.xlu0 %5158 }
 0x47c   : > { %5179 = vst.msk [vmem:[#allocation7 + $0x78] sm:$0xff] %vm1595_vm14, %v5159_v56  ;;  %v3908_v60 = vpop.permute.xlu1 %3907  ;;  %v5359_v62 = vld [vmem:[#allocation7 + $0x88] sm:$0xff] }
 0x47d   : > { %3927 = vst.msk [vmem:[#allocation7 + $0x80] sm:$0xff] %vm2035_vm5, %v3908_v60  ;;  %4891 = vrot.lane.b32.xlu0 %v9298_v48, %s9556_s25  ;;  %5537 = vmatprep.mubr.f32.mxu1 %v5359_v62  ;;  %v8713_v48 = vpack.c.bf16 %v5341_v43, %v5340_v45 }
 0x47e   : > { %5164 = vrot.lane.b32.xlu1 %v9299_v53, %s9549_s29  ;;  %8705 = vmatpush1.bf16.msra.mxu0 %v8704_v0 }
 0x47f   : > { %v4255_v8 = vpop.permute.xlu0 %4254  ;;  %8706 = vmatprep.subr.bf16.mxu0 %v9559_v61 }
 0x480   : > { %4273 = vst.msk [vmem:[#allocation7 + $0xa8] sm:$0xff] %vm1815_vm2, %v4255_v8  ;;  %v4671_v10 = vpop.permute.xlu1 %4670 }
 0x481   : > { %4690 = vst.msk [vmem:[#allocation7 + $0x90] sm:$0xff] %vm1668_vm0, %v4671_v10  ;;  %3913 = vrot.lane.b32.xlu0 %v9300_v58, %s9558_s27 }
 0x482   : > { %4676 = vrot.lane.b32.xlu1 %v9301_v6, %s9553_s7  ;;  %8708 = vmatpush1.bf16.msra.mxu0 %v8707_v33 }
 0x483   : > { %v4958_v14 = vpop.permute.xlu0 %4957  ;;  %8709 = vmatprep.subr.bf16.mxu0 %v9559_v61 }
 0x484   : > { %4978 = vst.msk [vmem:[#allocation7 + $0x70] sm:$0xff] %vm1962_vm4, %v4958_v14  ;;  %v5231_v16 = vpop.permute.xlu1 %5230  ;;  %v5358_v17 = vld [vmem:[#allocation7 + $0x80] sm:$0xff] }
 0x485   : > { %5251 = vst.msk [vmem:[#allocation7 + $0x78] sm:$0xff] %vm1668_vm0, %v5231_v16  ;;  %4963 = vrot.lane.b32.xlu0 %v9302_v11, %s9557_s26  ;;  %5538 = vmatmul.mubr.f32.gmra.mrb[8].mxu1 %v5358_v17 }
 0x486   : > { %5236 = vrot.lane.b32.xlu1 %v9303_v13, %s9553_s7  ;;  %8711 = vmatpush1.bf16.msra.mxu0 %v8710_v41 }
 0x487   : > { %v3693_v26 = vpop.permute.xlu0 %3692  ;;  %8712 = vmatprep.subr.bf16.mxu0 %v9559_v61 }
 0x488   : > { %3711 = vst.msk [vmem:[#allocation7 + $0xa0] sm:$0xff] %vm1815_vm2, %v3693_v26  ;;  %v4041_v27 = vpop.permute.xlu1 %4040 }
 0x489   : > { %4058 = vst.msk [vmem:[#allocation7 + $0xc8] sm:$0xff] %vm1595_vm14, %v4041_v27  ;;  %4748 = vrot.lane.b32.xlu0 %v9305_v19, %s9554_s23 }
 0x48a   : > { %5035 = vrot.lane.b32.xlu1 %v9306_v23, %s9558_s27  ;;  %8714 = vmatpush1.bf16.msra.mxu0 %v8713_v48 }
 0x48b   : > { %v4327_v31 = vpop.permute.xlu0 %4326  ;;  %8747 = vmatprep.subr.bf16.mxu0 %v9559_v61 }
 0x48c   : > { %4345 = vst.msk [vmem:[#allocation7 + $0xa8] sm:$0xff] %vm1888_vm3, %v4327_v31  ;;  %v4743_v34 = vpop.permute.xlu1 %4742  ;;  %v5357_v35 = vld [vmem:[#allocation7 + $0x78] sm:$0xff] }
 0x48d   : > { %4762 = vst.msk [vmem:[#allocation7 + $0x90] sm:$0xff] %vm1742_vm1, %v4743_v34  ;;  %4820 = vrot.lane.b32.xlu0 %v9307_v28, %s9555_s24  ;;  %8349 = vmatprep.mubr.msk.f32.mxu0 %vm5428_vm7, %v5357_v35 }
 0x48e   : > { %4893 = vrot.lane.b32.xlu1 %v9308_v29, %s9556_s25 }
 0x48f   : > { %v5030_v40 = vpop.permute.xlu0 %5029 }
 0x490   : > { %5050 = vst.msk [vmem:[#allocation7 + $0x70] sm:$0xff] %vm2035_vm5, %v5030_v40  ;;  %v3765_v42 = vpop.permute.xlu1 %3764 }
 0x491   : > { %3783 = vst.msk [vmem:[#allocation7 + $0xa0] sm:$0xff] %vm1888_vm3, %v3765_v42  ;;  %5166 = vrot.lane.b32.xlu0 %v9309_v36, %s9549_s29 }
 0x492   : > { %4965 = vrot.lane.b32.xlu1 %v9310_v39, %s9557_s26 }
 0x493   : > { %v4113_v47 = vpop.permute.xlu0 %4112 }
 0x494   : > { %4130 = vst.msk [vmem:[#allocation7 + $0xc8] sm:$0xff] %vm1668_vm0, %v4113_v47  ;;  %v4399_v49 = vpop.permute.xlu1 %4398 }
 0x495   : > { %4417 = vst.msk [vmem:[#allocation7 + $0xa8] sm:$0xff] %vm1962_vm4, %v4399_v49  ;;  %5238 = vrot.lane.b32.xlu0 %v9311_v44, %s9553_s7 }
 0x496   : > { %5037 = vrot.lane.b32.xlu1 %v9312_v46, %s9558_s27 }
 0x497   : > { %v4815_v20 = vpop.permute.xlu0 %4814  ;;  %v5356_v50 = vld [vmem:[#allocation7 + $0x70] sm:$0xff] }
 0x498   : > { %4834 = vst.msk [vmem:[#allocation7 + $0x90] sm:$0xff] %vm1815_vm2, %v4815_v20  ;;  %5638 = vmatmul.mubr.f32.gmra.mrb[14].mxu0 %v5356_v50  ;;  %v3838_v51 = vpop.permute.xlu1 %3837 }
 0x499   : > { %3856 = vst.msk [vmem:[#allocation7 + $0xa0] sm:$0xff] %vm1962_vm4, %v3838_v51 }
 0x49b   : > { %v4185_v25 = vpop.permute.xlu0 %4184 }
 0x49c   : > { %4202 = vst.msk [vmem:[#allocation7 + $0xc8] sm:$0xff] %vm1742_vm1, %v4185_v25  ;;  %v4472_v52 = vpop.permute.xlu1 %4471 }
 0x49d   : > { %4490 = vst.msk [vmem:[#allocation7 + $0xa8] sm:$0xff] %vm2035_vm5, %v4472_v52 }
 0x49f   : > { %v4600_v53 = vpop.permute.xlu0 %4599 }
 0x4a0   : > { %4618 = vst.msk [vmem:[#allocation7 + $0xb0] sm:$0xff] %vm1595_vm14, %v4600_v53  ;;  %v4888_v54 = vpop.permute.xlu1 %4887 }
 0x4a1   : > { %4907 = vst.msk [vmem:[#allocation7 + $0x90] sm:$0xff] %vm1888_vm3, %v4888_v54 }
 0x4a3   : > { %v5161_v55 = vpop.permute.xlu0 %5160 }
 0x4a4   : > { %5180 = vst.msk [vmem:[#allocation7 + $0x98] sm:$0xff] %vm1595_vm14, %v5161_v55  ;;  %v3623_v56 = vpop.permute.xlu1 %3622  ;;  %v5363_v58 = vld [vmem:[#allocation7 + $0xa8] sm:$0xff] }
 0x4a5   : > { %3640 = vst.msk [vmem:[#allocation7 + $0xc0] sm:$0xff] %vm1742_vm1, %v3623_v56  ;;  %5542 = vmatprep.mubr.f32.mxu1 %v5363_v58  ;;  %v5257_v58 = vld [vmem:[#allocation6 + $0x8] sm:$0xff] }
 0x4a7   : > { %v3910_v59 = vpop.permute.xlu0 %3909 }
 0x4a8   : > { %3928 = vst.msk [vmem:[#allocation7 + $0xa0] sm:$0xff] %vm2035_vm5, %v3910_v59  ;;  %v4257_v60 = vpop.permute.xlu1 %4256 }
 0x4a9   : > { %4274 = vst.msk [vmem:[#allocation7 + $0xc8] sm:$0xff] %vm1815_vm2, %v4257_v60  ;;  %v5256_v60 = vld [vmem:[#allocation6] sm:$0xff] }
 0x4ab   : > { %v4673_v62 = vpop.permute.xlu0 %4672 }
 0x4ac   : > { %4691 = vst.msk [vmem:[#allocation7 + $0xb0] sm:$0xff] %vm1668_vm0, %v4673_v62  ;;  %v4960_v63 = vpop.permute.xlu1 %4959 }
 0x4ad   : > { %4979 = vst.msk [vmem:[#allocation7 + $0x90] sm:$0xff] %vm1962_vm4, %v4960_v63 }
 0x4af   : > { %v5233_v1 = vpop.permute.xlu0 %5232  ;;  %v5362_v2 = vld [vmem:[#allocation7 + $0xa0] sm:$0xff] }
 0x4b0   : > { %5252 = vst.msk [vmem:[#allocation7 + $0x98] sm:$0xff] %vm1668_vm0, %v5233_v1  ;;  %5543 = vmatmul.mubr.f32.gmra.mrb[10].mxu1 %v5362_v2  ;;  %v3695_v3 = vpop.permute.xlu1 %3694  ;;  %v5261_v1 = vld [vmem:[#allocation6 + $0x28] sm:$0xff] }
 0x4b1   : > { %3712 = vst.msk [vmem:[#allocation7 + $0xc0] sm:$0xff] %vm1815_vm2, %v3695_v3  ;;  %v5260_v3 = vld [vmem:[#allocation6 + $0x20] sm:$0xff] }
 0x4b3   : > { %v4043_v4 = vpop.permute.xlu0 %4042 }
 0x4b4   : > { %4059 = vst.msk [vmem:[#allocation7 + $0xe8] sm:$0xff] %vm1595_vm14, %v4043_v4  ;;  %v4329_v5 = vpop.permute.xlu1 %4328 }
 0x4b5   : > { %4346 = vst.msk [vmem:[#allocation7 + $0xc8] sm:$0xff] %vm1888_vm3, %v4329_v5 }
 0x4b7   : > { %v4745_v6 = vpop.permute.xlu0 %4744  ;;  %v5624_v7 = vpop.f32.mrb[8].mxu0  ;;  %v5361_v18 = vld [vmem:[#allocation7 + $0x98] sm:$0xff] }
 0x4b8   : > { %4763 = vst.msk [vmem:[#allocation7 + $0xb0] sm:$0xff] %vm1742_vm1, %v4745_v6  ;;  %v5626_v8 = vpop.f32.mrb[9].mxu0  ;;  %8350 = vmatprep.mubr.msk.f32.mxu0 %vm5428_vm7, %v5361_v18  ;;  %v5032_v9 = vpop.permute.xlu1 %5031  ;;  %v5265_v6 = vld [vmem:[#allocation6 + $0x48] sm:$0xff]  ;;  %v5264_v18 = vld [vmem:[#allocation6 + $0x40] sm:$0xff] }
 0x4b9   : > { %5051 = vst.msk [vmem:[#allocation7 + $0x90] sm:$0xff] %vm2035_vm5, %v5032_v9 }
 0x4bb   : > { %v3767_v10 = vpop.permute.xlu0 %3766 }
 0x4bc   : > { %3784 = vst.msk [vmem:[#allocation7 + $0xc0] sm:$0xff] %vm1888_vm3, %v3767_v10  ;;  %v4115_v11 = vpop.permute.xlu1 %4114  ;;  %v5269_v10 = vld [vmem:[#allocation6 + $0x68] sm:$0xff] }
 0x4bd   : > { %4131 = vst.msk [vmem:[#allocation7 + $0xe8] sm:$0xff] %vm1668_vm0, %v4115_v11 }
 0x4bf   : > { %v4401_v24 = vpop.permute.xlu0 %4400 }
 0x4c0   : > { %4418 = vst.msk [vmem:[#allocation7 + $0xc8] sm:$0xff] %vm1962_vm4, %v4401_v24  ;;  %v4817_v57 = vpop.permute.xlu1 %4816  ;;  %v5360_v12 = vld [vmem:[#allocation7 + $0x90] sm:$0xff] }
 0x4c1   : > { %4835 = vst.msk [vmem:[#allocation7 + $0xb0] sm:$0xff] %vm1815_vm2, %v4817_v57  ;;  %5643 = vmatmul.mubr.f32.gmra.mrb[16].mxu0 %v5360_v12  ;;  %v5268_v57 = vld [vmem:[#allocation6 + $0x60] sm:$0xff]  ;;  %v5273_v12 = vld [vmem:[#allocation6 + $0x88] sm:$0xff] }
 0x4c3   : > { %v3840_v13 = vpop.permute.xlu0 %3839 }
 0x4c4   : > { %3857 = vst.msk [vmem:[#allocation7 + $0xc0] sm:$0xff] %vm1962_vm4, %v3840_v13  ;;  %v4187_v14 = vpop.permute.xlu1 %4186 }
 0x4c5   : > { %4203 = vst.msk [vmem:[#allocation7 + $0xe8] sm:$0xff] %vm1742_vm1, %v4187_v14  ;;  %v5272_v14 = vld [vmem:[#allocation6 + $0x80] sm:$0xff] }
 0x4c7   : > { %v4474_v15 = vpop.permute.xlu0 %4473 }
 0x4c8   : > { %4491 = vst.msk [vmem:[#allocation7 + $0xc8] sm:$0xff] %vm2035_vm5, %v4474_v15  ;;  %v4602_v16 = vpop.permute.xlu1 %4601 }
 0x4c9   : > { %4619 = vst.msk [vmem:[#allocation7 + $0xd0] sm:$0xff] %vm1595_vm14, %v4602_v16  ;;  %v5277_v16 = vld [vmem:[#allocation6 + $0xa8] sm:$0xff] }
 0x4cb   : > { %v4890_v17 = vpop.permute.xlu0 %4889 }
 0x4cc   : > { %4908 = vst.msk [vmem:[#allocation7 + $0xb0] sm:$0xff] %vm1888_vm3, %v4890_v17  ;;  %v5163_v19 = vpop.permute.xlu1 %5162  ;;  %v5259_v17 = vld [vmem:[#allocation6 + $0x18] sm:$0xff] }
 0x4cd   : > { %5181 = vst.msk [vmem:[#allocation7 + $0xb8] sm:$0xff] %vm1595_vm14, %v5163_v19  ;;  %v5276_v19 = vld [vmem:[#allocation6 + $0xa0] sm:$0xff] }
 0x4cf   : > { %v3625_v21 = vpop.permute.xlu0 %3624  ;;  %v8421_v22 = vpop.f32.mrb[0].mxu1  ;;  %v5367_v23 = vld [vmem:[#allocation7 + $0xc8] sm:$0xff] }
 0x4d0   : > { %3641 = vst.msk [vmem:[#allocation7 + $0xe0] sm:$0xff] %vm1742_vm1, %v3625_v21  ;;  %v8422_v26 = vpop.f32.mrb[1].mxu1  ;;  %5547 = vmatprep.mubr.f32.mxu1 %v5367_v23  ;;  %v3912_v0 = vpop.permute.xlu1 %3911  ;;  %v5281_v21 = vld [vmem:[#allocation6 + $0xc8] sm:$0xff]  ;;  %v5263_v23 = vld [vmem:[#allocation6 + $0x38] sm:$0xff] }
 0x4d1   : > { %v8423_v27 = vadd.f32 %v8422_v26, %v8421_v22  ;;  %3929 = vst.msk [vmem:[#allocation7 + $0xc0] sm:$0xff] %vm2035_vm5, %v3912_v0  ;;  %v5258_v22 = vld [vmem:[#allocation6 + $0x10] sm:$0xff]  ;;  %v5280_v26 = vld [vmem:[#allocation6 + $0xc0] sm:$0xff]  ;;  %v5285_v0 = vld [vmem:[#allocation6 + $0xe8] sm:$0xff] }
 0x4d3   : > { %v11516_v28 = vadd.f32 %v8423_v27, %v5624_v7  ;;  %v4259_v29 = vpop.permute.xlu0 %4258  ;;  %v5262_v27 = vld [vmem:[#allocation6 + $0x30] sm:$0xff] }
 0x4d4   : > { %4275 = vst.msk [vmem:[#allocation7 + $0xe8] sm:$0xff] %vm1815_vm2, %v4259_v29  ;;  %v4675_v30 = vpop.permute.xlu1 %4674  ;;  %v5267_v29 = vld [vmem:[#allocation6 + $0x58] sm:$0xff] }
 0x4d5   : > { %4692 = vst.msk [vmem:[#allocation7 + $0xd0] sm:$0xff] %vm1668_vm0, %v4675_v30 }
 0x4d7   : > { %v4962_v32 = vpop.permute.xlu0 %4961 }
 0x4d8   : > { %4980 = vst.msk [vmem:[#allocation7 + $0xb0] sm:$0xff] %vm1962_vm4, %v4962_v32  ;;  %v5235_v31 = vpop.permute.xlu1 %5234  ;;  %v5366_v33 = vld [vmem:[#allocation7 + $0xc0] sm:$0xff] }
 0x4d9   : > { %5253 = vst.msk [vmem:[#allocation7 + $0xb8] sm:$0xff] %vm1668_vm0, %v5235_v31  ;;  %5548 = vmatmul.mubr.f32.gmra.mrb[12].mxu1 %v5366_v33  ;;  %v5284_v32 = vld [vmem:[#allocation6 + $0xe0] sm:$0xff] }
 0x4db   : > { %v3697_v34 = vpop.permute.xlu0 %3696 }
 0x4dc   : > { %3713 = vst.msk [vmem:[#allocation7 + $0xe0] sm:$0xff] %vm1815_vm2, %v3697_v34  ;;  %v4331_v35 = vpop.permute.xlu1 %4330  ;;  %v5266_v34 = vld [vmem:[#allocation6 + $0x50] sm:$0xff] }
 0x4dd   : > { %4347 = vst.msk [vmem:[#allocation7 + $0xe8] sm:$0xff] %vm1888_vm3, %v4331_v35  ;;  %v5271_v35 = vld [vmem:[#allocation6 + $0x78] sm:$0xff] }
 0x4df   : > { %v4747_v36 = vpop.permute.xlu0 %4746 }
 0x4e0   : > { %4764 = vst.msk [vmem:[#allocation7 + $0xd0] sm:$0xff] %vm1742_vm1, %v4747_v36  ;;  %v5034_v37 = vpop.permute.xlu1 %5033  ;;  %v5365_v38 = vld [vmem:[#allocation7 + $0xb8] sm:$0xff]  ;;  %v5270_v36 = vld [vmem:[#allocation6 + $0x70] sm:$0xff] }
 0x4e1   : > { %5052 = vst.msk [vmem:[#allocation7 + $0xb0] sm:$0xff] %vm2035_vm5, %v5034_v37  ;;  %8351 = vmatprep.mubr.msk.f32.mxu0 %vm5428_vm7, %v5365_v38  ;;  %v5275_v37 = vld [vmem:[#allocation6 + $0x98] sm:$0xff]  ;;  %v5274_v38 = vld [vmem:[#allocation6 + $0x90] sm:$0xff] }
 0x4e3   : > { %v3769_v39 = vpop.permute.xlu0 %3768 }
 0x4e4   : > { %3785 = vst.msk [vmem:[#allocation7 + $0xe0] sm:$0xff] %vm1888_vm3, %v3769_v39  ;;  %v4403_v40 = vpop.permute.xlu1 %4402  ;;  %v5279_v39 = vld [vmem:[#allocation6 + $0xb8] sm:$0xff] }
 0x4e5   : > { %4419 = vst.msk [vmem:[#allocation7 + $0xe8] sm:$0xff] %vm1962_vm4, %v4403_v40  ;;  %v5278_v40 = vld [vmem:[#allocation6 + $0xb0] sm:$0xff] }
 0x4e7   : > { %v4819_v41 = vpop.permute.xlu0 %4818  ;;  %v8424_v42 = vpop.f32.mrb[2].mxu1 }
 0x4e8   : > { %4836 = vst.msk [vmem:[#allocation7 + $0xd0] sm:$0xff] %vm1815_vm2, %v4819_v41  ;;  %v8425_v44 = vpop.f32.mrb[3].mxu1  ;;  %v3842_v45 = vpop.permute.xlu1 %3841  ;;  %v5364_v43 = vld [vmem:[#allocation7 + $0xb0] sm:$0xff]  ;;  %v5283_v41 = vld [vmem:[#allocation6 + $0xd8] sm:$0xff] }
 0x4e9   : > { %v11530_v46 = vadd.f32 %v8425_v44, %v8424_v42  ;;  %3858 = vst.msk [vmem:[#allocation7 + $0xe0] sm:$0xff] %vm1962_vm4, %v3842_v45  ;;  %5648 = vmatmul.mubr.f32.gmra.mrb[18].mxu0 %v5364_v43  ;;  %v5282_v42 = vld [vmem:[#allocation6 + $0xd0] sm:$0xff]  ;;  %v5287_v44 = vld [vmem:[#allocation6 + $0xf8] sm:$0xff] }
 0x4ea   : > { %v5286_v43 = vld [vmem:[#allocation6 + $0xf0] sm:$0xff] }
 0x4eb   : > { %v4476_v47 = vpop.permute.xlu0 %4475 }
 0x4ec   : > { %4492 = vst.msk [vmem:[#allocation7 + $0xe8] sm:$0xff] %vm2035_vm5, %v4476_v47  ;;  %v4604_v48 = vpop.permute.xlu1 %4603 }
 0x4ed   : > { %4620 = vst.msk [vmem:[#allocation7 + $0xf0] sm:$0xff] %vm1595_vm14, %v4604_v48 }
 0x4ef   : > { %v4892_v49 = vpop.permute.xlu0 %4891 }
 0x4f0   : > { %4909 = vst.msk [vmem:[#allocation7 + $0xd0] sm:$0xff] %vm1888_vm3, %v4892_v49  ;;  %v5165_v20 = vpop.permute.xlu1 %5164 }
 0x4f1   : > { %5182 = vst.msk [vmem:[#allocation7 + $0xd8] sm:$0xff] %vm1595_vm14, %v5165_v20 }
 0x4f3   : > { %v3914_v50 = vpop.permute.xlu0 %3913  ;;  %v5371_v51 = vld [vmem:[#allocation7 + $0xe8] sm:$0xff] }
 0x4f4   : > { %3930 = vst.msk [vmem:[#allocation7 + $0xe0] sm:$0xff] %vm2035_vm5, %v3914_v50  ;;  %5552 = vmatprep.mubr.f32.mxu1 %v5371_v51  ;;  %v4677_v25 = vpop.permute.xlu1 %4676 }
 0x4f5   : > { %4693 = vst.msk [vmem:[#allocation7 + $0xf0] sm:$0xff] %vm1668_vm0, %v4677_v25 }
 0x4f7   : > { %v4964_v52 = vpop.permute.xlu0 %4963 }
 0x4f8   : > { %4981 = vst.msk [vmem:[#allocation7 + $0xd0] sm:$0xff] %vm1962_vm4, %v4964_v52  ;;  %v5237_v53 = vpop.permute.xlu1 %5236 }
 0x4f9   : > { %5254 = vst.msk [vmem:[#allocation7 + $0xd8] sm:$0xff] %vm1668_vm0, %v5237_v53 }
 0x4fb   : > { %v4749_v54 = vpop.permute.xlu0 %4748  ;;  %v5370_v55 = vld [vmem:[#allocation7 + $0xe0] sm:$0xff] }
 0x4fc   : > { %4765 = vst.msk [vmem:[#allocation7 + $0xf0] sm:$0xff] %vm1742_vm1, %v4749_v54  ;;  %5553 = vmatmul.mubr.f32.gmra.mrb[14].mxu1 %v5370_v55  ;;  %v5036_v56 = vpop.permute.xlu1 %5035  ;;  %v9321_v55 = vld [vmem:[#allocation4 + $0x1] ss:$8 sps:$4 sm:$0xff]  }
 0x4fd   : > { %5053 = vst.msk [vmem:[#allocation7 + $0xd0] sm:$0xff] %vm2035_vm5, %v5036_v56  ;;  %5751 = vmatprep.mubr.f32.mxu1 %v5257_v58  ;;  %6074 = vrot.lane.b32.xlu0 %v9321_v55, %s9549_s29  ;;  %v9322_v56 = vld [vmem:[#allocation4 + $0x11] ss:$8 sps:$4 sm:$0xff]  }
 0x4fe   : > { %6076 = vrot.lane.b32.xlu1 %v9322_v56, %s9549_s29 }
 0x4ff   : > { %v4821_v59 = vpop.permute.xlu0 %4820 }
 0x500   : > { %4837 = vst.msk [vmem:[#allocation7 + $0xf0] sm:$0xff] %vm1815_vm2, %v4821_v59  ;;  %5752 = vmatmul.mubr.f32.vlgmr.msra.gmra.mrb[16].mxu1 %v5256_v60  ;;  %v4894_v62 = vpop.permute.xlu1 %4893  ;;  %v5369_v63 = vld [vmem:[#allocation7 + $0xd8] sm:$0xff] }
 0x501   : > { %4910 = vst.msk [vmem:[#allocation7 + $0xf0] sm:$0xff] %vm1888_vm3, %v4894_v62  ;;  %8352 = vmatprep.mubr.msk.f32.mxu0 %vm5428_vm7, %v5369_v63  ;;  %5756 = vmatprep.mubr.f32.mxu1 %v5261_v1 }
 0x503   : > { %v5167_v2 = vpop.permute.xlu0 %5166 }
 0x504   : > { %5183 = vst.msk [vmem:[#allocation7 + $0xf8] sm:$0xff] %vm1595_vm14, %v5167_v2  ;;  %5757 = vmatmul.mubr.f32.gmra.mrb[18].mxu1 %v5260_v3  ;;  %v4966_v4 = vpop.permute.xlu1 %4965  ;;  %v5368_v5 = vld [vmem:[#allocation7 + $0xd0] sm:$0xff] }
 0x505   : > { %4982 = vst.msk [vmem:[#allocation7 + $0xf0] sm:$0xff] %vm1962_vm4, %v4966_v4  ;;  %5653 = vmatmul.mubr.f32.gmra.mrb[20].mxu0 %v5368_v5  ;;  %5761 = vmatprep.mubr.f32.mxu1 %v5265_v6 }
 0x507   : > { %v5239_v7 = vpop.permute.xlu0 %5238 }
 0x508   : > { %5255 = vst.msk [vmem:[#allocation7 + $0xf8] sm:$0xff] %vm1668_vm0, %v5239_v7  ;;  %v8427_v8 = vpop.f32.mrb[4].mxu1  ;;  %5762 = vmatmul.mubr.f32.gmra.mrb[20].mxu1 %v5264_v18  ;;  %v5038_v9 = vpop.permute.xlu1 %5037 }
 0x509   : > { %5054 = vst.msk [vmem:[#allocation7 + $0xf0] sm:$0xff] %vm2035_vm5, %v5038_v9  ;;  %v8428_v11 = vpop.f32.mrb[5].mxu1  ;;  %5766 = vmatprep.mubr.f32.mxu1 %v5269_v10 }
 0x50a   : > { %v8429_v24 = vadd.f32 %v8428_v11, %v8427_v8 }
 0x50c   : > { %5767 = vmatmul.mubr.f32.gmra.mrb[22].mxu1 %v5268_v57 }
 0x50d   : > { %5771 = vmatprep.mubr.f32.mxu1 %v5273_v12 }
 0x50f   : > { %v5373_v13 = vld [vmem:[#allocation7 + $0xf8] sm:$0xff] }
 0x510   : > { %8353 = vmatprep.mubr.msk.f32.mxu0 %vm5428_vm7, %v5373_v13  ;;  %5772 = vmatmul.mubr.f32.gmra.mrb[24].mxu1 %v5272_v14  ;;  %v5372_v15 = vld [vmem:[#allocation7 + $0xf0] sm:$0xff] }
 0x511   : > { %5658 = vmatmul.mubr.f32.gmra.mrb[22].mxu0 %v5372_v15  ;;  %5776 = vmatprep.mubr.f32.mxu1 %v5277_v16 }
 0x512   : > { %8354 = vmatprep.mubr.msk.f32.mxu0 %vm5428_vm7, %v5259_v17 }
 0x514   : > { %5777 = vmatmul.mubr.f32.gmra.mrb[26].mxu1 %v5276_v19 }
 0x515   : > { %5781 = vmatprep.mubr.f32.mxu1 %v5281_v21  ;;  %5857 = vmatmul.mubr.f32.vlgmr.msra.gmra.mrb[24].mxu0 %v5258_v22 }
 0x516   : > { %8355 = vmatprep.mubr.msk.f32.mxu0 %vm5428_vm7, %v5263_v23 }
 0x518   : > { %5782 = vmatmul.mubr.f32.gmra.mrb[28].mxu1 %v5280_v26 }
 0x519   : > { %5786 = vmatprep.mubr.f32.mxu1 %v5285_v0  ;;  %5862 = vmatmul.mubr.f32.gmra.mrb[26].mxu0 %v5262_v27 }
 0x51a   : > { %8356 = vmatprep.mubr.msk.f32.mxu0 %vm5428_vm7, %v5267_v29 }
 0x51b   : > { %v5629_v30 = vpop.f32.mrb[10].mxu0 }
 0x51c   : > { %v11555_v31 = vadd.f32 %v11530_v46, %v5629_v30  ;;  %v5631_v33 = vpop.f32.mrb[11].mxu0  ;;  %5787 = vmatmul.mubr.f32.gmra.mrb[30].mxu1 %v5284_v32 }
 0x51d   : > { %5867 = vmatmul.mubr.f32.gmra.mrb[28].mxu0 %v5266_v34 }
 0x51e   : > { %8357 = vmatprep.mubr.msk.f32.mxu0 %vm5428_vm7, %v5271_v35 }
 0x521   : > { %5872 = vmatmul.mubr.f32.gmra.mrb[30].mxu0 %v5270_v36 }
 0x522   : > { %8358 = vmatprep.mubr.msk.f32.mxu0 %vm5428_vm7, %v5275_v37  ;;  %v9374_v37 = vld [vmem:[#allocation4] ss:$8 sps:$4 sm:$0xff]  }
 0x523   : > { %6026 = vst.msk [vmem:[#allocation6] sm:$0xff] %vm1522_vm15, %v9374_v37 }
 0x525   : > { %5877 = vmatmul.mubr.f32.gmra.mrb[32].mxu0 %v5274_v38 }
 0x526   : > { %8359 = vmatprep.mubr.msk.f32.mxu0 %vm5428_vm7, %v5279_v39 }
 0x529   : > { %5882 = vmatmul.mubr.f32.gmra.mrb[34].mxu0 %v5278_v40 }
 0x52a   : > { %8360 = vmatprep.mubr.msk.f32.mxu0 %vm5428_vm7, %v5283_v41  ;;  %v11570_v41 = vld [vmem:[%s12327_s6] ss:$0 sm:$0xff] }
 0x52d   : > { %5887 = vmatmul.mubr.f32.gmra.mrb[36].mxu0 %v5282_v42 }
 0x52e   : > { %8361 = vmatprep.mubr.msk.f32.mxu0 %vm5428_vm7, %v5287_v44 }
 0x530   : > { %v8430_v45 = vpop.f32.mrb[6].mxu1 }
 0x531   : > { %v8431_v46 = vpop.f32.mrb[7].mxu1  ;;  %5892 = vmatmul.mubr.f32.gmra.mrb[38].mxu0 %v5286_v43  ;;  %v11572_v43 = vstv %s5920_s14 }
 0x532   : > { %v8432_v47 = vadd.f32 %v8431_v46, %v8430_v45 }
 0x543   : > { %v5634_v48 = vpop.f32.mrb[12].mxu0 }
 0x544   : > { %v5635_v49 = vadd.f32 %v8429_v24, %v5634_v48  ;;  %v5636_v20 = vpop.f32.mrb[13].mxu0 }
 0x558   : > { %v8433_v50 = vpop.f32.mrb[8].mxu1 }
 0x559   : > { %v8434_v51 = vpop.f32.mrb[9].mxu1 }
 0x55a   : > { %v8435_v25 = vadd.f32 %v8434_v51, %v8433_v50  ;;  %v9378_v50 = vld [vmem:[#allocation4 + $0x10] ss:$8 sps:$4 sm:$0xff]  }
 0x55b   : > { %6027 = vst.msk [vmem:[#allocation6 + $0x20] sm:$0xff] %vm1522_vm15, %v9378_v50 }
 0x56b   : > { %v5639_v52 = vpop.f32.mrb[14].mxu0 }
 0x56c   : > { %v5640_v53 = vadd.f32 %v8432_v47, %v5639_v52  ;;  %v5641_v54 = vpop.f32.mrb[15].mxu0 }
 0x583   : > { %v8436_v58 = vpop.f32.mrb[10].mxu1 }
 0x584   : > { %v8437_v59 = vpop.f32.mrb[11].mxu1 }
 0x585   : > { %v8438_v60 = vadd.f32 %v8437_v59, %v8436_v58 }
 0x594   : > { %v5644_v62 = vpop.f32.mrb[16].mxu0 }
 0x595   : > { %v5645_v63 = vadd.f32 %v8435_v25, %v5644_v62  ;;  %v5646_v1 = vpop.f32.mrb[17].mxu0 }
 0x5ac   : > { %v8439_v2 = vpop.f32.mrb[12].mxu1 }
 0x5ad   : > { %v8440_v3 = vpop.f32.mrb[13].mxu1 }
 0x5ae   : > { %v8441_v4 = vadd.f32 %v8440_v3, %v8439_v2 }
 0x5bc   : > { %v5649_v5 = vpop.f32.mrb[18].mxu0 }
 0x5bd   : > { %v5650_v6 = vadd.f32 %v8438_v60, %v5649_v5  ;;  %v5651_v7 = vpop.f32.mrb[19].mxu0 }
 0x5cf   : > { %v8442_v18 = vpop.f32.mrb[14].mxu1 }
 0x5d0   : > { %v8443_v8 = vpop.f32.mrb[15].mxu1 }
 0x5d1   : > { %v8444_v9 = vadd.f32 %v8443_v8, %v8442_v18 }
 0x5d3   : > { %v8477_v10 = vpop.f32.mrb[16].mxu1 }
 0x5d4   : > { %v8478_v11 = vpop.f32.mrb[17].mxu1 }
 0x5d5   : > { %v8479_v24 = vadd.f32 %v8478_v11, %v8477_v10 }
 0x5d7   : > { %v8480_v57 = vpop.f32.mrb[18].mxu1  ;;  %v5754_v12 = vadd.f32 %v8479_v24, %v11516_v28  ;;  %v6077_v24 = vpop.permute.xlu1 %6076 }
 0x5d8   : > { %v5654_v13 = vpop.f32.mrb[20].mxu0  ;;  %v8481_v14 = vpop.f32.mrb[19].mxu1  ;;  %6099 = vst.msk [vmem:[#allocation6 + $0x20] sm:$0xff] %vm1595_vm14, %v6077_v24 }
 0x5d9   : > { %v5655_v15 = vadd.f32 %v8441_v4, %v5654_v13  ;;  %v8482_v16 = vadd.f32 %v8481_v14, %v8480_v57  ;;  %v5656_v17 = vpop.f32.mrb[21].mxu0  ;;  %v6075_v4 = vpop.permute.xlu0 %6074 }
 0x5da   : > { %6098 = vst.msk [vmem:[#allocation6] sm:$0xff] %vm1595_vm14, %v6075_v4  ;;  %v9339_v4 = vld [vmem:[#allocation4 + $0xa] ss:$8 sps:$4 sm:$0xff]  }
 0x5db   : > { %v8483_v19 = vpop.f32.mrb[20].mxu1  ;;  %v5759_v21 = vadd.f32 %v8482_v16, %v11555_v31 }
 0x5dc   : > { %v8484_v22 = vpop.f32.mrb[21].mxu1 }
 0x5dd   : > { %v8485_v23 = vadd.f32 %v8484_v22, %v8483_v19 }
 0x5df   : > { %v8486_v26 = vpop.f32.mrb[22].mxu1  ;;  %v5764_v0 = vadd.f32 %v8485_v23, %v5635_v49 }
 0x5e0   : > { %v8487_v27 = vpop.f32.mrb[23].mxu1 }
 0x5e1   : > { %v8488_v29 = vadd.f32 %v8487_v27, %v8486_v26 }
 0x5e3   : > { %v8489_v30 = vpop.f32.mrb[24].mxu1  ;;  %v5769_v32 = vadd.f32 %v8488_v29, %v5640_v53 }
 0x5e4   : > { %v5659_v33 = vpop.f32.mrb[22].mxu0  ;;  %v8490_v34 = vpop.f32.mrb[25].mxu1 }
 0x5e5   : > { %v5660_v28 = vadd.f32 %v8444_v9, %v5659_v33  ;;  %v8491_v35 = vadd.f32 %v8490_v34, %v8489_v30  ;;  %v5661_v36 = vpop.f32.mrb[23].mxu0 }
 0x5e7   : > { %v8492_v38 = vpop.f32.mrb[26].mxu1  ;;  %v5774_v39 = vadd.f32 %v8491_v35, %v5645_v63 }
 0x5e8   : > { %v8493_v31 = vpop.f32.mrb[27].mxu1  ;;  %v5858_v40 = vpop.f32.mrb[24].mxu0 }
 0x5e9   : > { %v8494_v42 = vadd.f32 %v8493_v31, %v8492_v38  ;;  %v5859_v44 = vadd.f32 %v5858_v40, %v5754_v12  ;;  %v5860_v45 = vpop.f32.mrb[25].mxu0 }
 0x5eb   : > { %v5904_v46 = vadd.f32 %v11570_v41, %v5859_v44  ;;  %v8495_v47 = vpop.f32.mrb[28].mxu1  ;;  %v5779_v48 = vadd.f32 %v8494_v42, %v5650_v6 }
 0x5ec   : > { %v8496_v49 = vpop.f32.mrb[29].mxu1  ;;  %v5863_v20 = vpop.f32.mrb[26].mxu0 }
 0x5ed   : > { %vm5912_vm8 = vcmp.gt.f32.partialorder %v5904_v46, 0.0  ;;  %v5922_v51 = vmul.f32 %v11572_v43, %v5904_v46  ;;  %v8497_v25 = vadd.f32 %v8496_v49, %v8495_v47  ;;  %v5864_v52 = vadd.f32 %v5863_v20, %v5759_v21  ;;  %v5865_v53 = vpop.f32.mrb[27].mxu0 }
 0x5ee   : > { %v7907_v53 = vld [vmem:[%s12329_s8 + $0x88] sm:$0xff] }
 0x5ef   : > { %v11577_v54 = vsel %vm5912_vm8, %v5904_v46, %v5922_v51  ;;  %v5905_v55 = vadd.f32 %v11570_v41, %v5864_v52  ;;  %v8498_v56 = vpop.f32.mrb[30].mxu1  ;;  %v5784_v58 = vadd.f32 %v8497_v25, %v5655_v15  ;;  %v9328_v52 = vld [vmem:[#allocation4 + $0x2] ss:$8 sps:$4 sm:$0xff]  }
 0x5f0   : > { %v5946_v59 = vcombine.high %v11577_v54, %v11577_v54  ;;  %5962 = vst.msk [vmem:[#allocation4 + $0x39] sm:$0xf] %vm1424_vm6, %v11577_v54  ;;  %v8499_v60 = vpop.f32.mrb[31].mxu1  ;;  %v5868_v62 = vpop.f32.mrb[28].mxu0 }
 0x5f1   : > { %vm5913_vm9 = vcmp.gt.f32.partialorder %v5905_v55, 0.0  ;;  %v5923_v63 = vmul.f32 %v11572_v43, %v5905_v55  ;;  %v8500_v1 = vadd.f32 %v8499_v60, %v8498_v56  ;;  %v5869_v2 = vadd.f32 %v5868_v62, %v5764_v0  ;;  %v5870_v3 = vpop.f32.mrb[29].mxu0 }
 0x5f2   : > { %5963 = vst.msk [vmem:[#allocation4 + $0x41] sm:$0xf] %vm1424_vm6, %v5946_v59 }
 0x5f3   : > { %v11586_v5 = vsel %vm5913_vm9, %v5905_v55, %v5923_v63  ;;  %v5906_v6 = vadd.f32 %v11570_v41, %v5869_v2  ;;  %v5789_v7 = vadd.f32 %v8500_v1, %v5660_v28  ;;  %v9335_v63 = vld [vmem:[#allocation4 + $0x8] ss:$8 sps:$4 sm:$0xff]  }
 0x5f4   : > { %v5947_v18 = vcombine.high %v11586_v5, %v11586_v5  ;;  %5964 = vst.msk [vmem:[#allocation4 + $0x49] sm:$0xf] %vm1424_vm6, %v11586_v5  ;;  %v5873_v8 = vpop.f32.mrb[30].mxu0  ;;  %v9337_v2 = vld [vmem:[#allocation4 + $0x9] ss:$8 sps:$4 sm:$0xff]  }
 0x5f5   : > { %vm5914_vm10 = vcmp.gt.f32.partialorder %v5906_v6, 0.0  ;;  %v5924_v9 = vmul.f32 %v11572_v43, %v5906_v6  ;;  %v5874_v10 = vadd.f32 %v5873_v8, %v5769_v32  ;;  %v5875_v11 = vpop.f32.mrb[31].mxu0 }
 0x5f6   : > { %5965 = vst.msk [vmem:[#allocation4 + $0x51] sm:$0xf] %vm1424_vm6, %v5947_v18  ;;  %v9341_v18 = vld [vmem:[#allocation4 + $0x10] ss:$8 sps:$4 sm:$0xff]  }
 0x5f7   : > { %v11596_v57 = vsel %vm5914_vm10, %v5906_v6, %v5924_v9  ;;  %v5907_v12 = vadd.f32 %v11570_v41, %v5874_v10  ;;  %v9323_v13 = vld [vmem:[#allocation4 + $0x31] ss:$8 sps:$4 sm:$0xff]  }
 0x5f8   : > { %v5948_v14 = vcombine.high %v11596_v57, %v11596_v57  ;;  %5966 = vst.msk [vmem:[#allocation4 + $0x69] sm:$0xf] %vm1424_vm6, %v11596_v57  ;;  %v5878_v15 = vpop.f32.mrb[32].mxu0  ;;  %6078 = vrot.lane.b32.xlu0 %v9323_v13, %s9549_s29  ;;  %v9330_v59 = vld [vmem:[#allocation4 + $0x30] ss:$8 sps:$4 sm:$0xff]  }
 0x5f9   : > { %vm5915_vm11 = vcmp.gt.f32.partialorder %v5907_v12, 0.0  ;;  %v5925_v16 = vmul.f32 %v11572_v43, %v5907_v12  ;;  %v5879_v17 = vadd.f32 %v5878_v15, %v5774_v39  ;;  %v5880_v19 = vpop.f32.mrb[33].mxu0  ;;  %v9332_v60 = vld [vmem:[#allocation4 + $0x32] ss:$8 sps:$4 sm:$0xff]  }
 0x5fa   : > { %5967 = vst.msk [vmem:[#allocation4 + $0x71] sm:$0xf] %vm1424_vm6, %v5948_v14  ;;  %v9333_v62 = vld [vmem:[#allocation4 + $0x31] ss:$8 sps:$4 sm:$0xff]  }
 0x5fb   : > { %v11607_v21 = vsel %vm5915_vm11, %v5907_v12, %v5925_v16  ;;  %v5908_v22 = vadd.f32 %v11570_v41, %v5879_v17  ;;  %v9324_v23 = vld [vmem:[#allocation4 + $0x41] ss:$8 sps:$4 sm:$0xff]   ;;  %v9343_v11 = vld [vmem:[#allocation4 + $0x11] ss:$8 sps:$4 sm:$0xff]  }
 0x5fc   : > { %v5949_v26 = vcombine.high %v11607_v21, %v11607_v21  ;;  %5968 = vst.msk [vmem:[#allocation4 + $0x79] sm:$0xf] %vm1424_vm6, %v11607_v21  ;;  %v5883_v0 = vpop.f32.mrb[34].mxu0  ;;  %6080 = vrot.lane.b32.xlu1 %v9324_v23, %s9549_s29  ;;  %v9334_v1 = vld [vmem:[#allocation4 + $0x38] ss:$8 sps:$4 sm:$0xff]  }
 0x5fd   : > { %vm5916_vm12 = vcmp.gt.f32.partialorder %v5908_v22, 0.0  ;;  %v5926_v27 = vmul.f32 %v11572_v43, %v5908_v22  ;;  %v5884_v29 = vadd.f32 %v5883_v0, %v5779_v48  ;;  %v5885_v30 = vpop.f32.mrb[35].mxu0  ;;  %v7906_v48 = vld [vmem:[%s12329_s8 + $0x80] sm:$0xff]  ;;  %v9381_v8 = vld [vmem:[#allocation4 + $0x40] ss:$8 sps:$4 sm:$0xff]  }
 0x5fe   : > { %5969 = vst.msk [vmem:[#allocation4 + $0x81] sm:$0xf] %vm1424_vm6, %v5949_v26  ;;  %v9336_v3 = vld [vmem:[#allocation4 + $0x39] ss:$8 sps:$4 sm:$0xff]   ;;  %v9346_v26 = vld [vmem:[#allocation4 + $0x48] ss:$8 sps:$4 sm:$0xff]  }
 0x5ff   : > { %v11617_v32 = vsel %vm5916_vm12, %v5908_v22, %v5926_v27  ;;  %v5909_v33 = vadd.f32 %v11570_v41, %v5884_v29  ;;  %v9325_v34 = vld [vmem:[#allocation4 + $0x61] ss:$8 sps:$4 sm:$0xff]   ;;  %6029 = vst.msk [vmem:[#allocation6 + $0x60] sm:$0xff] %vm1522_vm15, %v9381_v8  ;;  %v9396_v19 = vld [vmem:[#allocation4 + $0x12] ss:$8 sps:$4 sm:$0xff]  }
 0x600   : > { %v5950_v28 = vcombine.high %v11617_v32, %v11617_v32  ;;  %5970 = vst.msk [vmem:[#allocation4 + $0x99] sm:$0xf] %vm1424_vm6, %v11617_v32  ;;  %v5888_v35 = vpop.f32.mrb[36].mxu0  ;;  %6082 = vrot.lane.b32.xlu0 %v9325_v34, %s9549_s29  ;;  %v9338_v6 = vld [vmem:[#allocation4 + $0x3a] ss:$8 sps:$4 sm:$0xff]   ;;  %v7908_v29 = vld [vmem:[%s12329_s8 + $0x90] sm:$0xff] }
 0x601   : > { %vm5917_vm13 = vcmp.gt.f32.partialorder %v5909_v33, 0.0  ;;  %v5927_v36 = vmul.f32 %v11572_v43, %v5909_v33  ;;  %v5889_v37 = vadd.f32 %v5888_v35, %v5784_v58  ;;  %v5890_v38 = vpop.f32.mrb[37].mxu0  ;;  %v9340_v9 = vld [vmem:[#allocation4 + $0x40] ss:$8 sps:$4 sm:$0xff]   ;;  %v7890_v22 = vld [vmem:[%s12329_s8] sm:$0xff]  ;;  %6586 = vst.msk [vmem:[#allocation6 + $0x8] sm:$0xff] %vm1522_vm15, %v9396_v19 }
 0x602   : > { %5971 = vst.msk [vmem:[#allocation4 + $0xa1] sm:$0xf] %vm1424_vm6, %v5950_v28  ;;  %v9384_v10 = vld [vmem:[#allocation4 + $0x60] ss:$8 sps:$4 sm:$0xff]   ;;  %v7909_v30 = vld [vmem:[%s12329_s8 + $0x98] sm:$0xff]  ;;  %v7910_v38 = vld [vmem:[%s12329_s8 + $0xa0] sm:$0xff] }
 0x603   : > { %v11627_v39 = vsel %vm5917_vm13, %v5909_v33, %v5927_v36  ;;  %v5910_v31 = vadd.f32 %v11570_v41, %v5889_v37  ;;  %v9326_v40 = vld [vmem:[#allocation4 + $0x71] ss:$8 sps:$4 sm:$0xff]   ;;  %6030 = vst.msk [vmem:[#allocation6 + $0x80] sm:$0xff] %vm1522_vm15, %v9384_v10  ;;  %v9342_v24 = vld [vmem:[#allocation4 + $0x40] ss:$8 sps:$4 sm:$0xff]   ;;  %v8719_v33 = vpack.c.bf16 %v7909_v30, %v7908_v29 }
 0x604   : > { %v5951_v42 = vcombine.high %v11627_v39, %v11627_v39  ;;  %5972 = vst.msk [vmem:[#allocation4 + $0xa9] sm:$0xf] %vm1424_vm6, %v11627_v39  ;;  %v5893_v44 = vpop.f32.mrb[38].mxu0  ;;  %6084 = vrot.lane.b32.xlu1 %v9326_v40, %s9549_s29  ;;  %v9387_v12 = vld [vmem:[#allocation4 + $0x70] ss:$8 sps:$4 sm:$0xff]   ;;  %v7891_v23 = vld [vmem:[%s12329_s8 + $0x8] sm:$0xff] }
 0x605   : > { %vm5918_vm8 = vcmp.gt.f32.partialorder %v5910_v31, 0.0  ;;  %v5928_v45 = vmul.f32 %v11572_v43, %v5910_v31  ;;  %v5894_v46 = vadd.f32 %v5893_v44, %v5789_v7  ;;  %v5895_v47 = vpop.f32.mrb[39].mxu0  ;;  %v9377_v7 = vld [vmem:[#allocation4 + $0x30] ss:$8 sps:$4 sm:$0xff]   ;;  %6031 = vst.msk [vmem:[#allocation6 + $0xa0] sm:$0xff] %vm1522_vm15, %v9387_v12  ;;  %v8717_v0 = vpack.c.bf16 %v7891_v23, %v7890_v22  ;;  %v7892_v34 = vld [vmem:[%s12329_s8 + $0x10] sm:$0xff] }
 0x606   : > { %5973 = vst.msk [vmem:[#allocation4 + $0xb1] sm:$0xf] %vm1424_vm6, %v5951_v42  ;;  %v9344_v14 = vld [vmem:[#allocation4 + $0x42] ss:$8 sps:$4 sm:$0xff]   ;;  %v7893_v28 = vld [vmem:[%s12329_s8 + $0x18] sm:$0xff]  ;;  %v7894_v42 = vld [vmem:[%s12329_s8 + $0x20] sm:$0xff] }
 0x607   : > { %v11640_v49 = vsel %vm5918_vm8, %v5910_v31, %v5928_v45  ;;  %v5911_v20 = vadd.f32 %v11570_v41, %v5894_v46  ;;  %v9327_v50 = vld [vmem:[#allocation4 + $0x91] ss:$8 sps:$4 sm:$0xff]   ;;  %v8715_v41 = vpack.c.bf16 %v7907_v53, %v7906_v48  ;;  %6028 = vst.msk [vmem:[#allocation6 + $0x40] sm:$0xff] %vm1522_vm15, %v9377_v7  ;;  %v9345_v15 = vld [vmem:[#allocation4 + $0x41] ss:$8 sps:$4 sm:$0xff]   ;;  %v8721_v36 = vpack.c.bf16 %v7893_v28, %v7892_v34 }
 0x608   : > { %v5952_v51 = vcombine.high %v11640_v49, %v11640_v49  ;;  %5974 = vst.msk [vmem:[#allocation4 + $0xc9] sm:$0xf] %vm1424_vm6, %v11640_v49  ;;  %6086 = vrot.lane.b32.xlu0 %v9327_v50, %s9549_s29  ;;  %v9390_v13 = vld [vmem:[#allocation4 + $0x90] ss:$8 sps:$4 sm:$0xff]   ;;  %v9348_v35 = vld [vmem:[#allocation4 + $0x60] ss:$8 sps:$4 sm:$0xff]  }
 0x609   : > { %vm5919_vm9 = vcmp.gt.f32.partialorder %v5911_v20, 0.0  ;;  %v5929_v25 = vmul.f32 %v11572_v43, %v5911_v20  ;;  %8716 = vmatprep.subr.bf16.mxu1 %v8715_v41  ;;  %v9331_v43 = vld [vmem:[#allocation4 + $0x12] ss:$8 sps:$4 sm:$0xff]   ;;  %6032 = vst.msk [vmem:[#allocation6 + $0xc0] sm:$0xff] %vm1522_vm15, %v9390_v13  ;;  %v7911_v31 = vld [vmem:[%s12329_s8 + $0xa8] sm:$0xff]  ;;  %v7912_v47 = vld [vmem:[%s12329_s8 + $0xb0] sm:$0xff] }
 0x60a   : > { %5975 = vst.msk [vmem:[#allocation4 + $0xd1] sm:$0xf] %vm1424_vm6, %v5952_v51  ;;  %v9347_v17 = vld [vmem:[#allocation4 + $0x18] ss:$8 sps:$4 sm:$0xff]   ;;  %8718 = vmatpush3.bf16.msra.mxu1 %v8717_v0  ;;  %v8723_v40 = vpack.c.bf16 %v7911_v31, %v7910_v38  ;;  %v9351_v46 = vld [vmem:[#allocation4 + $0x49] ss:$8 sps:$4 sm:$0xff]  }
 0x60b   : > { %v11653_v55 = vsel %vm5919_vm9, %v5911_v20, %v5929_v25  ;;  %v9329_v56 = vld [vmem:[#allocation4 + $0xa1] ss:$8 sps:$4 sm:$0xff]   ;;  %8720 = vmatprep.subr.bf16.mxu1 %v8719_v33  ;;  %v7913_v48 = vld [vmem:[%s12329_s8 + $0xb8] sm:$0xff]  ;;  %v7914_v41 = vld [vmem:[%s12329_s8 + $0xc0] sm:$0xff] }
 0x60c   : > { %v5953_v58 = vcombine.high %v11653_v55, %v11653_v55  ;;  %5976 = vst.msk [vmem:[#allocation4 + $0xd9] sm:$0xf] %vm1424_vm6, %v11653_v55  ;;  %6146 = vrot.lane.b32.xlu0 %v9328_v52, %s9553_s7  ;;  %6088 = vrot.lane.b32.xlu1 %v9329_v56, %s9549_s29  ;;  %v9393_v16 = vld [vmem:[#allocation4 + $0xa0] ss:$8 sps:$4 sm:$0xff]   ;;  %v7897_v50 = vld [vmem:[%s12329_s8 + $0x38] sm:$0xff]  ;;  %v8727_v25 = vpack.c.bf16 %v7913_v48, %v7912_v47  ;;  %v7918_v10 = vld [vmem:[%s12329_s8 + $0xe0] sm:$0xff] }
 0x60d   : > { %6033 = vst.msk [vmem:[#allocation6 + $0xe0] sm:$0xff] %vm1522_vm15, %v9393_v16  ;;  %v9349_v27 = vld [vmem:[#allocation4 + $0x19] ss:$8 sps:$4 sm:$0xff]   ;;  %v7896_v20 = vld [vmem:[%s12329_s8 + $0x30] sm:$0xff]  ;;  %v7921_v16 = vld [vmem:[%s12329_s8 + $0xf8] sm:$0xff] }
 0x60e   : > { %5977 = vst.msk [vmem:[#allocation4 + $0xe1] sm:$0xf] %vm1424_vm6, %v5953_v58  ;;  %v9350_v37 = vld [vmem:[#allocation4 + $0x1a] ss:$8 sps:$4 sm:$0xff]   ;;  %8722 = vmatpush3.bf16.msra.mxu1 %v8721_v36  ;;  %v9352_v51 = vld [vmem:[#allocation4 + $0x4a] ss:$8 sps:$4 sm:$0xff]   ;;  %v8729_v53 = vpack.c.bf16 %v7897_v50, %v7896_v20 }
 0x60f   : > { %v7895_v44 = vld [vmem:[%s12329_s8 + $0x28] sm:$0xff]  ;;  %8724 = vmatprep.subr.bf16.mxu1 %v8723_v40  ;;  %v7898_v58 = vld [vmem:[%s12329_s8 + $0x40] sm:$0xff]  ;;  %v7904_v22 = vld [vmem:[%s12329_s8 + $0x70] sm:$0xff] }
 0x610   : > { %6634 = vrot.lane.b32.xlu0 %v9330_v59, %s9549_s29  ;;  %6148 = vrot.lane.b32.xlu1 %v9331_v43, %s9553_s7  ;;  %v8725_v45 = vpack.c.bf16 %v7895_v44, %v7894_v42  ;;  %v9353_v52 = vld [vmem:[#allocation4 + $0x61] ss:$8 sps:$4 sm:$0xff]   ;;  %v9356_v7 = vld [vmem:[#allocation4 + $0x50] ss:$8 sps:$4 sm:$0xff]  }
 0x611   : > { %v7915_v56 = vld [vmem:[%s12329_s8 + $0xc8] sm:$0xff]  ;;  %v9361_v30 = vld [vmem:[#allocation4 + $0x68] ss:$8 sps:$4 sm:$0xff]  }
 0x612   : > { %8726 = vmatpush3.bf16.msra.mxu1 %v8725_v45  ;;  %v8731_v43 = vpack.c.bf16 %v7915_v56, %v7914_v41  ;;  %v7899_v59 = vld [vmem:[%s12329_s8 + $0x48] sm:$0xff]  ;;  %v9362_v33 = vld [vmem:[#allocation4 + $0x69] ss:$8 sps:$4 sm:$0xff]  }
 0x613   : > { %8728 = vmatprep.subr.bf16.mxu1 %v8727_v25  ;;  %v9409_v8 = vld [vmem:[#allocation4 + $0x22] ss:$8 sps:$4 sm:$0xff]   ;;  %v9363_v34 = vld [vmem:[#allocation4 + $0x70] ss:$8 sps:$4 sm:$0xff]  }
 0x614   : > { %6778 = vrot.lane.b32.xlu0 %v9332_v60, %s9554_s23  ;;  %6706 = vrot.lane.b32.xlu1 %v9333_v62, %s9553_s7  ;;  %v9354_v60 = vld [vmem:[#allocation4 + $0x20] ss:$8 sps:$4 sm:$0xff]   ;;  %v9355_v62 = vld [vmem:[#allocation4 + $0x32] ss:$8 sps:$4 sm:$0xff]   ;;  %6587 = vst.msk [vmem:[#allocation6 + $0x28] sm:$0xff] %vm1522_vm15, %v9409_v8 }
 0x615   : > { %v7903_v13 = vld [vmem:[%s12329_s8 + $0x68] sm:$0xff]  ;;  %v9364_v28 = vld [vmem:[#allocation4 + $0x71] ss:$8 sps:$4 sm:$0xff]  }
 0x616   : > { %8730 = vmatpush3.bf16.msra.mxu1 %v8729_v53  ;;  %v9360_v0 = vld [vmem:[#allocation4 + $0x39] ss:$8 sps:$4 sm:$0xff]   ;;  %v9370_v42 = vld [vmem:[#allocation4 + $0x48] ss:$8 sps:$4 sm:$0xff]  }
 0x617   : > { %8732 = vmatprep.subr.bf16.mxu1 %v8731_v43  ;;  %v9416_v29 = vld [vmem:[#allocation4 + $0x42] ss:$8 sps:$4 sm:$0xff]   ;;  %v9431_v38 = vld [vmem:[#allocation4 + $0x52] ss:$8 sps:$4 sm:$0xff]  }
 0x618   : > { %6850 = vrot.lane.b32.xlu0 %v9334_v1, %s9555_s24  ;;  %6218 = vrot.lane.b32.xlu1 %v9335_v63, %s9554_s23  ;;  %v8733_v63 = vpack.c.bf16 %v7899_v59, %v7898_v58  ;;  %v7916_v1 = vld [vmem:[%s12329_s8 + $0xd0] sm:$0xff]  ;;  %6588 = vst.msk [vmem:[#allocation6 + $0x48] sm:$0xff] %vm1522_vm15, %v9416_v29  ;;  %6589 = vst.msk [vmem:[#allocation6 + $0x68] sm:$0xff] %vm1522_vm15, %v9431_v38  ;;  %v9368_v31 = vld [vmem:[#allocation4 + $0x72] ss:$8 sps:$4 sm:$0xff]  }
 0x619   : > { %v9366_v36 = vld [vmem:[#allocation4 + $0x42] ss:$8 sps:$4 sm:$0xff]   ;;  %v9371_v44 = vld [vmem:[#allocation4 + $0x70] ss:$8 sps:$4 sm:$0xff]  }
 0x61a   : > { %8734 = vmatpush3.bf16.msra.mxu1 %v8733_v63  ;;  %v9369_v40 = vld [vmem:[#allocation4 + $0x40] ss:$8 sps:$4 sm:$0xff]   ;;  %v9444_v47 = vld [vmem:[#allocation4 + $0x72] ss:$8 sps:$4 sm:$0xff]  }
 0x61b   : > { %v9372_v45 = vld [vmem:[#allocation4 + $0x41] ss:$8 sps:$4 sm:$0xff]   ;;  %6590 = vst.msk [vmem:[#allocation6 + $0x88] sm:$0xff] %vm1522_vm15, %v9444_v47  ;;  %v9376_v20 = vld [vmem:[#allocation4 + $0x90] ss:$8 sps:$4 sm:$0xff]  }
 0x61c   : > { %6922 = vrot.lane.b32.xlu0 %v9336_v3, %s9556_s25  ;;  %6290 = vrot.lane.b32.xlu1 %v9337_v2, %s9555_s24  ;;  %v7917_v2 = vld [vmem:[%s12329_s8 + $0xd8] sm:$0xff]  ;;  %v9379_v50 = vld [vmem:[#allocation4 + $0x79] ss:$8 sps:$4 sm:$0xff]  }
 0x61d   : > { %v8735_v3 = vpack.c.bf16 %v7917_v2, %v7916_v1  ;;  %v9375_v48 = vld [vmem:[#allocation4 + $0x49] ss:$8 sps:$4 sm:$0xff]   ;;  %v9383_v41 = vld [vmem:[#allocation4 + $0x7a] ss:$8 sps:$4 sm:$0xff]  }
 0x61e   : > { %v9380_v25 = vld [vmem:[#allocation4 + $0x4a] ss:$8 sps:$4 sm:$0xff]  }
 0x61f   : > { %8736 = vmatprep.subr.bf16.mxu1 %v8735_v3  ;;  %v9459_v56 = vld [vmem:[#allocation4 + $0x82] ss:$8 sps:$4 sm:$0xff]   ;;  %v9386_v59 = vld [vmem:[#allocation4 + $0x50] ss:$8 sps:$4 sm:$0xff]  }
 0x620   : > { %6994 = vrot.lane.b32.xlu0 %v9338_v6, %s9557_s26  ;;  %6362 = vrot.lane.b32.xlu1 %v9339_v4, %s9556_s25  ;;  %v7900_v4 = vld [vmem:[%s12329_s8 + $0x50] sm:$0xff]  ;;  %v7901_v6 = vld [vmem:[%s12329_s8 + $0x58] sm:$0xff]  ;;  %6591 = vst.msk [vmem:[#allocation6 + $0xa8] sm:$0xff] %vm1522_vm15, %v9459_v56 }
 0x621   : > { %v9385_v58 = vld [vmem:[#allocation4 + $0x62] ss:$8 sps:$4 sm:$0xff]   ;;  %v9392_v3 = vld [vmem:[#allocation4 + $0x51] ss:$8 sps:$4 sm:$0xff]  }
 0x622   : > { %v9389_v63 = vld [vmem:[#allocation4 + $0x80] ss:$8 sps:$4 sm:$0xff]   ;;  %v9527_v56 = vld [vmem:[#allocation4 + $0x71] ss:$8 sps:$4 sm:$0xff]  }
 0x623   : > { %v9391_v1 = vld [vmem:[#allocation4 + $0x68] ss:$8 sps:$4 sm:$0xff]   ;;  %7148 = vst.msk [vmem:[#allocation6 + $0x50] sm:$0xff] %vm1522_vm15, %v9527_v56 }
 0x624   : > { %7066 = vrot.lane.b32.xlu0 %v9340_v9, %s9558_s27  ;;  %6434 = vrot.lane.b32.xlu1 %v9341_v18, %s9557_s26  ;;  %v9357_v18 = vld [vmem:[#allocation4 + $0x62] ss:$8 sps:$4 sm:$0xff]   ;;  %v8737_v9 = vpack.c.bf16 %v7901_v6, %v7900_v4 }
 0x625   : > { %v9472_v4 = vld [vmem:[#allocation4 + $0xa2] ss:$8 sps:$4 sm:$0xff]  }
 0x626   : > { %8738 = vmatpush3.bf16.msra.mxu1 %v8737_v9  ;;  %v9394_v6 = vld [vmem:[#allocation4 + $0x98] ss:$8 sps:$4 sm:$0xff]   ;;  %6592 = vst.msk [vmem:[#allocation6 + $0xc8] sm:$0xff] %vm1522_vm15, %v9472_v4  ;;  %v9395_v8 = vld [vmem:[#allocation4 + $0x69] ss:$8 sps:$4 sm:$0xff]  }
 0x627   : > { %v9404_v29 = vld [vmem:[#allocation4 + $0xa2] ss:$8 sps:$4 sm:$0xff]  }
 0x628   : > { %6636 = vrot.lane.b32.xlu0 %v9342_v24, %s9549_s29  ;;  %6506 = vrot.lane.b32.xlu1 %v9343_v11, %s9558_s27  ;;  %v7919_v11 = vld [vmem:[%s12329_s8 + $0xe8] sm:$0xff]  ;;  %v7902_v24 = vld [vmem:[%s12329_s8 + $0x60] sm:$0xff] }
 0x629   : > { %v8739_v12 = vpack.c.bf16 %v7919_v11, %v7918_v10  ;;  %v8741_v19 = vpack.c.bf16 %v7903_v13, %v7902_v24  ;;  %v9397_v11 = vld [vmem:[#allocation4 + $0xa0] ss:$8 sps:$4 sm:$0xff]  }
 0x62a   : > { %v9398_v24 = vld [vmem:[#allocation4 + $0x99] ss:$8 sps:$4 sm:$0xff]  }
 0x62b   : > { %8740 = vmatprep.subr.bf16.mxu1 %v8739_v12  ;;  %v9532_v4 = vld [vmem:[#allocation4 + $0xe1] ss:$8 sps:$4 sm:$0xff]  }
 0x62c   : > { %6780 = vrot.lane.b32.xlu0 %v9344_v14, %s9554_s23  ;;  %6708 = vrot.lane.b32.xlu1 %v9345_v15, %s9553_s7  ;;  %v9358_v14 = vld [vmem:[#allocation4 + $0x21] ss:$8 sps:$4 sm:$0xff]   ;;  %7153 = vst.msk [vmem:[#allocation6 + $0xf0] sm:$0xff] %vm1522_vm15, %v9532_v4 }
 0x62d   : > { %v7920_v15 = vld [vmem:[%s12329_s8 + $0xf0] sm:$0xff]  ;;  %8742 = vmatpush3.bf16.msra.mxu1 %v8741_v19 }
 0x62e   : > { %v8743_v23 = vpack.c.bf16 %v7921_v16, %v7920_v15  ;;  %v9400_v15 = vld [vmem:[#allocation4 + $0xa1] ss:$8 sps:$4 sm:$0xff]   ;;  %v9487_v16 = vld [vmem:[#allocation4 + $0xb2] ss:$8 sps:$4 sm:$0xff]  }
 0x62f   : > { %6593 = vst.msk [vmem:[#allocation6 + $0xe8] sm:$0xff] %vm1522_vm15, %v9487_v16  ;;  %v9421_v16 = vld [vmem:[#allocation4 + $0x98] ss:$8 sps:$4 sm:$0xff]  }
 0x630   : > { %6852 = vrot.lane.b32.xlu0 %v9346_v26, %s9555_s24  ;;  %6220 = vrot.lane.b32.xlu1 %v9347_v17, %s9554_s23  ;;  %v9359_v17 = vld [vmem:[#allocation4 + $0x38] ss:$8 sps:$4 sm:$0xff]   ;;  %v7905_v26 = vld [vmem:[%s12329_s8 + $0x78] sm:$0xff] }
 0x631   : > { %8744 = vmatprep.subr.bf16.mxu1 %v8743_v23  ;;  %v9402_v23 = vld [vmem:[#allocation4 + $0x72] ss:$8 sps:$4 sm:$0xff]   ;;  %v9442_v4 = vld [vmem:[#allocation4 + $0x42] ss:$8 sps:$4 sm:$0xff]  }
 0x634   : > { %6638 = vrot.lane.b32.xlu0 %v9348_v35, %s9549_s29  ;;  %6292 = vrot.lane.b32.xlu1 %v9349_v27, %s9555_s24  ;;  %v8745_v27 = vpack.c.bf16 %v7905_v26, %v7904_v22  ;;  %v9365_v35 = vld [vmem:[#allocation4 + $0x3a] ss:$8 sps:$4 sm:$0xff]  }
 0x635   : > { %v9401_v22 = vld [vmem:[#allocation4 + $0x9a] ss:$8 sps:$4 sm:$0xff]  }
 0x636   : > { %8746 = vmatpush3.bf16.msra.mxu1 %v8745_v27  ;;  %v9403_v26 = vld [vmem:[#allocation4 + $0x70] ss:$8 sps:$4 sm:$0xff]  }
 0x637   : > { %8780 = vmatprep.subr.bf16.mxu1 %v9559_v61 }
 0x638   : > { %6364 = vrot.lane.b32.xlu0 %v9350_v37, %s9556_s25  ;;  %6924 = vrot.lane.b32.xlu1 %v9351_v46, %s9556_s25  ;;  %v9367_v37 = vld [vmem:[#allocation4 + $0x6a] ss:$8 sps:$4 sm:$0xff]   ;;  %v9373_v46 = vld [vmem:[#allocation4 + $0x78] ss:$8 sps:$4 sm:$0xff]  }
 0x63c   : > { %6996 = vrot.lane.b32.xlu0 %v9352_v51, %s9557_s26  ;;  %6710 = vrot.lane.b32.xlu1 %v9353_v52, %s9553_s7  ;;  %v9382_v52 = vld [vmem:[#allocation4 + $0x91] ss:$8 sps:$4 sm:$0xff]  }
 0x640   : > { %6436 = vrot.lane.b32.xlu0 %v9354_v60, %s9557_s26  ;;  %6150 = vrot.lane.b32.xlu1 %v9355_v62, %s9553_s7  ;;  %v9388_v60 = vld [vmem:[#allocation4 + $0x92] ss:$8 sps:$4 sm:$0xff]  }
 0x644   : > { %7068 = vrot.lane.b32.xlu0 %v9356_v7, %s9558_s27  ;;  %6782 = vrot.lane.b32.xlu1 %v9357_v18, %s9554_s23 }
 0x648   : > { %6508 = vrot.lane.b32.xlu0 %v9358_v14, %s9558_s27  ;;  %6222 = vrot.lane.b32.xlu1 %v9359_v17, %s9554_s23  ;;  %v9399_v14 = vld [vmem:[#allocation4 + $0x6a] ss:$8 sps:$4 sm:$0xff]  }
 0x64c   : > { %6294 = vrot.lane.b32.xlu0 %v9360_v0, %s9555_s24  ;;  %6854 = vrot.lane.b32.xlu1 %v9361_v30, %s9555_s24  ;;  %v9405_v30 = vld [vmem:[#allocation4 + $0xa0] ss:$8 sps:$4 sm:$0xff]  }
 0x650   : > { %6926 = vrot.lane.b32.xlu0 %v9362_v33, %s9556_s25  ;;  %6640 = vrot.lane.b32.xlu1 %v9363_v34, %s9549_s29  ;;  %v9406_v33 = vld [vmem:[#allocation4 + $0x78] ss:$8 sps:$4 sm:$0xff]  }
 0x651   : > { %v9504_v34 = vld [vmem:[#allocation4 + $0x41] ss:$8 sps:$4 sm:$0xff]  }
 0x652   : > { %7146 = vst.msk [vmem:[#allocation6 + $0x10] sm:$0xff] %vm1522_vm15, %v9504_v34 }
 0x654   : > { %6712 = vrot.lane.b32.xlu0 %v9364_v28, %s9553_s7  ;;  %6366 = vrot.lane.b32.xlu1 %v9365_v35, %s9556_s25 }
 0x658   : > { %6152 = vrot.lane.b32.xlu0 %v9366_v36, %s9553_s7  ;;  %6998 = vrot.lane.b32.xlu1 %v9367_v37, %s9557_s26  ;;  %v9505_v36 = vld [vmem:[#allocation4 + $0xa1] ss:$8 sps:$4 sm:$0xff]   ;;  %v9407_v37 = vld [vmem:[#allocation4 + $0x71] ss:$8 sps:$4 sm:$0xff]  }
 0x659   : > { %7150 = vst.msk [vmem:[#allocation6 + $0x90] sm:$0xff] %vm1522_vm15, %v9505_v36 }
 0x65c   : > { %6784 = vrot.lane.b32.xlu0 %v9368_v31, %s9554_s23  ;;  %6438 = vrot.lane.b32.xlu1 %v9369_v40, %s9557_s26  ;;  %v9408_v40 = vld [vmem:[#allocation4 + $0xa8] ss:$8 sps:$4 sm:$0xff]  }
 0x660   : > { %6224 = vrot.lane.b32.xlu0 %v9370_v42, %s9554_s23  ;;  %7070 = vrot.lane.b32.xlu1 %v9371_v44, %s9558_s27  ;;  %v9516_v42 = vld [vmem:[#allocation4 + $0x51] ss:$8 sps:$4 sm:$0xff]  }
 0x661   : > { %v9410_v44 = vld [vmem:[#allocation4 + $0x79] ss:$8 sps:$4 sm:$0xff]   ;;  %7147 = vst.msk [vmem:[#allocation6 + $0x30] sm:$0xff] %vm1522_vm15, %v9516_v42 }
 0x664   : > { %6510 = vrot.lane.b32.xlu1 %v9372_v45, %s9558_s27  ;;  %6856 = vrot.lane.b32.xlu0 %v9373_v46, %s9555_s24  ;;  %v9519_v45 = vld [vmem:[#allocation4 + $0xb1] ss:$8 sps:$4 sm:$0xff]  }
 0x665   : > { %7151 = vst.msk [vmem:[#allocation6 + $0xb0] sm:$0xff] %vm1522_vm15, %v9519_v45  ;;  %v9432_v45 = vld [vmem:[#allocation4 + $0xa0] ss:$8 sps:$4 sm:$0xff]  }
 0x668   : > { %6296 = vrot.lane.b32.xlu1 %v9375_v48, %s9555_s24  ;;  %6642 = vrot.lane.b32.xlu0 %v9376_v20, %s9549_s29  ;;  %v9411_v48 = vld [vmem:[#allocation4 + $0xc0] ss:$8 sps:$4 sm:$0xff]   ;;  %v9522_v20 = vld [vmem:[#allocation4 + $0x70] ss:$8 sps:$4 sm:$0xff]  }
 0x669   : > { %7706 = vst.msk [vmem:[#allocation6 + $0x18] sm:$0xff] %vm1522_vm15, %v9522_v20 }
 0x66a   : > { %v6079_v51 = vpop.permute.xlu0 %6078 }
 0x66b   : > { %6100 = vst.msk [vmem:[#allocation6 + $0x40] sm:$0xff] %vm1595_vm14, %v6079_v51  ;;  %v9413_v51 = vld [vmem:[#allocation4 + $0x7a] ss:$8 sps:$4 sm:$0xff]  }
 0x66c   : > { %6928 = vrot.lane.b32.xlu1 %v9379_v50, %s9556_s25  ;;  %6368 = vrot.lane.b32.xlu0 %v9380_v25, %s9556_s25  ;;  %v9412_v50 = vld [vmem:[#allocation4 + $0xa9] ss:$8 sps:$4 sm:$0xff]  }
 0x66d   : > { %v9525_v25 = vld [vmem:[#allocation4 + $0xd0] ss:$8 sps:$4 sm:$0xff]  }
 0x66e   : > { %v6081_v53 = vpop.permute.xlu1 %6080  ;;  %7710 = vst.msk [vmem:[#allocation6 + $0x98] sm:$0xff] %vm1522_vm15, %v9525_v25 }
 0x66f   : > { %6101 = vst.msk [vmem:[#allocation6 + $0x60] sm:$0xff] %vm1595_vm14, %v6081_v53 }
 0x670   : > { %6714 = vrot.lane.b32.xlu1 %v9382_v52, %s9553_s7  ;;  %7000 = vrot.lane.b32.xlu0 %v9383_v41, %s9557_s26 }
 0x672   : > { %v6083_v43 = vpop.permute.xlu0 %6082 }
 0x673   : > { %6102 = vst.msk [vmem:[#allocation6 + $0x80] sm:$0xff] %vm1595_vm14, %v6083_v43  ;;  %v9414_v43 = vld [vmem:[#allocation4 + $0xc1] ss:$8 sps:$4 sm:$0xff]  }
 0x674   : > { %6154 = vrot.lane.b32.xlu1 %v9385_v58, %s9553_s7  ;;  %6440 = vrot.lane.b32.xlu0 %v9386_v59, %s9557_s26  ;;  %v9528_v58 = vld [vmem:[#allocation4 + $0xd1] ss:$8 sps:$4 sm:$0xff]  }
 0x675   : > { %v9415_v59 = vld [vmem:[#allocation4 + $0xaa] ss:$8 sps:$4 sm:$0xff]   ;;  %7152 = vst.msk [vmem:[#allocation6 + $0xd0] sm:$0xff] %vm1522_vm15, %v9528_v58 }
 0x676   : > { %v6085_v62 = vpop.permute.xlu1 %6084 }
 0x677   : > { %6103 = vst.msk [vmem:[#allocation6 + $0xa0] sm:$0xff] %vm1595_vm14, %v6085_v62  ;;  %v9530_v62 = vld [vmem:[#allocation4 + $0xe0] ss:$8 sps:$4 sm:$0xff]  }
 0x678   : > { %6786 = vrot.lane.b32.xlu1 %v9388_v60, %s9554_s23  ;;  %7072 = vrot.lane.b32.xlu0 %v9389_v63, %s9558_s27  ;;  %v9529_v60 = vld [vmem:[#allocation4 + $0x80] ss:$8 sps:$4 sm:$0xff]   ;;  %7711 = vst.msk [vmem:[#allocation6 + $0xb8] sm:$0xff] %vm1522_vm15, %v9530_v62 }
 0x679   : > { %v9531_v63 = vld [vmem:[#allocation4 + $0x81] ss:$8 sps:$4 sm:$0xff]   ;;  %7707 = vst.msk [vmem:[#allocation6 + $0x38] sm:$0xff] %vm1522_vm15, %v9529_v60 }
 0x67a   : > { %v6087_v2 = vpop.permute.xlu0 %6086  ;;  %7149 = vst.msk [vmem:[#allocation6 + $0x70] sm:$0xff] %vm1522_vm15, %v9531_v63  ;;  %v9440_v63 = vld [vmem:[#allocation4 + $0xaa] ss:$8 sps:$4 sm:$0xff]  }
 0x67b   : > { %6104 = vst.msk [vmem:[#allocation6 + $0xc0] sm:$0xff] %vm1595_vm14, %v6087_v2 }
 0x67c   : > { %6226 = vrot.lane.b32.xlu1 %v9391_v1, %s9554_s23  ;;  %6512 = vrot.lane.b32.xlu0 %v9392_v3, %s9558_s27 }
 0x67e   : > { %v6147_v7 = vpop.permute.xlu0 %6146  ;;  %v6089_v18 = vpop.permute.xlu1 %6088 }
 0x67f   : > { %6170 = vst.msk [vmem:[#allocation6] sm:$0xff] %vm1668_vm0, %v6147_v7  ;;  %v9535_v7 = vld [vmem:[#allocation4 + $0xb0] ss:$8 sps:$4 sm:$0xff]  }
 0x680   : > { %6105 = vst.msk [vmem:[#allocation6 + $0xe0] sm:$0xff] %vm1595_vm14, %v6089_v18  ;;  %6858 = vrot.lane.b32.xlu1 %v9394_v6, %s9555_s24  ;;  %6298 = vrot.lane.b32.xlu0 %v9395_v8, %s9555_s24  ;;  %v9533_v6 = vld [vmem:[#allocation4 + $0xa0] ss:$8 sps:$4 sm:$0xff]  }
 0x681   : > { %7708 = vst.msk [vmem:[#allocation6 + $0x58] sm:$0xff] %vm1522_vm15, %v9533_v6  ;;  %7709 = vst.msk [vmem:[#allocation6 + $0x78] sm:$0xff] %vm1522_vm15, %v9535_v7  ;;  %v9443_v6 = vld [vmem:[#allocation4 + $0xa2] ss:$8 sps:$4 sm:$0xff]   ;;  %v7922_v7 = vld [vmem:[%s12329_s8 + $0x100] sm:$0xff] }
 0x682   : > { %v6635_v9 = vpop.permute.xlu0 %6634  ;;  %v6149_v10 = vpop.permute.xlu1 %6148 }
 0x683   : > { %6658 = vst.msk [vmem:[#allocation6 + $0x8] sm:$0xff] %vm1595_vm14, %v6635_v9  ;;  %v9417_v9 = vld [vmem:[#allocation4 + $0x92] ss:$8 sps:$4 sm:$0xff]  }
 0x684   : > { %6171 = vst.msk [vmem:[#allocation6 + $0x20] sm:$0xff] %vm1668_vm0, %v6149_v10  ;;  %6644 = vrot.lane.b32.xlu1 %v9397_v11, %s9549_s29  ;;  %6930 = vrot.lane.b32.xlu0 %v9398_v24, %s9556_s25  ;;  %v9418_v10 = vld [vmem:[#allocation4 + $0x80] ss:$8 sps:$4 sm:$0xff]  }
 0x686   : > { %v6779_v12 = vpop.permute.xlu0 %6778  ;;  %v6707_v13 = vpop.permute.xlu1 %6706 }
 0x687   : > { %6730 = vst.msk [vmem:[#allocation6 + $0x8] sm:$0xff] %vm1668_vm0, %v6707_v13  ;;  %v9420_v13 = vld [vmem:[#allocation4 + $0xb0] ss:$8 sps:$4 sm:$0xff]  }
 0x688   : > { %6802 = vst.msk [vmem:[#allocation6 + $0x8] sm:$0xff] %vm1742_vm1, %v6779_v12  ;;  %6370 = vrot.lane.b32.xlu1 %v9399_v14, %s9556_s25  ;;  %6716 = vrot.lane.b32.xlu0 %v9400_v15, %s9553_s7  ;;  %v9419_v12 = vld [vmem:[#allocation4 + $0xc2] ss:$8 sps:$4 sm:$0xff]  }
 0x68a   : > { %v6851_v17 = vpop.permute.xlu0 %6850  ;;  %v6219_v19 = vpop.permute.xlu1 %6218 }
 0x68b   : > { %6874 = vst.msk [vmem:[#allocation6 + $0x8] sm:$0xff] %vm1815_vm2, %v6851_v17  ;;  %v9422_v17 = vld [vmem:[#allocation4 + $0x81] ss:$8 sps:$4 sm:$0xff]  }
 0x68c   : > { %6242 = vst.msk [vmem:[#allocation6] sm:$0xff] %vm1742_vm1, %v6219_v19  ;;  %7002 = vrot.lane.b32.xlu1 %v9401_v22, %s9557_s26  ;;  %6156 = vrot.lane.b32.xlu0 %v9402_v23, %s9553_s7  ;;  %v9423_v23 = vld [vmem:[#allocation4 + $0xc8] ss:$8 sps:$4 sm:$0xff]  }
 0x68e   : > { %v6923_v0 = vpop.permute.xlu0 %6922  ;;  %v6291_v27 = vpop.permute.xlu1 %6290 }
 0x68f   : > { %6946 = vst.msk [vmem:[#allocation6 + $0x8] sm:$0xff] %vm1888_vm3, %v6923_v0 }
 0x690   : > { %6314 = vst.msk [vmem:[#allocation6] sm:$0xff] %vm1815_vm2, %v6291_v27  ;;  %6442 = vrot.lane.b32.xlu1 %v9403_v26, %s9557_s26  ;;  %6788 = vrot.lane.b32.xlu0 %v9404_v29, %s9554_s23  ;;  %v9424_v26 = vld [vmem:[#allocation4 + $0x99] ss:$8 sps:$4 sm:$0xff]  }
 0x691   : > { %v9425_v29 = vld [vmem:[#allocation4 + $0xd0] ss:$8 sps:$4 sm:$0xff]  }
 0x692   : > { %v6995_v28 = vpop.permute.xlu0 %6994  ;;  %v6363_v35 = vpop.permute.xlu1 %6362 }
 0x693   : > { %7018 = vst.msk [vmem:[#allocation6 + $0x8] sm:$0xff] %vm1962_vm4, %v6995_v28  ;;  %v9427_v28 = vld [vmem:[#allocation4 + $0x9a] ss:$8 sps:$4 sm:$0xff]  }
 0x694   : > { %6386 = vst.msk [vmem:[#allocation6] sm:$0xff] %vm1888_vm3, %v6363_v35  ;;  %7074 = vrot.lane.b32.xlu1 %v9405_v30, %s9558_s27  ;;  %6228 = vrot.lane.b32.xlu0 %v9406_v33, %s9554_s23  ;;  %v9426_v30 = vld [vmem:[#allocation4 + $0xc9] ss:$8 sps:$4 sm:$0xff]  }
 0x695   : > { %v9428_v35 = vld [vmem:[#allocation4 + $0xd1] ss:$8 sps:$4 sm:$0xff]  }
 0x696   : > { %v7067_v38 = vpop.permute.xlu0 %7066  ;;  %v6435_v31 = vpop.permute.xlu1 %6434 }
 0x697   : > { %7090 = vst.msk [vmem:[#allocation6 + $0x8] sm:$0xff] %vm2035_vm5, %v7067_v38 }
 0x698   : > { %6458 = vst.msk [vmem:[#allocation6] sm:$0xff] %vm1962_vm4, %v6435_v31  ;;  %6514 = vrot.lane.b32.xlu1 %v9407_v37, %s9558_s27  ;;  %6860 = vrot.lane.b32.xlu0 %v9408_v40, %s9555_s24  ;;  %v9429_v31 = vld [vmem:[#allocation4 + $0xca] ss:$8 sps:$4 sm:$0xff]  }
 0x699   : > { %v9430_v40 = vld [vmem:[#allocation4 + $0xa2] ss:$8 sps:$4 sm:$0xff]  }
 0x69a   : > { %v6637_v46 = vpop.permute.xlu0 %6636  ;;  %v6507_v47 = vpop.permute.xlu1 %6506 }
 0x69b   : > { %6659 = vst.msk [vmem:[#allocation6 + $0x28] sm:$0xff] %vm1595_vm14, %v6637_v46  ;;  %v9433_v46 = vld [vmem:[#allocation4 + $0xd2] ss:$8 sps:$4 sm:$0xff]  }
 0x69c   : > { %6530 = vst.msk [vmem:[#allocation6] sm:$0xff] %vm2035_vm5, %v6507_v47  ;;  %6300 = vrot.lane.b32.xlu1 %v9410_v44, %s9555_s24  ;;  %6646 = vrot.lane.b32.xlu0 %v9411_v48, %s9549_s29 }
 0x69e   : > { %v6781_v52 = vpop.permute.xlu0 %6780  ;;  %v6709_v53 = vpop.permute.xlu1 %6708  ;;  %v7859_v41 = vld [vmem:[#allocation6 + $0x8] sm:$0xff] }
 0x69f   : > { %6731 = vst.msk [vmem:[#allocation6 + $0x28] sm:$0xff] %vm1668_vm0, %v6709_v53  ;;  %8039 = vmatprep.mubr.f32.mxu1 %v7859_v41  ;;  %v9436_v53 = vld [vmem:[#allocation4 + $0xa1] ss:$8 sps:$4 sm:$0xff]  }
 0x6a0   : > { %6803 = vst.msk [vmem:[#allocation6 + $0x28] sm:$0xff] %vm1742_vm1, %v6781_v52  ;;  %6932 = vrot.lane.b32.xlu1 %v9412_v50, %s9556_s25  ;;  %6372 = vrot.lane.b32.xlu0 %v9413_v51, %s9556_s25  ;;  %v9434_v50 = vld [vmem:[#allocation4 + $0xd0] ss:$8 sps:$4 sm:$0xff]  }
 0x6a1   : > { %v9435_v51 = vld [vmem:[#allocation4 + $0xa8] ss:$8 sps:$4 sm:$0xff]   ;;  %v9437_v41 = vld [vmem:[#allocation4 + $0xd8] ss:$8 sps:$4 sm:$0xff]  }
 0x6a2   : > { %v6853_v1 = vpop.permute.xlu0 %6852  ;;  %v6221_v2 = vpop.permute.xlu1 %6220 }
 0x6a3   : > { %v7858_v3 = vld [vmem:[#allocation6] sm:$0xff]  ;;  %6875 = vst.msk [vmem:[#allocation6 + $0x28] sm:$0xff] %vm1815_vm2, %v6853_v1 }
 0x6a4   : > { %6243 = vst.msk [vmem:[#allocation6 + $0x20] sm:$0xff] %vm1742_vm1, %v6221_v2  ;;  %8040 = vmatmul.mubr.f32.vlgmr.msra.gmra.mrb[32].mxu1 %v7858_v3  ;;  %6718 = vrot.lane.b32.xlu1 %v9414_v43, %s9553_s7  ;;  %v9438_v43 = vld [vmem:[#allocation4 + $0xa9] ss:$8 sps:$4 sm:$0xff]   ;;  %v9441_v1 = vld [vmem:[#allocation4 + $0xda] ss:$8 sps:$4 sm:$0xff]  }
 0x6a5   : > { %7004 = vrot.lane.b32.xlu0 %v9415_v59, %s9557_s26  ;;  %v9439_v59 = vld [vmem:[#allocation4 + $0xd9] ss:$8 sps:$4 sm:$0xff]  }
 0x6a6   : > { %v6639_v18 = vpop.permute.xlu0 %6638  ;;  %v6293_v8 = vpop.permute.xlu1 %6292 }
 0x6a7   : > { %6660 = vst.msk [vmem:[#allocation6 + $0x48] sm:$0xff] %vm1595_vm14, %v6639_v18  ;;  %v7923_v18 = vld [vmem:[%s12329_s8 + $0x108] sm:$0xff] }
 0x6a8   : > { %6315 = vst.msk [vmem:[#allocation6 + $0x20] sm:$0xff] %vm1815_vm2, %v6293_v8  ;;  %6158 = vrot.lane.b32.xlu1 %v9417_v9, %s9553_s7  ;;  %v8748_v8 = vpack.c.bf16 %v7923_v18, %v7922_v7 }
 0x6a9   : > { %6444 = vrot.lane.b32.xlu0 %v9418_v10, %s9557_s26 }
 0x6aa   : > { %v6365_v11 = vpop.permute.xlu0 %6364  ;;  %v6925_v24 = vpop.permute.xlu1 %6924  ;;  %8749 = vmatpush1.bf16.msra.mxu0 %v8748_v8  ;;  %8791 = vmatpush1.bf16.msra.mxu1 %v8748_v8 }
 0x6ab   : > { %6387 = vst.msk [vmem:[#allocation6 + $0x20] sm:$0xff] %vm1888_vm3, %v6365_v11  ;;  %6947 = vst.msk [vmem:[#allocation6 + $0x28] sm:$0xff] %vm1888_vm3, %v6925_v24  ;;  %v9445_v24 = vld [vmem:[#allocation4 + $0xb0] ss:$8 sps:$4 sm:$0xff]   ;;  %8750 = vmatprep.subr.bf16.mxu0 %v9559_v61  ;;  %8781 = vmatprep.subr.bf16.mxu1 %v9559_v61 }
 0x6ac   : > { %6790 = vrot.lane.b32.xlu1 %v9419_v12, %s9554_s23  ;;  %v9446_v12 = vld [vmem:[#allocation4 + $0xe0] ss:$8 sps:$4 sm:$0xff]  }
 0x6ad   : > { %7076 = vrot.lane.b32.xlu0 %v9420_v13, %s9558_s27  ;;  %v7924_v13 = vld [vmem:[%s12329_s8 + $0x110] sm:$0xff] }
 0x6ae   : > { %v6997_v14 = vpop.permute.xlu0 %6996  ;;  %v6711_v15 = vpop.permute.xlu1 %6710 }
 0x6af   : > { %7019 = vst.msk [vmem:[#allocation6 + $0x28] sm:$0xff] %vm1962_vm4, %v6997_v14  ;;  %v7925_v14 = vld [vmem:[%s12329_s8 + $0x118] sm:$0xff] }
 0x6b0   : > { %6732 = vst.msk [vmem:[#allocation6 + $0x48] sm:$0xff] %vm1668_vm0, %v6711_v15  ;;  %6230 = vrot.lane.b32.xlu1 %v9421_v16, %s9554_s23  ;;  %v8751_v15 = vpack.c.bf16 %v7925_v14, %v7924_v13 }
 0x6b1   : > { %6516 = vrot.lane.b32.xlu0 %v9422_v17, %s9558_s27 }
 0x6b2   : > { %v6437_v19 = vpop.permute.xlu0 %6436  ;;  %v6151_v22 = vpop.permute.xlu1 %6150  ;;  %8752 = vmatpush1.bf16.msra.mxu0 %v8751_v15  ;;  %8792 = vmatpush1.bf16.msra.mxu1 %v8751_v15  ;;  %v9462_v15 = vld [vmem:[#allocation4 + $0xd0] ss:$8 sps:$4 sm:$0xff]  }
 0x6b3   : > { %6459 = vst.msk [vmem:[#allocation6 + $0x20] sm:$0xff] %vm1962_vm4, %v6437_v19  ;;  %8753 = vmatprep.subr.bf16.mxu0 %v9559_v61  ;;  %8782 = vmatprep.subr.bf16.mxu1 %v9559_v61 }
 0x6b4   : > { %6172 = vst.msk [vmem:[#allocation6 + $0x40] sm:$0xff] %vm1668_vm0, %v6151_v22  ;;  %6862 = vrot.lane.b32.xlu1 %v9423_v23, %s9555_s24  ;;  %v9447_v22 = vld [vmem:[#allocation4 + $0x60] ss:$8 sps:$4 sm:$0xff]  }
 0x6b5   : > { %6302 = vrot.lane.b32.xlu0 %v9424_v26, %s9555_s24  ;;  %v9448_v23 = vld [vmem:[#allocation4 + $0xc0] ss:$8 sps:$4 sm:$0xff]   ;;  %v7926_v26 = vld [vmem:[%s12329_s8 + $0x120] sm:$0xff] }
 0x6b6   : > { %v7069_v0 = vpop.permute.xlu0 %7068  ;;  %v6783_v27 = vpop.permute.xlu1 %6782 }
 0x6b7   : > { %7091 = vst.msk [vmem:[#allocation6 + $0x28] sm:$0xff] %vm2035_vm5, %v7069_v0  ;;  %v7927_v0 = vld [vmem:[%s12329_s8 + $0x128] sm:$0xff] }
 0x6b8   : > { %6804 = vst.msk [vmem:[#allocation6 + $0x48] sm:$0xff] %vm1742_vm1, %v6783_v27  ;;  %6648 = vrot.lane.b32.xlu1 %v9425_v29, %s9549_s29  ;;  %v8754_v27 = vpack.c.bf16 %v7927_v0, %v7926_v26  ;;  %v9464_v0 = vld [vmem:[#allocation4 + $0xc9] ss:$8 sps:$4 sm:$0xff]  }
 0x6b9   : > { %6934 = vrot.lane.b32.xlu0 %v9426_v30, %s9556_s25 }
 0x6ba   : > { %v6509_v33 = vpop.permute.xlu0 %6508  ;;  %v6223_v34 = vpop.permute.xlu1 %6222  ;;  %8755 = vmatpush1.bf16.msra.mxu0 %v8754_v27  ;;  %8793 = vmatpush1.bf16.msra.mxu1 %v8754_v27  ;;  %v9465_v27 = vld [vmem:[#allocation4 + $0x72] ss:$8 sps:$4 sm:$0xff]  }
 0x6bb   : > { %6531 = vst.msk [vmem:[#allocation6 + $0x20] sm:$0xff] %vm2035_vm5, %v6509_v33  ;;  %v9449_v33 = vld [vmem:[#allocation4 + $0xb1] ss:$8 sps:$4 sm:$0xff]   ;;  %8756 = vmatprep.subr.bf16.mxu0 %v9559_v61  ;;  %8783 = vmatprep.subr.bf16.mxu1 %v9559_v61 }
 0x6bc   : > { %6244 = vst.msk [vmem:[#allocation6 + $0x40] sm:$0xff] %vm1742_vm1, %v6223_v34  ;;  %6374 = vrot.lane.b32.xlu1 %v9427_v28, %s9556_s25  ;;  %v9450_v34 = vld [vmem:[#allocation4 + $0x61] ss:$8 sps:$4 sm:$0xff]  }
 0x6bd   : > { %6720 = vrot.lane.b32.xlu0 %v9428_v35, %s9553_s7  ;;  %v7928_v28 = vld [vmem:[%s12329_s8 + $0x130] sm:$0xff]  ;;  %v7929_v35 = vld [vmem:[%s12329_s8 + $0x138] sm:$0xff] }
 0x6be   : > { %v6295_v36 = vpop.permute.xlu0 %6294  ;;  %v6855_v37 = vpop.permute.xlu1 %6854  ;;  %v7863_v38 = vld [vmem:[#allocation6 + $0x28] sm:$0xff] }
 0x6bf   : > { %6316 = vst.msk [vmem:[#allocation6 + $0x40] sm:$0xff] %vm1815_vm2, %v6295_v36  ;;  %6876 = vst.msk [vmem:[#allocation6 + $0x48] sm:$0xff] %vm1815_vm2, %v6855_v37  ;;  %8044 = vmatprep.mubr.f32.mxu1 %v7863_v38  ;;  %v8757_v36 = vpack.c.bf16 %v7929_v35, %v7928_v28  ;;  %v9466_v35 = vld [vmem:[#allocation4 + $0xd2] ss:$8 sps:$4 sm:$0xff]  }
 0x6c0   : > { %7006 = vrot.lane.b32.xlu1 %v9429_v31, %s9557_s26  ;;  %v9451_v31 = vld [vmem:[#allocation4 + $0xc1] ss:$8 sps:$4 sm:$0xff]  }
 0x6c1   : > { %6160 = vrot.lane.b32.xlu0 %v9430_v40, %s9553_s7  ;;  %v9452_v40 = vld [vmem:[#allocation4 + $0x62] ss:$8 sps:$4 sm:$0xff]   ;;  %8758 = vmatpush1.bf16.msra.mxu0 %v8757_v36 }
 0x6c2   : > { %v6927_v42 = vpop.permute.xlu0 %6926  ;;  %v6641_v44 = vpop.permute.xlu1 %6640  ;;  %v7862_v47 = vld [vmem:[#allocation6 + $0x20] sm:$0xff]  ;;  %8794 = vmatpush1.bf16.msra.mxu1 %v8757_v36  ;;  %8759 = vmatprep.subr.bf16.mxu0 %v9559_v61  ;;  %v9467_v36 = vld [vmem:[#allocation4 + $0x71] ss:$8 sps:$4 sm:$0xff]  }
 0x6c3   : > { %6948 = vst.msk [vmem:[#allocation6 + $0x48] sm:$0xff] %vm1888_vm3, %v6927_v42  ;;  %8045 = vmatmul.mubr.f32.gmra.mrb[34].mxu1 %v7862_v47  ;;  %v7930_v42 = vld [vmem:[%s12329_s8 + $0x140] sm:$0xff]  ;;  %8784 = vmatprep.subr.bf16.mxu1 %v9559_v61 }
 0x6c4   : > { %6661 = vst.msk [vmem:[#allocation6 + $0x68] sm:$0xff] %vm1595_vm14, %v6641_v44  ;;  %6446 = vrot.lane.b32.xlu1 %v9432_v45, %s9557_s26  ;;  %v7931_v44 = vld [vmem:[%s12329_s8 + $0x148] sm:$0xff] }
 0x6c5   : > { %6792 = vrot.lane.b32.xlu0 %v9433_v46, %s9554_s23  ;;  %v8760_v45 = vpack.c.bf16 %v7931_v44, %v7930_v42  ;;  %v9470_v44 = vld [vmem:[#allocation4 + $0xca] ss:$8 sps:$4 sm:$0xff]  }
 0x6c6   : > { %v6713_v48 = vpop.permute.xlu0 %6712  ;;  %v6367_v20 = vpop.permute.xlu1 %6366 }
 0x6c7   : > { %6733 = vst.msk [vmem:[#allocation6 + $0x68] sm:$0xff] %vm1668_vm0, %v6713_v48  ;;  %v9453_v48 = vld [vmem:[#allocation4 + $0xc2] ss:$8 sps:$4 sm:$0xff]   ;;  %8761 = vmatpush1.bf16.msra.mxu0 %v8760_v45  ;;  %8795 = vmatpush1.bf16.msra.mxu1 %v8760_v45  ;;  %v9471_v45 = vld [vmem:[#allocation4 + $0x72] ss:$8 sps:$4 sm:$0xff]  }
 0x6c8   : > { %6388 = vst.msk [vmem:[#allocation6 + $0x40] sm:$0xff] %vm1888_vm3, %v6367_v20  ;;  %7078 = vrot.lane.b32.xlu1 %v9434_v50, %s9558_s27  ;;  %v9454_v20 = vld [vmem:[#allocation4 + $0x52] ss:$8 sps:$4 sm:$0xff]   ;;  %8762 = vmatprep.subr.bf16.mxu0 %v9559_v61  ;;  %v7932_v50 = vld [vmem:[%s12329_s8 + $0x150] sm:$0xff] }
 0x6c9   : > { %6232 = vrot.lane.b32.xlu0 %v9435_v51, %s9554_s23  ;;  %v7933_v51 = vld [vmem:[%s12329_s8 + $0x158] sm:$0xff]  ;;  %8785 = vmatprep.subr.bf16.mxu1 %v9559_v61 }
 0x6ca   : > { %v6153_v25 = vpop.permute.xlu0 %6152  ;;  %v6999_v52 = vpop.permute.xlu1 %6998 }
 0x6cb   : > { %6173 = vst.msk [vmem:[#allocation6 + $0x60] sm:$0xff] %vm1668_vm0, %v6153_v25  ;;  %v8763_v25 = vpack.c.bf16 %v7933_v51, %v7932_v50  ;;  %v9474_v50 = vld [vmem:[#allocation4 + $0x72] ss:$8 sps:$4 sm:$0xff]  }
 0x6cc   : > { %7020 = vst.msk [vmem:[#allocation6 + $0x48] sm:$0xff] %vm1962_vm4, %v6999_v52  ;;  %6518 = vrot.lane.b32.xlu1 %v9436_v53, %s9558_s27 }
 0x6cd   : > { %6864 = vrot.lane.b32.xlu0 %v9437_v41, %s9555_s24  ;;  %v9455_v41 = vld [vmem:[#allocation4 + $0xb2] ss:$8 sps:$4 sm:$0xff]   ;;  %8764 = vmatpush1.bf16.msra.mxu0 %v8763_v25 }
 0x6ce   : > { %v6785_v56 = vpop.permute.xlu0 %6784  ;;  %v6439_v58 = vpop.permute.xlu1 %6438  ;;  %8796 = vmatpush1.bf16.msra.mxu1 %v8763_v25  ;;  %8765 = vmatprep.subr.bf16.mxu0 %v9559_v61 }
 0x6cf   : > { %6805 = vst.msk [vmem:[#allocation6 + $0x68] sm:$0xff] %vm1742_vm1, %v6785_v56  ;;  %v9456_v56 = vld [vmem:[#allocation4 + $0x68] ss:$8 sps:$4 sm:$0xff]   ;;  %8786 = vmatprep.subr.bf16.mxu1 %v9559_v61 }
 0x6d0   : > { %6460 = vst.msk [vmem:[#allocation6 + $0x40] sm:$0xff] %vm1962_vm4, %v6439_v58  ;;  %6304 = vrot.lane.b32.xlu1 %v9438_v43, %s9555_s24  ;;  %v7934_v58 = vld [vmem:[%s12329_s8 + $0x160] sm:$0xff]  ;;  %v7935_v43 = vld [vmem:[%s12329_s8 + $0x168] sm:$0xff] }
 0x6d1   : > { %6936 = vrot.lane.b32.xlu0 %v9439_v59, %s9556_s25  ;;  %v8766_v59 = vpack.c.bf16 %v7935_v43, %v7934_v58  ;;  %v9477_v43 = vld [vmem:[#allocation4 + $0xd8] ss:$8 sps:$4 sm:$0xff]  }
 0x6d2   : > { %v6225_v60 = vpop.permute.xlu0 %6224  ;;  %v7071_v62 = vpop.permute.xlu1 %7070 }
 0x6d3   : > { %6245 = vst.msk [vmem:[#allocation6 + $0x60] sm:$0xff] %vm1742_vm1, %v6225_v60  ;;  %8767 = vmatpush1.bf16.msra.mxu0 %v8766_v59  ;;  %8797 = vmatpush1.bf16.msra.mxu1 %v8766_v59  ;;  %v9478_v59 = vld [vmem:[#allocation4 + $0x81] ss:$8 sps:$4 sm:$0xff]  }
 0x6d4   : > { %7092 = vst.msk [vmem:[#allocation6 + $0x48] sm:$0xff] %vm2035_vm5, %v7071_v62  ;;  %6376 = vrot.lane.b32.xlu1 %v9440_v63, %s9556_s25  ;;  %8768 = vmatprep.subr.bf16.mxu0 %v9559_v61 }
 0x6d5   : > { %7008 = vrot.lane.b32.xlu0 %v9441_v1, %s9557_s26  ;;  %v9457_v1 = vld [vmem:[#allocation4 + $0xc8] ss:$8 sps:$4 sm:$0xff]   ;;  %8787 = vmatprep.subr.bf16.mxu1 %v9559_v61 }
 0x6d6   : > { %v6511_v2 = vpop.permute.xlu1 %6510  ;;  %v6857_v3 = vpop.permute.xlu0 %6856 }
 0x6d7   : > { %6532 = vst.msk [vmem:[#allocation6 + $0x40] sm:$0xff] %vm2035_vm5, %v6511_v2  ;;  %v9458_v2 = vld [vmem:[#allocation4 + $0x71] ss:$8 sps:$4 sm:$0xff]  }
 0x6d8   : > { %6877 = vst.msk [vmem:[#allocation6 + $0x68] sm:$0xff] %vm1815_vm2, %v6857_v3  ;;  %7194 = vrot.lane.b32.xlu1 %v9442_v4, %s9549_s29  ;;  %v7936_v3 = vld [vmem:[%s12329_s8 + $0x170] sm:$0xff]  ;;  %v7937_v4 = vld [vmem:[%s12329_s8 + $0x178] sm:$0xff] }
 0x6d9   : > { %7202 = vrot.lane.b32.xlu0 %v9443_v6, %s9549_s29  ;;  %v8769_v6 = vpack.c.bf16 %v7937_v4, %v7936_v3 }
 0x6da   : > { %v6297_v9 = vpop.permute.xlu1 %6296  ;;  %v6643_v10 = vpop.permute.xlu0 %6642 }
 0x6db   : > { %v7867_v11 = vld [vmem:[#allocation6 + $0x48] sm:$0xff]  ;;  %6317 = vst.msk [vmem:[#allocation6 + $0x60] sm:$0xff] %vm1815_vm2, %v6297_v9  ;;  %v9460_v9 = vld [vmem:[#allocation4 + $0xd1] ss:$8 sps:$4 sm:$0xff]   ;;  %8770 = vmatpush1.bf16.msra.mxu0 %v8769_v6  ;;  %8798 = vmatpush1.bf16.msra.mxu1 %v8769_v6 }
 0x6dc   : > { %6662 = vst.msk [vmem:[#allocation6 + $0x88] sm:$0xff] %vm1595_vm14, %v6643_v10  ;;  %8049 = vmatprep.mubr.f32.mxu1 %v7867_v11  ;;  %6448 = vrot.lane.b32.xlu1 %v9445_v24, %s9557_s26  ;;  %v9461_v10 = vld [vmem:[#allocation4 + $0x70] ss:$8 sps:$4 sm:$0xff]   ;;  %v7939_v24 = vld [vmem:[%s12329_s8 + $0x188] sm:$0xff] }
 0x6dd   : > { %7080 = vrot.lane.b32.xlu0 %v9446_v12, %s9558_s27  ;;  %8771 = vmatprep.subr.bf16.mxu0 %v9559_v61  ;;  %v7938_v11 = vld [vmem:[%s12329_s8 + $0x180] sm:$0xff] }
 0x6de   : > { %v6929_v16 = vpop.permute.xlu1 %6928  ;;  %v6369_v17 = vpop.permute.xlu0 %6368  ;;  %v7866_v19 = vld [vmem:[#allocation6 + $0x40] sm:$0xff]  ;;  %v8772_v12 = vpack.c.bf16 %v7939_v24, %v7938_v11  ;;  %8788 = vmatprep.subr.bf16.mxu1 %v9559_v61 }
 0x6df   : > { %6949 = vst.msk [vmem:[#allocation6 + $0x68] sm:$0xff] %vm1888_vm3, %v6929_v16  ;;  %6389 = vst.msk [vmem:[#allocation6 + $0x60] sm:$0xff] %vm1888_vm3, %v6369_v17  ;;  %8050 = vmatmul.mubr.f32.gmra.mrb[36].mxu1 %v7866_v19  ;;  %v9463_v16 = vld [vmem:[#allocation4 + $0x69] ss:$8 sps:$4 sm:$0xff]   ;;  %v9482_v6 = vld [vmem:[#allocation4 + $0x79] ss:$8 sps:$4 sm:$0xff]  }
 0x6e0   : > { %7266 = vrot.lane.b32.xlu1 %v9447_v22, %s9553_s7  ;;  %8773 = vmatpush1.bf16.msra.mxu0 %v8772_v12  ;;  %v7940_v17 = vld [vmem:[%s12329_s8 + $0x190] sm:$0xff]  ;;  %v7941_v19 = vld [vmem:[%s12329_s8 + $0x198] sm:$0xff] }
 0x6e1   : > { %7274 = vrot.lane.b32.xlu0 %v9448_v23, %s9553_s7  ;;  %8799 = vmatpush1.bf16.msra.mxu1 %v8772_v12  ;;  %v8775_v22 = vpack.c.bf16 %v7941_v19, %v7940_v17  ;;  %v9485_v12 = vld [vmem:[#allocation4 + $0xe2] ss:$8 sps:$4 sm:$0xff]  }
 0x6e2   : > { %v6715_v29 = vpop.permute.xlu1 %6714  ;;  %v7001_v30 = vpop.permute.xlu0 %7000  ;;  %8774 = vmatprep.subr.bf16.mxu0 %v9559_v61  ;;  %8789 = vmatprep.subr.bf16.mxu1 %v9559_v61  ;;  %v9489_v19 = vld [vmem:[#allocation4 + $0x7a] ss:$8 sps:$4 sm:$0xff]  }
 0x6e3   : > { %6734 = vst.msk [vmem:[#allocation6 + $0x88] sm:$0xff] %vm1668_vm0, %v6715_v29  ;;  %v7942_v29 = vld [vmem:[%s12329_s8 + $0x1a0] sm:$0xff] }
 0x6e4   : > { %7021 = vst.msk [vmem:[#allocation6 + $0x68] sm:$0xff] %vm1962_vm4, %v7001_v30  ;;  %6520 = vrot.lane.b32.xlu1 %v9449_v33, %s9558_s27  ;;  %8776 = vmatpush1.bf16.msra.mxu0 %v8775_v22  ;;  %v7943_v30 = vld [vmem:[%s12329_s8 + $0x1a8] sm:$0xff] }
 0x6e5   : > { %7338 = vrot.lane.b32.xlu0 %v9450_v34, %s9554_s23  ;;  %8800 = vmatpush1.bf16.msra.mxu1 %v8775_v22  ;;  %v8778_v33 = vpack.c.bf16 %v7943_v30, %v7942_v29 }
 0x6e6   : > { %v6155_v37 = vpop.permute.xlu1 %6154  ;;  %v6441_v38 = vpop.permute.xlu0 %6440  ;;  %8777 = vmatprep.subr.bf16.mxu0 %v9559_v61  ;;  %8790 = vmatprep.subr.bf16.mxu1 %v9559_v61 }
 0x6e7   : > { %6174 = vst.msk [vmem:[#allocation6 + $0x80] sm:$0xff] %vm1668_vm0, %v6155_v37 }
 0x6e8   : > { %6461 = vst.msk [vmem:[#allocation6 + $0x60] sm:$0xff] %vm1962_vm4, %v6441_v38  ;;  %7346 = vrot.lane.b32.xlu1 %v9451_v31, %s9554_s23  ;;  %8779 = vmatpush1.bf16.msra.mxu0 %v8778_v33  ;;  %v9468_v31 = vld [vmem:[#allocation4 + $0xd1] ss:$8 sps:$4 sm:$0xff]  }
 0x6e9   : > { %7410 = vrot.lane.b32.xlu0 %v9452_v40, %s9555_s24  ;;  %8801 = vmatpush1.bf16.msra.mxu1 %v8778_v33  ;;  %v9469_v40 = vld [vmem:[#allocation4 + $0x6a] ss:$8 sps:$4 sm:$0xff]  }
 0x6ea   : > { %v6787_v46 = vpop.permute.xlu1 %6786  ;;  %v7073_v47 = vpop.permute.xlu0 %7072  ;;  %v9493_v33 = vld [vmem:[#allocation4 + $0x82] ss:$8 sps:$4 sm:$0xff]  }
 0x6eb   : > { %6806 = vst.msk [vmem:[#allocation6 + $0x88] sm:$0xff] %vm1742_vm1, %v6787_v46 }
 0x6ec   : > { %7093 = vst.msk [vmem:[#allocation6 + $0x68] sm:$0xff] %vm2035_vm5, %v7073_v47  ;;  %7418 = vrot.lane.b32.xlu1 %v9453_v48, %s9555_s24 }
 0x6ed   : > { %7196 = vrot.lane.b32.xlu0 %v9454_v20, %s9549_s29  ;;  %v9473_v20 = vld [vmem:[#allocation4 + $0xd2] ss:$8 sps:$4 sm:$0xff]  }
 0x6ee   : > { %v6227_v52 = vpop.permute.xlu1 %6226  ;;  %v6513_v53 = vpop.permute.xlu0 %6512 }
 0x6ef   : > { %6246 = vst.msk [vmem:[#allocation6 + $0x80] sm:$0xff] %vm1742_vm1, %v6227_v52 }
 0x6f0   : > { %6533 = vst.msk [vmem:[#allocation6 + $0x60] sm:$0xff] %vm2035_vm5, %v6513_v53  ;;  %7204 = vrot.lane.b32.xlu1 %v9455_v41, %s9549_s29  ;;  %v9475_v53 = vld [vmem:[#allocation4 + $0xd2] ss:$8 sps:$4 sm:$0xff]  }
 0x6f1   : > { %7482 = vrot.lane.b32.xlu0 %v9456_v56, %s9556_s25  ;;  %v9476_v41 = vld [vmem:[#allocation4 + $0x78] ss:$8 sps:$4 sm:$0xff]  }
 0x6f2   : > { %v6859_v60 = vpop.permute.xlu1 %6858  ;;  %v6299_v62 = vpop.permute.xlu0 %6298 }
 0x6f3   : > { %v7871_v63 = vld [vmem:[#allocation6 + $0x68] sm:$0xff]  ;;  %6878 = vst.msk [vmem:[#allocation6 + $0x88] sm:$0xff] %vm1815_vm2, %v6859_v60  ;;  %6318 = vst.msk [vmem:[#allocation6 + $0x80] sm:$0xff] %vm1815_vm2, %v6299_v62 }
 0x6f4   : > { %8054 = vmatprep.mubr.f32.mxu1 %v7871_v63  ;;  %7490 = vrot.lane.b32.xlu1 %v9457_v1, %s9556_s25  ;;  %v9479_v63 = vld [vmem:[#allocation4 + $0xe1] ss:$8 sps:$4 sm:$0xff]   ;;  %v9480_v1 = vld [vmem:[#allocation4 + $0x90] ss:$8 sps:$4 sm:$0xff]  }
 0x6f5   : > { %7754 = vrot.lane.b32.xlu0 %v9458_v2, %s9549_s29  ;;  %v9481_v2 = vld [vmem:[#allocation4 + $0xf0] ss:$8 sps:$4 sm:$0xff]  }
 0x6f6   : > { %v6645_v7 = vpop.permute.xlu1 %6644  ;;  %v6931_v18 = vpop.permute.xlu0 %6930 }
 0x6f7   : > { %v7870_v8 = vld [vmem:[#allocation6 + $0x60] sm:$0xff]  ;;  %6663 = vst.msk [vmem:[#allocation6 + $0xa8] sm:$0xff] %vm1595_vm14, %v6645_v7 }
 0x6f8   : > { %6950 = vst.msk [vmem:[#allocation6 + $0x88] sm:$0xff] %vm1888_vm3, %v6931_v18  ;;  %8055 = vmatmul.mubr.f32.gmra.mrb[38].mxu1 %v7870_v8  ;;  %7762 = vrot.lane.b32.xlu1 %v9460_v9, %s9549_s29  ;;  %v9483_v8 = vld [vmem:[#allocation4 + $0xd9] ss:$8 sps:$4 sm:$0xff]  }
 0x6f9   : > { %7268 = vrot.lane.b32.xlu0 %v9461_v10, %s9553_s7  ;;  %v9484_v9 = vld [vmem:[#allocation4 + $0x82] ss:$8 sps:$4 sm:$0xff]  }
 0x6fa   : > { %v6371_v13 = vpop.permute.xlu1 %6370  ;;  %v6717_v14 = vpop.permute.xlu0 %6716 }
 0x6fb   : > { %6390 = vst.msk [vmem:[#allocation6 + $0x80] sm:$0xff] %vm1888_vm3, %v6371_v13  ;;  %v9486_v13 = vld [vmem:[#allocation4 + $0x91] ss:$8 sps:$4 sm:$0xff]  }
 0x6fc   : > { %6735 = vst.msk [vmem:[#allocation6 + $0xa8] sm:$0xff] %vm1668_vm0, %v6717_v14  ;;  %7276 = vrot.lane.b32.xlu1 %v9462_v15, %s9553_s7  ;;  %v9488_v14 = vld [vmem:[#allocation4 + $0xf1] ss:$8 sps:$4 sm:$0xff]  }
 0x6fd   : > { %7554 = vrot.lane.b32.xlu0 %v9463_v16, %s9557_s26 }
 0x6fe   : > { %v7003_v23 = vpop.permute.xlu1 %7002  ;;  %v6157_v26 = vpop.permute.xlu0 %6156 }
 0x6ff   : > { %7022 = vst.msk [vmem:[#allocation6 + $0x88] sm:$0xff] %vm1962_vm4, %v7003_v23 }
 0x700   : > { %6175 = vst.msk [vmem:[#allocation6 + $0xa0] sm:$0xff] %vm1668_vm0, %v6157_v26  ;;  %7562 = vrot.lane.b32.xlu1 %v9464_v0, %s9557_s26  ;;  %v9490_v26 = vld [vmem:[#allocation4 + $0xda] ss:$8 sps:$4 sm:$0xff]  }
 0x701   : > { %7826 = vrot.lane.b32.xlu0 %v9465_v27, %s9553_s7  ;;  %v9491_v0 = vld [vmem:[#allocation4 + $0x92] ss:$8 sps:$4 sm:$0xff]  }
 0x702   : > { %v6443_v34 = vpop.permute.xlu1 %6442  ;;  %v6789_v28 = vpop.permute.xlu0 %6788  ;;  %v9492_v27 = vld [vmem:[#allocation4 + $0xf2] ss:$8 sps:$4 sm:$0xff]  }
 0x703   : > { %6462 = vst.msk [vmem:[#allocation6 + $0x80] sm:$0xff] %vm1962_vm4, %v6443_v34  ;;  %v9534_v34 = vld [vmem:[#allocation4 + $0x100] ss:$8 sps:$4 sm:$0xff]  }
 0x704   : > { %6807 = vst.msk [vmem:[#allocation6 + $0xa8] sm:$0xff] %vm1742_vm1, %v6789_v28  ;;  %7834 = vrot.lane.b32.xlu1 %v9466_v35, %s9553_s7 }
 0x705   : > { %7340 = vrot.lane.b32.xlu0 %v9467_v36, %s9554_s23  ;;  %7712 = vst.msk [vmem:[#allocation6 + $0xd8] sm:$0xff] %vm1522_vm15, %v9534_v34  ;;  %v9494_v36 = vld [vmem:[#allocation4 + $0xe2] ss:$8 sps:$4 sm:$0xff]  }
 0x706   : > { %v7075_v37 = vpop.permute.xlu1 %7074  ;;  %v6229_v38 = vpop.permute.xlu0 %6228 }
 0x707   : > { %7094 = vst.msk [vmem:[#allocation6 + $0x88] sm:$0xff] %vm2035_vm5, %v7075_v37  ;;  %v9495_v37 = vld [vmem:[#allocation4 + $0x98] ss:$8 sps:$4 sm:$0xff]  }
 0x708   : > { %6247 = vst.msk [vmem:[#allocation6 + $0xa0] sm:$0xff] %vm1742_vm1, %v6229_v38  ;;  %7348 = vrot.lane.b32.xlu1 %v9468_v31, %s9554_s23  ;;  %v9496_v38 = vld [vmem:[#allocation4 + $0xf8] ss:$8 sps:$4 sm:$0xff]  }
 0x709   : > { %7626 = vrot.lane.b32.xlu0 %v9469_v40, %s9558_s27 }
 0x70a   : > { %v6515_v61 = vpop.permute.xlu1 %6514  ;;  %v6861_v42 = vpop.permute.xlu0 %6860 }
 0x70b   : > { %6534 = vst.msk [vmem:[#allocation6 + $0x80] sm:$0xff] %vm2035_vm5, %v6515_v61  ;;  %v9497_v61 = vld [vmem:[#allocation4 + $0xa1] ss:$8 sps:$4 sm:$0xff]  }
 0x70c   : > { %6879 = vst.msk [vmem:[#allocation6 + $0xa8] sm:$0xff] %vm1815_vm2, %v6861_v42  ;;  %7634 = vrot.lane.b32.xlu1 %v9470_v44, %s9558_s27  ;;  %v9498_v42 = vld [vmem:[#allocation4 + $0x101] ss:$8 sps:$4 sm:$0xff]  }
 0x70d   : > { %7412 = vrot.lane.b32.xlu0 %v9471_v45, %s9555_s24 }
 0x70e   : > { %v6301_v46 = vpop.permute.xlu1 %6300  ;;  %v6647_v47 = vpop.permute.xlu0 %6646  ;;  %v7875_v48 = vld [vmem:[#allocation6 + $0x88] sm:$0xff] }
 0x70f   : > { %6319 = vst.msk [vmem:[#allocation6 + $0xa0] sm:$0xff] %vm1815_vm2, %v6301_v46  ;;  %8059 = vmatprep.mubr.f32.mxu1 %v7875_v48  ;;  %v9499_v46 = vld [vmem:[#allocation4 + $0xa0] ss:$8 sps:$4 sm:$0xff]  }
 0x710   : > { %6664 = vst.msk [vmem:[#allocation6 + $0xc8] sm:$0xff] %vm1595_vm14, %v6647_v47  ;;  %7420 = vrot.lane.b32.xlu1 %v9473_v20, %s9555_s24  ;;  %v9500_v47 = vld [vmem:[#allocation4 + $0x100] ss:$8 sps:$4 sm:$0xff]  }
 0x711   : > { %7198 = vrot.lane.b32.xlu0 %v9474_v50, %s9549_s29 }
 0x712   : > { %v6933_v51 = vpop.permute.xlu1 %6932  ;;  %v6373_v25 = vpop.permute.xlu0 %6372  ;;  %v7874_v52 = vld [vmem:[#allocation6 + $0x80] sm:$0xff] }
 0x713   : > { %6951 = vst.msk [vmem:[#allocation6 + $0xa8] sm:$0xff] %vm1888_vm3, %v6933_v51  ;;  %6391 = vst.msk [vmem:[#allocation6 + $0xa0] sm:$0xff] %vm1888_vm3, %v6373_v25  ;;  %8060 = vmatmul.mubr.f32.gmra.mrb[40].mxu1 %v7874_v52  ;;  %v9501_v51 = vld [vmem:[#allocation4 + $0x99] ss:$8 sps:$4 sm:$0xff]  }
 0x714   : > { %7206 = vrot.lane.b32.xlu1 %v9475_v53, %s9549_s29  ;;  %v9502_v25 = vld [vmem:[#allocation4 + $0xf9] ss:$8 sps:$4 sm:$0xff]  }
 0x715   : > { %7484 = vrot.lane.b32.xlu0 %v9476_v41, %s9556_s25 }
 0x716   : > { %v6719_v56 = vpop.permute.xlu1 %6718 }
 0x717   : > { %v7005_v58 = vpop.permute.xlu0 %7004  ;;  %6736 = vst.msk [vmem:[#allocation6 + $0xc8] sm:$0xff] %vm1668_vm0, %v6719_v56  ;;  %v9503_v56 = vld [vmem:[#allocation4 + $0xa2] ss:$8 sps:$4 sm:$0xff]  }
 0x718   : > { %7023 = vst.msk [vmem:[#allocation6 + $0xa8] sm:$0xff] %vm1962_vm4, %v7005_v58  ;;  %7492 = vrot.lane.b32.xlu1 %v9477_v43, %s9556_s25  ;;  %v9506_v58 = vld [vmem:[#allocation4 + $0x102] ss:$8 sps:$4 sm:$0xff]  }
 0x719   : > { %7756 = vrot.lane.b32.xlu0 %v9478_v59, %s9549_s29 }
 0x71a   : > { %v6159_v60 = vpop.permute.xlu1 %6158 }
 0x71b   : > { %v6445_v62 = vpop.permute.xlu0 %6444  ;;  %6176 = vst.msk [vmem:[#allocation6 + $0xc0] sm:$0xff] %vm1668_vm0, %v6159_v60  ;;  %v9507_v60 = vld [vmem:[#allocation4 + $0xa1] ss:$8 sps:$4 sm:$0xff]  }
 0x71c   : > { %6463 = vst.msk [vmem:[#allocation6 + $0xa0] sm:$0xff] %vm1962_vm4, %v6445_v62  ;;  %7764 = vrot.lane.b32.xlu1 %v9479_v63, %s9549_s29  ;;  %v9508_v62 = vld [vmem:[#allocation4 + $0x101] ss:$8 sps:$4 sm:$0xff]  }
 0x71d   : > { %7270 = vrot.lane.b32.xlu0 %v9480_v1, %s9553_s7 }
 0x71e   : > { %v6791_v3 = vpop.permute.xlu1 %6790 }
 0x71f   : > { %v7077_v4 = vpop.permute.xlu0 %7076  ;;  %6808 = vst.msk [vmem:[#allocation6 + $0xc8] sm:$0xff] %vm1742_vm1, %v6791_v3  ;;  %v9510_v3 = vld [vmem:[#allocation4 + $0xfa] ss:$8 sps:$4 sm:$0xff]  }
 0x720   : > { %7095 = vst.msk [vmem:[#allocation6 + $0xa8] sm:$0xff] %vm2035_vm5, %v7077_v4  ;;  %7278 = vrot.lane.b32.xlu1 %v9481_v2, %s9553_s7  ;;  %v9509_v2 = vld [vmem:[#allocation4 + $0x9a] ss:$8 sps:$4 sm:$0xff]  }
 0x721   : > { %7556 = vrot.lane.b32.xlu0 %v9482_v6, %s9557_s26  ;;  %v9536_v4 = vld [vmem:[#allocation4 + $0x110] ss:$8 sps:$4 sm:$0xff]  }
 0x722   : > { %v6231_v7 = vpop.permute.xlu1 %6230  ;;  %7713 = vst.msk [vmem:[#allocation6 + $0xf8] sm:$0xff] %vm1522_vm15, %v9536_v4 }
 0x723   : > { %v6517_v18 = vpop.permute.xlu0 %6516  ;;  %6248 = vst.msk [vmem:[#allocation6 + $0xc0] sm:$0xff] %vm1742_vm1, %v6231_v7 }
 0x724   : > { %6535 = vst.msk [vmem:[#allocation6 + $0xa0] sm:$0xff] %vm2035_vm5, %v6517_v18  ;;  %7564 = vrot.lane.b32.xlu1 %v9483_v8, %s9557_s26  ;;  %v9511_v18 = vld [vmem:[#allocation4 + $0xa2] ss:$8 sps:$4 sm:$0xff]  }
 0x725   : > { %7828 = vrot.lane.b32.xlu0 %v9484_v9, %s9553_s7  ;;  %v9512_v8 = vld [vmem:[#allocation4 + $0x102] ss:$8 sps:$4 sm:$0xff]  }
 0x726   : > { %v6863_v10 = vpop.permute.xlu1 %6862 }
 0x727   : > { %v6303_v11 = vpop.permute.xlu0 %6302  ;;  %v7879_v24 = vld [vmem:[#allocation6 + $0xa8] sm:$0xff]  ;;  %6880 = vst.msk [vmem:[#allocation6 + $0xc8] sm:$0xff] %vm1815_vm2, %v6863_v10 }
 0x728   : > { %6320 = vst.msk [vmem:[#allocation6 + $0xc0] sm:$0xff] %vm1815_vm2, %v6303_v11  ;;  %8064 = vmatprep.mubr.f32.mxu1 %v7879_v24  ;;  %7836 = vrot.lane.b32.xlu1 %v9485_v12, %s9553_s7  ;;  %v9513_v24 = vld [vmem:[#allocation4 + $0xa8] ss:$8 sps:$4 sm:$0xff]  }
 0x729   : > { %7342 = vrot.lane.b32.xlu0 %v9486_v13, %s9554_s23  ;;  %v9514_v12 = vld [vmem:[#allocation4 + $0x108] ss:$8 sps:$4 sm:$0xff]  }
 0x72a   : > { %v6649_v15 = vpop.permute.xlu1 %6648 }
 0x72b   : > { %v6935_v16 = vpop.permute.xlu0 %6934  ;;  %v7878_v17 = vld [vmem:[#allocation6 + $0xa0] sm:$0xff]  ;;  %6665 = vst.msk [vmem:[#allocation6 + $0xe8] sm:$0xff] %vm1595_vm14, %v6649_v15  ;;  %v9515_v15 = vld [vmem:[#allocation4 + $0xb1] ss:$8 sps:$4 sm:$0xff]  }
 0x72c   : > { %6952 = vst.msk [vmem:[#allocation6 + $0xc8] sm:$0xff] %vm1888_vm3, %v6935_v16  ;;  %8065 = vmatmul.mubr.f32.gmra.mrb[42].mxu1 %v7878_v17  ;;  %7350 = vrot.lane.b32.xlu1 %v9488_v14, %s9554_s23  ;;  %v9517_v16 = vld [vmem:[#allocation4 + $0x111] ss:$8 sps:$4 sm:$0xff]  }
 0x72d   : > { %7628 = vrot.lane.b32.xlu0 %v9489_v19, %s9558_s27 }
 0x72e   : > { %v6375_v22 = vpop.permute.xlu1 %6374 }
 0x72f   : > { %v6721_v23 = vpop.permute.xlu0 %6720  ;;  %6392 = vst.msk [vmem:[#allocation6 + $0xc0] sm:$0xff] %vm1888_vm3, %v6375_v22 }
 0x730   : > { %6737 = vst.msk [vmem:[#allocation6 + $0xe8] sm:$0xff] %vm1668_vm0, %v6721_v23  ;;  %7636 = vrot.lane.b32.xlu1 %v9490_v26, %s9558_s27  ;;  %v9518_v23 = vld [vmem:[#allocation4 + $0xa9] ss:$8 sps:$4 sm:$0xff]  }
 0x731   : > { %7414 = vrot.lane.b32.xlu0 %v9491_v0, %s9555_s24  ;;  %v9520_v26 = vld [vmem:[#allocation4 + $0x109] ss:$8 sps:$4 sm:$0xff]  }
 0x732   : > { %v7007_v29 = vpop.permute.xlu1 %7006 }
 0x733   : > { %v6161_v30 = vpop.permute.xlu0 %6160  ;;  %7024 = vst.msk [vmem:[#allocation6 + $0xc8] sm:$0xff] %vm1962_vm4, %v7007_v29  ;;  %v9521_v29 = vld [vmem:[#allocation4 + $0xb2] ss:$8 sps:$4 sm:$0xff]  }
 0x734   : > { %6177 = vst.msk [vmem:[#allocation6 + $0xe0] sm:$0xff] %vm1668_vm0, %v6161_v30  ;;  %7422 = vrot.lane.b32.xlu1 %v9492_v27, %s9555_s24  ;;  %v9523_v30 = vld [vmem:[#allocation4 + $0x112] ss:$8 sps:$4 sm:$0xff]  }
 0x735   : > { %7200 = vrot.lane.b32.xlu0 %v9493_v33, %s9549_s29 }
 0x736   : > { %v6447_v28 = vpop.permute.xlu1 %6446 }
 0x737   : > { %v6793_v35 = vpop.permute.xlu0 %6792  ;;  %6464 = vst.msk [vmem:[#allocation6 + $0xc0] sm:$0xff] %vm1962_vm4, %v6447_v28  ;;  %v9524_v28 = vld [vmem:[#allocation4 + $0xaa] ss:$8 sps:$4 sm:$0xff]  }
 0x738   : > { %6809 = vst.msk [vmem:[#allocation6 + $0xe8] sm:$0xff] %vm1742_vm1, %v6793_v35  ;;  %7208 = vrot.lane.b32.xlu1 %v9494_v36, %s9549_s29  ;;  %v9526_v35 = vld [vmem:[#allocation4 + $0x10a] ss:$8 sps:$4 sm:$0xff]  }
 0x739   : > { %7486 = vrot.lane.b32.xlu0 %v9495_v37, %s9556_s25 }
 0x73a   : > { %v7079_v31 = vpop.permute.xlu1 %7078 }
 0x73b   : > { %v6233_v40 = vpop.permute.xlu0 %6232  ;;  %7096 = vst.msk [vmem:[#allocation6 + $0xc8] sm:$0xff] %vm2035_vm5, %v7079_v31 }
 0x73c   : > { %6249 = vst.msk [vmem:[#allocation6 + $0xe0] sm:$0xff] %vm1742_vm1, %v6233_v40  ;;  %7494 = vrot.lane.b32.xlu1 %v9496_v38, %s9556_s25 }
 0x73d   : > { %7758 = vrot.lane.b32.xlu0 %v9497_v61, %s9549_s29 }
 0x73e   : > { %v6519_v44 = vpop.permute.xlu1 %6518 }
 0x73f   : > { %v6865_v45 = vpop.permute.xlu0 %6864  ;;  %6536 = vst.msk [vmem:[#allocation6 + $0xc0] sm:$0xff] %vm2035_vm5, %v6519_v44 }
 0x740   : > { %6881 = vst.msk [vmem:[#allocation6 + $0xe8] sm:$0xff] %vm1815_vm2, %v6865_v45  ;;  %7766 = vrot.lane.b32.xlu1 %v9498_v42, %s9549_s29 }
 0x741   : > { %7272 = vrot.lane.b32.xlu0 %v9499_v46, %s9553_s7 }
 0x742   : > { %v6305_v48 = vpop.permute.xlu1 %6304  ;;  %v7883_v50 = vld [vmem:[#allocation6 + $0xc8] sm:$0xff] }
 0x743   : > { %v6937_v20 = vpop.permute.xlu0 %6936  ;;  %6321 = vst.msk [vmem:[#allocation6 + $0xe0] sm:$0xff] %vm1815_vm2, %v6305_v48  ;;  %8069 = vmatprep.mubr.f32.mxu1 %v7883_v50 }
 0x744   : > { %6953 = vst.msk [vmem:[#allocation6 + $0xe8] sm:$0xff] %vm1888_vm3, %v6937_v20  ;;  %7280 = vrot.lane.b32.xlu1 %v9500_v47, %s9553_s7 }
 0x745   : > { %7558 = vrot.lane.b32.xlu0 %v9501_v51, %s9557_s26 }
 0x746   : > { %v6377_v52 = vpop.permute.xlu1 %6376  ;;  %v7882_v41 = vld [vmem:[#allocation6 + $0xc0] sm:$0xff] }
 0x747   : > { %v7009_v53 = vpop.permute.xlu0 %7008  ;;  %6393 = vst.msk [vmem:[#allocation6 + $0xe0] sm:$0xff] %vm1888_vm3, %v6377_v52  ;;  %8070 = vmatmul.mubr.f32.gmra.mrb[44].mxu1 %v7882_v41 }
 0x748   : > { %7025 = vst.msk [vmem:[#allocation6 + $0xe8] sm:$0xff] %vm1962_vm4, %v7009_v53  ;;  %7566 = vrot.lane.b32.xlu1 %v9502_v25, %s9557_s26 }
 0x749   : > { %7830 = vrot.lane.b32.xlu0 %v9503_v56, %s9553_s7 }
 0x74a   : > { %v7195_v43 = vpop.permute.xlu1 %7194 }
 0x74b   : > { %v7203_v59 = vpop.permute.xlu0 %7202  ;;  %7218 = vst.msk [vmem:[#allocation6 + $0x10] sm:$0xff] %vm1595_vm14, %v7195_v43 }
 0x74c   : > { %7222 = vst.msk [vmem:[#allocation6 + $0x90] sm:$0xff] %vm1595_vm14, %v7203_v59  ;;  %7838 = vrot.lane.b32.xlu1 %v9506_v58, %s9553_s7 }
 0x74d   : > { %7344 = vrot.lane.b32.xlu0 %v9507_v60, %s9554_s23 }
 0x74e   : > { %v6449_v63 = vpop.permute.xlu1 %6448 }
 0x74f   : > { %v7081_v1 = vpop.permute.xlu0 %7080  ;;  %6465 = vst.msk [vmem:[#allocation6 + $0xe0] sm:$0xff] %vm1962_vm4, %v6449_v63 }
 0x750   : > { %7097 = vst.msk [vmem:[#allocation6 + $0xe8] sm:$0xff] %vm2035_vm5, %v7081_v1  ;;  %7352 = vrot.lane.b32.xlu1 %v9508_v62, %s9554_s23 }
 0x751   : > { %7630 = vrot.lane.b32.xlu0 %v9509_v2, %s9558_s27 }
 0x752   : > { %v7267_v6 = vpop.permute.xlu1 %7266 }
 0x753   : > { %v7275_v7 = vpop.permute.xlu0 %7274  ;;  %7290 = vst.msk [vmem:[#allocation6 + $0x10] sm:$0xff] %vm1668_vm0, %v7267_v6 }
 0x754   : > { %7294 = vst.msk [vmem:[#allocation6 + $0x90] sm:$0xff] %vm1668_vm0, %v7275_v7  ;;  %7638 = vrot.lane.b32.xlu1 %v9510_v3, %s9558_s27 }
 0x755   : > { %7416 = vrot.lane.b32.xlu0 %v9511_v18, %s9555_s24 }
 0x756   : > { %v6521_v9 = vpop.permute.xlu1 %6520 }
 0x757   : > { %v7339_v10 = vpop.permute.xlu0 %7338  ;;  %v7887_v11 = vld [vmem:[#allocation6 + $0xe8] sm:$0xff]  ;;  %6537 = vst.msk [vmem:[#allocation6 + $0xe0] sm:$0xff] %vm2035_vm5, %v6521_v9 }
 0x758   : > { %7362 = vst.msk [vmem:[#allocation6 + $0x10] sm:$0xff] %vm1742_vm1, %v7339_v10  ;;  %8074 = vmatprep.mubr.f32.mxu1 %v7887_v11  ;;  %7424 = vrot.lane.b32.xlu1 %v9512_v8, %s9555_s24 }
 0x759   : > { %7488 = vrot.lane.b32.xlu0 %v9513_v24, %s9556_s25 }
 0x75a   : > { %v7347_v13 = vpop.permute.xlu1 %7346 }
 0x75b   : > { %v7411_v14 = vpop.permute.xlu0 %7410  ;;  %7366 = vst.msk [vmem:[#allocation6 + $0x90] sm:$0xff] %vm1742_vm1, %v7347_v13 }
 0x75c   : > { %7434 = vst.msk [vmem:[#allocation6 + $0x10] sm:$0xff] %vm1815_vm2, %v7411_v14  ;;  %7496 = vrot.lane.b32.xlu1 %v9514_v12, %s9556_s25 }
 0x75d   : > { %7760 = vrot.lane.b32.xlu0 %v9515_v15, %s9549_s29 }
 0x75e   : > { %v7419_v17 = vpop.permute.xlu1 %7418  ;;  %v7886_v22 = vld [vmem:[#allocation6 + $0xe0] sm:$0xff] }
 0x75f   : > { %v7197_v19 = vpop.permute.xlu0 %7196  ;;  %7438 = vst.msk [vmem:[#allocation6 + $0x90] sm:$0xff] %vm1815_vm2, %v7419_v17  ;;  %8075 = vmatmul.mubr.f32.gmra.mrb[46].mxu1 %v7886_v22 }
 0x760   : > { %7219 = vst.msk [vmem:[#allocation6 + $0x30] sm:$0xff] %vm1595_vm14, %v7197_v19  ;;  %7768 = vrot.lane.b32.xlu1 %v9517_v16, %s9549_s29  ;;  %s8193_s29 = sld [smem:[#allocation9]] }
 0x761   : > { %7560 = vrot.lane.b32.xlu0 %v9518_v23, %s9557_s26 }
 0x762   : > { %v7205_v0 = vpop.permute.xlu1 %7204 }
 0x763   : > { %v7483_v27 = vpop.permute.xlu0 %7482  ;;  %7223 = vst.msk [vmem:[#allocation6 + $0xb0] sm:$0xff] %vm1595_vm14, %v7205_v0 }
 0x764   : > { %7506 = vst.msk [vmem:[#allocation6 + $0x10] sm:$0xff] %vm1888_vm3, %v7483_v27  ;;  %7568 = vrot.lane.b32.xlu1 %v9520_v26, %s9557_s26  ;;  %s12259_s26 = scalar_lea.vmem %s12332_s11, %s9714_s10 }
 0x765   : > { %7832 = vrot.lane.b32.xlu0 %v9521_v29, %s9553_s7 }
 0x766   : > { %v7491_v33 = vpop.permute.xlu1 %7490 }
 0x767   : > { %v7755_v34 = vpop.permute.xlu0 %7754  ;;  %7510 = vst.msk [vmem:[#allocation6 + $0x90] sm:$0xff] %vm1888_vm3, %v7491_v33 }
 0x768   : > { %7778 = vst.msk [vmem:[#allocation6 + $0x18] sm:$0xff] %vm1595_vm14, %v7755_v34  ;;  %7840 = vrot.lane.b32.xlu1 %v9523_v30, %s9553_s7 }
 0x769   : > { %7632 = vrot.lane.b32.xlu0 %v9524_v28, %s9558_s27 }
 0x76a   : > { %v7763_v36 = vpop.permute.xlu1 %7762 }
 0x76b   : > { %v7269_v37 = vpop.permute.xlu0 %7268  ;;  %7782 = vst.msk [vmem:[#allocation6 + $0x98] sm:$0xff] %vm1595_vm14, %v7763_v36 }
 0x76c   : > { %7291 = vst.msk [vmem:[#allocation6 + $0x30] sm:$0xff] %vm1668_vm0, %v7269_v37  ;;  %7640 = vrot.lane.b32.xlu1 %v9526_v35, %s9558_s27 }
 0x76e   : > { %v7277_v38 = vpop.permute.xlu1 %7276 }
 0x76f   : > { %v7555_v31 = vpop.permute.xlu0 %7554  ;;  %7295 = vst.msk [vmem:[#allocation6 + $0xb0] sm:$0xff] %vm1668_vm0, %v7277_v38 }
 0x770   : > { %7578 = vst.msk [vmem:[#allocation6 + $0x10] sm:$0xff] %vm1962_vm4, %v7555_v31 }
 0x772   : > { %v7563_v40 = vpop.permute.xlu1 %7562 }
 0x773   : > { %v7827_v61 = vpop.permute.xlu0 %7826  ;;  %7582 = vst.msk [vmem:[#allocation6 + $0x90] sm:$0xff] %vm1962_vm4, %v7563_v40 }
 0x774   : > { %7850 = vst.msk [vmem:[#allocation6 + $0x18] sm:$0xff] %vm1668_vm0, %v7827_v61 }
 0x776   : > { %v7835_v44 = vpop.permute.xlu1 %7834 }
 0x777   : > { %v8533_v42 = vpop.f32.mrb[32].mxu1  ;;  %7854 = vst.msk [vmem:[#allocation6 + $0x98] sm:$0xff] %vm1668_vm0, %v7835_v44  ;;  %v7341_v45 = vpop.permute.xlu0 %7340 }
 0x778   : > { %v8534_v46 = vpop.f32.mrb[33].mxu1  ;;  %7363 = vst.msk [vmem:[#allocation6 + $0x30] sm:$0xff] %vm1742_vm1, %v7341_v45 }
 0x779   : > { %v12175_v47 = vadd.f32 %v8534_v46, %v8533_v42 }
 0x77a   : > { %v7349_v48 = vpop.permute.xlu1 %7348 }
 0x77b   : > { %v7861_v20 = vld [vmem:[#allocation6 + $0x18] sm:$0xff]  ;;  %7367 = vst.msk [vmem:[#allocation6 + $0xb0] sm:$0xff] %vm1742_vm1, %v7349_v48  ;;  %v7627_v50 = vpop.permute.xlu0 %7626 }
 0x77c   : > { %8364 = vmatprep.mubr.msk.f32.mxu0 %vm5428_vm7, %v7861_v20  ;;  %7650 = vst.msk [vmem:[#allocation6 + $0x10] sm:$0xff] %vm2035_vm5, %v7627_v50 }
 0x77e   : > { %v7635_v51 = vpop.permute.xlu1 %7634  ;;  %v7877_v25 = vld [vmem:[#allocation6 + $0x98] sm:$0xff] }
 0x77f   : > { %7654 = vst.msk [vmem:[#allocation6 + $0x90] sm:$0xff] %vm2035_vm5, %v7635_v51  ;;  %v7413_v52 = vpop.permute.xlu0 %7412  ;;  %8368 = vmatprep.mubr.msk.f32.mxu1 %vm5428_vm7, %v7877_v25 }
 0x780   : > { %7435 = vst.msk [vmem:[#allocation6 + $0x30] sm:$0xff] %vm1815_vm2, %v7413_v52 }
 0x782   : > { %v7421_v53 = vpop.permute.xlu1 %7420 }
 0x783   : > { %7439 = vst.msk [vmem:[#allocation6 + $0xb0] sm:$0xff] %vm1815_vm2, %v7421_v53  ;;  %v7199_v41 = vpop.permute.xlu0 %7198  ;;  %v7860_v56 = vld [vmem:[#allocation6 + $0x10] sm:$0xff] }
 0x784   : > { %7220 = vst.msk [vmem:[#allocation6 + $0x50] sm:$0xff] %vm1595_vm14, %v7199_v41  ;;  %8145 = vmatmul.mubr.f32.vlgmr.msra.gmra.mrb[40].mxu0 %v7860_v56 }
 0x786   : > { %v7207_v58 = vpop.permute.xlu1 %7206  ;;  %v7876_v43 = vld [vmem:[#allocation6 + $0x90] sm:$0xff] }
 0x787   : > { %7224 = vst.msk [vmem:[#allocation6 + $0xd0] sm:$0xff] %vm1595_vm14, %v7207_v58  ;;  %v7485_v59 = vpop.permute.xlu0 %7484  ;;  %8165 = vmatmul.mubr.f32.vlgmr.msra.gmra.mrb[48].mxu1 %v7876_v43 }
 0x788   : > { %7507 = vst.msk [vmem:[#allocation6 + $0x30] sm:$0xff] %vm1888_vm3, %v7485_v59 }
 0x78a   : > { %v7493_v60 = vpop.permute.xlu1 %7492 }
 0x78b   : > { %7511 = vst.msk [vmem:[#allocation6 + $0xb0] sm:$0xff] %vm1888_vm3, %v7493_v60  ;;  %v7757_v62 = vpop.permute.xlu0 %7756 }
 0x78c   : > { %7779 = vst.msk [vmem:[#allocation6 + $0x38] sm:$0xff] %vm1595_vm14, %v7757_v62 }
 0x78e   : > { %v7765_v63 = vpop.permute.xlu1 %7764 }
 0x78f   : > { %7783 = vst.msk [vmem:[#allocation6 + $0xb8] sm:$0xff] %vm1595_vm14, %v7765_v63  ;;  %v7271_v1 = vpop.permute.xlu0 %7270 }
 0x790   : > { %7292 = vst.msk [vmem:[#allocation6 + $0x50] sm:$0xff] %vm1668_vm0, %v7271_v1 }
 0x792   : > { %v7279_v2 = vpop.permute.xlu1 %7278 }
 0x793   : > { %7296 = vst.msk [vmem:[#allocation6 + $0xd0] sm:$0xff] %vm1668_vm0, %v7279_v2  ;;  %v7557_v3 = vpop.permute.xlu0 %7556 }
 0x794   : > { %7579 = vst.msk [vmem:[#allocation6 + $0x30] sm:$0xff] %vm1962_vm4, %v7557_v3 }
 0x796   : > { %v7565_v4 = vpop.permute.xlu1 %7564  ;;  %v8536_v6 = vpop.f32.mrb[34].mxu1 }
 0x797   : > { %7583 = vst.msk [vmem:[#allocation6 + $0xb0] sm:$0xff] %vm1962_vm4, %v7565_v4  ;;  %v7829_v7 = vpop.permute.xlu0 %7828  ;;  %v8537_v18 = vpop.f32.mrb[35].mxu1 }
 0x798   : > { %7851 = vst.msk [vmem:[#allocation6 + $0x38] sm:$0xff] %vm1668_vm0, %v7829_v7  ;;  %v12195_v8 = vadd.f32 %v8537_v18, %v8536_v6 }
 0x79a   : > { %v7837_v9 = vpop.permute.xlu1 %7836 }
 0x79b   : > { %7855 = vst.msk [vmem:[#allocation6 + $0xb8] sm:$0xff] %vm1668_vm0, %v7837_v9  ;;  %v7343_v10 = vpop.permute.xlu0 %7342 }
 0x79c   : > { %7364 = vst.msk [vmem:[#allocation6 + $0x50] sm:$0xff] %vm1742_vm1, %v7343_v10 }
 0x79e   : > { %v7351_v11 = vpop.permute.xlu1 %7350 }
 0x79f   : > { %7368 = vst.msk [vmem:[#allocation6 + $0xd0] sm:$0xff] %vm1742_vm1, %v7351_v11  ;;  %v7629_v24 = vpop.permute.xlu0 %7628  ;;  %v7865_v12 = vld [vmem:[#allocation6 + $0x38] sm:$0xff] }
 0x7a0   : > { %7651 = vst.msk [vmem:[#allocation6 + $0x30] sm:$0xff] %vm2035_vm5, %v7629_v24  ;;  %8365 = vmatprep.mubr.msk.f32.mxu0 %vm5428_vm7, %v7865_v12 }
 0x7a2   : > { %v7637_v13 = vpop.permute.xlu1 %7636  ;;  %v7881_v14 = vld [vmem:[#allocation6 + $0xb8] sm:$0xff] }
 0x7a3   : > { %7655 = vst.msk [vmem:[#allocation6 + $0xb0] sm:$0xff] %vm2035_vm5, %v7637_v13  ;;  %v7415_v15 = vpop.permute.xlu0 %7414  ;;  %8369 = vmatprep.mubr.msk.f32.mxu1 %vm5428_vm7, %v7881_v14 }
 0x7a4   : > { %7436 = vst.msk [vmem:[#allocation6 + $0x50] sm:$0xff] %vm1815_vm2, %v7415_v15 }
 0x7a6   : > { %v7423_v16 = vpop.permute.xlu1 %7422 }
 0x7a7   : > { %7440 = vst.msk [vmem:[#allocation6 + $0xd0] sm:$0xff] %vm1815_vm2, %v7423_v16  ;;  %v7201_v17 = vpop.permute.xlu0 %7200  ;;  %v7864_v19 = vld [vmem:[#allocation6 + $0x30] sm:$0xff] }
 0x7a8   : > { %7221 = vst.msk [vmem:[#allocation6 + $0x70] sm:$0xff] %vm1595_vm14, %v7201_v17  ;;  %8150 = vmatmul.mubr.f32.gmra.mrb[42].mxu0 %v7864_v19 }
 0x7aa   : > { %v7209_v22 = vpop.permute.xlu1 %7208  ;;  %v7880_v23 = vld [vmem:[#allocation6 + $0xb0] sm:$0xff] }
 0x7ab   : > { %7225 = vst.msk [vmem:[#allocation6 + $0xf0] sm:$0xff] %vm1595_vm14, %v7209_v22  ;;  %v7487_v26 = vpop.permute.xlu0 %7486  ;;  %8170 = vmatmul.mubr.f32.gmra.mrb[50].mxu1 %v7880_v23  ;;  %v12247_v22 = vld [vmem:[%s12330_s9] ss:$0 sm:$0xff] }
 0x7ac   : > { %7508 = vst.msk [vmem:[#allocation6 + $0x50] sm:$0xff] %vm1888_vm3, %v7487_v26  ;;  %v8042_v23 = vadd.f32 %v12175_v47, %v12247_v22 }
 0x7ae   : > { %v7495_v0 = vpop.permute.xlu1 %7494 }
 0x7af   : > { %7512 = vst.msk [vmem:[#allocation6 + $0xd0] sm:$0xff] %vm1888_vm3, %v7495_v0  ;;  %v7759_v27 = vpop.permute.xlu0 %7758  ;;  %v12251_v0 = vstv %s8193_s29 }
 0x7b0   : > { %7780 = vst.msk [vmem:[#allocation6 + $0x58] sm:$0xff] %vm1595_vm14, %v7759_v27 }
 0x7b2   : > { %v8539_v29 = vpop.f32.mrb[36].mxu1  ;;  %v7767_v30 = vpop.permute.xlu1 %7766 }
 0x7b3   : > { %7784 = vst.msk [vmem:[#allocation6 + $0xd8] sm:$0xff] %vm1595_vm14, %v7767_v30  ;;  %v7273_v33 = vpop.permute.xlu0 %7272  ;;  %v8540_v34 = vpop.f32.mrb[37].mxu1 }
 0x7b4   : > { %7293 = vst.msk [vmem:[#allocation6 + $0x70] sm:$0xff] %vm1668_vm0, %v7273_v33  ;;  %v12213_v28 = vadd.f32 %v8540_v34, %v8539_v29 }
 0x7b6   : > { %v7281_v35 = vpop.permute.xlu1 %7280 }
 0x7b7   : > { %7297 = vst.msk [vmem:[#allocation6 + $0xf0] sm:$0xff] %vm1668_vm0, %v7281_v35  ;;  %v7559_v36 = vpop.permute.xlu0 %7558 }
 0x7b8   : > { %7580 = vst.msk [vmem:[#allocation6 + $0x50] sm:$0xff] %vm1962_vm4, %v7559_v36 }
 0x7ba   : > { %v7567_v37 = vpop.permute.xlu1 %7566 }
 0x7bb   : > { %7584 = vst.msk [vmem:[#allocation6 + $0xd0] sm:$0xff] %vm1962_vm4, %v7567_v37  ;;  %v7831_v38 = vpop.permute.xlu0 %7830 }
 0x7bc   : > { %7852 = vst.msk [vmem:[#allocation6 + $0x58] sm:$0xff] %vm1668_vm0, %v7831_v38 }
 0x7be   : > { %v7839_v31 = vpop.permute.xlu1 %7838 }
 0x7bf   : > { %7856 = vst.msk [vmem:[#allocation6 + $0xd8] sm:$0xff] %vm1668_vm0, %v7839_v31  ;;  %v7345_v40 = vpop.permute.xlu0 %7344 }
 0x7c0   : > { %7365 = vst.msk [vmem:[#allocation6 + $0x70] sm:$0xff] %vm1742_vm1, %v7345_v40 }
 0x7c2   : > { %v7353_v61 = vpop.permute.xlu1 %7352 }
 0x7c3   : > { %7369 = vst.msk [vmem:[#allocation6 + $0xf0] sm:$0xff] %vm1742_vm1, %v7353_v61  ;;  %v7631_v42 = vpop.permute.xlu0 %7630  ;;  %v7869_v44 = vld [vmem:[#allocation6 + $0x58] sm:$0xff] }
 0x7c4   : > { %7652 = vst.msk [vmem:[#allocation6 + $0x50] sm:$0xff] %vm2035_vm5, %v7631_v42  ;;  %8366 = vmatprep.mubr.msk.f32.mxu0 %vm5428_vm7, %v7869_v44 }
 0x7c6   : > { %v7639_v45 = vpop.permute.xlu1 %7638  ;;  %v7885_v46 = vld [vmem:[#allocation6 + $0xd8] sm:$0xff] }
 0x7c7   : > { %7656 = vst.msk [vmem:[#allocation6 + $0xd0] sm:$0xff] %vm2035_vm5, %v7639_v45  ;;  %v7417_v48 = vpop.permute.xlu0 %7416  ;;  %8370 = vmatprep.mubr.msk.f32.mxu1 %vm5428_vm7, %v7885_v46 }
 0x7c8   : > { %7437 = vst.msk [vmem:[#allocation6 + $0x70] sm:$0xff] %vm1815_vm2, %v7417_v48 }
 0x7ca   : > { %v7425_v50 = vpop.permute.xlu1 %7424 }
 0x7cb   : > { %v8542_v20 = vpop.f32.mrb[38].mxu1  ;;  %7441 = vst.msk [vmem:[#allocation6 + $0xf0] sm:$0xff] %vm1815_vm2, %v7425_v50  ;;  %v7489_v51 = vpop.permute.xlu0 %7488  ;;  %v7868_v52 = vld [vmem:[#allocation6 + $0x50] sm:$0xff] }
 0x7cc   : > { %v8543_v25 = vpop.f32.mrb[39].mxu1  ;;  %7509 = vst.msk [vmem:[#allocation6 + $0x70] sm:$0xff] %vm1888_vm3, %v7489_v51  ;;  %8155 = vmatmul.mubr.f32.gmra.mrb[44].mxu0 %v7868_v52 }
 0x7cd   : > { %v12229_v53 = vadd.f32 %v8543_v25, %v8542_v20 }
 0x7ce   : > { %v7497_v41 = vpop.permute.xlu1 %7496  ;;  %v7884_v56 = vld [vmem:[#allocation6 + $0xd0] sm:$0xff] }
 0x7cf   : > { %7513 = vst.msk [vmem:[#allocation6 + $0xf0] sm:$0xff] %vm1888_vm3, %v7497_v41  ;;  %v7761_v58 = vpop.permute.xlu0 %7760  ;;  %8175 = vmatmul.mubr.f32.gmra.mrb[52].mxu1 %v7884_v56 }
 0x7d0   : > { %7781 = vst.msk [vmem:[#allocation6 + $0x78] sm:$0xff] %vm1595_vm14, %v7761_v58 }
 0x7d2   : > { %v7769_v43 = vpop.permute.xlu1 %7768 }
 0x7d3   : > { %7785 = vst.msk [vmem:[#allocation6 + $0xf8] sm:$0xff] %vm1595_vm14, %v7769_v43  ;;  %v7561_v59 = vpop.permute.xlu0 %7560 }
 0x7d4   : > { %7581 = vst.msk [vmem:[#allocation6 + $0x70] sm:$0xff] %vm1962_vm4, %v7561_v59 }
 0x7d6   : > { %v7569_v60 = vpop.permute.xlu1 %7568 }
 0x7d7   : > { %7585 = vst.msk [vmem:[#allocation6 + $0xf0] sm:$0xff] %vm1962_vm4, %v7569_v60  ;;  %v7833_v62 = vpop.permute.xlu0 %7832 }
 0x7d8   : > { %7853 = vst.msk [vmem:[#allocation6 + $0x78] sm:$0xff] %vm1668_vm0, %v7833_v62 }
 0x7da   : > { %v7841_v63 = vpop.permute.xlu1 %7840 }
 0x7db   : > { %7857 = vst.msk [vmem:[#allocation6 + $0xf8] sm:$0xff] %vm1668_vm0, %v7841_v63  ;;  %v7633_v1 = vpop.permute.xlu0 %7632 }
 0x7dc   : > { %7653 = vst.msk [vmem:[#allocation6 + $0x70] sm:$0xff] %vm2035_vm5, %v7633_v1 }
 0x7de   : > { %v7641_v2 = vpop.permute.xlu1 %7640 }
 0x7df   : > { %7657 = vst.msk [vmem:[#allocation6 + $0xf0] sm:$0xff] %vm2035_vm5, %v7641_v2  ;;  %v7873_v3 = vld [vmem:[#allocation6 + $0x78] sm:$0xff] }
 0x7e0   : > { %8367 = vmatprep.mubr.msk.f32.mxu0 %vm5428_vm7, %v7873_v3 }
 0x7e2   : > { %v7889_v4 = vld [vmem:[#allocation6 + $0xf8] sm:$0xff] }
 0x7e3   : > { %v7872_v6 = vld [vmem:[#allocation6 + $0x70] sm:$0xff]  ;;  %8371 = vmatprep.mubr.msk.f32.mxu1 %vm5428_vm7, %v7889_v4 }
 0x7e4   : > { %8160 = vmatmul.mubr.f32.gmra.mrb[46].mxu0 %v7872_v6 }
 0x7e6   : > { %v8545_v7 = vpop.f32.mrb[40].mxu1  ;;  %v7888_v18 = vld [vmem:[#allocation6 + $0xf0] sm:$0xff] }
 0x7e7   : > { %v8546_v9 = vpop.f32.mrb[41].mxu1  ;;  %8180 = vmatmul.mubr.f32.gmra.mrb[54].mxu1 %v7888_v18 }
 0x7e8   : > { %v8547_v10 = vadd.f32 %v8546_v9, %v8545_v7 }
 0x7ea   : > { %v8062_v30 = vadd.f32 %v8547_v10, %v12247_v22 }
 0x7ff   : > { %v8548_v11 = vpop.f32.mrb[42].mxu1 }
 0x800   : > { %v8549_v24 = vpop.f32.mrb[43].mxu1 }
 0x801   : > { %v8550_v12 = vadd.f32 %v8549_v24, %v8548_v11 }
 0x803   : > { %v8067_v48 = vadd.f32 %v8550_v12, %v12247_v22 }
 0x81a   : > { %v8551_v13 = vpop.f32.mrb[44].mxu1 }
 0x81b   : > { %v8552_v14 = vpop.f32.mrb[45].mxu1 }
 0x81c   : > { %v8553_v15 = vadd.f32 %v8552_v14, %v8551_v13 }
 0x81e   : > { %v8072_v63 = vadd.f32 %v8553_v15, %v12247_v22 }
 0x832   : > { %v8554_v16 = vpop.f32.mrb[46].mxu1 }
 0x833   : > { %v8555_v17 = vpop.f32.mrb[47].mxu1 }
 0x834   : > { %v12242_v19 = vadd.f32 %v8555_v17, %v8554_v16 }
 0x836   : > { %v8077_v13 = vadd.f32 %v12242_v19, %v12247_v22 }
 0x857   : > { %v8146_v26 = vpop.f32.mrb[40].mxu0 }
 0x858   : > { %v8147_v27 = vadd.f32 %v8146_v26, %v8042_v23  ;;  %v8148_v29 = vpop.f32.mrb[41].mxu0 }
 0x85a   : > { %vm8185_vm14 = vcmp.gt.f32.partialorder %v8147_v27, 0.0  ;;  %v8195_v33 = vmul.f32 %v12251_v0, %v8147_v27  ;;  %v8166_v34 = vpop.f32.mrb[48].mxu1 }
 0x85b   : > { %v8167_v35 = vadd.f32 %v8166_v34, %v8062_v30  ;;  %v8168_v36 = vpop.f32.mrb[49].mxu1 }
 0x85c   : > { %v8203_v47 = vsel %vm8185_vm14, %v8147_v27, %v8195_v33 }
 0x85d   : > { %v8211_v37 = vadd.f32 %v8203_v47, %v11577_v54  ;;  %vm8189_vm15 = vcmp.gt.f32.partialorder %v8167_v35, 0.0  ;;  %v8199_v38 = vmul.f32 %v12251_v0, %v8167_v35  ;;  %v8047_v54 = vadd.f32 %v12195_v8, %v12247_v22 }
 0x85f   : > { %v8227_v31 = vcombine.high %v8211_v37, %v8211_v37  ;;  %8243 = vst.msk [vmem:[%s12259_s26] sm:$0xf] %vm1424_vm6, %v8211_v37  ;;  %v8207_v40 = vsel %vm8189_vm15, %v8167_v35, %v8199_v38 }
 0x860   : > { %v8215_v61 = vadd.f32 %v8207_v40, %v11617_v32 }
 0x861   : > { %8244 = vst.msk [vmem:[%s12259_s26 + $0x4] sm:$0xf] %vm1424_vm6, %v8227_v31 }
 0x862   : > { %v8231_v42 = vcombine.high %v8215_v61, %v8215_v61  ;;  %8251 = vst.msk [vmem:[%s12259_s26 + $0x20] sm:$0xf] %vm1424_vm6, %v8215_v61 }
 0x864   : > { %8252 = vst.msk [vmem:[%s12259_s26 + $0x24] sm:$0xf] %vm1424_vm6, %v8231_v42 }
 0x87b   : > { %v8151_v44 = vpop.f32.mrb[42].mxu0 }
 0x87c   : > { %v8152_v45 = vadd.f32 %v8151_v44, %v8047_v54  ;;  %v8153_v46 = vpop.f32.mrb[43].mxu0 }
 0x87e   : > { %vm8186_vm0 = vcmp.gt.f32.partialorder %v8152_v45, 0.0  ;;  %v8196_v32 = vmul.f32 %v12251_v0, %v8152_v45  ;;  %v8171_v20 = vpop.f32.mrb[50].mxu1 }
 0x87f   : > { %v8172_v50 = vadd.f32 %v8171_v20, %v8067_v48  ;;  %v8173_v51 = vpop.f32.mrb[51].mxu1 }
 0x880   : > { %v8204_v25 = vsel %vm8186_vm0, %v8152_v45, %v8196_v32 }
 0x881   : > { %v8212_v52 = vadd.f32 %v8204_v25, %v11586_v5  ;;  %vm8190_vm1 = vcmp.gt.f32.partialorder %v8172_v50, 0.0  ;;  %v8200_v8 = vmul.f32 %v12251_v0, %v8172_v50  ;;  %v8052_v5 = vadd.f32 %v12213_v28, %v12247_v22 }
 0x883   : > { %v8228_v41 = vcombine.high %v8212_v52, %v8212_v52  ;;  %8245 = vst.msk [vmem:[%s12259_s26 + $0x8] sm:$0xf] %vm1424_vm6, %v8212_v52  ;;  %v8208_v56 = vsel %vm8190_vm1, %v8172_v50, %v8200_v8 }
 0x884   : > { %v8216_v58 = vadd.f32 %v8208_v56, %v11627_v39 }
 0x885   : > { %8246 = vst.msk [vmem:[%s12259_s26 + $0xc] sm:$0xf] %vm1424_vm6, %v8228_v41 }
 0x886   : > { %v8232_v43 = vcombine.high %v8216_v58, %v8216_v58  ;;  %8253 = vst.msk [vmem:[%s12259_s26 + $0x28] sm:$0xf] %vm1424_vm6, %v8216_v58 }
 0x888   : > { %8254 = vst.msk [vmem:[%s12259_s26 + $0x2c] sm:$0xf] %vm1424_vm6, %v8232_v43 }
 0x89f   : > { %v8156_v59 = vpop.f32.mrb[44].mxu0 }
 0x8a0   : > { %v8157_v60 = vadd.f32 %v8156_v59, %v8052_v5  ;;  %v8158_v62 = vpop.f32.mrb[45].mxu0 }
 0x8a2   : > { %vm8187_vm2 = vcmp.gt.f32.partialorder %v8157_v60, 0.0  ;;  %v8197_v39 = vmul.f32 %v12251_v0, %v8157_v60  ;;  %v8176_v1 = vpop.f32.mrb[52].mxu1 }
 0x8a3   : > { %v8177_v2 = vadd.f32 %v8176_v1, %v8072_v63  ;;  %v8178_v3 = vpop.f32.mrb[53].mxu1 }
 0x8a4   : > { %v8205_v4 = vsel %vm8187_vm2, %v8157_v60, %v8197_v39 }
 0x8a5   : > { %v8213_v6 = vadd.f32 %v8205_v4, %v11596_v57  ;;  %vm8191_vm3 = vcmp.gt.f32.partialorder %v8177_v2, 0.0  ;;  %v8201_v28 = vmul.f32 %v12251_v0, %v8177_v2  ;;  %v8057_v57 = vadd.f32 %v12229_v53, %v12247_v22 }
 0x8a7   : > { %v8229_v7 = vcombine.high %v8213_v6, %v8213_v6  ;;  %8247 = vst.msk [vmem:[%s12259_s26 + $0x10] sm:$0xf] %vm1424_vm6, %v8213_v6  ;;  %v8209_v18 = vsel %vm8191_vm3, %v8177_v2, %v8201_v28 }
 0x8a8   : > { %v8217_v9 = vadd.f32 %v8209_v18, %v11640_v49 }
 0x8a9   : > { %8248 = vst.msk [vmem:[%s12259_s26 + $0x14] sm:$0xf] %vm1424_vm6, %v8229_v7 }
 0x8aa   : > { %v8233_v10 = vcombine.high %v8217_v9, %v8217_v9  ;;  %8255 = vst.msk [vmem:[%s12259_s26 + $0x30] sm:$0xf] %vm1424_vm6, %v8217_v9 }
 0x8ac   : > { %8256 = vst.msk [vmem:[%s12259_s26 + $0x34] sm:$0xf] %vm1424_vm6, %v8233_v10 }
 0x8b7   : > { %v8161_v11 = vpop.f32.mrb[46].mxu0 }
 0x8b8   : > { %v8162_v24 = vadd.f32 %v8161_v11, %v8057_v57  ;;  %v8163_v12 = vpop.f32.mrb[47].mxu0 }
 0x8ba   : > { %vm8188_vm4 = vcmp.gt.f32.partialorder %v8162_v24, 0.0  ;;  %v8198_v49 = vmul.f32 %v12251_v0, %v8162_v24  ;;  %v8181_v14 = vpop.f32.mrb[54].mxu1 }
 0x8bb   : > { %v8182_v15 = vadd.f32 %v8181_v14, %v8077_v13  ;;  %v8183_v16 = vpop.f32.mrb[55].mxu1 }
 0x8bc   : > { %v8206_v17 = vsel %vm8188_vm4, %v8162_v24, %v8198_v49 }
 0x8bd   : > { %v8214_v23 = vadd.f32 %v8206_v17, %v11607_v21  ;;  %vm8192_vm5 = vcmp.gt.f32.partialorder %v8182_v15, 0.0  ;;  %v8202_v53 = vmul.f32 %v12251_v0, %v8182_v15 }
 0x8bf   : > { %v8230_v26 = vcombine.high %v8214_v23, %v8214_v23  ;;  %8249 = vst.msk [vmem:[%s12259_s26 + $0x18] sm:$0xf] %vm1424_vm6, %v8214_v23  ;;  %v8210_v27 = vsel %vm8192_vm5, %v8182_v15, %v8202_v53 }
 0x8c0   : > { %v8218_v19 = vadd.f32 %v8210_v27, %v11653_v55 }
 0x8c1   : > { %8250 = vst.msk [vmem:[%s12259_s26 + $0x1c] sm:$0xf] %vm1424_vm6, %v8230_v26 }
 0x8c2   : > { %v8234_v22 = vcombine.high %v8218_v19, %v8218_v19  ;;  %8257 = vst.msk [vmem:[%s12259_s26 + $0x38] sm:$0xf] %vm1424_vm6, %v8218_v19 }
 0x8c4   : > { %8258 = vst.msk [vmem:[%s12259_s26 + $0x3c] sm:$0xf] %vm1424_vm6, %v8234_v22 }
 0x8c5 PF: > { %s23_s21 = sadd.s32 1, %s9543_s21  }
 0x8c6   : > { %p20_p4 = scmp.ge.s32.totalorder %s23_s21, 4  }
 0x8c8   :  { %22 = sbr.rel (!%p20_p4) target bundleno = 3 (0x3), region = 122 }

</bundles_post_ra>
